<compile_context>
chip_gen: v7x
topology: tpu7x:2x2x1
jax: 0.10.0
libtpu: 0.0.40
codegen_flags: <defaults>
</compile_context>

<pallas_src>
import math
from functools import partial

import numpy as np
import jax
import jax.numpy as jnp
from jax import lax
from jax.experimental import pallas as pl
from jax.experimental.pallas import tpu as pltpu

NEG = -1.0e9      # finite stand-in for -inf (avoids NaN inside log-sum-exp)
W_TILE = 128      # windows per lane-tile (the lane axis of every vector op)


# ----------------------------------------------------------------------------
# Setup glue: mirror gtn.make_kernel_graph as dense tensors (plain numpy).
# ----------------------------------------------------------------------------
def build_kernel_tensors(lexicon, num_classes, blank_idx, blank_optional=True,
                         spike=False):
    """Dense encoding of gtn.make_kernel_graph for every lexicon entry.

    Returns:
      mask01: (K, NP, NP, C) f32, mask01[k, dst, src, c] = 1.0 iff kernel k
              has an arc src -> dst labelled c (arc weights are all 0 because
              learn_params=False), else 0.0.  NP = N rounded up to a multiple
              of 8 so every (dst, src) slab is sublane-aligned.
      start:  (K, NP) log-mask of start nodes (0 / NEG).
      final:  (K, NP) log-mask of accepting nodes (0 / NEG).
      n_states: true number of FSA nodes N (<= NP).
    """
    K = len(lexicon)
    N = max(2 * len(tok) + 1 for tok in lexicon)
    NP = -(-N // 8) * 8
    mask01 = np.zeros((K, NP, NP, num_classes), dtype=np.float32)
    start = np.full((K, NP), NEG, dtype=np.float32)
    final = np.full((K, NP), NEG, dtype=np.float32)
    for k, tok in enumerate(lexicon):
        n = len(tok)
        start[k, 0] = 0.0
        if n == 0:
            final[k, 0] = 0.0
        mask01[k, 0, 0, blank_idx] = 1.0                       # blank loop @ start
        for i, c in enumerate(tok):
            if blank_optional and i + 1 == n:
                final[k, 2 * i + 1] = 0.0
            if i + 1 == n:
                final[k, 2 * i + 2] = 0.0
            mask01[k, 2 * i + 1, 2 * i, c] = 1.0               # emit c
            if not spike:
                mask01[k, 2 * i + 1, 2 * i + 1, c] = 1.0       # repeat c
            mask01[k, 2 * i + 2, 2 * i + 1, blank_idx] = 1.0   # blank after c
            mask01[k, 2 * i + 2, 2 * i + 2, blank_idx] = 1.0   # blank loop
            if i > 0 and blank_optional and tok[i - 1] != c:
                mask01[k, 2 * i + 1, 2 * i - 1, c] = 1.0       # skip the blank
    return mask01, start, final, N


# ----------------------------------------------------------------------------
# Pallas kernel: forward (or viterbi) recursion for one (k-tile, b, w-tile).
# ----------------------------------------------------------------------------
def conv_transduce_kernel(mask_ref, start_ref, final_ref, xw_ref, out_ref, *,
                          kernel_size, k_tile, n_pad, w_tile, viterbi,
                          inv_scale):
    # mask_ref : (KT*NP*NP, C) bf16, rows ordered (k, dst, src), values 0/1
    # start_ref: (KT, NP, 1)   f32 log start-node mask
    # final_ref: (KT, NP, 1)   f32 log accepting-node mask
    # xw_ref   : (1, ksize, C, W_TILE) f32, xw[0, s, c, w] = x[b, w*stride+s, c]
    # out_ref  : (1, KT, W_TILE) f32 per-kernel, per-window scores
    f32 = jnp.float32
    mask = mask_ref[...].astype(f32)            # hoisted: one upcast per grid step

    def reduce_lse(x, axis):
        if viterbi:
            return jnp.max(x, axis=axis)
        m = jnp.max(x, axis=axis, keepdims=True)
        return jnp.squeeze(m, axis=axis) + jnp.log(jnp.sum(jnp.exp(x - m), axis=axis))

    # alpha[k, n, w]: log forward weight of node n for window w (lane axis = w).
    alpha = jnp.broadcast_to(start_ref[...], (k_tile, n_pad, w_tile))

    for s in range(kernel_size):                               # static unroll
        emit = xw_ref[0, s, :, :]                              # (C, W) lane-dense
        m = jnp.max(emit, axis=0, keepdims=True)               # (1, W)
        ee = jnp.exp(emit - m)                                 # (C, W)
        # Label reduction as a single MXU matmul:
        #   logsumexp_c(trans[k,d,s,c] + emit[c,w]) = log(mask01 @ exp(emit-m)) + m
        # (For these kernel graphs each (src,dst) pair carries at most one
        #  label, so this is also exact for the viterbi/max semiring.)
        sraw = jnp.dot(mask, ee, preferred_element_type=f32)   # (KT*NP*NP, W)
        sraw = sraw.reshape(k_tile, n_pad, n_pad, w_tile)      # (KT, dst, src, W)
        log_s = jnp.where(sraw > 0.0,
                          jnp.log(jnp.maximum(sraw, 1e-30)),
                          NEG) + m[None, None]                 # (KT, dst, src, W)
        scores = alpha[:, None, :, :] + log_s                  # bcast over dst
        alpha = reduce_lse(scores, axis=2)                     # (KT, NP, W)

    v = alpha + final_ref[...]                                 # (KT, NP, W)
    # One lane-dense slab store per grid step; 1/scale fused in.
    out_ref[...] = (reduce_lse(v, axis=1) * inv_scale)[None]   # (1, KT, W)


# ----------------------------------------------------------------------------
# Wrapper: padding, normalization, window gather, pallas_call plumbing.
# ----------------------------------------------------------------------------
def conv_transduce_1d(inputs, lexicon, kernel_size, stride, blank_idx,
                      blank_optional=True, scale="none", normalize="none",
                      viterbi=False, spike=False):
    assert kernel_size % 2 == 1, "Use an odd kernel size for easy padding."
    if normalize not in ("none", "pre", "post"):
        raise ValueError(f"Unknown normalization {normalize}")
    if scale == "none":
        scale_val = 1.0
    elif scale == "sqrt":
        scale_val = math.sqrt(kernel_size)
    elif scale == "linear":
        scale_val = float(kernel_size)
    else:
        raise ValueError(f"Unknown scale {scale}")

    B, T, C = inputs.shape
    pad = kernel_size // 2
    x = jnp.pad(inputs.astype(jnp.float32), ((0, 0), (pad, pad), (0, 0)))
    if normalize == "pre":
        x = jax.nn.log_softmax(x, axis=2)
    T_pad = T + 2 * pad
    if T_pad < kernel_size:
        raise ValueError(f"Input ({T_pad}) too short for kernel ({kernel_size})")

    mask01, start, final, _ = build_kernel_tensors(
        lexicon, C, blank_idx, blank_optional, spike)
    K, NP = start.shape
    num_windows = (T_pad - kernel_size) // stride + 1

    # ---- window tiling: windows on the lane axis ---------------------------
    w_pad = -(-num_windows // W_TILE) * W_TILE
    num_w_tiles = w_pad // W_TILE
    t_need = (w_pad - 1) * stride + kernel_size
    extra_t = max(0, t_need - T_pad)
    x = jnp.pad(x, ((0, 0), (0, extra_t), (0, 0)))             # zero tail (unused windows)
    x_ct = jnp.transpose(x, (0, 2, 1))                         # (B, C, T_tot)
    T_tot = x_ct.shape[2]
    # xw[b, s, c, w] = x[b, w*stride + s, c]: built once by XLA via static
    # (strided) slices so every in-kernel emission slice is static + lane-dense.
    xw = jnp.stack(
        [lax.slice(x_ct, (0, 0, s),
                   (B, C, min(T_tot, s + (w_pad - 1) * stride + 1)),
                   (1, 1, stride))
         for s in range(kernel_size)], axis=1)                 # (B, ksize, C, w_pad)

    # ---- kernel (K) tiling so the dense mask/intermediates fit VMEM --------
    if K * NP * NP * W_TILE * 4 <= (2 << 20) or K <= 8:
        k_tile, k_pad = K, K
    else:
        budget = max(8, (((2 << 20) // (NP * NP * W_TILE * 4)) // 8) * 8)
        k_tile = min(64, budget)
        k_pad = -(-K // k_tile) * k_tile
    num_k_tiles = k_pad // k_tile
    if k_pad != K:
        mask01 = np.pad(mask01, ((0, k_pad - K), (0, 0), (0, 0), (0, 0)))
        start = np.pad(start, ((0, k_pad - K), (0, 0)), constant_values=NEG)
        final = np.pad(final, ((0, k_pad - K), (0, 0)), constant_values=NEG)

    # Mask values are exactly 0/1 -> bf16 storage is exact (upcast in-kernel).
    mask_flat = jnp.asarray(mask01.reshape(k_pad * NP * NP, C), dtype=jnp.bfloat16)
    start_j = jnp.asarray(start.reshape(k_pad, NP, 1))
    final_j = jnp.asarray(final.reshape(k_pad, NP, 1))

    kernel = partial(conv_transduce_kernel, kernel_size=kernel_size,
                     k_tile=k_tile, n_pad=NP, w_tile=W_TILE, viterbi=viterbi,
                     inv_scale=1.0 / scale_val)

    # Rough VMEM budget: double-buffered blocks + a few live 4-D temporaries.
    blk_bytes = (2 * (k_tile * NP * NP * C * 2
                      + kernel_size * C * W_TILE * 4
                      + k_tile * W_TILE * 4
                      + 2 * k_tile * NP * 4)
                 + 4 * k_tile * NP * NP * W_TILE * 4)
    vmem_limit = int(min(64 << 20, max(32 << 20, 2 * blk_bytes)))

    out_kw = pl.pallas_call(
        kernel,
        out_shape=jax.ShapeDtypeStruct((B, k_pad, w_pad), jnp.float32),
        grid_spec=pltpu.PrefetchScalarGridSpec(
            num_scalar_prefetch=0,
            grid=(num_k_tiles, B, num_w_tiles),   # k-tile outermost: mask reused
            in_specs=[
                pl.BlockSpec((k_tile * NP * NP, C), lambda kk, b, j: (kk, 0)),
                pl.BlockSpec((k_tile, NP, 1), lambda kk, b, j: (kk, 0, 0)),
                pl.BlockSpec((k_tile, NP, 1), lambda kk, b, j: (kk, 0, 0)),
                pl.BlockSpec((1, kernel_size, C, W_TILE),
                             lambda kk, b, j: (b, 0, 0, j)),
            ],
            out_specs=pl.BlockSpec((1, k_tile, W_TILE),
                                   lambda kk, b, j: (b, kk, j)),
        ),
        compiler_params=pltpu.CompilerParams(
            dimension_semantics=("parallel", "parallel", "parallel"),
            vmem_limit_bytes=vmem_limit),
    )(mask_flat, start_j, final_j, xw)

    outputs = jnp.transpose(out_kw[:, :K, :num_windows], (0, 2, 1))  # (B, W, K)
    if normalize == "post":
        outputs = jax.nn.softmax(outputs, axis=2)
    if normalize == "pre":
        outputs = jnp.exp(outputs)
    return outputs


# ----------------------------------------------------------------------------
# Plain numpy reference (same math, float64) for a correctness check.
# ----------------------------------------------------------------------------
def _np_lse(x, axis):
    m = x.max(axis, keepdims=True)
    return np.squeeze(m, axis) + np.log(np.exp(x - m).sum(axis))


def ref_conv_transduce(x_np, lexicon, kernel_size, stride, blank_idx):
    pad = kernel_size // 2
    xp = np.pad(x_np.astype(np.float64), ((0, 0), (pad, pad), (0, 0)))
    mask01, start, final, _ = build_kernel_tensors(lexicon, x_np.shape[-1], blank_idx)
    trans = np.where(mask01 > 0, 0.0, NEG).astype(np.float64)
    start = start.astype(np.float64)
    final = final.astype(np.float64)
    B, T_pad, C = xp.shape
    K, NP = start.shape
    W = (T_pad - kernel_size) // stride + 1
    out = np.zeros((B, W, K), dtype=np.float64)
    for b in range(B):
        for w in range(W):
            alpha = start.copy()
            for s in range(kernel_size):
                emit = xp[b, w * stride + s]                   # (C,)
                scores = trans + alpha[:, None, :, None] + emit[None, None, None, :]
                alpha = _np_lse(_np_lse(scores, -1), -1)
            out[b, w] = _np_lse(alpha + final, -1)
    return out


if __name__ == "__main__":
    # small deterministic example consistent with the module's forward()
    B, T, C = 2, 16, 8
    blank_idx = C - 1
    kernel_size = 3
    lexicon = [[1], [2, 3], [0, 1, 2]]          # min_kernel_size = 3 <= kernel_size

    key = jax.random.PRNGKey(0)
    x = jax.random.normal(key, (B, T, C), dtype=jnp.float32)

    # stride = 1
    out = conv_transduce_1d(x, lexicon, kernel_size, 1, blank_idx)
    out = jax.block_until_ready(out)
    ref = ref_conv_transduce(np.asarray(x), lexicon, kernel_size, 1, blank_idx)
    assert out.shape == ref.shape, (out.shape, ref.shape)
    np.testing.assert_allclose(np.asarray(out), ref, rtol=1e-4, atol=1e-4)

    # stride = 2 (exercises the strided window gather path)
    out2 = conv_transduce_1d(x, lexicon, kernel_size, 2, blank_idx)
    out2 = jax.block_until_ready(out2)
    ref2 = ref_conv_transduce(np.asarray(x), lexicon, kernel_size, 2, blank_idx)
    assert out2.shape == ref2.shape, (out2.shape, ref2.shape)
    np.testing.assert_allclose(np.asarray(out2), ref2, rtol=1e-4, atol=1e-4)

    print("KERNEL_OK")
</pallas_src>

<mosaic_0001>
module attributes {stable_mosaic.version = 11 : i64} {
  func.func @conv_transduce_kernel(%arg0: i32, %arg1: i32, %arg2: i32, %arg3: memref<192x8xbf16, #tpu.memory_space<vmem>>, %arg4: memref<3x8x1xf32, #tpu.memory_space<vmem>>, %arg5: memref<3x8x1xf32, #tpu.memory_space<vmem>>, %arg6: memref<1x3x8x128xf32, #tpu.memory_space<vmem>>, %arg7: memref<1x3x128xf32, #tpu.memory_space<vmem>>) attributes {dimension_semantics = [#tpu.dimension_semantics<parallel>, #tpu.dimension_semantics<parallel>, #tpu.dimension_semantics<parallel>], iteration_bounds = array<i64: 1, 2, 1>, scalar_prefetch = 0 : i64, scratch_operands = 0 : i64, tpu.core_type = #tpu.core_type<tc>, window_params = [{transform_indices = @transform_0, window_bounds = array<i64: 192, 8>}, {transform_indices = @transform_1, window_bounds = array<i64: 3, 8, 1>}, {transform_indices = @transform_2, window_bounds = array<i64: 3, 8, 1>}, {transform_indices = @transform_3, window_bounds = array<i64: 1, 3, 8, 128>}, {transform_indices = @transform_4, window_bounds = array<i64: 1, 3, 128>}]} {
    %c0 = arith.constant 0 : index
    %c0_0 = arith.constant 0 : index
    %0 = vector.load %arg3[%c0, %c0_0] : memref<192x8xbf16, #tpu.memory_space<vmem>>, vector<192x8xbf16>
    %1 = arith.extf %0 : vector<192x8xbf16> to vector<192x8xf32>
    %c0_1 = arith.constant 0 : index
    %c0_2 = arith.constant 0 : index
    %c0_3 = arith.constant 0 : index
    %2 = vector.load %arg4[%c0_1, %c0_2, %c0_3] : memref<3x8x1xf32, #tpu.memory_space<vmem>>, vector<3x8x1xf32>
    %3 = vector.shape_cast %2 : vector<3x8x1xf32> to vector<3x8x1xf32>
    %4 = vector.broadcast %3 : vector<3x8x1xf32> to vector<3x8x128xf32>
    %c0_4 = arith.constant 0 : index
    %c0_5 = arith.constant 0 : index
    %c0_6 = arith.constant 0 : index
    %c0_7 = arith.constant 0 : index
    %5 = vector.load %arg6[%c0_4, %c0_5, %c0_6, %c0_7] : memref<1x3x8x128xf32, #tpu.memory_space<vmem>>, vector<1x1x8x128xf32>
    %6 = vector.shape_cast %5 : vector<1x1x8x128xf32> to vector<8x128xf32>
    %cst = arith.constant dense<0xFF800000> : vector<128xf32>
    %7 = vector.multi_reduction <maximumf>, %6, %cst [0] : vector<8x128xf32> to vector<128xf32>
    %8 = vector.shape_cast %7 : vector<128xf32> to vector<1x128xf32>
    %9 = vector.broadcast %8 : vector<1x128xf32> to vector<8x128xf32>
    %10 = arith.subf %6, %9 : vector<8x128xf32>
    %11 = math.exp %10 : vector<8x128xf32>
    %cst_8 = arith.constant dense<0.000000e+00> : vector<192x128xf32>
    %12 = tpu.matmul %1, %11, %cst_8 {dimension_numbers = #tpu.dot_dimension_numbers<[1], [0], [0], [1], [0, 0, 1, 1], [], []>} : vector<192x8xf32>, vector<8x128xf32>, vector<192x128xf32> -> vector<192x128xf32>
    %13 = vector.shape_cast %12 : vector<192x128xf32> to vector<3x8x8x128xf32>
    %cst_9 = arith.constant 0.000000e+00 : f32
    %14 = vector.broadcast %cst_9 : f32 to vector<3x8x8x128xf32>
    %15 = arith.cmpf ogt, %13, %14 : vector<3x8x8x128xf32>
    %cst_10 = arith.constant 1.000000e-30 : f32
    %16 = vector.broadcast %cst_10 : f32 to vector<3x8x8x128xf32>
    %17 = arith.maximumf %13, %16 : vector<3x8x8x128xf32>
    %18 = math.log %17 : vector<3x8x8x128xf32>
    %cst_11 = arith.constant -1.000000e+09 : f32
    %19 = vector.broadcast %cst_11 : f32 to vector<3x8x8x128xf32>
    %20 = arith.select %15, %18, %19 : vector<3x8x8x128xi1>, vector<3x8x8x128xf32>
    %21 = vector.shape_cast %8 : vector<1x128xf32> to vector<1x1x1x128xf32>
    %22 = vector.broadcast %21 : vector<1x1x1x128xf32> to vector<3x8x8x128xf32>
    %23 = arith.addf %20, %22 : vector<3x8x8x128xf32>
    %24 = vector.shape_cast %4 : vector<3x8x128xf32> to vector<3x1x8x128xf32>
    %25 = vector.broadcast %24 : vector<3x1x8x128xf32> to vector<3x8x8x128xf32>
    %26 = arith.addf %25, %23 : vector<3x8x8x128xf32>
    %cst_12 = arith.constant dense<0xFF800000> : vector<3x8x128xf32>
    %27 = vector.multi_reduction <maximumf>, %26, %cst_12 [2] : vector<3x8x8x128xf32> to vector<3x8x128xf32>
    %28 = vector.shape_cast %27 : vector<3x8x128xf32> to vector<3x8x1x128xf32>
    %29 = vector.shape_cast %28 : vector<3x8x1x128xf32> to vector<3x8x128xf32>
    %30 = vector.broadcast %28 : vector<3x8x1x128xf32> to vector<3x8x8x128xf32>
    %31 = arith.subf %26, %30 : vector<3x8x8x128xf32>
    %32 = math.exp %31 : vector<3x8x8x128xf32>
    %cst_13 = arith.constant dense<0.000000e+00> : vector<3x8x128xf32>
    %33 = vector.multi_reduction <add>, %32, %cst_13 [2] : vector<3x8x8x128xf32> to vector<3x8x128xf32>
    %34 = math.log %33 : vector<3x8x128xf32>
    %35 = arith.addf %29, %34 : vector<3x8x128xf32>
    %c0_14 = arith.constant 0 : index
    %c1 = arith.constant 1 : index
    %c0_15 = arith.constant 0 : index
    %c0_16 = arith.constant 0 : index
    %36 = vector.load %arg6[%c0_14, %c1, %c0_15, %c0_16] : memref<1x3x8x128xf32, #tpu.memory_space<vmem>>, vector<1x1x8x128xf32>
    %37 = vector.shape_cast %36 : vector<1x1x8x128xf32> to vector<8x128xf32>
    %cst_17 = arith.constant dense<0xFF800000> : vector<128xf32>
    %38 = vector.multi_reduction <maximumf>, %37, %cst_17 [0] : vector<8x128xf32> to vector<128xf32>
    %39 = vector.shape_cast %38 : vector<128xf32> to vector<1x128xf32>
    %40 = vector.broadcast %39 : vector<1x128xf32> to vector<8x128xf32>
    %41 = arith.subf %37, %40 : vector<8x128xf32>
    %42 = math.exp %41 : vector<8x128xf32>
    %cst_18 = arith.constant dense<0.000000e+00> : vector<192x128xf32>
    %43 = tpu.matmul %1, %42, %cst_18 {dimension_numbers = #tpu.dot_dimension_numbers<[1], [0], [0], [1], [0, 0, 1, 1], [], []>} : vector<192x8xf32>, vector<8x128xf32>, vector<192x128xf32> -> vector<192x128xf32>
    %44 = vector.shape_cast %43 : vector<192x128xf32> to vector<3x8x8x128xf32>
    %cst_19 = arith.constant 0.000000e+00 : f32
    %45 = vector.broadcast %cst_19 : f32 to vector<3x8x8x128xf32>
    %46 = arith.cmpf ogt, %44, %45 : vector<3x8x8x128xf32>
    %cst_20 = arith.constant 1.000000e-30 : f32
    %47 = vector.broadcast %cst_20 : f32 to vector<3x8x8x128xf32>
    %48 = arith.maximumf %44, %47 : vector<3x8x8x128xf32>
    %49 = math.log %48 : vector<3x8x8x128xf32>
    %cst_21 = arith.constant -1.000000e+09 : f32
    %50 = vector.broadcast %cst_21 : f32 to vector<3x8x8x128xf32>
    %51 = arith.select %46, %49, %50 : vector<3x8x8x128xi1>, vector<3x8x8x128xf32>
    %52 = vector.shape_cast %39 : vector<1x128xf32> to vector<1x1x1x128xf32>
    %53 = vector.broadcast %52 : vector<1x1x1x128xf32> to vector<3x8x8x128xf32>
    %54 = arith.addf %51, %53 : vector<3x8x8x128xf32>
    %55 = vector.shape_cast %35 : vector<3x8x128xf32> to vector<3x1x8x128xf32>
    %56 = vector.broadcast %55 : vector<3x1x8x128xf32> to vector<3x8x8x128xf32>
    %57 = arith.addf %56, %54 : vector<3x8x8x128xf32>
    %cst_22 = arith.constant dense<0xFF800000> : vector<3x8x128xf32>
    %58 = vector.multi_reduction <maximumf>, %57, %cst_22 [2] : vector<3x8x8x128xf32> to vector<3x8x128xf32>
    %59 = vector.shape_cast %58 : vector<3x8x128xf32> to vector<3x8x1x128xf32>
    %60 = vector.shape_cast %59 : vector<3x8x1x128xf32> to vector<3x8x128xf32>
    %61 = vector.broadcast %59 : vector<3x8x1x128xf32> to vector<3x8x8x128xf32>
    %62 = arith.subf %57, %61 : vector<3x8x8x128xf32>
    %63 = math.exp %62 : vector<3x8x8x128xf32>
    %cst_23 = arith.constant dense<0.000000e+00> : vector<3x8x128xf32>
    %64 = vector.multi_reduction <add>, %63, %cst_23 [2] : vector<3x8x8x128xf32> to vector<3x8x128xf32>
    %65 = math.log %64 : vector<3x8x128xf32>
    %66 = arith.addf %60, %65 : vector<3x8x128xf32>
    %c0_24 = arith.constant 0 : index
    %c2 = arith.constant 2 : index
    %c0_25 = arith.constant 0 : index
    %c0_26 = arith.constant 0 : index
    %67 = vector.load %arg6[%c0_24, %c2, %c0_25, %c0_26] : memref<1x3x8x128xf32, #tpu.memory_space<vmem>>, vector<1x1x8x128xf32>
    %68 = vector.shape_cast %67 : vector<1x1x8x128xf32> to vector<8x128xf32>
    %cst_27 = arith.constant dense<0xFF800000> : vector<128xf32>
    %69 = vector.multi_reduction <maximumf>, %68, %cst_27 [0] : vector<8x128xf32> to vector<128xf32>
    %70 = vector.shape_cast %69 : vector<128xf32> to vector<1x128xf32>
    %71 = vector.broadcast %70 : vector<1x128xf32> to vector<8x128xf32>
    %72 = arith.subf %68, %71 : vector<8x128xf32>
    %73 = math.exp %72 : vector<8x128xf32>
    %cst_28 = arith.constant dense<0.000000e+00> : vector<192x128xf32>
    %74 = tpu.matmul %1, %73, %cst_28 {dimension_numbers = #tpu.dot_dimension_numbers<[1], [0], [0], [1], [0, 0, 1, 1], [], []>} : vector<192x8xf32>, vector<8x128xf32>, vector<192x128xf32> -> vector<192x128xf32>
    %75 = vector.shape_cast %74 : vector<192x128xf32> to vector<3x8x8x128xf32>
    %cst_29 = arith.constant 0.000000e+00 : f32
    %76 = vector.broadcast %cst_29 : f32 to vector<3x8x8x128xf32>
    %77 = arith.cmpf ogt, %75, %76 : vector<3x8x8x128xf32>
    %cst_30 = arith.constant 1.000000e-30 : f32
    %78 = vector.broadcast %cst_30 : f32 to vector<3x8x8x128xf32>
    %79 = arith.maximumf %75, %78 : vector<3x8x8x128xf32>
    %80 = math.log %79 : vector<3x8x8x128xf32>
    %cst_31 = arith.constant -1.000000e+09 : f32
    %81 = vector.broadcast %cst_31 : f32 to vector<3x8x8x128xf32>
    %82 = arith.select %77, %80, %81 : vector<3x8x8x128xi1>, vector<3x8x8x128xf32>
    %83 = vector.shape_cast %70 : vector<1x128xf32> to vector<1x1x1x128xf32>
    %84 = vector.broadcast %83 : vector<1x1x1x128xf32> to vector<3x8x8x128xf32>
    %85 = arith.addf %82, %84 : vector<3x8x8x128xf32>
    %86 = vector.shape_cast %66 : vector<3x8x128xf32> to vector<3x1x8x128xf32>
    %87 = vector.broadcast %86 : vector<3x1x8x128xf32> to vector<3x8x8x128xf32>
    %88 = arith.addf %87, %85 : vector<3x8x8x128xf32>
    %cst_32 = arith.constant dense<0xFF800000> : vector<3x8x128xf32>
    %89 = vector.multi_reduction <maximumf>, %88, %cst_32 [2] : vector<3x8x8x128xf32> to vector<3x8x128xf32>
    %90 = vector.shape_cast %89 : vector<3x8x128xf32> to vector<3x8x1x128xf32>
    %91 = vector.shape_cast %90 : vector<3x8x1x128xf32> to vector<3x8x128xf32>
    %92 = vector.broadcast %90 : vector<3x8x1x128xf32> to vector<3x8x8x128xf32>
    %93 = arith.subf %88, %92 : vector<3x8x8x128xf32>
    %94 = math.exp %93 : vector<3x8x8x128xf32>
    %cst_33 = arith.constant dense<0.000000e+00> : vector<3x8x128xf32>
    %95 = vector.multi_reduction <add>, %94, %cst_33 [2] : vector<3x8x8x128xf32> to vector<3x8x128xf32>
    %96 = math.log %95 : vector<3x8x128xf32>
    %97 = arith.addf %91, %96 : vector<3x8x128xf32>
    %c0_34 = arith.constant 0 : index
    %c0_35 = arith.constant 0 : index
    %c0_36 = arith.constant 0 : index
    %98 = vector.load %arg5[%c0_34, %c0_35, %c0_36] : memref<3x8x1xf32, #tpu.memory_space<vmem>>, vector<3x8x1xf32>
    %99 = vector.broadcast %98 : vector<3x8x1xf32> to vector<3x8x128xf32>
    %100 = arith.addf %97, %99 : vector<3x8x128xf32>
    %cst_37 = arith.constant dense<0xFF800000> : vector<3x128xf32>
    %101 = vector.multi_reduction <maximumf>, %100, %cst_37 [1] : vector<3x8x128xf32> to vector<3x128xf32>
    %102 = vector.shape_cast %101 : vector<3x128xf32> to vector<3x1x128xf32>
    %103 = vector.shape_cast %102 : vector<3x1x128xf32> to vector<3x128xf32>
    %104 = vector.broadcast %102 : vector<3x1x128xf32> to vector<3x8x128xf32>
    %105 = arith.subf %100, %104 : vector<3x8x128xf32>
    %106 = math.exp %105 : vector<3x8x128xf32>
    %cst_38 = arith.constant dense<0.000000e+00> : vector<3x128xf32>
    %107 = vector.multi_reduction <add>, %106, %cst_38 [1] : vector<3x8x128xf32> to vector<3x128xf32>
    %108 = math.log %107 : vector<3x128xf32>
    %109 = arith.addf %103, %108 : vector<3x128xf32>
    %cst_39 = arith.constant 1.000000e+00 : f32
    %110 = vector.broadcast %cst_39 : f32 to vector<3x128xf32>
    %111 = arith.mulf %109, %110 : vector<3x128xf32>
    %112 = vector.shape_cast %111 : vector<3x128xf32> to vector<1x3x128xf32>
    %c0_40 = arith.constant 0 : index
    %c0_41 = arith.constant 0 : index
    %c0_42 = arith.constant 0 : index
    %113 = vector.load %arg7[%c0_40, %c0_41, %c0_42] : memref<1x3x128xf32, #tpu.memory_space<vmem>>, vector<1x3x128xf32>
    tpu.vector_store %arg7[%c0_40, %c0_41, %c0_42], %112 {strides = array<i32>} : memref<1x3x128xf32, #tpu.memory_space<vmem>>, vector<1x3x128xf32>,
    return
  }
  func.func @transform_0(%arg0: i32, %arg1: i32, %arg2: i32) -> (i32, i32) {
    %c0_i32 = arith.constant 0 : i32
    %c0_i32_0 = arith.constant 0 : i32
    return %arg0, %c0_i32 : i32, i32
  }
  func.func @transform_1(%arg0: i32, %arg1: i32, %arg2: i32) -> (i32, i32, i32) {
    %c0_i32 = arith.constant 0 : i32
    %c0_i32_0 = arith.constant 0 : i32
    %c0_i32_1 = arith.constant 0 : i32
    return %arg0, %c0_i32, %c0_i32_0 : i32, i32, i32
  }
  func.func @transform_2(%arg0: i32, %arg1: i32, %arg2: i32) -> (i32, i32, i32) {
    %c0_i32 = arith.constant 0 : i32
    %c0_i32_0 = arith.constant 0 : i32
    %c0_i32_1 = arith.constant 0 : i32
    return %arg0, %c0_i32, %c0_i32_0 : i32, i32, i32
  }
  func.func @transform_3(%arg0: i32, %arg1: i32, %arg2: i32) -> (i32, i32, i32, i32) {
    %c0_i32 = arith.constant 0 : i32
    %c0_i32_0 = arith.constant 0 : i32
    %c0_i32_1 = arith.constant 0 : i32
    return %arg1, %c0_i32, %c0_i32_0, %arg2 : i32, i32, i32, i32
  }
  func.func @transform_4(%arg0: i32, %arg1: i32, %arg2: i32) -> (i32, i32, i32) {
    %c0_i32 = arith.constant 0 : i32
    return %arg1, %arg0, %arg2 : i32, i32, i32
  }
}

</mosaic_0001>

<bundles_post_ra>
// kernel: tpu_custom_call.1
= control target key start
LH: loop header
LB: loop body
LE: loop exit
PB: predicated region body
PF: predicated region fallthrough
CT: control target
= control target key end

     0   :  { %s8714_s15 = smov 0   ;;  %s8716_s16 = smov 0   ;;  %s13466_s0 = inlined_call_operand.vmem [shape: bf16[192,8], index: 0, kind: input, shape index: {}]   ;;  %s13467_s1 = inlined_call_operand.vmem [shape: f32[3,8,1], index: 1, kind: input, shape index: {}]   ;;  %s13468_s2 = inlined_call_operand.vmem [shape: f32[3,8,1], index: 2, kind: input, shape index: {}]   ;;  %s13469_s3 = inlined_call_operand.vmem [shape: f32[2,3,8,128], index: 3, kind: input, shape index: {}]   ;;  %s13470_s4 = inlined_call_operand.vmem [shape: f32[2,3,128], index: 4, kind: output, shape index: {}]  }
   0x1   :  { %s8718_s17 = smov 0  }
   0x2 LB: > { %s29_s18 = sadd.s32 1, %s8682_s16  ;;  %p7143_p0 = scmp.ge.s32.totalorder %s8686_s17, 1  ;;  %s8686_s17 = sphi %s8718_s17, %s14_s17   ;;  %s8682_s16 = sphi %s8716_s16, %s13762_s16   ;;  %s8678_s15 = sphi %s8714_s15, %s13761_s15  }
   0x3   : > { %p31_p1 = scmp.ge.s32.totalorder %s29_s18, 2  ;;  %p223_p2 = scmp.lt.s32.totalorder %s8686_s17, 3 }
   0x5   : > { %s13764_s18 = smov (%p31_p1, %s29_s18), 0  ;;  %p224_p3 = pnand %p7143_p0, %p223_p2 }
   0x7   : > { %227 = sbr.rel (%p224_p3) target bundleno = 1584 (0x630), region = 36 }
   0xe   : > { %p290_p4 = scmp.lt.s32.totalorder %s8678_s15, 1  ;;  %v7223_v0 = vld [vmem:[%s13466_s0] sm:$0xff]   ;;  %vm384_vm0 = vcmask 64512   ;;  %v7275_v1 = vld [vmem:[%s13466_s0 + $0x30] sm:$0xff]   ;;  %v8688_v4 = vmov 0   ;;  %v357_v5 = vld [vmem:[%s13467_s1 + $0x8] sm:$0xff] }
   0xf   : > { %v8738_v2 = vunpack.c.l.bf16 %v7223_v0  ;;  %v8740_v3 = vunpack.c.l.bf16 %v7275_v1  ;;  %7499 = vset.pattern.permute.xlu1 %v8688_v4  ;;  %7498 = vset.pattern.permute.xlu0 %v8688_v4  ;;  %v356_v6 = vld [vmem:[%s13467_s1] sm:$0xff]  ;;  %v358_v7 = vld [vmem:[%s13467_s1 + $0x10] sm:$0xff]  ;;  %v6683_v8 = vld [vmem:[%s13468_s2 + $0x8] sm:$0xff]  ;;  %v8785_v40 = vunpack.c.h.bf16 %v7223_v0  ;;  %v8787_v41 = vunpack.c.h.bf16 %v7275_v1 }
  0x10   : > { %s13766_s15 = smov (!%p290_p4, %s8678_s15), 1  ;;  %366 = vperm.xlu0 %7498, %v357_v5   ;;  %361 = vperm.xlu1 %7499, %v356_v6   ;;  %v6684_v18 = vld [vmem:[%s13468_s2 + $0x10] sm:$0xff]  ;;  %v6682_v19 = vld [vmem:[%s13468_s2] sm:$0xff]  ;;  %v7270_v38 = vld [vmem:[%s13466_s0 + $0x8] sm:$0xff]  }
  0x11   : > { %7358 = vmatprep.mubr.msk.f32.mxu0 %vm384_vm0, %v8738_v2  ;;  %7376 = vmatprep.mubr.msk.f32.mxu1 %vm384_vm0, %v8740_v3  ;;  %s7472_s23 = smul.u32 24, %s13766_s15  ;;  %v7276_v39 = vld [vmem:[%s13466_s0 + $0x38] sm:$0xff]   ;;  %v8789_v43 = vunpack.c.l.bf16 %v7270_v38  ;;  %v7271_v46 = vld [vmem:[%s13466_s0 + $0x10] sm:$0xff]   ;;  %v7277_v47 = vld [vmem:[%s13466_s0 + $0x40] sm:$0xff]   ;;  %v7229_v49 = vunpack.c.h.bf16 %v7270_v38  ;;  %s7145_s11 = sshll.u32 %s13766_s15, 2 }
  0x12   : > { %v8791_v44 = vunpack.c.l.bf16 %v7276_v39  ;;  %v8803_v50 = vunpack.c.h.bf16 %v7276_v39  ;;  %v7232_v51 = vunpack.c.l.bf16 %v7271_v46  ;;  %v8809_v52 = vunpack.c.l.bf16 %v7277_v47  ;;  %v7272_v53 = vld [vmem:[%s13466_s0 + $0x18] sm:$0xff]   ;;  %v7278_v54 = vld [vmem:[%s13466_s0 + $0x48] sm:$0xff]   ;;  %v7273_v59 = vld [vmem:[%s13466_s0 + $0x20] sm:$0xff]   ;;  %s307_s14 = scalar_lea.vmem %s13470_s4, %s7145_s11 }
  0x13   : > { %s297_s30 = scalar_lea.vmem %s13469_s3, %s7472_s23  ;;  %v7233_v55 = vunpack.c.h.bf16 %v7271_v46  ;;  %v8820_v56 = vunpack.c.h.bf16 %v7277_v47  ;;  %v7236_v57 = vunpack.c.l.bf16 %v7272_v53  ;;  %v8825_v58 = vunpack.c.l.bf16 %v7278_v54  ;;  %v7279_v60 = vld [vmem:[%s13466_s0 + $0x50] sm:$0xff]   ;;  %v7274_v1 = vld [vmem:[%s13466_s0 + $0x28] sm:$0xff]   ;;  %v7280_v4 = vld [vmem:[%s13466_s0 + $0x58] sm:$0xff]  }
  0x14   : > { %v374_v9 = vld [vmem:[%s297_s30] sm:$0xff]  ;;  %v7170_v10 = vld [vmem:[%s297_s30 + $0x8] sm:$0xff]  ;;  %v7195_v11 = vld [vmem:[%s297_s30 + $0x10] sm:$0xff]  ;;  %371 = vperm.xlu0 %7498, %v358_v7   ;;  %6691 = vperm.xlu1 %7499, %v6683_v8   ;;  %v7237_v61 = vunpack.c.h.bf16 %v7272_v53  ;;  %v7261_v62 = vunpack.c.h.bf16 %v7278_v54  ;;  %v7240_v63 = vunpack.c.l.bf16 %v7273_v59  ;;  %v7264_v0 = vunpack.c.l.bf16 %v7279_v60 }
  0x15   : > { %v375_v12 = vrot.slane %v374_v9, 4  ;;  %v1244_v13 = vrot.slane %v7170_v10, 4  ;;  %v3968_v14 = vrot.slane %v7195_v11, 4  ;;  %v7241_v5 = vunpack.c.h.bf16 %v7273_v59 }
  0x16   : > { %v7265_v6 = vunpack.c.h.bf16 %v7279_v60  ;;  %v7244_v7 = vunpack.c.l.bf16 %v7274_v1  ;;  %v7268_v8 = vunpack.c.l.bf16 %v7280_v4 }
  0x17   : > { %v376_v15 = vmax.f32 %v374_v9, %v375_v12  ;;  %v1245_v16 = vmax.f32 %v7170_v10, %v1244_v13  ;;  %v3969_v17 = vmax.f32 %v7195_v11, %v3968_v14 }
  0x18   : > { %6695 = vperm.xlu0 %7498, %v6684_v18   ;;  %6687 = vperm.xlu1 %7499, %v6682_v19  }
  0x19   : > { %v377_v20 = vrot.slane %v376_v15, 2  ;;  %v1246_v21 = vrot.slane %v1245_v16, 2  ;;  %v3970_v22 = vrot.slane %v3969_v17, 2 }
  0x1b   : > { %v378_v23 = vmax.f32 %v376_v15, %v377_v20  ;;  %v1247_v24 = vmax.f32 %v1245_v16, %v1246_v21  ;;  %v3971_v25 = vmax.f32 %v3969_v17, %v3970_v22 }
  0x1d   : > { %v379_v26 = vrot.slane %v378_v23, 1  ;;  %v1248_v27 = vrot.slane %v1247_v24, 1  ;;  %v3972_v28 = vrot.slane %v3971_v25, 1 }
  0x1f   : > { %v8770_v29 = vmax.f32 %v378_v23, %v379_v26  ;;  %v8772_v30 = vmax.f32 %v1247_v24, %v1248_v27  ;;  %v8774_v31 = vmax.f32 %v3971_v25, %v3972_v28 }
  0x21   : > { %13565 = vst [vmem:[#allocation2_spill] sm:$0xff] %v8772_v30  ;;  %13566 = vst [vmem:[#allocation3_spill] sm:$0xff] %v8774_v31  ;;  %v381_v32 = vsub.f32 %v374_v9, %v8770_v29  ;;  %v1250_v33 = vsub.f32 %v7170_v10, %v8772_v30  ;;  %v3974_v34 = vsub.f32 %v7195_v11, %v8774_v31  ;;  %v7245_v9 = vunpack.c.h.bf16 %v7274_v1 }
  0x22   : > { %v7269_v10 = vunpack.c.h.bf16 %v7280_v4 }
  0x23   : > { %v382_v35 = vmul.f32 1.442695, %v381_v32  ;;  %v1251_v36 = vmul.f32 1.442695, %v1250_v33  ;;  %v3975_v37 = vmul.f32 1.442695, %v3974_v34 }
  0x25   : > { %7500 = vpow2.f32 %v382_v35 }
  0x26   : > { %7502 = vpow2.f32 %v1251_v36 }
  0x27   : > { %7504 = vpow2.f32 %v3975_v37 }
  0x2f   : > { %v7501_v42 = vpop.eup %7500 }
  0x30   : > { %v7503_v45 = vpop.eup %7502  ;;  %7356 = vmatprep.subr.mxu0 %v7501_v42  ;;  %7470 = vmatprep.subr.mxu1 %v7501_v42 }
  0x31   : > { %v7505_v48 = vpop.eup %7504  ;;  %7357 = vmatpush3.msra.mxu0 %v7501_v42  ;;  %7471 = vmatpush3.msra.mxu1 %v7501_v42 }
  0x32   : > { %7359 = vmatmul.mubr.msk.f32.vlgmr.msra.gmra.mrb[0].mxu0 %vm384_vm0, %v8785_v40  ;;  %7377 = vmatmul.mubr.msk.f32.vlgmr.msra.gmra.mrb[0].mxu1 %vm384_vm0, %v8787_v41 }
  0x33   : > { %7361 = vmatprep.mubr.msk.f32.mxu0 %vm384_vm0, %v8789_v43  ;;  %7379 = vmatprep.mubr.msk.f32.mxu1 %vm384_vm0, %v8791_v44 }
  0x34   : > { %7394 = vmatprep.subr.mxu1 %v7503_v45  ;;  %7432 = vmatprep.subr.mxu0 %v7505_v48 }
  0x35   : > { %7395 = vmatpush3.msra.mxu1 %v7503_v45  ;;  %7433 = vmatpush3.msra.mxu0 %v7505_v48 }
  0x36   : > { %7362 = vmatmul.mubr.msk.f32.gmra.mrb[2].mxu0 %vm384_vm0, %v7229_v49  ;;  %7380 = vmatmul.mubr.msk.f32.gmra.mrb[2].mxu1 %vm384_vm0, %v8803_v50 }
  0x37   : > { %7364 = vmatprep.mubr.msk.f32.mxu0 %vm384_vm0, %v7232_v51  ;;  %7382 = vmatprep.mubr.msk.f32.mxu1 %vm384_vm0, %v8809_v52 }
  0x3a   : > { %7365 = vmatmul.mubr.msk.f32.gmra.mrb[4].mxu0 %vm384_vm0, %v7233_v55  ;;  %7383 = vmatmul.mubr.msk.f32.gmra.mrb[4].mxu1 %vm384_vm0, %v8820_v56 }
  0x3b   : > { %7367 = vmatprep.mubr.msk.f32.mxu0 %vm384_vm0, %v7236_v57  ;;  %7385 = vmatprep.mubr.msk.f32.mxu1 %vm384_vm0, %v8825_v58 }
  0x3e   : > { %7368 = vmatmul.mubr.msk.f32.gmra.mrb[6].mxu0 %vm384_vm0, %v7237_v61  ;;  %7386 = vmatmul.mubr.msk.f32.gmra.mrb[6].mxu1 %vm384_vm0, %v7261_v62 }
  0x3f   : > { %7370 = vmatprep.mubr.msk.f32.mxu0 %vm384_vm0, %v7240_v63  ;;  %7388 = vmatprep.mubr.msk.f32.mxu1 %vm384_vm0, %v7264_v0 }
  0x42   : > { %7371 = vmatmul.mubr.msk.f32.gmra.mrb[8].mxu0 %vm384_vm0, %v7241_v5  ;;  %7389 = vmatmul.mubr.msk.f32.gmra.mrb[8].mxu1 %vm384_vm0, %v7265_v6 }
  0x43   : > { %7373 = vmatprep.mubr.msk.f32.mxu0 %vm384_vm0, %v7244_v7  ;;  %7391 = vmatprep.mubr.msk.f32.mxu1 %vm384_vm0, %v7268_v8 }
  0x46   : > { %7374 = vmatmul.mubr.msk.f32.gmra.mrb[10].mxu0 %vm384_vm0, %v7245_v9  ;;  %7392 = vmatmul.mubr.msk.f32.gmra.mrb[10].mxu1 %vm384_vm0, %v7269_v10 }
  0x47   : > { %7396 = vmatprep.mubr.msk.f32.mxu1 %vm384_vm0, %v8738_v2  ;;  %7434 = vmatprep.mubr.msk.f32.mxu0 %vm384_vm0, %v8738_v2 }
  0x4a   : > { %7397 = vmatmul.mubr.msk.f32.vlgmr.msra.gmra.mrb[12].mxu1 %vm384_vm0, %v8785_v40  ;;  %7435 = vmatmul.mubr.msk.f32.vlgmr.msra.gmra.mrb[12].mxu0 %vm384_vm0, %v8785_v40 }
  0x4b   : > { %7399 = vmatprep.mubr.msk.f32.mxu1 %vm384_vm0, %v8789_v43  ;;  %7437 = vmatprep.mubr.msk.f32.mxu0 %vm384_vm0, %v8789_v43 }
  0x4e   : > { %7400 = vmatmul.mubr.msk.f32.gmra.mrb[14].mxu1 %vm384_vm0, %v7229_v49  ;;  %7438 = vmatmul.mubr.msk.f32.gmra.mrb[14].mxu0 %vm384_vm0, %v7229_v49 }
  0x4f   : > { %7402 = vmatprep.mubr.msk.f32.mxu1 %vm384_vm0, %v7232_v51  ;;  %7440 = vmatprep.mubr.msk.f32.mxu0 %vm384_vm0, %v7232_v51 }
  0x52   : > { %7403 = vmatmul.mubr.msk.f32.gmra.mrb[16].mxu1 %vm384_vm0, %v7233_v55  ;;  %7441 = vmatmul.mubr.msk.f32.gmra.mrb[16].mxu0 %vm384_vm0, %v7233_v55 }
  0x53   : > { %7405 = vmatprep.mubr.msk.f32.mxu1 %vm384_vm0, %v7236_v57  ;;  %7443 = vmatprep.mubr.msk.f32.mxu0 %vm384_vm0, %v7236_v57 }
  0x56   : > { %7406 = vmatmul.mubr.msk.f32.gmra.mrb[18].mxu1 %vm384_vm0, %v7237_v61  ;;  %7444 = vmatmul.mubr.msk.f32.gmra.mrb[18].mxu0 %vm384_vm0, %v7237_v61 }
  0x57   : > { %7408 = vmatprep.mubr.msk.f32.mxu1 %vm384_vm0, %v7240_v63  ;;  %7446 = vmatprep.mubr.msk.f32.mxu0 %vm384_vm0, %v7240_v63 }
  0x5a   : > { %7409 = vmatmul.mubr.msk.f32.gmra.mrb[20].mxu1 %vm384_vm0, %v7241_v5  ;;  %7447 = vmatmul.mubr.msk.f32.gmra.mrb[20].mxu0 %vm384_vm0, %v7241_v5 }
  0x5b   : > { %7411 = vmatprep.mubr.msk.f32.mxu1 %vm384_vm0, %v7244_v7  ;;  %7449 = vmatprep.mubr.msk.f32.mxu0 %vm384_vm0, %v7244_v7 }
  0x5e   : > { %7412 = vmatmul.mubr.msk.f32.gmra.mrb[22].mxu1 %vm384_vm0, %v7245_v9  ;;  %7450 = vmatmul.mubr.msk.f32.gmra.mrb[22].mxu0 %vm384_vm0, %v7245_v9 }
  0x5f   : > { %7414 = vmatprep.mubr.msk.f32.mxu1 %vm384_vm0, %v8740_v3  ;;  %7452 = vmatprep.mubr.msk.f32.mxu0 %vm384_vm0, %v8740_v3 }
  0x62   : > { %7415 = vmatmul.mubr.msk.f32.gmra.mrb[24].mxu1 %vm384_vm0, %v8787_v41  ;;  %7453 = vmatmul.mubr.msk.f32.gmra.mrb[24].mxu0 %vm384_vm0, %v8787_v41 }
  0x63   : > { %7417 = vmatprep.mubr.msk.f32.mxu1 %vm384_vm0, %v8791_v44  ;;  %7455 = vmatprep.mubr.msk.f32.mxu0 %vm384_vm0, %v8791_v44 }
  0x66   : > { %7418 = vmatmul.mubr.msk.f32.gmra.mrb[26].mxu1 %vm384_vm0, %v8803_v50  ;;  %7456 = vmatmul.mubr.msk.f32.gmra.mrb[26].mxu0 %vm384_vm0, %v8803_v50 }
  0x67   : > { %7420 = vmatprep.mubr.msk.f32.mxu1 %vm384_vm0, %v8809_v52  ;;  %7458 = vmatprep.mubr.msk.f32.mxu0 %vm384_vm0, %v8809_v52 }
  0x6a   : > { %7421 = vmatmul.mubr.msk.f32.gmra.mrb[28].mxu1 %vm384_vm0, %v8820_v56  ;;  %7459 = vmatmul.mubr.msk.f32.gmra.mrb[28].mxu0 %vm384_vm0, %v8820_v56 }
  0x6b   : > { %7423 = vmatprep.mubr.msk.f32.mxu1 %vm384_vm0, %v8825_v58  ;;  %7461 = vmatprep.mubr.msk.f32.mxu0 %vm384_vm0, %v8825_v58 }
  0x6e   : > { %7424 = vmatmul.mubr.msk.f32.gmra.mrb[30].mxu1 %vm384_vm0, %v7261_v62  ;;  %7462 = vmatmul.mubr.msk.f32.gmra.mrb[30].mxu0 %vm384_vm0, %v7261_v62 }
  0x6f   : > { %7426 = vmatprep.mubr.msk.f32.mxu1 %vm384_vm0, %v7264_v0  ;;  %7464 = vmatprep.mubr.msk.f32.mxu0 %vm384_vm0, %v7264_v0 }
  0x72   : > { %7427 = vmatmul.mubr.msk.f32.gmra.mrb[32].mxu1 %vm384_vm0, %v7265_v6  ;;  %7465 = vmatmul.mubr.msk.f32.gmra.mrb[32].mxu0 %vm384_vm0, %v7265_v6 }
  0x73   : > { %7429 = vmatprep.mubr.msk.f32.mxu1 %vm384_vm0, %v7268_v8  ;;  %7467 = vmatprep.mubr.msk.f32.mxu0 %vm384_vm0, %v7268_v8 }
  0x76   : > { %7430 = vmatmul.mubr.msk.f32.gmra.mrb[34].mxu1 %vm384_vm0, %v7269_v10  ;;  %7468 = vmatmul.mubr.msk.f32.gmra.mrb[34].mxu0 %vm384_vm0, %v7269_v10 }
 0x105   : > { %v8923_v2 = vpop.f32.mrb[0].mxu0  ;;  %v7378_v3 = vpop.f32.mrb[0].mxu1 }
 0x106   : > { %v679_v11 = vmax.f32 %v7378_v3, 1e-30  ;;  %v8925_v12 = vpop.f32.mrb[1].mxu0  ;;  %v583_v13 = vpop.f32.mrb[1].mxu1  ;;  %v667_v20 = vmax.f32 %v8923_v2, 1e-30 }
 0x107   : > { %v678_v14 = vmax.f32 %v583_v13, 1e-30  ;;  %v666_v22 = vmax.f32 %v8925_v12, 1e-30  ;;  %vm655_vm1 = vcmp.gt.f32.partialorder %v7378_v3, 0.0  ;;  %vm654_vm2 = vcmp.gt.f32.partialorder %v583_v13, 0.0  ;;  %v8984_v13 = vpop.permute.xlu0 %366 }
 0x108   : > { %7506 = vlog2.f32 %v679_v11  ;;  %vm643_vm5 = vcmp.gt.f32.partialorder %v8923_v2, 0.0  ;;  %vm642_vm6 = vcmp.gt.f32.partialorder %v8925_v12, 0.0 }
 0x109   : > { %v8927_v15 = vpop.f32.mrb[2].mxu0  ;;  %v8929_v16 = vpop.f32.mrb[2].mxu1  ;;  %7508 = vlog2.f32 %v678_v14 }
 0x10a   : > { %v8931_v17 = vpop.f32.mrb[3].mxu0  ;;  %v593_v18 = vpop.f32.mrb[3].mxu1  ;;  %v681_v19 = vmax.f32 %v8929_v16, 1e-30  ;;  %v669_v25 = vmax.f32 %v8927_v15, 1e-30 }
 0x10b   : > { %v680_v21 = vmax.f32 %v593_v18, 1e-30  ;;  %v668_v28 = vmax.f32 %v8931_v17, 1e-30  ;;  %vm656_vm3 = vcmp.gt.f32.partialorder %v593_v18, 0.0  ;;  %vm657_vm4 = vcmp.gt.f32.partialorder %v8929_v16, 0.0 }
 0x10c   : > { %7510 = vlog2.f32 %v681_v19  ;;  %vm645_vm7 = vcmp.gt.f32.partialorder %v8927_v15, 0.0  ;;  %vm644_vm8 = vcmp.gt.f32.partialorder %v8931_v17, 0.0 }
 0x10d   : > { %v8936_v23 = vpop.f32.mrb[4].mxu0  ;;  %v8938_v24 = vpop.f32.mrb[4].mxu1  ;;  %7512 = vlog2.f32 %v680_v21 }
 0x10e   : > { %v8941_v26 = vpop.f32.mrb[5].mxu0  ;;  %v8943_v27 = vpop.f32.mrb[5].mxu1  ;;  %7514 = vlog2.f32 %v667_v20  ;;  %v671_v37 = vmax.f32 %v8936_v23, 1e-30  ;;  %v683_v4 = vmax.f32 %v8938_v24, 1e-30 }
 0x10f   : > { %7516 = vlog2.f32 %v666_v22  ;;  %v670_v39 = vmax.f32 %v8941_v26, 1e-30  ;;  %vm647_vm9 = vcmp.gt.f32.partialorder %v8936_v23, 0.0  ;;  %v682_v20 = vmax.f32 %v8943_v27, 1e-30 }
 0x110   : > { %7518 = vlog2.f32 %v669_v25  ;;  %vm646_vm10 = vcmp.gt.f32.partialorder %v8941_v26, 0.0  ;;  %vm659_vm15 = vcmp.gt.f32.partialorder %v8938_v24, 0.0  ;;  %vm658_vm0 = vcmp.gt.f32.partialorder %v8943_v27, 0.0 }
 0x111   : > { %v8946_v32 = vpop.f32.mrb[6].mxu0  ;;  %v8948_v33 = vpop.f32.mrb[6].mxu1  ;;  %7520 = vlog2.f32 %v668_v28 }
 0x112   : > { %v8950_v34 = vpop.f32.mrb[7].mxu0  ;;  %v8952_v35 = vpop.f32.mrb[7].mxu1  ;;  %7522 = vlog2.f32 %v671_v37  ;;  %v673_v60 = vmax.f32 %v8946_v32, 1e-30  ;;  %vm649_vm13 = vcmp.gt.f32.partialorder %v8946_v32, 0.0 }
 0x113   : > { %v7507_v36 = vpop.eup %7506  ;;  %v672_v48 = vmax.f32 %v8950_v34, 1e-30  ;;  %7524 = vlog2.f32 %v670_v39  ;;  %vm648_vm11 = vcmp.gt.f32.partialorder %v8950_v34, 0.0 }
 0x114   : > { %v7509_v38 = vpop.eup %7508  ;;  %v717_v45 = vmul.f32 0.6931472, %v7507_v36 }
 0x115   : > { %v8956_v40 = vpop.f32.mrb[8].mxu0  ;;  %v8958_v41 = vpop.f32.mrb[8].mxu1  ;;  %v715_v46 = vmul.f32 0.6931472, %v7509_v38 }
 0x116   : > { %v7511_v42 = vpop.eup %7510  ;;  %v8960_v43 = vpop.f32.mrb[9].mxu0  ;;  %v675_v49 = vmax.f32 %v8956_v40, 1e-30  ;;  %v751_v58 = vsel %vm655_vm1, %v717_v45, -1e+09  ;;  %vm651_vm12 = vcmp.gt.f32.partialorder %v8956_v40, 0.0 }
 0x117   : > { %v8962_v44 = vpop.f32.mrb[9].mxu1  ;;  %v7513_v47 = vpop.eup %7512  ;;  %v721_v51 = vmul.f32 0.6931472, %v7511_v42  ;;  %v750_v59 = vsel %vm654_vm2, %v715_v46, -1e+09  ;;  %v775_v6 = vadd.f32 %v751_v58, %v8770_v29  ;;  %vm650_vm14 = vcmp.gt.f32.partialorder %v8960_v43, 0.0 }
 0x118   : > { %v7515_v50 = vpop.eup %7514  ;;  %v719_v52 = vmul.f32 0.6931472, %v7513_v47  ;;  %7526 = vlog2.f32 %v675_v49  ;;  %v774_v8 = vadd.f32 %v750_v59, %v8770_v29  ;;  %v674_v9 = vmax.f32 %v8960_v43, 1e-30 }
 0x119   : > { %v8966_v53 = vpop.f32.mrb[10].mxu0  ;;  %v7517_v54 = vpop.eup %7516  ;;  %v693_v62 = vmul.f32 0.6931472, %v7515_v50  ;;  %7528 = vlog2.f32 %v672_v48  ;;  %v753_v1 = vsel %vm657_vm4, %v721_v51, -1e+09  ;;  %v9001_v22 = vadd.f32 %v775_v6, %v8984_v13 }
 0x11a   : > { %v8968_v55 = vpop.f32.mrb[10].mxu1  ;;  %v8970_v56 = vpop.f32.mrb[11].mxu0  ;;  %v752_v63 = vsel %vm656_vm3, %v719_v52, -1e+09  ;;  %v691_v7 = vmul.f32 0.6931472, %v7517_v54  ;;  %7530 = vlog2.f32 %v673_v60  ;;  %v777_v16 = vadd.f32 %v753_v1, %v8770_v29 }
 0x11b   : > { %v7519_v57 = vpop.eup %7518  ;;  %v8974_v0 = vpop.f32.mrb[11].mxu1  ;;  %v776_v11 = vadd.f32 %v752_v63, %v8770_v29  ;;  %v739_v14 = vsel %vm643_vm5, %v693_v62, -1e+09  ;;  %7532 = vlog2.f32 %v674_v9  ;;  %v8998_v12 = vadd.f32 %v774_v8, %v8984_v13 }
 0x11c   : > { %v7521_v61 = vpop.eup %7520  ;;  %v697_v10 = vmul.f32 0.6931472, %v7519_v57  ;;  %v738_v21 = vsel %vm642_vm6, %v691_v7, -1e+09  ;;  %7534 = vlog2.f32 %v683_v4  ;;  %v763_v28 = vadd.f32 %v739_v14, %v8770_v29 }
 0x11d   : > { %v8978_v5 = vpop.f32.mrb[12].mxu1  ;;  %v695_v3 = vmul.f32 0.6931472, %v7521_v61  ;;  %v7523_v19 = vpop.eup %7522  ;;  %v9005_v17 = vadd.f32 %v776_v11, %v8984_v13  ;;  %v9009_v39 = vadd.f32 %v777_v16, %v8984_v13  ;;  %v882_v42 = vrot.slane %v8998_v12, 4 }
 0x11e   : > { %v8986_v2 = vpop.f32.mrb[13].mxu1  ;;  %v7525_v25 = vpop.eup %7524  ;;  %v741_v15 = vsel %vm645_vm7, %v697_v10, -1e+09  ;;  %v701_v38 = vmul.f32 0.6931472, %v7523_v19  ;;  %v888_v45 = vrot.slane %v9001_v22, 4  ;;  %v762_v46 = vadd.f32 %v738_v21, %v8770_v29 }
 0x11f   : > { %v740_v36 = vsel %vm644_vm8, %v695_v3, -1e+09  ;;  %v894_v48 = vrot.slane %v9005_v17, 4  ;;  %v765_v50 = vadd.f32 %v741_v15, %v8770_v29  ;;  %v883_v51 = vmax.f32 %v8998_v12, %v882_v42  ;;  %v9022_v61 = vpop.permute.xlu1 %361 }
 0x120   : > { %v889_v52 = vmax.f32 %v9001_v22, %v888_v45  ;;  %v900_v54 = vrot.slane %v9009_v39, 4  ;;  %v764_v57 = vadd.f32 %v740_v36, %v8770_v29  ;;  %v699_v58 = vmul.f32 0.6931472, %v7525_v25 }
 0x121   : > { %v8990_v18 = vpop.f32.mrb[14].mxu1  ;;  %v895_v60 = vmax.f32 %v9005_v17, %v894_v48  ;;  %v743_v40 = vsel %vm647_vm9, %v701_v38, -1e+09  ;;  %v884_v63 = vrot.slane %v883_v51, 2  ;;  %v9034_v11 = vadd.f32 %v762_v46, %v9022_v61 }
 0x122   : > { %v7527_v37 = vpop.eup %7526  ;;  %v890_v1 = vrot.slane %v889_v52, 2  ;;  %v901_v8 = vmax.f32 %v9009_v39, %v900_v54  ;;  %v742_v14 = vsel %vm646_vm10, %v699_v58, -1e+09  ;;  %v9055_v34 = vadd.f32 %v763_v28, %v9022_v61 }
 0x123   : > { %v709_v47 = vmul.f32 0.6931472, %v7527_v37  ;;  %v7529_v49 = vpop.eup %7528  ;;  %v896_v7 = vrot.slane %v895_v60, 2  ;;  %v885_v3 = vmax.f32 %v883_v51, %v884_v63  ;;  %v810_v51 = vrot.slane %v9034_v11, 4 }
 0x124   : > { %v7531_v4 = vpop.eup %7530  ;;  %v703_v6 = vmul.f32 0.6931472, %v7529_v49  ;;  %v891_v23 = vmax.f32 %v889_v52, %v890_v1  ;;  %v902_v21 = vrot.slane %v901_v8, 2  ;;  %v767_v43 = vadd.f32 %v743_v40, %v8770_v29 }
 0x125   : > { %v747_v59 = vsel %vm651_vm12, %v709_v47, -1e+09  ;;  %v7533_v9 = vpop.eup %7532  ;;  %v897_v19 = vmax.f32 %v895_v60, %v896_v7  ;;  %v705_v15 = vmul.f32 0.6931472, %v7531_v4  ;;  %v886_v37 = vrot.slane %v885_v3, 1 }
 0x126   : > { %v771_v62 = vadd.f32 %v747_v59, %v8770_v29  ;;  %v707_v16 = vmul.f32 0.6931472, %v7533_v9  ;;  %v9038_v25 = vpop.eup %7534  ;;  %v892_v38 = vrot.slane %v891_v23, 1  ;;  %v744_v42 = vsel %vm648_vm11, %v703_v6, -1e+09 }
 0x127   : > { %v898_v46 = vrot.slane %v897_v19, 1  ;;  %v903_v47 = vmax.f32 %v901_v8, %v902_v21  ;;  %v9047_v49 = vmax.f32 %v885_v3, %v886_v37  ;;  %v766_v59 = vadd.f32 %v742_v14, %v8770_v29 }
 0x128   : > { %v9031_v10 = vadd.f32 %v771_v62, %v8984_v13  ;;  %v746_v45 = vsel %vm650_vm14, %v707_v16, -1e+09  ;;  %v9050_v52 = vmax.f32 %v891_v23, %v892_v38  ;;  %v745_v63 = vsel %vm649_vm13, %v705_v15, -1e+09 }
 0x129   : > { %v770_v26 = vadd.f32 %v746_v45, %v8770_v29  ;;  %v9052_v54 = vmax.f32 %v897_v19, %v898_v46  ;;  %v904_v58 = vrot.slane %v903_v47, 1  ;;  %v966_v62 = vsub.f32 %v8998_v12, %v9047_v49 }
 0x12a   : > { %v864_v36 = vrot.slane %v9031_v10, 4  ;;  %v967_v4 = vsub.f32 %v9001_v22, %v9050_v52  ;;  %v9068_v6 = vadd.f32 %v764_v57, %v9022_v61  ;;  %v768_v28 = vadd.f32 %v744_v42, %v8770_v29 }
 0x12b   : > { %13567 = vst [vmem:[#allocation4_spill] sm:$0xff] %v9052_v54  ;;  %v9063_v1 = vmax.f32 %v903_v47, %v904_v58  ;;  %v9072_v40 = vadd.f32 %v770_v26, %v8984_v13  ;;  %v811_v8 = vmax.f32 %v9034_v11, %v810_v51  ;;  %v968_v32 = vsub.f32 %v9005_v17, %v9052_v54 }
 0x12c   : > { %v865_v48 = vmax.f32 %v9031_v10, %v864_v36  ;;  %v1002_v12 = vmul.f32 1.442695, %v966_v62  ;;  %v9078_v9 = vadd.f32 %v765_v50, %v9022_v61  ;;  %v816_v22 = vrot.slane %v9055_v34, 4 }
 0x12d   : > { %13568 = vst [vmem:[#allocation5_spill] sm:$0xff] %v9063_v1  ;;  %7536 = vlog2.f32 %v682_v20  ;;  %v969_v57 = vsub.f32 %v9009_v39, %v9063_v1  ;;  %v1004_v3 = vmul.f32 1.442695, %v967_v4  ;;  %v9086_v23 = vadd.f32 %v766_v59, %v9022_v61 }
 0x12e   : > { %v866_v60 = vrot.slane %v865_v48, 2  ;;  %v9089_v16 = vadd.f32 %v767_v43, %v9022_v61  ;;  %v817_v17 = vmax.f32 %v9055_v34, %v816_v22  ;;  %v822_v50 = vrot.slane %v9068_v6, 4 }
 0x12f   : > { %v769_v19 = vadd.f32 %v745_v63, %v8770_v29  ;;  %v858_v21 = vrot.slane %v9072_v40, 4  ;;  %v9096_v20 = vadd.f32 %v768_v28, %v9022_v61  ;;  %v812_v39 = vrot.slane %v811_v8, 2 }
 0x130   : > { %v867_v7 = vmax.f32 %v865_v48, %v866_v60  ;;  %7538 = vpow2.f32 %v1002_v12  ;;  %v1006_v15 = vmul.f32 1.442695, %v968_v32  ;;  %v823_v36 = vmax.f32 %v9068_v6, %v822_v50  ;;  %v9113_v32 = vpop.f32.mrb[15].mxu1 }
 0x131   : > { %v828_v37 = vrot.slane %v9078_v9, 4  ;;  %7540 = vpow2.f32 %v1004_v3  ;;  %v1008_v38 = vmul.f32 1.442695, %v969_v57  ;;  %v818_v42 = vrot.slane %v817_v17, 2 }
 0x132   : > { %v868_v14 = vrot.slane %v867_v7, 1  ;;  %v834_v45 = vrot.slane %v9086_v23, 4  ;;  %v824_v47 = vrot.slane %v823_v36, 2  ;;  %v840_v48 = vrot.slane %v9089_v16, 4 }
 0x133   : > { %v829_v26 = vmax.f32 %v9078_v9, %v828_v37  ;;  %v859_v51 = vmax.f32 %v9072_v40, %v858_v21  ;;  %v9107_v58 = vadd.f32 %v769_v19, %v9022_v61  ;;  %v846_v59 = vrot.slane %v9096_v20, 4 }
 0x134   : > { %v9101_v46 = vmax.f32 %v867_v7, %v868_v14  ;;  %v835_v43 = vmax.f32 %v9086_v23, %v834_v45  ;;  %7542 = vpow2.f32 %v1006_v15  ;;  %v813_v60 = vmax.f32 %v811_v8, %v812_v39 }
 0x135   : > { %v830_v62 = vrot.slane %v829_v26, 2  ;;  %v841_v63 = vmax.f32 %v9089_v16, %v840_v48  ;;  %7544 = vpow2.f32 %v1008_v38  ;;  %v819_v4 = vmax.f32 %v817_v17, %v818_v42 }
 0x136   : > { %13569 = vst [vmem:[#allocation6_spill] sm:$0xff] %v9101_v46  ;;  %v836_v28 = vrot.slane %v835_v43, 2  ;;  %v847_v7 = vmax.f32 %v9096_v20, %v846_v59  ;;  %v685_v12 = vmax.f32 %v8948_v33, 1e-30  ;;  %v963_v61 = vsub.f32 %v9031_v10, %v9101_v46 }
 0x137   : > { %v825_v22 = vmax.f32 %v823_v36, %v824_v47  ;;  %v842_v57 = vrot.slane %v841_v63, 2  ;;  %v7537_v3 = vpop.eup %7536  ;;  %v684_v8 = vmax.f32 %v8952_v35, 1e-30  ;;  %v831_v14 = vmax.f32 %v829_v26, %v830_v62 }
 0x138   : > { %v848_v50 = vrot.slane %v847_v7, 2  ;;  %v687_v19 = vmax.f32 %v8958_v41, 1e-30  ;;  %v860_v17 = vrot.slane %v859_v51, 2  ;;  %v814_v21 = vrot.slane %v813_v60, 1 }
 0x139   : > { %v686_v39 = vmax.f32 %v8962_v44, 1e-30  ;;  %v820_v15 = vrot.slane %v819_v4, 1  ;;  %v837_v37 = vmax.f32 %v835_v43, %v836_v28  ;;  %v852_v38 = vrot.slane %v9107_v58, 4 }
 0x13a   : > { %v7539_v42 = vpop.eup %7538  ;;  %7546 = vlog2.f32 %v685_v12  ;;  %v996_v10 = vmul.f32 1.442695, %v963_v61  ;;  %v826_v36 = vrot.slane %v825_v22, 1  ;;  %v843_v45 = vmax.f32 %v841_v63, %v842_v57 }
 0x13b   : > { %v7541_v47 = vpop.eup %7540  ;;  %7548 = vlog2.f32 %v684_v8  ;;  %v832_v26 = vrot.slane %v831_v14, 1  ;;  %v849_v48 = vmax.f32 %v847_v7, %v848_v50  ;;  %v861_v59 = vmax.f32 %v859_v51, %v860_v17 }
 0x13c   : > { %7550 = vlog2.f32 %v687_v19  ;;  %v9124_v62 = vmax.f32 %v813_v60, %v814_v21  ;;  %v9126_v43 = vmax.f32 %v819_v4, %v820_v15  ;;  %v838_v28 = vrot.slane %v837_v37, 1 }
 0x13d   : > { %7552 = vlog2.f32 %v686_v39  ;;  %v853_v12 = vmax.f32 %v9107_v58, %v852_v38  ;;  %v1098_v63 = vrot.slane %v7539_v42, 4  ;;  %v9129_v57 = vmax.f32 %v825_v22, %v826_v36 }
 0x13e   : > { %v7543_v61 = vpop.eup %7542  ;;  %7554 = vpow2.f32 %v996_v10  ;;  %v844_v8 = vrot.slane %v843_v45, 1  ;;  %v1104_v7 = vrot.slane %v7541_v47, 4  ;;  %v9131_v50 = vmax.f32 %v831_v14, %v832_v26 }
 0x13f   : > { %v7545_v31 = vpop.eup %7544  ;;  %v850_v19 = vrot.slane %v849_v48, 1  ;;  %v854_v51 = vrot.slane %v853_v12, 2  ;;  %v725_v60 = vmul.f32 0.6931472, %v9038_v25  ;;  %v723_v17 = vmul.f32 0.6931472, %v7537_v3 }
 0x140   : > { %v862_v4 = vrot.slane %v861_v59, 1  ;;  %v954_v21 = vsub.f32 %v9034_v11, %v9124_v62  ;;  %v1110_v39 = vrot.slane %v7543_v61, 4  ;;  %v9136_v15 = vmax.f32 %v837_v37, %v838_v28  ;;  %v9144_v25 = vpop.f32.mrb[16].mxu1 }
 0x141   : > { %v855_v38 = vmax.f32 %v853_v12, %v854_v51  ;;  %v955_v22 = vsub.f32 %v9055_v34, %v9126_v43  ;;  %v1099_v10 = vadd.f32 %v7539_v42, %v1098_v63  ;;  %v1116_v36 = vrot.slane %v7545_v31, 4 }
 0x142   : > { %v9140_v14 = vmax.f32 %v843_v45, %v844_v8  ;;  %v956_v26 = vsub.f32 %v9068_v6, %v9129_v57  ;;  %v1105_v3 = vadd.f32 %v7541_v47, %v1104_v7  ;;  %v9146_v46 = vmax.f32 %v849_v48, %v850_v19 }
 0x143   : > { %v856_v11 = vrot.slane %v855_v38, 1  ;;  %v957_v37 = vsub.f32 %v9078_v9, %v9131_v50  ;;  %v755_v34 = vsel %vm659_vm15, %v725_v60, -1e+09  ;;  %v754_v42 = vsel %vm658_vm0, %v723_v17, -1e+09 }
 0x144   : > { %v7547_v28 = vpop.eup %7546  ;;  %vm661_vm1 = vcmp.gt.f32.partialorder %v8948_v33, 0.0  ;;  %v978_v45 = vmul.f32 1.442695, %v954_v21  ;;  %vm660_vm2 = vcmp.gt.f32.partialorder %v8952_v35, 0.0  ;;  %v1111_v47 = vadd.f32 %v7543_v61, %v1110_v39 }
 0x145   : > { %v7549_v6 = vpop.eup %7548  ;;  %v9156_v48 = vmax.f32 %v855_v38, %v856_v11  ;;  %v958_v12 = vsub.f32 %v9086_v23, %v9136_v15  ;;  %v980_v9 = vmul.f32 1.442695, %v955_v22  ;;  %v1100_v8 = vrot.slane %v1099_v10, 2 }
 0x146   : > { %v7551_v63 = vpop.eup %7550  ;;  %v1117_v24 = vadd.f32 %v7545_v31, %v1116_v36  ;;  %v959_v27 = vsub.f32 %v9089_v16, %v9140_v14  ;;  %v982_v7 = vmul.f32 1.442695, %v956_v26  ;;  %v9162_v51 = vmax.f32 %v861_v59, %v862_v4 }
 0x147   : > { %v7553_v19 = vpop.eup %7552  ;;  %v1106_v60 = vrot.slane %v1105_v3, 2  ;;  %v960_v61 = vsub.f32 %v9096_v20, %v9146_v46  ;;  %v984_v17 = vmul.f32 1.442695, %v957_v37  ;;  %v729_v39 = vmul.f32 0.6931472, %v7547_v28 }
 0x148   : > { %13570 = vst [vmem:[#allocation7_spill] sm:$0xff] %v9162_v51  ;;  %v7555_v21 = vpop.eup %7554  ;;  %v727_v38 = vmul.f32 0.6931472, %v7549_v6  ;;  %v961_v23 = vsub.f32 %v9107_v58, %v9156_v48  ;;  %7556 = vpow2.f32 %v978_v45  ;;  %v733_v31 = vmul.f32 0.6931472, %v7551_v63 }
 0x149   : > { %v1112_v22 = vrot.slane %v1111_v47, 2  ;;  %7558 = vpow2.f32 %v980_v9  ;;  %v986_v16 = vmul.f32 1.442695, %v958_v12  ;;  %v1101_v36 = vadd.f32 %v1100_v8, %v1099_v10 }
 0x14a   : > { %v1118_v26 = vrot.slane %v1117_v24, 2  ;;  %7560 = vpow2.f32 %v982_v7  ;;  %v988_v59 = vmul.f32 1.442695, %v959_v27  ;;  %v962_v4 = vsub.f32 %v9072_v40, %v9162_v51  ;;  %v9179_v27 = vpop.f32.mrb[17].mxu1 }
 0x14b   : > { %v1107_v20 = vadd.f32 %v1106_v60, %v1105_v3  ;;  %7562 = vpow2.f32 %v984_v17  ;;  %v990_v11 = vmul.f32 1.442695, %v960_v61  ;;  %vm663_vm3 = vcmp.gt.f32.partialorder %v8958_v41, 0.0 }
 0x14c   : > { %v731_v37 = vmul.f32 0.6931472, %v7553_v19  ;;  %v1080_v28 = vrot.slane %v7555_v21, 4  ;;  %v992_v58 = vmul.f32 1.442695, %v961_v23  ;;  %vm662_vm4 = vcmp.gt.f32.partialorder %v8962_v44, 0.0 }
 0x14d   : > { %v757_v45 = vsel %vm661_vm1, %v729_v39, -1e+09  ;;  %v1113_v10 = vadd.f32 %v1112_v22, %v1111_v47  ;;  %7564 = vpow2.f32 %v986_v16  ;;  %v756_v6 = vsel %vm660_vm2, %v727_v38, -1e+09 }
 0x14e   : > { %v1102_v12 = vrot.slane %v1101_v36, 1  ;;  %v1119_v40 = vadd.f32 %v1118_v26, %v1117_v24  ;;  %7566 = vpow2.f32 %v988_v59  ;;  %v759_v3 = vsel %vm663_vm3, %v733_v31, -1e+09 }
 0x14f   : > { %v994_v9 = vmul.f32 1.442695, %v962_v4  ;;  %v1108_v63 = vrot.slane %v1107_v20, 1  ;;  %7568 = vpow2.f32 %v990_v11  ;;  %v758_v41 = vsel %vm662_vm4, %v731_v37, -1e+09 }
 0x150   : > { %v9176_v8 = vadd.f32 %v7555_v21, %v1080_v28  ;;  %7570 = vpow2.f32 %v992_v58  ;;  %v677_v33 = vmax.f32 %v8966_v53, 1e-30  ;;  %v9182_v44 = vadd.f32 %v755_v34, %v8770_v29 }
 0x151   : > { %v9185_v35 = vadd.f32 %v754_v42, %v8770_v29  ;;  %v9188_v47 = vadd.f32 %v757_v45, %v8770_v29  ;;  %v1114_v24 = vrot.slane %v1113_v10, 1  ;;  %v9191_v19 = vadd.f32 %v756_v6, %v8770_v29 }
 0x152   : > { %v7557_v7 = vpop.eup %7556  ;;  %v9194_v60 = vadd.f32 %v759_v3, %v8770_v29  ;;  %v1103_v61 = vadd.f32 %v1102_v12, %v1101_v36  ;;  %v1120_v17 = vrot.slane %v1119_v40, 1  ;;  %v9197_v34 = vadd.f32 %v758_v41, %v8770_v29 }
 0x153   : > { %v7559_v21 = vpop.eup %7558  ;;  %7572 = vpow2.f32 %v994_v9  ;;  %v1109_v42 = vadd.f32 %v1108_v63, %v1107_v20  ;;  %v1026_v39 = vrot.slane %v7557_v7, 4  ;;  %v676_v22 = vmax.f32 %v8970_v56, 1e-30 }
 0x154   : > { %v7561_v38 = vpop.eup %7560  ;;  %v1032_v31 = vrot.slane %v7559_v21, 4  ;;  %7574 = vlog2.f32 %v677_v33  ;;  %v9201_v26 = vadd.f32 %v1114_v24, %v1113_v10  ;;  %v1463_v4 = vmax.f32 %v8978_v5, 1e-30 }
 0x155   : > { %v7563_v16 = vpop.eup %7562  ;;  %v1027_v59 = vadd.f32 %v7557_v7, %v1026_v39  ;;  %v1038_v36 = vrot.slane %v7561_v38, 4  ;;  %v9204_v11 = vadd.f32 %v1120_v17, %v1119_v40  ;;  %7576 = vlog2.f32 %v1103_v61 }
 0x156   : > { %v1033_v37 = vadd.f32 %v7559_v21, %v1032_v31  ;;  %v1044_v20 = vrot.slane %v7563_v16, 4  ;;  %7578 = vlog2.f32 %v1109_v42  ;;  %v689_v6 = vmax.f32 %v8968_v55, 1e-30 }
 0x157   : > { %v7565_v28 = vpop.eup %7564  ;;  %v1028_v58 = vrot.slane %v1027_v59, 2  ;;  %v1039_v45 = vadd.f32 %v7561_v38, %v1038_v36  ;;  %7580 = vlog2.f32 %v676_v22  ;;  %vm653_vm5 = vcmp.gt.f32.partialorder %v8966_v53, 0.0 }
 0x158   : > { %v7567_v12 = vpop.eup %7566  ;;  %v1034_v3 = vrot.slane %v1033_v37, 2  ;;  %v1045_v9 = vadd.f32 %v7563_v16, %v1044_v20  ;;  %v1050_v10 = vrot.slane %v7565_v28, 4  ;;  %7582 = vlog2.f32 %v1463_v4 }
 0x159   : > { %v7569_v63 = vpop.eup %7568  ;;  %v1029_v41 = vadd.f32 %v1028_v58, %v1027_v59  ;;  %v1040_v33 = vrot.slane %v1039_v45, 2  ;;  %v1056_v24 = vrot.slane %v7567_v12, 4  ;;  %7584 = vlog2.f32 %v689_v6 }
 0x15a   : > { %v7571_v40 = vpop.eup %7570  ;;  %v1035_v7 = vadd.f32 %v1034_v3, %v1033_v37  ;;  %v1046_v61 = vrot.slane %v1045_v9, 2  ;;  %v1051_v17 = vadd.f32 %v7565_v28, %v1050_v10  ;;  %v1062_v21 = vrot.slane %v7569_v63, 4 }
 0x15b   : > { %v1030_v42 = vrot.slane %v1029_v41, 1  ;;  %v1041_v39 = vadd.f32 %v1040_v33, %v1039_v45  ;;  %v1057_v38 = vadd.f32 %v7567_v12, %v1056_v24  ;;  %v1068_v31 = vrot.slane %v7571_v40, 4 }
 0x15c   : > { %v1036_v36 = vrot.slane %v1035_v7, 1  ;;  %v1047_v16 = vadd.f32 %v1046_v61, %v1045_v9  ;;  %v1052_v20 = vrot.slane %v1051_v17, 2  ;;  %v1063_v22 = vadd.f32 %v7569_v63, %v1062_v21 }
 0x15d   : > { %v9208_v23 = vpop.eup %7572  ;;  %v1031_v59 = vadd.f32 %v1030_v42, %v1029_v41  ;;  %v1042_v58 = vrot.slane %v1041_v39, 1  ;;  %v1058_v4 = vrot.slane %v1057_v38, 2  ;;  %v1069_v45 = vadd.f32 %v7571_v40, %v1068_v31 }
 0x15e   : > { %v7575_v37 = vpop.eup %7574  ;;  %v1037_v3 = vadd.f32 %v1036_v36, %v1035_v7  ;;  %v1048_v28 = vrot.slane %v1047_v16, 1  ;;  %v1053_v10 = vadd.f32 %v1052_v20, %v1051_v17  ;;  %v1064_v51 = vrot.slane %v1063_v22, 2 }
 0x15f   : > { %v1043_v1 = vadd.f32 %v1042_v58, %v1041_v39  ;;  %v1059_v54 = vadd.f32 %v1058_v4, %v1057_v38  ;;  %vm652_vm6 = vcmp.gt.f32.partialorder %v8970_v56, 0.0  ;;  %v9211_v12 = vpop.eup %7576  ;;  %7586 = vlog2.f32 %v1031_v59  ;;  %v9224_v58 = vpop.f32.mrb[18].mxu1 }
 0x160   : > { %v1049_v9 = vadd.f32 %v1048_v28, %v1047_v16  ;;  %v1054_v63 = vrot.slane %v1053_v10, 1  ;;  %v1065_v33 = vadd.f32 %v1064_v51, %v1063_v22  ;;  %v9213_v41 = vpop.eup %7578  ;;  %v1070_v6 = vrot.slane %v1069_v45, 2  ;;  %13571 = vst [vmem:[#allocation8_spill] sm:$0xff] %v9224_v58 }
 0x161   : > { %v1060_v24 = vrot.slane %v1059_v54, 1  ;;  %7588 = vlog2.f32 %v1037_v3  ;;  %v713_v7 = vmul.f32 0.6931472, %v7575_v37  ;;  %v7581_v61 = vpop.eup %7580  ;;  %v688_v40 = vmax.f32 %v8974_v0, 1e-30 }
 0x162   : > { %v1055_v17 = vadd.f32 %v1054_v63, %v1053_v10  ;;  %v1066_v21 = vrot.slane %v1065_v33, 1  ;;  %7590 = vlog2.f32 %v1043_v1  ;;  %v7583_v42 = vpop.eup %7582  ;;  %v1071_v38 = vadd.f32 %v1070_v6, %v1069_v45 }
 0x163   : > { %v1061_v39 = vadd.f32 %v1060_v24, %v1059_v54  ;;  %7592 = vlog2.f32 %v1049_v9  ;;  %v749_v51 = vsel %vm653_vm5, %v713_v7, -1e+09  ;;  %vm1439_vm7 = vcmp.gt.f32.partialorder %v8978_v5, 0.0  ;;  %v7585_v53 = vpop.eup %7584 }
 0x164   : > { %v1067_v31 = vadd.f32 %v1066_v21, %v1065_v33  ;;  %7594 = vlog2.f32 %v1055_v17  ;;  %v773_v36 = vadd.f32 %v749_v51, %v8770_v29  ;;  %v1072_v16 = vrot.slane %v1071_v38, 1 }
 0x165   : > { %7596 = vlog2.f32 %v1061_v39  ;;  %v711_v20 = vmul.f32 0.6931472, %v7581_v61  ;;  %v2519_v22 = vlaneseq  ;;  %v1489_v54 = vmul.f32 0.6931472, %v7583_v42 }
 0x166   : > { %7598 = vlog2.f32 %v1067_v31  ;;  %v9221_v1 = vadd.f32 %v773_v36, %v8984_v13  ;;  %v1462_v59 = vmax.f32 %v8986_v2, 1e-30  ;;  %v1073_v37 = vadd.f32 %v1072_v16, %v1071_v38 }
 0x167   : > { %7600 = vlog2.f32 %v9201_v26  ;;  %v748_v3 = vsel %vm652_vm6, %v711_v20, -1e+09  ;;  %v1535_v45 = vsel %vm1439_vm7, %v1489_v54, -1e+09  ;;  %v13572_v9 = vrot.slane %v9176_v8, 2 }
 0x168   : > { %v876_v28 = vrot.slane %v9221_v1, 4  ;;  %v772_v10 = vadd.f32 %v748_v3, %v8770_v29  ;;  %7602 = vlog2.f32 %v688_v40  ;;  %v9240_v26 = vadd.f32 %v1535_v45, %v8772_v30 }
 0x169   : > { %v9237_v63 = vadd.f32 %v13572_v9, %v9176_v8  ;;  %7604 = vlog2.f32 %v1073_v37  ;;  %vm2158_vm8 = vcmask 1040384   ;;  %v7587_v56 = vpop.eup %7586  ;;  %v2520_v6 = vshrl.u32 %v2519_v22, 7 }
 0x16a   : > { %v877_v33 = vmax.f32 %v9221_v1, %v876_v28  ;;  %v9244_v24 = vadd.f32 %v772_v10, %v8984_v13  ;;  %7606 = vlog2.f32 %v1462_v59  ;;  %v1171_v7 = vmul.f32 0.6931472, %v7587_v56 }
 0x16b   : > { %v7589_v5 = vpop.eup %7588  ;;  %v737_v61 = vmul.f32 0.6931472, %v7585_v53  ;;  %v1613_v17 = vrot.slane %v9240_v26, 1  ;;  %v1614_v8 = vrot.slane %v9240_v26, 2  ;;  %v1615_v38 = vrot.slane %v9240_v26, 3 }
 0x16c   : > { %v7591_v21 = vpop.eup %7590  ;;  %v1173_v40 = vmul.f32 0.6931472, %v7589_v5  ;;  %v878_v42 = vrot.slane %v877_v33, 2  ;;  %v870_v39 = vrot.slane %v9244_v24, 4  ;;  %v9251_v13 = vadd.f32 %v1171_v7, %v9124_v62 }
 0x16d   : > { %v7593_v51 = vpop.eup %7592  ;;  %v1175_v31 = vmul.f32 0.6931472, %v7591_v21  ;;  %v1616_v36 = vrot.slane %v9240_v26, 4  ;;  %v1617_v16 = vrot.slane %v9240_v26, 5  ;;  %vm665_vm9 = vcmp.gt.f32.partialorder %v8968_v55, 0.0 }
 0x16e   : > { %v7595_v20 = vpop.eup %7594  ;;  %v1177_v22 = vmul.f32 0.6931472, %v7593_v51  ;;  %v9256_v54 = vadd.f32 %v1173_v40, %v9126_v43  ;;  %v879_v59 = vmax.f32 %v877_v33, %v878_v42  ;;  %v871_v53 = vmax.f32 %v9244_v24, %v870_v39 }
 0x16f   : > { %v7597_v37 = vpop.eup %7596  ;;  %v1179_v3 = vmul.f32 0.6931472, %v7595_v20  ;;  %v9261_v28 = vadd.f32 %v1175_v31, %v9129_v57  ;;  %v1618_v62 = vrot.slane %v9240_v26, 6  ;;  %v9266_v10 = vadd.f32 %v9240_v26, %v9251_v13 }
 0x170   : > { %v7599_v45 = vpop.eup %7598  ;;  %v1181_v9 = vmul.f32 0.6931472, %v7597_v37  ;;  %v9269_v43 = vadd.f32 %v1177_v22, %v9131_v50  ;;  %v880_v56 = vrot.slane %v879_v59, 1  ;;  %v872_v33 = vrot.slane %v871_v53, 2 }
 0x171   : > { %13573 = vst [vmem:[#allocation9_spill] sm:$0xff] %v9261_v28  ;;  %v9271_v5 = vpop.eup %7600  ;;  %v1183_v7 = vmul.f32 0.6931472, %v7599_v45  ;;  %v9274_v21 = vadd.f32 %v1179_v3, %v9136_v15  ;;  %v9277_v57 = vadd.f32 %v1613_v17, %v9256_v54  ;;  %v9280_v40 = vadd.f32 %v1614_v8, %v9261_v28 }
 0x172   : > { %13574 = vst [vmem:[#allocation10_spill] sm:$0xff] %v9269_v43  ;;  %v7603_v42 = vpop.eup %7602  ;;  %v9283_v39 = vadd.f32 %v1181_v9, %v9140_v14  ;;  %v9285_v50 = vmax.f32 %v879_v59, %v880_v56  ;;  %v873_v51 = vmax.f32 %v871_v53, %v872_v33  ;;  %v9288_v31 = vadd.f32 %v1615_v38, %v9269_v43 }
 0x173   : > { %13575 = vst [vmem:[#allocation11_spill] sm:$0xff] %v9274_v21  ;;  %v7605_v20 = vpop.eup %7604  ;;  %v9291_v15 = vadd.f32 %v1183_v7, %v9146_v46  ;;  %v9294_v17 = vadd.f32 %v1616_v36, %v9274_v21  ;;  %v2174_v8 = vsel %vm2158_vm8, %v9266_v10, -inf  ;;  %v2175_v14 = vsel %vm2158_vm8, %v9277_v57, -inf }
 0x174   : > { %13576 = vst [vmem:[#allocation12_spill] sm:$0xff] %v9283_v39  ;;  %13577 = vst [vmem:[#allocation13_spill] sm:$0xff] %v9285_v50  ;;  %v7607_v22 = vpop.eup %7606  ;;  %v1185_v59 = vmul.f32 0.6931472, %v7605_v20  ;;  %v965_v53 = vsub.f32 %v9221_v1, %v9285_v50  ;;  %v874_v38 = vrot.slane %v873_v51, 1  ;;  %v9303_v37 = vadd.f32 %v1617_v16, %v9283_v39  ;;  %v9319_v16 = vpop.permute.xlu0 %371 }
 0x175   : > { %13578 = vst [vmem:[#allocation14_spill] sm:$0xff] %v9291_v15  ;;  %v9306_v46 = vadd.f32 %v1618_v62, %v9291_v15  ;;  %v2176_v36 = vmax.f32 %v2174_v8, %v2175_v14  ;;  %v2177_v3 = vsel %vm2158_vm8, %v9280_v40, -inf  ;;  %v9310_v45 = vsub.s32 0, %v2520_v6 }
 0x176   : > { %v9313_v9 = vadd.f32 %v1185_v59, %v9156_v48  ;;  %v9315_v56 = vmax.f32 %v873_v51, %v874_v38  ;;  %v1619_v1 = vrot.slane %v9240_v26, 7  ;;  %vm1438_vm10 = vcmp.gt.f32.partialorder %v8986_v2, 0.0 }
 0x177   : > { %13579 = vst [vmem:[#allocation15_spill] sm:$0xff] %v9310_v45  ;;  %v1000_v33 = vmul.f32 1.442695, %v965_v53  ;;  %v761_v62 = vsel %vm665_vm9, %v737_v61, -1e+09  ;;  %v2178_v7 = vmax.f32 %v2176_v36, %v2177_v3  ;;  %v2179_v51 = vsel %vm2158_vm8, %v9288_v31, -inf }
 0x178   : > { %13580 = vst [vmem:[#allocation16_spill] sm:$0xff] %v9313_v9  ;;  %13581 = vst [vmem:[#allocation17_spill] sm:$0xff] %v9315_v56  ;;  %v1487_v20 = vmul.f32 0.6931472, %v7607_v22  ;;  %v964_v6 = vsub.f32 %v9244_v24, %v9315_v56  ;;  %v9326_v48 = vadd.f32 %v1619_v1, %v9313_v9  ;;  %v2181_v2 = vsel %vm2158_vm8, %v9294_v17, -inf }
 0x179   : > { %vm664_vm11 = vcmp.gt.f32.partialorder %v8974_v0, 0.0  ;;  %v735_v26 = vmul.f32 0.6931472, %v7603_v42  ;;  %v2180_v8 = vmax.f32 %v2178_v7, %v2179_v51  ;;  %v9335_v61 = vadd.f32 %v9185_v35, %v9319_v16 }
 0x17a   : > { %v1534_v55 = vsel %vm1438_vm10, %v1487_v20, -1e+09  ;;  %v2183_v24 = vsel %vm2158_vm8, %v9303_v37, -inf  ;;  %v9342_v22 = vadd.f32 %v9182_v44, %v9319_v16  ;;  %v9346_v59 = vadd.f32 %v9191_v19, %v9319_v16 }
 0x17b   : > { %v1558_v14 = vadd.f32 %v1534_v55, %v8772_v30  ;;  %7608 = vpow2.f32 %v1000_v33  ;;  %v998_v42 = vmul.f32 1.442695, %v964_v6  ;;  %v2182_v53 = vmax.f32 %v2180_v8, %v2181_v2 }
 0x17c   : > { %v2185_v35 = vsel %vm2158_vm8, %v9306_v46, -inf  ;;  %v2187_v38 = vsel %vm2158_vm8, %v9326_v48, -inf  ;;  %v9392_v56 = vadd.f32 %v761_v62, %v8770_v29  ;;  %v918_v50 = vrot.slane %v9346_v59, 4 }
 0x17d   : > { %v1606_v36 = vrot.slane %v1558_v14, 1  ;;  %v1607_v3 = vrot.slane %v1558_v14, 2  ;;  %v1608_v1 = vrot.slane %v1558_v14, 3  ;;  %v2184_v7 = vmax.f32 %v2182_v53, %v2183_v24 }
 0x17e   : > { %v1609_v20 = vrot.slane %v1558_v14, 4  ;;  %v1610_v44 = vrot.slane %v1558_v14, 5  ;;  %v1611_v51 = vrot.slane %v1558_v14, 6  ;;  %v1612_v55 = vrot.slane %v1558_v14, 7 }
 0x17f   : > { %v9353_v19 = vadd.f32 %v1558_v14, %v9251_v13  ;;  %v9356_v33 = vadd.f32 %v1606_v36, %v9256_v54  ;;  %v9359_v6 = vadd.f32 %v1607_v3, %v9261_v28  ;;  %v2186_v2 = vmax.f32 %v2184_v7, %v2185_v35 }
 0x180   : > { %v9362_v8 = vadd.f32 %v1608_v1, %v9269_v43  ;;  %v9365_v4 = vadd.f32 %v1609_v20, %v9274_v21  ;;  %v9368_v24 = vadd.f32 %v1610_v44, %v9283_v39  ;;  %v9371_v53 = vadd.f32 %v1611_v51, %v9291_v15 }
 0x181   : > { %v9374_v14 = vadd.f32 %v1612_v55, %v9313_v9  ;;  %v2159_v36 = vsel %vm2158_vm8, %v9353_v19, -inf  ;;  %v2160_v35 = vsel %vm2158_vm8, %v9356_v33, -inf  ;;  %v9380_v3 = vmax.f32 %v2186_v2, %v2187_v38 }
 0x182   : > { %v2161_v1 = vmax.f32 %v2159_v36, %v2160_v35  ;;  %v2162_v7 = vsel %vm2158_vm8, %v9359_v6, -inf  ;;  %v906_v20 = vrot.slane %v9335_v61, 4  ;;  %v13582_v44 = vrot.slane %v9208_v23, 4 }
 0x183   : > { %v760_v38 = vsel %vm664_vm11, %v735_v26, -1e+09  ;;  %v2526_v2 = vrot.slane %v9380_v3, %v9310_v45  ;;  %v912_v35 = vrot.slane %v9342_v22, 4  ;;  %7610 = vpow2.f32 %v998_v42 }
 0x184   : > { %v9388_v51 = vadd.f32 %v9208_v23, %v13582_v44  ;;  %v2163_v36 = vmax.f32 %v2161_v1, %v2162_v7  ;;  %v2164_v23 = vsel %vm2158_vm8, %v9362_v8, -inf  ;;  %v2166_v44 = vsel %vm2158_vm8, %v9365_v4, -inf }
 0x185   : > { %v9406_v62 = vadd.f32 %v9188_v47, %v9319_v16  ;;  %v7609_v0 = vpop.eup %7608  ;;  %v2623_v26 = vsub.f32 %v9266_v10, %v2526_v2  ;;  %v2624_v1 = vsub.f32 %v9277_v57, %v2526_v2  ;;  %v2625_v7 = vsub.f32 %v9280_v40, %v2526_v2 }
 0x186   : > { %v907_v55 = vmax.f32 %v9335_v61, %v906_v20  ;;  %v2626_v42 = vsub.f32 %v9288_v31, %v2526_v2  ;;  %v2627_v58 = vsub.f32 %v9294_v17, %v2526_v2  ;;  %v2628_v9 = vsub.f32 %v9303_v37, %v2526_v2 }
 0x187   : > { %v2629_v15 = vsub.f32 %v9306_v46, %v2526_v2  ;;  %v2630_v47 = vsub.f32 %v9326_v48, %v2526_v2  ;;  %v2823_v39 = vmul.f32 1.442695, %v2623_v26  ;;  %v913_v21 = vmax.f32 %v9342_v22, %v912_v35 }
 0x188   : > { %v919_v10 = vmax.f32 %v9346_v59, %v918_v50  ;;  %v2825_v57 = vmul.f32 1.442695, %v2624_v1  ;;  %v2827_v43 = vmul.f32 1.442695, %v2625_v7  ;;  %v2829_v40 = vmul.f32 1.442695, %v2626_v42 }
 0x189   : > { %v2165_v28 = vmax.f32 %v2163_v36, %v2164_v23  ;;  %v784_v20 = vadd.f32 %v760_v38, %v8770_v29  ;;  %7612 = vpow2.f32 %v2823_v39  ;;  %v2831_v31 = vmul.f32 1.442695, %v2627_v58 }
 0x18a   : > { %v9422_v17 = vadd.f32 %v9197_v34, %v9319_v16  ;;  %7614 = vpow2.f32 %v2825_v57  ;;  %v2833_v37 = vmul.f32 1.442695, %v2628_v9  ;;  %v2168_v46 = vsel %vm2158_vm8, %v9368_v24, -inf }
 0x18b   : > { %v2170_v50 = vsel %vm2158_vm8, %v9371_v53, -inf  ;;  %7616 = vpow2.f32 %v2827_v43  ;;  %v2835_v48 = vmul.f32 1.442695, %v2629_v15  ;;  %v2167_v2 = vmax.f32 %v2165_v28, %v2166_v44  ;;  %v9432_v15 = vpop.f32.mrb[19].mxu1 }
 0x18c   : > { %v924_v36 = vrot.slane %v9406_v62, 4  ;;  %7618 = vpow2.f32 %v2829_v40  ;;  %vm3384_vm12 = vcmask 1041409   ;;  %v908_v29 = vrot.slane %v907_v55, 2  ;;  %13583 = vst [vmem:[#allocation18_spill] sm:$0xff] %v9432_v15 }
 0x18d   : > { %v914_v58 = vrot.slane %v913_v21, 2  ;;  %v920_v39 = vrot.slane %v919_v10, 2  ;;  %v1092_v34 = vrot.slane %v7609_v0, 4  ;;  %7620 = vpow2.f32 %v2831_v31  ;;  %v9429_v35 = vpop.eup %7610 }
 0x18e   : > { %v2837_v38 = vmul.f32 1.442695, %v2630_v47  ;;  %vm3387_vm13 = vcmask 1042434   ;;  %v2169_v9 = vmax.f32 %v2167_v2, %v2168_v46  ;;  %7622 = vpow2.f32 %v2833_v37 }
 0x18f   : > { %vm3390_vm14 = vcmask 1043459   ;;  %v909_v23 = vmax.f32 %v907_v55, %v908_v29  ;;  %v915_v43 = vmax.f32 %v913_v21, %v914_v58  ;;  %v930_v28 = vrot.slane %v9422_v17, 4 }
 0x190   : > { %vm3393_vm15 = vcmask 1044484   ;;  %v2171_v44 = vmax.f32 %v2169_v9, %v2170_v50  ;;  %v9436_v26 = vadd.f32 %v9194_v60, %v9319_v16  ;;  %v9438_v1 = vmax.f32 %v919_v10, %v920_v39 }
 0x191   : > { %v925_v7 = vmax.f32 %v9406_v62, %v924_v36  ;;  %7624 = vpow2.f32 %v2835_v48  ;;  %v2172_v42 = vsel %vm2158_vm8, %v9374_v14, -inf  ;;  %v910_v55 = vrot.slane %v909_v23, 1 }
 0x192   : > { %v916_v21 = vrot.slane %v915_v43, 1  ;;  %7626 = vpow2.f32 %v2837_v38  ;;  %vm3396_vm0 = vcmask 1045509   ;;  %v9443_v47 = vmax.f32 %v2171_v44, %v2172_v42 }
 0x193   : > { %v926_v57 = vrot.slane %v925_v7, 2  ;;  %v9445_v40 = vadd.f32 %v7609_v0, %v1092_v34  ;;  %vm3399_vm1 = vcmask 1046534   ;;  %v9448_v60 = vadd.f32 %v784_v20, %v9319_v16  ;;  %v7613_v37 = vpop.eup %7612 }
 0x194   : > { %v9452_v10 = vadd.f32 %v9392_v56, %v9319_v16  ;;  %v931_v31 = vmax.f32 %v9422_v17, %v930_v28  ;;  %vm3402_vm2 = vcmask 1047559   ;;  %v2522_v50 = vrot.slane %v9443_v47, %v9310_v45  ;;  %v7615_v2 = vpop.eup %7614 }
 0x195   : > { %v9458_v48 = vmax.f32 %v909_v23, %v910_v55  ;;  %v922_v0 = vrot.slane %v9438_v1, 1  ;;  %v9461_v20 = vmax.f32 %v915_v43, %v916_v21  ;;  %v927_v36 = vmax.f32 %v925_v7, %v926_v57  ;;  %v7617_v16 = vpop.eup %7616 }
 0x196   : > { %v932_v29 = vrot.slane %v931_v31, 2  ;;  %v936_v56 = vrot.slane %v9436_v26, 4  ;;  %v3404_v58 = vrot.slane %v7615_v2, 7  ;;  %v2615_v39 = vsub.f32 %v9353_v19, %v2522_v50  ;;  %v7619_v9 = vpop.eup %7618 }
 0x197   : > { %13584 = vst [vmem:[#allocation19_spill] sm:$0xff] %v9458_v48  ;;  %13585 = vst [vmem:[#allocation20_spill] sm:$0xff] %v9461_v20  ;;  %v2616_v34 = vsub.f32 %v9356_v33, %v2522_v50  ;;  %v2617_v38 = vsub.f32 %v9359_v6, %v2522_v50  ;;  %v3406_v23 = vrot.slane %v7617_v16, 6  ;;  %v2618_v28 = vsub.f32 %v9362_v8, %v2522_v50  ;;  %v7621_v7 = vpop.eup %7620 }
 0x198   : > { %v2619_v44 = vsub.f32 %v9365_v4, %v2522_v50  ;;  %v2620_v43 = vsub.f32 %v9368_v24, %v2522_v50  ;;  %v3405_v42 = vsel %vm3384_vm12, %v3404_v58, %v7613_v37  ;;  %v3408_v55 = vrot.slane %v7619_v9, 5  ;;  %v7623_v57 = vpop.eup %7622 }
 0x199   : > { %v2621_v21 = vsub.f32 %v9371_v53, %v2522_v50  ;;  %v2622_v19 = vsub.f32 %v9374_v14, %v2522_v50  ;;  %v3407_v33 = vsel %vm3387_vm13, %v3406_v23, %v3405_v42  ;;  %v3410_v6 = vrot.slane %v7621_v7, 4 }
 0x19a   : > { %v2807_v2 = vmul.f32 1.442695, %v2615_v39  ;;  %v2809_v16 = vmul.f32 1.442695, %v2616_v34  ;;  %v3409_v8 = vsel %vm3390_vm14, %v3408_v55, %v3407_v33  ;;  %v3412_v46 = vrot.slane %v7623_v57, 3  ;;  %v9478_v39 = vpop.f32.mrb[20].mxu1 }
 0x19b   : > { %v2811_v4 = vmul.f32 1.442695, %v2617_v38  ;;  %v2813_v15 = vmul.f32 1.442695, %v2618_v28  ;;  %v7625_v24 = vpop.eup %7624  ;;  %v3411_v45 = vsel %vm3393_vm15, %v3410_v6, %v3409_v8  ;;  %v2815_v37 = vmul.f32 1.442695, %v2619_v44 }
 0x19c   : > { %7628 = vpow2.f32 %v2807_v2  ;;  %v942_v53 = vrot.slane %v9448_v60, 4  ;;  %v7627_v58 = vpop.eup %7626  ;;  %v3413_v14 = vsel %vm3396_vm0, %v3412_v46, %v3411_v45  ;;  %v3414_v50 = vrot.slane %v7625_v24, 2 }
 0x19d   : > { %7630 = vpow2.f32 %v2809_v16  ;;  %v2817_v9 = vmul.f32 1.442695, %v2620_v43  ;;  %v3416_v34 = vrot.slane %v7627_v58, 1  ;;  %v2819_v23 = vmul.f32 1.442695, %v2621_v21 }
 0x19e   : > { %7632 = vpow2.f32 %v2811_v4  ;;  %v948_v38 = vrot.slane %v9452_v10, 4  ;;  %v3415_v28 = vsel %vm3399_vm1, %v3414_v50, %v3413_v14  ;;  %v2821_v7 = vmul.f32 1.442695, %v2622_v19 }
 0x19f   : > { %7634 = vpow2.f32 %v2813_v15  ;;  %v928_v44 = vrot.slane %v927_v36, 1  ;;  %v3417_v42 = vsel %vm3402_vm2, %v3416_v34, %v3415_v28  ;;  %v9484_v45 = vmax.f32 %v9438_v1, %v922_v0  ;;  %v9493_v0 = vpop.f32.mrb[21].mxu1 }
 0x1a0   : > { %7636 = vpow2.f32 %v2815_v37  ;;  %v933_v46 = vmax.f32 %v931_v31, %v932_v29  ;;  %v3756_v43 = vrot.slane %v3417_v42, 4  ;;  %v937_v21 = vmax.f32 %v9436_v26, %v936_v56 }
 0x1a1   : > { %13586 = vst [vmem:[#allocation21_spill] sm:$0xff] %v9484_v45  ;;  %7638 = vpow2.f32 %v2817_v9  ;;  %v9486_v55 = vmax.f32 %v927_v36, %v928_v44  ;;  %v943_v33 = vmax.f32 %v9448_v60, %v942_v53  ;;  %v970_v15 = vsub.f32 %v9335_v61, %v9458_v48 }
 0x1a2   : > { %7640 = vpow2.f32 %v2819_v23  ;;  %v934_v57 = vrot.slane %v933_v46, 1  ;;  %v3757_v19 = vadd.f32 %v3756_v43, %v3417_v42  ;;  %v938_v6 = vrot.slane %v937_v21, 2 }
 0x1a3   : > { %13587 = vst [vmem:[#allocation22_spill] sm:$0xff] %v9486_v55  ;;  %7642 = vpow2.f32 %v2821_v7  ;;  %v949_v1 = vmax.f32 %v9452_v10, %v948_v38  ;;  %v944_v36 = vrot.slane %v943_v33, 2  ;;  %v971_v29 = vsub.f32 %v9342_v22, %v9461_v20 }
 0x1a4   : > { %v9495_v31 = vmax.f32 %v933_v46, %v934_v57  ;;  %v972_v56 = vsub.f32 %v9346_v59, %v9484_v45  ;;  %v3758_v2 = vrot.slane %v3757_v19, 2  ;;  %v939_v16 = vmax.f32 %v937_v21, %v938_v6 }
 0x1a5   : > { %v950_v8 = vrot.slane %v949_v1, 2  ;;  %v973_v61 = vsub.f32 %v9406_v62, %v9486_v55  ;;  %v945_v24 = vmax.f32 %v943_v33, %v944_v36  ;;  %v1010_v53 = vmul.f32 1.442695, %v970_v15 }
 0x1a6   : > { %13588 = vst [vmem:[#allocation23_spill] sm:$0xff] %v9495_v31  ;;  %v7629_v4 = vpop.eup %7628  ;;  %v974_v37 = vsub.f32 %v9422_v17, %v9495_v31  ;;  %v1012_v58 = vmul.f32 1.442695, %v971_v29  ;;  %v3759_v50 = vadd.f32 %v3758_v2, %v3757_v19  ;;  %v940_v9 = vrot.slane %v939_v16, 1 }
 0x1a7   : > { %v7631_v14 = vpop.eup %7630  ;;  %v951_v22 = vmax.f32 %v949_v1, %v950_v8  ;;  %v1014_v34 = vmul.f32 1.442695, %v972_v56  ;;  %v946_v38 = vrot.slane %v945_v24, 1  ;;  %7644 = vpow2.f32 %v1010_v53 }
 0x1a8   : > { %v7633_v23 = vpop.eup %7632  ;;  %v3383_v59 = vrot.slane %v7631_v14, 7  ;;  %v1016_v28 = vmul.f32 1.442695, %v973_v61  ;;  %v3760_v44 = vrot.slane %v3759_v50, 1  ;;  %v9505_v42 = vmax.f32 %v939_v16, %v940_v9 }
 0x1a9   : > { %v7635_v7 = vpop.eup %7634  ;;  %v3386_v62 = vrot.slane %v7633_v23, 6  ;;  %v952_v46 = vrot.slane %v951_v22, 1  ;;  %v9508_v57 = vmax.f32 %v945_v24, %v946_v38  ;;  %7646 = vpow2.f32 %v1012_v58 }
 0x1aa   : > { %13589 = vst [vmem:[#allocation24_spill] sm:$0xff] %v9505_v42  ;;  %v7637_v43 = vpop.eup %7636  ;;  %v3385_v17 = vsel %vm3384_vm12, %v3383_v59, %v7629_v4  ;;  %v3389_v21 = vrot.slane %v7635_v7, 5  ;;  %v3761_v15 = vadd.f32 %v3760_v44, %v3759_v50  ;;  %v975_v2 = vsub.f32 %v9436_v26, %v9505_v42 }
 0x1ab   : > { %13590 = vst [vmem:[#allocation25_spill] sm:$0xff] %v9508_v57  ;;  %v7639_v33 = vpop.eup %7638  ;;  %v3388_v19 = vsel %vm3387_vm13, %v3386_v62, %v3385_v17  ;;  %v3392_v6 = vrot.slane %v7637_v43, 4  ;;  %v9511_v1 = vmax.f32 %v951_v22, %v952_v46  ;;  %v976_v16 = vsub.f32 %v9448_v60, %v9508_v57 }
 0x1ac   : > { %v7641_v36 = vpop.eup %7640  ;;  %v3391_v29 = vsel %vm3390_vm14, %v3389_v21, %v3388_v19  ;;  %v3395_v56 = vrot.slane %v7639_v33, 3  ;;  %7648 = vlog2.f32 %v3761_v15  ;;  %v1018_v14 = vmul.f32 1.442695, %v974_v37 }
 0x1ad   : > { %13591 = vst [vmem:[#allocation26_spill] sm:$0xff] %v9511_v1  ;;  %v7643_v8 = vpop.eup %7642  ;;  %v3394_v61 = vsel %vm3393_vm15, %v3392_v6, %v3391_v29  ;;  %v3398_v4 = vrot.slane %v7641_v36, 2  ;;  %v977_v24 = vsub.f32 %v9452_v10, %v9511_v1  ;;  %7650 = vpow2.f32 %v1014_v34 }
 0x1ae   : > { %v3397_v53 = vsel %vm3396_vm0, %v3395_v56, %v3394_v61  ;;  %v3401_v58 = vrot.slane %v7643_v8, 1  ;;  %7652 = vpow2.f32 %v1016_v28  ;;  %v1020_v26 = vmul.f32 1.442695, %v975_v2 }
 0x1af   : > { %v3400_v50 = vsel %vm3399_vm1, %v3398_v4, %v3397_v53  ;;  %v1022_v9 = vmul.f32 1.442695, %v976_v16  ;;  %v1076_v60 = vrot.slane %v9388_v51, 2  ;;  %v13592_v22 = vrot.slane %v9429_v35, 4 }
 0x1b0   : > { %v3403_v59 = vsel %vm3402_vm2, %v3401_v58, %v3400_v50  ;;  %7654 = vpow2.f32 %v1018_v14  ;;  %v1094_v10 = vrot.slane %v9445_v40, 2  ;;  %v1465_v37 = vmax.f32 %v8990_v18, 1e-30 }
 0x1b1   : > { %v1087_v23 = vadd.f32 %v9429_v35, %v13592_v22  ;;  %v3750_v38 = vrot.slane %v3403_v59, 4  ;;  %7656 = vpow2.f32 %v1020_v26  ;;  %v7645_v34 = vpop.eup %7644  ;;  %v1024_v28 = vmul.f32 1.442695, %v977_v24 }
 0x1b2   : > { %7658 = vlog2.f32 %v9204_v11  ;;  %v1122_v44 = vrot.slane %v7645_v34, 4  ;;  %v13593_v35 = vrot.slane %v9237_v63, 1  ;;  %v1077_v17 = vadd.f32 %v1076_v60, %v9388_v51 }
 0x1b3   : > { %v3751_v7 = vadd.f32 %v3750_v38, %v3403_v59  ;;  %7660 = vpow2.f32 %v1022_v9  ;;  %v7647_v62 = vpop.eup %7646  ;;  %v1088_v43 = vrot.slane %v1087_v23, 2  ;;  %v1095_v21 = vadd.f32 %v1094_v10, %v9445_v40 }
 0x1b4   : > { %v1085_v46 = vadd.f32 %v13593_v35, %v9237_v63  ;;  %7662 = vlog2.f32 %v1465_v37  ;;  %v1128_v15 = vrot.slane %v7647_v62, 4  ;;  %v1123_v19 = vadd.f32 %v7645_v34, %v1122_v44 }
 0x1b5   : > { %v3752_v33 = vrot.slane %v3751_v7, 2  ;;  %7664 = vpow2.f32 %v1024_v28  ;;  %v1464_v29 = vmax.f32 %v9113_v32, 1e-30  ;;  %v1089_v2 = vadd.f32 %v1088_v43, %v1087_v23 }
 0x1b6   : > { %v7649_v11 = vpop.eup %7648  ;;  %v1129_v36 = vadd.f32 %v7647_v62, %v1128_v15  ;;  %7666 = vlog2.f32 %v1085_v46  ;;  %v1078_v8 = vrot.slane %v1077_v17, 1  ;;  %v1096_v61 = vrot.slane %v1095_v21, 1 }
 0x1b7   : > { %v3753_v6 = vadd.f32 %v3752_v33, %v3751_v7  ;;  %v7651_v56 = vpop.eup %7650  ;;  %v3897_v16 = vmul.f32 0.6931472, %v7649_v11  ;;  %v1124_v53 = vrot.slane %v1123_v19, 2  ;;  %v1195_v26 = vmul.f32 0.6931472, %v9211_v12 }
 0x1b8   : > { %v7653_v63 = vpop.eup %7652  ;;  %v1134_v51 = vrot.slane %v7651_v56, 4  ;;  %v1130_v58 = vrot.slane %v1129_v36, 2  ;;  %7668 = vlog2.f32 %v1464_v29  ;;  %v1090_v23 = vrot.slane %v1089_v2, 1 }
 0x1b9   : > { %v3754_v4 = vrot.slane %v3753_v6, 1  ;;  %v9538_v40 = vadd.f32 %v3897_v16, %v9380_v3  ;;  %v1140_v14 = vrot.slane %v7653_v63, 4  ;;  %v1079_v34 = vadd.f32 %v1078_v8, %v1077_v17 }
 0x1ba   : > { %v7655_v24 = vpop.eup %7654  ;;  %v1135_v60 = vadd.f32 %v7651_v56, %v1134_v51  ;;  %v1197_v28 = vmul.f32 0.6931472, %v9213_v41  ;;  %v1199_v3 = vmul.f32 0.6931472, %v9271_v5  ;;  %v1097_v44 = vadd.f32 %v1096_v61, %v1095_v21 }
 0x1bb   : > { %13594 = vst [vmem:[#allocation27_spill] sm:$0xff] %v9538_v40  ;;  %v7657_v50 = vpop.eup %7656  ;;  %v3755_v9 = vadd.f32 %v3754_v4, %v3753_v6  ;;  %v1141_v59 = vadd.f32 %v7653_v63, %v1140_v14  ;;  %v1146_v10 = vrot.slane %v7655_v24, 4  ;;  %v1125_v62 = vadd.f32 %v1124_v53, %v1123_v19  ;;  %v9548_v19 = vpop.f32.mrb[22].mxu1  ;;  %v13597_v53 = vld [vmem:[#allocation4_spill] sm:$0xff] }
 0x1bc   : > { %v7659_v22 = vpop.eup %7658  ;;  %v1152_v38 = vrot.slane %v7657_v50, 4  ;;  %v1131_v35 = vadd.f32 %v1130_v58, %v1129_v36  ;;  %v9544_v43 = vadd.f32 %v1195_v26, %v9047_v49  ;;  %v1136_v33 = vrot.slane %v1135_v60, 2  ;;  %v13599_v26 = vld [vmem:[#allocation5_spill] sm:$0xff] }
 0x1bd   : > { %v7661_v37 = vpop.eup %7660  ;;  %7670 = vlog2.f32 %v3755_v9  ;;  %v1147_v12 = vadd.f32 %v7655_v24, %v1146_v10  ;;  %v1201_v46 = vmul.f32 0.6931472, %v7659_v22  ;;  %v1142_v15 = vrot.slane %v1141_v59, 2 }
 0x1be   : > { %v7663_v7 = vpop.eup %7662  ;;  %13595 = vst [vmem:[#allocation28_spill] sm:$0xff] %v9544_v43  ;;  %v1091_v6 = vadd.f32 %v1090_v23, %v1089_v2  ;;  %v1153_v29 = vadd.f32 %v7657_v50, %v1152_v38  ;;  %v1158_v17 = vrot.slane %v7661_v37, 4  ;;  %vm1441_vm3 = vcmp.gt.f32.partialorder %v8990_v18, 0.0 }
 0x1bf   : > { %v7665_v11 = vpop.eup %7664  ;;  %7672 = vlog2.f32 %v1079_v34  ;;  %v1148_v41 = vrot.slane %v1147_v12, 2  ;;  %v1493_v5 = vmul.f32 0.6931472, %v7663_v7  ;;  %v1467_v21 = vmax.f32 %v9144_v25, 1e-30 }
 0x1c0   : > { %v9550_v36 = vpop.eup %7666  ;;  %7674 = vlog2.f32 %v1097_v44  ;;  %v1126_v49 = vrot.slane %v1125_v62, 1  ;;  %v1132_v56 = vrot.slane %v1131_v35, 1  ;;  %v1466_v16 = vmax.f32 %v9179_v27, 1e-30 }
 0x1c1   : > { %v1137_v63 = vadd.f32 %v1136_v33, %v1135_v60  ;;  %v1143_v2 = vadd.f32 %v1142_v15, %v1141_v59  ;;  %v1164_v8 = vrot.slane %v7665_v11, 4  ;;  %v1537_v61 = vsel %vm1441_vm3, %v1493_v5, -1e+09 }
 0x1c2   : > { %v9554_v18 = vadd.f32 %v1197_v28, %v9050_v52  ;;  %7676 = vlog2.f32 %v1091_v6  ;;  %v1154_v4 = vrot.slane %v1153_v29, 2  ;;  %v1159_v51 = vadd.f32 %v7661_v37, %v1158_v17  ;;  %v7669_v24 = vpop.eup %7668  ;;  %v13602_v17 = vld [vmem:[#allocation9_spill] sm:$0xff] }
 0x1c3   : > { %v9557_v58 = vadd.f32 %v1199_v3, %v13597_v53  ;;  %v1149_v14 = vadd.f32 %v1148_v41, %v1147_v12  ;;  %v1561_v50 = vadd.f32 %v1537_v61, %v8772_v30  ;;  %7678 = vlog2.f32 %v1467_v21  ;;  %v13605_v61 = vld [vmem:[#allocation12_spill] sm:$0xff] }
 0x1c4   : > { %13596 = vst [vmem:[#allocation29_spill] sm:$0xff] %v9554_v18  ;;  %v9561_v9 = vadd.f32 %v1201_v46, %v13599_v26  ;;  %v1127_v60 = vadd.f32 %v1126_v49, %v1125_v62  ;;  %vm1440_vm4 = vcmp.gt.f32.partialorder %v9113_v32, 0.0  ;;  %7680 = vlog2.f32 %v1466_v16 }
 0x1c5   : > { %13598 = vst [vmem:[#allocation4_spill] sm:$0xff] %v9557_v58  ;;  %v1133_v22 = vadd.f32 %v1132_v56, %v1131_v35  ;;  %v1138_v23 = vrot.slane %v1137_v63, 1  ;;  %v1144_v59 = vrot.slane %v1143_v2, 1  ;;  %v9564_v10 = vadd.f32 %v7665_v11, %v1164_v8  ;;  %v13604_v56 = vld [vmem:[#allocation11_spill] sm:$0xff] }
 0x1c6   : > { %13600 = vst [vmem:[#allocation5_spill] sm:$0xff] %v9561_v9  ;;  %v1155_v37 = vadd.f32 %v1154_v4, %v1153_v29  ;;  %v1160_v34 = vrot.slane %v1159_v51, 2  ;;  %v1491_v28 = vmul.f32 0.6931472, %v7669_v24  ;;  %v1150_v3 = vrot.slane %v1149_v14, 1  ;;  %v13606_v24 = vld [vmem:[#allocation14_spill] sm:$0xff] }
 0x1c7   : > { %v7671_v52 = vpop.eup %7670  ;;  %v1627_v7 = vrot.slane %v1561_v50, 1  ;;  %v1628_v44 = vrot.slane %v1561_v50, 2  ;;  %v1629_v12 = vrot.slane %v1561_v50, 3  ;;  %v1630_v62 = vrot.slane %v1561_v50, 4 }
 0x1c8   : > { %v3895_v38 = vmul.f32 0.6931472, %v7671_v52  ;;  %v1631_v33 = vrot.slane %v1561_v50, 5  ;;  %v1632_v15 = vrot.slane %v1561_v50, 6  ;;  %v1633_v35 = vrot.slane %v1561_v50, 7 }
 0x1c9   : > { %v9569_v6 = vpop.eup %7672  ;;  %v9572_v11 = vadd.f32 %v1561_v50, %v9251_v13  ;;  %v9575_v29 = vadd.f32 %v1627_v7, %v9256_v54  ;;  %v9578_v41 = vadd.f32 %v1628_v44, %v13602_v17  ;;  %v1139_v21 = vadd.f32 %v1138_v23, %v1137_v63  ;;  %v13607_v50 = vld [vmem:[#allocation16_spill] sm:$0xff] }
 0x1ca   : > { %v9567_v46 = vadd.f32 %v3895_v38, %v9443_v47  ;;  %v9580_v5 = vpop.eup %7674  ;;  %v13603_v47 = vld [vmem:[#allocation10_spill] sm:$0xff]  ;;  %v9586_v16 = vadd.f32 %v1630_v62, %v13604_v56  ;;  %v1536_v8 = vsel %vm1440_vm4, %v1491_v28, -1e+09  ;;  %v9591_v4 = vadd.f32 %v1631_v33, %v13605_v61 }
 0x1cb   : > { %v9583_v49 = vadd.f32 %v1629_v12, %v13603_v47  ;;  %v9594_v53 = vadd.f32 %v1632_v15, %v13606_v24  ;;  %v9597_v26 = vadd.f32 %v1633_v35, %v13607_v50  ;;  %v2204_v63 = vsel %vm2158_vm8, %v9572_v11, -inf }
 0x1cc   : > { %13601 = vst [vmem:[#allocation30_spill] sm:$0xff] %v9567_v46  ;;  %v9601_v52 = vpop.eup %7676  ;;  %v1145_v23 = vadd.f32 %v1144_v59, %v1143_v2  ;;  %v1156_v38 = vrot.slane %v1155_v37, 1  ;;  %v2205_v32 = vsel %vm2158_vm8, %v9575_v29, -inf  ;;  %v2207_v28 = vsel %vm2158_vm8, %v9578_v41, -inf }
 0x1cd   : > { %v7679_v7 = vpop.eup %7678  ;;  %v1151_v44 = vadd.f32 %v1150_v3, %v1149_v14  ;;  %v1161_v12 = vadd.f32 %v1160_v34, %v1159_v51  ;;  %7682 = vlog2.f32 %v1127_v60  ;;  %v2206_v62 = vmax.f32 %v2204_v63, %v2205_v32 }
 0x1ce   : > { %v7681_v33 = vpop.eup %7680  ;;  %v9608_v15 = vmul.f32 0.6931472, %v9550_v36  ;;  %7684 = vlog2.f32 %v1133_v22  ;;  %v1560_v35 = vadd.f32 %v1536_v8, %v8772_v30  ;;  %vm1443_vm5 = vcmp.gt.f32.partialorder %v9144_v25, 0.0 }
 0x1cf   : > { %7686 = vlog2.f32 %v1139_v21  ;;  %v2208_v59 = vmax.f32 %v2206_v62, %v2207_v28  ;;  %vm1442_vm6 = vcmp.gt.f32.partialorder %v9179_v27, 0.0  ;;  %v1157_v40 = vadd.f32 %v1156_v38, %v1155_v37  ;;  %v9622_v37 = vpop.f32.mrb[23].mxu1 }
 0x1d0   : > { %7688 = vlog2.f32 %v1145_v23  ;;  %v2209_v51 = vsel %vm2158_vm8, %v9583_v49, -inf  ;;  %v2211_v36 = vsel %vm2158_vm8, %v9586_v16, -inf  ;;  %v1162_v14 = vrot.slane %v1161_v12, 1 }
 0x1d1   : > { %7690 = vlog2.f32 %v1151_v44  ;;  %v2210_v60 = vmax.f32 %v2208_v59, %v2209_v51  ;;  %v2213_v22 = vsel %vm2158_vm8, %v9591_v4, -inf  ;;  %v2215_v34 = vsel %vm2158_vm8, %v9594_v53, -inf }
 0x1d2   : > { %v1620_v3 = vrot.slane %v1560_v35, 1  ;;  %v1621_v21 = vrot.slane %v1560_v35, 2  ;;  %v1622_v8 = vrot.slane %v1560_v35, 3  ;;  %v1623_v23 = vrot.slane %v1560_v35, 4 }
 0x1d3   : > { %v2212_v63 = vmax.f32 %v2210_v60, %v2211_v36  ;;  %v1624_v38 = vrot.slane %v1560_v35, 5  ;;  %v9625_v32 = vadd.f32 %v1560_v35, %v9251_v13  ;;  %v1625_v28 = vrot.slane %v1560_v35, 6 }
 0x1d4   : > { %v1626_v44 = vrot.slane %v1560_v35, 7  ;;  %v9628_v62 = vadd.f32 %v1620_v3, %v9256_v54  ;;  %v9631_v59 = vadd.f32 %v1621_v21, %v13602_v17  ;;  %v9634_v2 = vadd.f32 %v1622_v8, %v13603_v47 }
 0x1d5   : > { %v2214_v51 = vmax.f32 %v2212_v63, %v2213_v22  ;;  %v9637_v46 = vadd.f32 %v1623_v23, %v13604_v56  ;;  %v1497_v36 = vmul.f32 0.6931472, %v7679_v7  ;;  %v9640_v60 = vadd.f32 %v1624_v38, %v13605_v61 }
 0x1d6   : > { %v9643_v1 = vadd.f32 %v1625_v28, %v13606_v24  ;;  %v9646_v35 = vadd.f32 %v1626_v44, %v13607_v50  ;;  %v1495_v3 = vmul.f32 0.6931472, %v7681_v33  ;;  %v2189_v8 = vsel %vm2158_vm8, %v9625_v32, -inf }
 0x1d7   : > { %v9648_v21 = vpop.eup %7682  ;;  %v2216_v22 = vmax.f32 %v2214_v51, %v2215_v34  ;;  %v2190_v63 = vsel %vm2158_vm8, %v9628_v62, -inf  ;;  %v2192_v7 = vsel %vm2158_vm8, %v9631_v59, -inf  ;;  %v9658_v38 = vadd.f32 %v1162_v14, %v1161_v12 }
 0x1d8   : > { %v9656_v23 = vpop.eup %7684  ;;  %7692 = vlog2.f32 %v1157_v40  ;;  %v2217_v33 = vsel %vm2158_vm8, %v9597_v26, -inf  ;;  %v2191_v28 = vmax.f32 %v2189_v8, %v2190_v63  ;;  %v2194_v51 = vsel %vm2158_vm8, %v9634_v2, -inf }
 0x1d9   : > { %v9662_v44 = vpop.eup %7686  ;;  %v9664_v34 = vmax.f32 %v2216_v22, %v2217_v33  ;;  %v2196_v57 = vsel %vm2158_vm8, %v9637_v46, -inf  ;;  %v1539_v42 = vsel %vm1443_vm5, %v1497_v36, -1e+09  ;;  %v2198_v14 = vsel %vm2158_vm8, %v9640_v60, -inf  ;;  %v13611_v33 = vld [vmem:[#allocation15_spill] sm:$0xff] }
 0x1da   : > { %13608 = vst [vmem:[#allocation9_spill] sm:$0xff] %v9662_v44  ;;  %v9672_v12 = vpop.eup %7688  ;;  %v2193_v40 = vmax.f32 %v2191_v28, %v2192_v7  ;;  %v1563_v8 = vadd.f32 %v1539_v42, %v8772_v30  ;;  %v1538_v22 = vsel %vm1442_vm6, %v1495_v3, -1e+09  ;;  %v2200_v25 = vsel %vm2158_vm8, %v9643_v1, -inf }
 0x1db   : > { %13609 = vst [vmem:[#allocation10_spill] sm:$0xff] %v9672_v12  ;;  %v9679_v63 = vpop.eup %7690  ;;  %v2534_v31 = vrot.slane %v9664_v34, %v13611_v33  ;;  %v2202_v36 = vsel %vm2158_vm8, %v9646_v35, -inf  ;;  %v9688_v7 = vadd.f32 %v1538_v22, %v8772_v30  ;;  %vm1447_vm10 = vcmp.gt.f32.partialorder %v9478_v39, 0.0 }
 0x1dc   : > { %13610 = vst [vmem:[#allocation11_spill] sm:$0xff] %v9679_v63  ;;  %v2195_v28 = vmax.f32 %v2193_v40, %v2194_v51  ;;  %v1641_v55 = vrot.slane %v1563_v8, 1  ;;  %v1642_v42 = vrot.slane %v1563_v8, 2  ;;  %v1643_v45 = vrot.slane %v1563_v8, 3 }
 0x1dd   : > { %v2639_v27 = vsub.f32 %v9572_v11, %v2534_v31  ;;  %v2640_v3 = vsub.f32 %v9575_v29, %v2534_v31  ;;  %v2641_v63 = vsub.f32 %v9578_v41, %v2534_v31  ;;  %v2642_v12 = vsub.f32 %v9583_v49, %v2534_v31 }
 0x1de   : > { %v2643_v44 = vsub.f32 %v9586_v16, %v2534_v31  ;;  %v2644_v9 = vsub.f32 %v9591_v4, %v2534_v31  ;;  %v2645_v58 = vsub.f32 %v9594_v53, %v2534_v31  ;;  %v2646_v22 = vsub.f32 %v9597_v26, %v2534_v31 }
 0x1df   : > { %v2855_v51 = vmul.f32 1.442695, %v2639_v27  ;;  %v2857_v40 = vmul.f32 1.442695, %v2640_v3  ;;  %v2859_v18 = vmul.f32 1.442695, %v2641_v63  ;;  %v2197_v43 = vmax.f32 %v2195_v28, %v2196_v57 }
 0x1e0   : > { %v2861_v30 = vmul.f32 1.442695, %v2642_v12  ;;  %v2863_v11 = vmul.f32 1.442695, %v2643_v44  ;;  %v2865_v20 = vmul.f32 1.442695, %v2644_v9  ;;  %v9699_v29 = vadd.f32 %v1563_v8, %v9251_v13 }
 0x1e1   : > { %7694 = vpow2.f32 %v2855_v51  ;;  %v2867_v41 = vmul.f32 1.442695, %v2645_v58  ;;  %v2869_v49 = vmul.f32 1.442695, %v2646_v22  ;;  %v2199_v16 = vmax.f32 %v2197_v43, %v2198_v14 }
 0x1e2   : > { %v9701_v48 = vpop.eup %7692  ;;  %7696 = vpow2.f32 %v2857_v40  ;;  %v1644_v4 = vrot.slane %v1563_v8, 4  ;;  %v1645_v53 = vrot.slane %v1563_v8, 5  ;;  %v1646_v31 = vrot.slane %v1563_v8, 6 }
 0x1e3   : > { %7698 = vpow2.f32 %v2859_v18  ;;  %v2201_v26 = vmax.f32 %v2199_v16, %v2200_v25  ;;  %v1647_v63 = vrot.slane %v1563_v8, 7  ;;  %v9704_v57 = vadd.f32 %v1641_v55, %v9256_v54 }
 0x1e4   : > { %7700 = vpow2.f32 %v2861_v30  ;;  %v9707_v9 = vadd.f32 %v1642_v42, %v13602_v17  ;;  %v9710_v58 = vadd.f32 %v1643_v45, %v13603_v47  ;;  %v9713_v43 = vadd.f32 %v1644_v4, %v13604_v56 }
 0x1e5   : > { %7702 = vpow2.f32 %v2863_v11  ;;  %v9715_v44 = vmax.f32 %v2201_v26, %v2202_v36  ;;  %v9718_v18 = vadd.f32 %v1645_v53, %v13605_v61  ;;  %v9721_v12 = vadd.f32 %v1646_v31, %v13606_v24 }
 0x1e6   : > { %7704 = vpow2.f32 %v2865_v20  ;;  %v9724_v30 = vadd.f32 %v1647_v63, %v13607_v50  ;;  %v2234_v45 = vsel %vm2158_vm8, %v9699_v29, -inf  ;;  %v2235_v55 = vsel %vm2158_vm8, %v9704_v57, -inf }
 0x1e7   : > { %7706 = vpow2.f32 %v2867_v41  ;;  %v2530_v14 = vrot.slane %v9715_v44, %v13611_v33  ;;  %v2236_v8 = vmax.f32 %v2234_v45, %v2235_v55  ;;  %v2237_v25 = vsel %vm2158_vm8, %v9707_v9, -inf  ;;  %v9752_v45 = vpop.f32.mrb[24].mxu1 }
 0x1e8   : > { %7708 = vpow2.f32 %v2869_v49  ;;  %v2239_v20 = vsel %vm2158_vm8, %v9710_v58, -inf  ;;  %v2241_v36 = vsel %vm2158_vm8, %v9713_v43, -inf  ;;  %v2243_v28 = vsel %vm2158_vm8, %v9718_v18, -inf }
 0x1e9   : > { %v2631_v42 = vsub.f32 %v9625_v32, %v2530_v14  ;;  %v2632_v27 = vsub.f32 %v9628_v62, %v2530_v14  ;;  %v2633_v3 = vsub.f32 %v9631_v59, %v2530_v14  ;;  %v2634_v22 = vsub.f32 %v9634_v2, %v2530_v14 }
 0x1ea   : > { %v2635_v51 = vsub.f32 %v9637_v46, %v2530_v14  ;;  %v2636_v40 = vsub.f32 %v9640_v60, %v2530_v14  ;;  %v2637_v11 = vsub.f32 %v9643_v1, %v2530_v14  ;;  %v2638_v41 = vsub.f32 %v9646_v35, %v2530_v14 }
 0x1eb   : > { %v7695_v49 = vpop.eup %7694  ;;  %v2839_v16 = vmul.f32 1.442695, %v2631_v42  ;;  %v2841_v4 = vmul.f32 1.442695, %v2632_v27  ;;  %v2843_v53 = vmul.f32 1.442695, %v2633_v3  ;;  %v2238_v31 = vmax.f32 %v2236_v8, %v2237_v25 }
 0x1ec   : > { %v7697_v32 = vpop.eup %7696  ;;  %v2845_v26 = vmul.f32 1.442695, %v2634_v22  ;;  %v2847_v62 = vmul.f32 1.442695, %v2635_v51  ;;  %v2849_v63 = vmul.f32 1.442695, %v2636_v40  ;;  %v9750_v2 = vadd.f32 %v9688_v7, %v9251_v13 }
 0x1ed   : > { %v7699_v46 = vpop.eup %7698  ;;  %v3432_v59 = vrot.slane %v7697_v32, 7  ;;  %7710 = vpow2.f32 %v2839_v16  ;;  %v2851_v60 = vmul.f32 1.442695, %v2637_v11  ;;  %v2853_v1 = vmul.f32 1.442695, %v2638_v41 }
 0x1ee   : > { %v7701_v35 = vpop.eup %7700  ;;  %v3434_v55 = vrot.slane %v7699_v46, 6  ;;  %7712 = vpow2.f32 %v2841_v4  ;;  %v2240_v14 = vmax.f32 %v2238_v31, %v2239_v20  ;;  %v2245_v8 = vsel %vm2158_vm8, %v9721_v12, -inf }
 0x1ef   : > { %v7703_v25 = vpop.eup %7702  ;;  %v3433_v42 = vsel %vm3384_vm12, %v3432_v59, %v7695_v49  ;;  %v3436_v27 = vrot.slane %v7701_v35, 5  ;;  %7714 = vpow2.f32 %v2843_v53  ;;  %v2247_v3 = vsel %vm2158_vm8, %v9724_v30, -inf }
 0x1f0   : > { %v7705_v22 = vpop.eup %7704  ;;  %v3435_v51 = vsel %vm3387_vm13, %v3434_v55, %v3433_v42  ;;  %v3438_v40 = vrot.slane %v7703_v25, 4  ;;  %7716 = vpow2.f32 %v2845_v26  ;;  %v2242_v11 = vmax.f32 %v2240_v14, %v2241_v36 }
 0x1f1   : > { %v7707_v41 = vpop.eup %7706  ;;  %v3437_v20 = vsel %vm3390_vm14, %v3436_v27, %v3435_v51  ;;  %v3440_v16 = vrot.slane %v7705_v22, 3  ;;  %7718 = vpow2.f32 %v2847_v62  ;;  %v1634_v4 = vrot.slane %v9688_v7, 1 }
 0x1f2   : > { %v7709_v31 = vpop.eup %7708  ;;  %v3439_v49 = vsel %vm3393_vm15, %v3438_v40, %v3437_v20  ;;  %v3442_v53 = vrot.slane %v7707_v41, 2  ;;  %7720 = vpow2.f32 %v2849_v63  ;;  %v2244_v32 = vmax.f32 %v2242_v11, %v2243_v28 }
 0x1f3   : > { %v3441_v46 = vsel %vm3396_vm0, %v3440_v16, %v3439_v49  ;;  %v3444_v59 = vrot.slane %v7709_v31, 1  ;;  %7722 = vpow2.f32 %v2851_v60  ;;  %v1635_v26 = vrot.slane %v9688_v7, 2 }
 0x1f4   : > { %v3443_v36 = vsel %vm3399_vm1, %v3442_v53, %v3441_v46  ;;  %7724 = vpow2.f32 %v2853_v1  ;;  %v2246_v35 = vmax.f32 %v2244_v32, %v2245_v8  ;;  %v1636_v62 = vrot.slane %v9688_v7, 3 }
 0x1f5   : > { %v3445_v55 = vsel %vm3402_vm2, %v3444_v59, %v3443_v36  ;;  %v1637_v14 = vrot.slane %v9688_v7, 4  ;;  %v1638_v25 = vrot.slane %v9688_v7, 5  ;;  %v1639_v28 = vrot.slane %v9688_v7, 6 }
 0x1f6   : > { %v3768_v63 = vrot.slane %v3445_v55, 4  ;;  %v9771_v42 = vmax.f32 %v2246_v35, %v2247_v3  ;;  %v1640_v60 = vrot.slane %v9688_v7, 7  ;;  %v9775_v27 = vadd.f32 %v1634_v4, %v9256_v54 }
 0x1f7   : > { %v7711_v1 = vpop.eup %7710  ;;  %v9778_v8 = vadd.f32 %v1635_v26, %v13602_v17  ;;  %v9781_v22 = vadd.f32 %v1636_v62, %v13603_v47  ;;  %v9784_v51 = vadd.f32 %v1637_v14, %v13604_v56  ;;  %v9787_v40 = vadd.f32 %v1638_v25, %v13605_v61 }
 0x1f8   : > { %v7713_v3 = vpop.eup %7712  ;;  %v3769_v11 = vadd.f32 %v3768_v63, %v3445_v55  ;;  %v2542_v7 = vrot.slane %v9771_v42, %v13611_v33  ;;  %v9792_v41 = vadd.f32 %v1639_v28, %v13606_v24  ;;  %v9795_v20 = vadd.f32 %v1640_v60, %v13607_v50 }
 0x1f9   : > { %v7715_v16 = vpop.eup %7714  ;;  %v13612_v4 = vrot.slane %v9564_v10, 2  ;;  %7726 = vlog2.f32 %v9658_v38  ;;  %v3418_v49 = vrot.slane %v7713_v3, 7  ;;  %v2219_v53 = vsel %vm2158_vm8, %v9750_v2, -inf  ;;  %v9808_v38 = vpop.f32.mrb[25].mxu1 }
 0x1fa   : > { %v7717_v32 = vpop.eup %7716  ;;  %v3770_v46 = vrot.slane %v3769_v11, 2  ;;  %v3420_v59 = vrot.slane %v7715_v16, 6  ;;  %v2655_v26 = vsub.f32 %v9699_v29, %v2542_v7  ;;  %v2656_v36 = vsub.f32 %v9704_v57, %v2542_v7 }
 0x1fb   : > { %v1167_v31 = vadd.f32 %v13612_v4, %v9564_v10  ;;  %v7719_v35 = vpop.eup %7718  ;;  %v3419_v62 = vsel %vm3384_vm12, %v3418_v49, %v7711_v1  ;;  %v3422_v55 = vrot.slane %v7717_v32, 5  ;;  %v2657_v14 = vsub.f32 %v9707_v9, %v2542_v7 }
 0x1fc   : > { %v2658_v10 = vsub.f32 %v9710_v58, %v2542_v7  ;;  %v7721_v25 = vpop.eup %7720  ;;  %v3771_v28 = vadd.f32 %v3770_v46, %v3769_v11  ;;  %v3421_v63 = vsel %vm3387_vm13, %v3420_v59, %v3419_v62  ;;  %v3424_v60 = vrot.slane %v7719_v35, 4 }
 0x1fd   : > { %v2659_v3 = vsub.f32 %v9713_v43, %v2542_v7  ;;  %v7723_v29 = vpop.eup %7722  ;;  %v3423_v57 = vsel %vm3390_vm14, %v3422_v55, %v3421_v63  ;;  %v3426_v16 = vrot.slane %v7721_v25, 3  ;;  %v2660_v1 = vsub.f32 %v9718_v18, %v2542_v7 }
 0x1fe   : > { %v2661_v4 = vsub.f32 %v9721_v12, %v2542_v7  ;;  %v7725_v9 = vpop.eup %7724  ;;  %v3772_v49 = vrot.slane %v3771_v28, 1  ;;  %v3425_v58 = vsel %vm3393_vm15, %v3424_v60, %v3423_v57  ;;  %v3428_v32 = vrot.slane %v7723_v29, 2 }
 0x1ff   : > { %v2662_v11 = vsub.f32 %v9724_v30, %v2542_v7  ;;  %v3427_v46 = vsel %vm3396_vm0, %v3426_v16, %v3425_v58  ;;  %v3430_v59 = vrot.slane %v7725_v9, 1  ;;  %v2887_v35 = vmul.f32 1.442695, %v2655_v26 }
 0x200   : > { %v2889_v43 = vmul.f32 1.442695, %v2656_v36  ;;  %v3773_v62 = vadd.f32 %v3772_v49, %v3771_v28  ;;  %v3429_v55 = vsel %vm3399_vm1, %v3428_v32, %v3427_v46  ;;  %v2891_v25 = vmul.f32 1.442695, %v2657_v14 }
 0x201   : > { %v2220_v18 = vsel %vm2158_vm8, %v9775_v27, -inf  ;;  %v1168_v12 = vrot.slane %v1167_v31, 1  ;;  %v3431_v63 = vsel %vm3402_vm2, %v3430_v59, %v3429_v55  ;;  %7728 = vpow2.f32 %v2887_v35  ;;  %v13615_v59 = vld [vmem:[#allocation6_spill] sm:$0xff]  ;;  %v13618_v55 = vld [vmem:[#allocation13_spill] sm:$0xff] }
 0x202   : > { %v2893_v60 = vmul.f32 1.442695, %v2658_v10  ;;  %7730 = vlog2.f32 %v3773_v62  ;;  %v3762_v29 = vrot.slane %v3431_v63, 4  ;;  %v2895_v30 = vmul.f32 1.442695, %v2659_v3 }
 0x203   : > { %v2222_v7 = vsel %vm2158_vm8, %v9778_v8, -inf  ;;  %v9824_v26 = vpop.eup %7726  ;;  %v1187_v36 = vmul.f32 0.6931472, %v9569_v6  ;;  %7732 = vpow2.f32 %v2889_v43  ;;  %v2897_v14 = vmul.f32 1.442695, %v2660_v1  ;;  %v13617_v43 = vld [vmem:[#allocation7_spill] sm:$0xff] }
 0x204   : > { %13613 = vst [vmem:[#allocation12_spill] sm:$0xff] %v9824_v26  ;;  %v2221_v28 = vmax.f32 %v2219_v53, %v2220_v18  ;;  %v1193_v57 = vmul.f32 0.6931472, %v9580_v5  ;;  %v3763_v16 = vadd.f32 %v3762_v29, %v3431_v63  ;;  %7734 = vpow2.f32 %v2891_v25  ;;  %v13614_v5 = vld [vmem:[#allocation8_spill] sm:$0xff] }
 0x205   : > { %v2899_v9 = vmul.f32 1.442695, %v2661_v4  ;;  %v1169_v49 = vadd.f32 %v1168_v12, %v1167_v31  ;;  %7736 = vpow2.f32 %v2893_v60  ;;  %v2901_v10 = vmul.f32 1.442695, %v2662_v11  ;;  %v13616_v11 = vld [vmem:[#allocation18_spill] sm:$0xff]  ;;  %v13619_v60 = vld [vmem:[#allocation17_spill] sm:$0xff] }
 0x206   : > { %v2223_v58 = vmax.f32 %v2221_v28, %v2222_v7  ;;  %v3764_v3 = vrot.slane %v3763_v16, 2  ;;  %7738 = vpow2.f32 %v2895_v30  ;;  %v2224_v32 = vsel %vm2158_vm8, %v9781_v22, -inf }
 0x207   : > { %v2226_v6 = vsel %vm2158_vm8, %v9784_v51, -inf  ;;  %v1191_v1 = vmul.f32 0.6931472, %v9601_v52  ;;  %7740 = vpow2.f32 %v2897_v14  ;;  %v1469_v46 = vmax.f32 %v13614_v5, 1e-30 }
 0x208   : > { %v2225_v53 = vmax.f32 %v2223_v58, %v2224_v32  ;;  %v9836_v31 = vadd.f32 %v9608_v15, %v13615_v59  ;;  %v3765_v4 = vadd.f32 %v3764_v3, %v3763_v16  ;;  %7742 = vpow2.f32 %v2899_v9 }
 0x209   : > { %v1468_v35 = vmax.f32 %v13616_v11, 1e-30  ;;  %v9840_v62 = vadd.f32 %v1187_v36, %v13617_v43  ;;  %v9843_v25 = vadd.f32 %v1193_v57, %v13618_v55  ;;  %7744 = vpow2.f32 %v2901_v10 }
 0x20a   : > { %v2227_v52 = vmax.f32 %v2225_v53, %v2226_v6  ;;  %7746 = vlog2.f32 %v1169_v49  ;;  %v3766_v18 = vrot.slane %v3765_v4, 1  ;;  %v2228_v12 = vsel %vm2158_vm8, %v9787_v40, -inf }
 0x20b   : > { %v2230_v15 = vsel %vm2158_vm8, %v9792_v41, -inf  ;;  %v7729_v63 = vpop.eup %7728  ;;  %v9850_v29 = vadd.f32 %v1191_v1, %v13619_v60  ;;  %7748 = vlog2.f32 %v1469_v46  ;;  %v1471_v7 = vmax.f32 %v9478_v39, 1e-30 }
 0x20c   : > { %v2229_v30 = vmax.f32 %v2227_v52, %v2228_v12  ;;  %v7731_v36 = vpop.eup %7730  ;;  %v1203_v14 = vmul.f32 0.6931472, %v9648_v21  ;;  %v3767_v28 = vadd.f32 %v3766_v18, %v3765_v4  ;;  %7750 = vlog2.f32 %v1468_v35  ;;  %v13621_v35 = vld [vmem:[#allocation19_spill] sm:$0xff] }
 0x20d   : > { %v1470_v57 = vmax.f32 %v9493_v0, 1e-30  ;;  %v7733_v16 = vpop.eup %7732  ;;  %v3901_v9 = vmul.f32 0.6931472, %v7731_v36  ;;  %7752 = vlog2.f32 %v1471_v7  ;;  %v1473_v10 = vmax.f32 %v9548_v19, 1e-30 }
 0x20e   : > { %v2231_v49 = vmax.f32 %v2229_v30, %v2230_v15  ;;  %v7735_v58 = vpop.eup %7734  ;;  %7754 = vlog2.f32 %v3767_v28  ;;  %v3460_v3 = vrot.slane %v7733_v16, 7  ;;  %v2232_v32 = vsel %vm2158_vm8, %v9795_v20, -inf }
 0x20f   : > { %v1472_v6 = vmax.f32 %v9622_v37, 1e-30  ;;  %v7737_v1 = vpop.eup %7736  ;;  %v9860_v21 = vadd.f32 %v3901_v9, %v9664_v34  ;;  %v3462_v53 = vrot.slane %v7735_v58, 6  ;;  %7756 = vlog2.f32 %v1470_v57 }
 0x210   : > { %v9862_v46 = vmax.f32 %v2231_v49, %v2232_v32  ;;  %v7739_v59 = vpop.eup %7738  ;;  %v9865_v4 = vmul.f32 0.6931472, %v9656_v23  ;;  %v9868_v43 = vadd.f32 %v1203_v14, %v13621_v35  ;;  %v3461_v55 = vsel %vm3384_vm12, %v3460_v3, %v7729_v63 }
 0x211   : > { %13620 = vst [vmem:[#allocation14_spill] sm:$0xff] %v9860_v21  ;;  %v3464_v52 = vrot.slane %v7737_v1, 5  ;;  %v7741_v18 = vpop.eup %7740  ;;  %v3463_v12 = vsel %vm3387_vm13, %v3462_v53, %v3461_v55  ;;  %v3466_v15 = vrot.slane %v7739_v59, 4  ;;  %vm1445_vm7 = vcmp.gt.f32.partialorder %v13614_v5, 0.0 }
 0x212   : > { %13622 = vst [vmem:[#allocation16_spill] sm:$0xff] %v9868_v43  ;;  %v2538_v34 = vrot.slane %v9862_v46, %v13611_v33  ;;  %vm1444_vm9 = vcmp.gt.f32.partialorder %v13616_v11, 0.0  ;;  %7758 = vlog2.f32 %v1473_v10  ;;  %v7743_v23 = vpop.eup %7742  ;;  %v3468_v30 = vrot.slane %v7741_v18, 3 }
 0x213   : > { %v3465_v60 = vsel %vm3390_vm14, %v3464_v52, %v3463_v12  ;;  %7760 = vlog2.f32 %v1472_v6  ;;  %v1475_v63 = vmax.f32 %v9752_v45, 1e-30  ;;  %v7745_v7 = vpop.eup %7744  ;;  %v3470_v14 = vrot.slane %v7743_v23, 2 }
 0x214   : > { %v3467_v36 = vsel %vm3393_vm15, %v3466_v15, %v3465_v60  ;;  %v2647_v28 = vsub.f32 %v9750_v2, %v2538_v34  ;;  %v2648_v57 = vsub.f32 %v9775_v27, %v2538_v34  ;;  %vm1446_vm11 = vcmp.gt.f32.partialorder %v9493_v0, 0.0  ;;  %v9883_v16 = vpop.eup %7746 }
 0x215   : > { %13623 = vst [vmem:[#allocation15_spill] sm:$0xff] %v9883_v16  ;;  %v3469_v9 = vsel %vm3396_vm0, %v3468_v30, %v3467_v36  ;;  %v3472_v49 = vrot.slane %v7745_v7, 1  ;;  %v2649_v10 = vsub.f32 %v9778_v8, %v2538_v34  ;;  %v2650_v58 = vsub.f32 %v9781_v22, %v2538_v34  ;;  %v7749_v3 = vpop.eup %7748 }
 0x216   : > { %v3471_v32 = vsel %vm3399_vm1, %v3470_v14, %v3469_v9  ;;  %v2651_v6 = vsub.f32 %v9784_v51, %v2538_v34  ;;  %v2652_v2 = vsub.f32 %v9787_v40, %v2538_v34  ;;  %v2653_v27 = vsub.f32 %v9792_v41, %v2538_v34  ;;  %v7751_v1 = vpop.eup %7750 }
 0x217   : > { %v3473_v53 = vsel %vm3402_vm2, %v3472_v49, %v3471_v32  ;;  %v2654_v59 = vsub.f32 %v9795_v20, %v2538_v34  ;;  %v2871_v35 = vmul.f32 1.442695, %v2647_v28  ;;  %v2873_v55 = vmul.f32 1.442695, %v2648_v57  ;;  %v7753_v52 = vpop.eup %7752  ;;  %v13627_v32 = vld [vmem:[#allocation2_spill] sm:$0xff] }
 0x218   : > { %v3780_v8 = vrot.slane %v3473_v53, 4  ;;  %v2875_v18 = vmul.f32 1.442695, %v2649_v10  ;;  %v2877_v22 = vmul.f32 1.442695, %v2650_v58  ;;  %7762 = vlog2.f32 %v1475_v63  ;;  %v7755_v12 = vpop.eup %7754  ;;  %v13625_v58 = vld [vmem:[#allocation20_spill] sm:$0xff] }
 0x219   : > { %7764 = vpow2.f32 %v2871_v35  ;;  %v2879_v15 = vmul.f32 1.442695, %v2651_v6  ;;  %v2881_v51 = vmul.f32 1.442695, %v2652_v2  ;;  %v2883_v23 = vmul.f32 1.442695, %v2653_v27  ;;  %v7757_v40 = vpop.eup %7756 }
 0x21a   : > { %v3899_v60 = vmul.f32 0.6931472, %v7755_v12  ;;  %v3781_v41 = vadd.f32 %v3780_v8, %v3473_v53  ;;  %7766 = vpow2.f32 %v2873_v55  ;;  %v2885_v30 = vmul.f32 1.442695, %v2654_v59 }
 0x21b   : > { %7768 = vpow2.f32 %v2875_v18  ;;  %v1501_v7 = vmul.f32 0.6931472, %v7749_v3  ;;  %v1499_v20 = vmul.f32 0.6931472, %v7751_v1  ;;  %v1505_v34 = vmul.f32 0.6931472, %v7753_v52 }
 0x21c   : > { %v9894_v36 = vpop.eup %7758  ;;  %v9897_v14 = vadd.f32 %v3899_v60, %v9715_v44  ;;  %v3782_v63 = vrot.slane %v3781_v41, 2  ;;  %7770 = vpow2.f32 %v2877_v22  ;;  %v1503_v28 = vmul.f32 0.6931472, %v7757_v40 }
 0x21d   : > { %v9899_v57 = vpop.eup %7760  ;;  %7772 = vpow2.f32 %v2879_v15  ;;  %v1541_v9 = vsel %vm1445_vm7, %v1501_v7, -1e+09  ;;  %v1540_v49 = vsel %vm1444_vm9, %v1499_v20, -1e+09  ;;  %v1543_v10 = vsel %vm1447_vm10, %v1505_v34, -1e+09 }
 0x21e   : > { %13624 = vst [vmem:[#allocation8_spill] sm:$0xff] %v9897_v14  ;;  %v9909_v3 = vadd.f32 %v9865_v4, %v13625_v58  ;;  %v3783_v44 = vadd.f32 %v3782_v63, %v3781_v41  ;;  %7774 = vpow2.f32 %v2881_v51  ;;  %v1565_v6 = vadd.f32 %v1541_v9, %v13627_v32  ;;  %v9950_v7 = vpop.f32.mrb[26].mxu1 }
 0x21f   : > { %7776 = vpow2.f32 %v2883_v23  ;;  %v9913_v2 = vadd.f32 %v1540_v49, %v13627_v32  ;;  %v9916_v5 = vadd.f32 %v1543_v10, %v13627_v32  ;;  %v9920_v11 = vsel %vm1446_vm11, %v1503_v28, -1e+09  ;;  %13628 = vst [vmem:[#allocation18_spill] sm:$0xff] %v9950_v7 }
 0x220   : > { %13626 = vst [vmem:[#allocation6_spill] sm:$0xff] %v9909_v3  ;;  %v3784_v39 = vrot.slane %v3783_v44, 1  ;;  %7778 = vpow2.f32 %v2885_v30  ;;  %v1655_v27 = vrot.slane %v1565_v6, 1  ;;  %v1656_v4 = vrot.slane %v1565_v6, 2 }
 0x221   : > { %v1657_v1 = vrot.slane %v1565_v6, 3  ;;  %v1658_v53 = vrot.slane %v1565_v6, 4  ;;  %v1659_v59 = vrot.slane %v1565_v6, 5  ;;  %v1660_v35 = vrot.slane %v1565_v6, 6 }
 0x222   : > { %v9922_v55 = vpop.eup %7762  ;;  %v3785_v52 = vadd.f32 %v3784_v39, %v3783_v44  ;;  %v1661_v8 = vrot.slane %v1565_v6, 7  ;;  %v9925_v18 = vadd.f32 %v1565_v6, %v9251_v13  ;;  %v9928_v22 = vadd.f32 %v1655_v27, %v9256_v54 }
 0x223   : > { %v7765_v0 = vpop.eup %7764  ;;  %v9931_v12 = vadd.f32 %v1656_v4, %v13602_v17  ;;  %v9934_v15 = vadd.f32 %v1657_v1, %v13603_v47  ;;  %v9937_v51 = vadd.f32 %v1658_v53, %v13604_v56  ;;  %v9940_v23 = vadd.f32 %v1659_v59, %v13605_v61 }
 0x224   : > { %v7767_v40 = vpop.eup %7766  ;;  %7780 = vlog2.f32 %v3785_v52  ;;  %v9943_v60 = vadd.f32 %v1660_v35, %v13606_v24  ;;  %v9946_v41 = vadd.f32 %v1661_v8, %v13607_v50  ;;  %v2264_v30 = vsel %vm2158_vm8, %v9925_v18, -inf }
 0x225   : > { %v7769_v20 = vpop.eup %7768  ;;  %v3446_v34 = vrot.slane %v7767_v40, 7  ;;  %v2265_v63 = vsel %vm2158_vm8, %v9928_v22, -inf  ;;  %v2267_v28 = vsel %vm2158_vm8, %v9931_v12, -inf  ;;  %v2269_v9 = vsel %vm2158_vm8, %v9934_v15, -inf }
 0x226   : > { %v7771_v49 = vpop.eup %7770  ;;  %v3448_v10 = vrot.slane %v7769_v20, 6  ;;  %v2266_v58 = vmax.f32 %v2264_v30, %v2265_v63  ;;  %v2271_v44 = vsel %vm2158_vm8, %v9937_v51, -inf  ;;  %v2273_v6 = vsel %vm2158_vm8, %v9940_v23, -inf }
 0x227   : > { %v7773_v39 = vpop.eup %7772  ;;  %v3447_v27 = vsel %vm3384_vm12, %v3446_v34, %v7765_v0  ;;  %v3450_v4 = vrot.slane %v7771_v49, 5  ;;  %v2275_v1 = vsel %vm2158_vm8, %v9943_v60, -inf  ;;  %v2277_v53 = vsel %vm2158_vm8, %v9946_v41, -inf }
 0x228   : > { %v7775_v59 = vpop.eup %7774  ;;  %v3449_v35 = vsel %vm3387_vm13, %v3448_v10, %v3447_v27  ;;  %v3452_v52 = vrot.slane %v7773_v39, 4  ;;  %v2268_v8 = vmax.f32 %v2266_v58, %v2267_v28  ;;  %v1648_v40 = vrot.slane %v9913_v2, 1 }
 0x229   : > { %v7777_v30 = vpop.eup %7776  ;;  %v3451_v20 = vsel %vm3390_vm14, %v3450_v4, %v3449_v35  ;;  %v3454_v63 = vrot.slane %v7775_v59, 3  ;;  %v1649_v0 = vrot.slane %v9913_v2, 2  ;;  %v1650_v34 = vrot.slane %v9913_v2, 3 }
 0x22a   : > { %v7779_v49 = vpop.eup %7778  ;;  %v3453_v21 = vsel %vm3393_vm15, %v3452_v52, %v3451_v20  ;;  %v3456_v14 = vrot.slane %v7777_v30, 2  ;;  %v2270_v3 = vmax.f32 %v2268_v8, %v2269_v9  ;;  %v1651_v43 = vrot.slane %v9913_v2, 4 }
 0x22b   : > { %v3455_v10 = vsel %vm3396_vm0, %v3454_v63, %v3453_v21  ;;  %v3458_v28 = vrot.slane %v7779_v49, 1  ;;  %v1652_v58 = vrot.slane %v9913_v2, 5  ;;  %v1653_v39 = vrot.slane %v9913_v2, 6 }
 0x22c   : > { %v3457_v27 = vsel %vm3399_vm1, %v3456_v14, %v3455_v10  ;;  %v2272_v4 = vmax.f32 %v2270_v3, %v2271_v44  ;;  %v1654_v59 = vrot.slane %v9913_v2, 7  ;;  %v9981_v35 = vadd.f32 %v9913_v2, %v9251_v13 }
 0x22d   : > { %v3459_v9 = vsel %vm3402_vm2, %v3458_v28, %v3457_v27  ;;  %v9985_v52 = vadd.f32 %v1648_v40, %v9256_v54  ;;  %v9988_v21 = vadd.f32 %v1649_v0, %v13602_v17  ;;  %v9991_v8 = vadd.f32 %v1650_v34, %v13603_v47  ;;  %v10007_v47 = vpop.f32.mrb[27].mxu1 }
 0x22e   : > { %v7781_v30 = vpop.eup %7780  ;;  %v3774_v14 = vrot.slane %v3459_v9, 4  ;;  %v2274_v3 = vmax.f32 %v2272_v4, %v2273_v6  ;;  %v9994_v44 = vadd.f32 %v1651_v43, %v13604_v56  ;;  %v9997_v13 = vadd.f32 %v1652_v58, %v13605_v61  ;;  %13629 = vst [vmem:[#allocation7_spill] sm:$0xff] %v10007_v47 }
 0x22f   : > { %v3905_v2 = vmul.f32 0.6931472, %v7781_v30  ;;  %v10000_v20 = vadd.f32 %v1653_v39, %v13606_v24  ;;  %v10003_v54 = vadd.f32 %v1654_v59, %v13607_v50  ;;  %v2249_v17 = vsel %vm2158_vm8, %v9981_v35, -inf }
 0x230   : > { %v3775_v40 = vadd.f32 %v3774_v14, %v3459_v9  ;;  %v2276_v6 = vmax.f32 %v2274_v3, %v2275_v1  ;;  %v2250_v56 = vsel %vm2158_vm8, %v9985_v52, -inf  ;;  %v2252_v61 = vsel %vm2158_vm8, %v9988_v21, -inf }
 0x231   : > { %v10014_v43 = vadd.f32 %v3905_v2, %v9771_v42  ;;  %v2251_v24 = vmax.f32 %v2249_v17, %v2250_v56  ;;  %v2254_v50 = vsel %vm2158_vm8, %v9991_v8, -inf  ;;  %v2256_v63 = vsel %vm2158_vm8, %v9994_v44, -inf }
 0x232   : > { %v3776_v0 = vrot.slane %v3775_v40, 2  ;;  %v10020_v34 = vmax.f32 %v2276_v6, %v2277_v53  ;;  %v2258_v1 = vsel %vm2158_vm8, %v9997_v13, -inf  ;;  %v2260_v49 = vsel %vm2158_vm8, %v10000_v20, -inf }
 0x233   : > { %13630 = vst [vmem:[#allocation13_spill] sm:$0xff] %v10014_v43  ;;  %v2253_v10 = vmax.f32 %v2251_v24, %v2252_v61  ;;  %v2262_v42 = vsel %vm2158_vm8, %v10003_v54, -inf  ;;  %v1669_v28 = vrot.slane %v9916_v5, 1  ;;  %v1670_v58 = vrot.slane %v9916_v5, 2 }
 0x234   : > { %v3777_v39 = vadd.f32 %v3776_v0, %v3775_v40  ;;  %v2550_v27 = vrot.slane %v10020_v34, %v13611_v33  ;;  %v1671_v53 = vrot.slane %v9916_v5, 3  ;;  %v1672_v4 = vrot.slane %v9916_v5, 4 }
 0x235   : > { %v2255_v59 = vmax.f32 %v2253_v10, %v2254_v50  ;;  %v1673_v9 = vrot.slane %v9916_v5, 5  ;;  %v1674_v30 = vrot.slane %v9916_v5, 6  ;;  %v1675_v14 = vrot.slane %v9916_v5, 7 }
 0x236   : > { %v3778_v3 = vrot.slane %v3777_v39, 1  ;;  %v2671_v2 = vsub.f32 %v9925_v18, %v2550_v27  ;;  %v2672_v17 = vsub.f32 %v9928_v22, %v2550_v27  ;;  %v2673_v40 = vsub.f32 %v9931_v12, %v2550_v27 }
 0x237   : > { %v2674_v6 = vsub.f32 %v9934_v15, %v2550_v27  ;;  %v2675_v56 = vsub.f32 %v9937_v51, %v2550_v27  ;;  %v2676_v61 = vsub.f32 %v9940_v23, %v2550_v27  ;;  %v2677_v24 = vsub.f32 %v9943_v60, %v2550_v27 }
 0x238   : > { %v3779_v50 = vadd.f32 %v3778_v3, %v3777_v39  ;;  %v2678_v0 = vsub.f32 %v9946_v41, %v2550_v27  ;;  %v2919_v10 = vmul.f32 1.442695, %v2671_v2  ;;  %v2921_v43 = vmul.f32 1.442695, %v2672_v17 }
 0x239   : > { %v2923_v47 = vmul.f32 1.442695, %v2673_v40  ;;  %v2925_v7 = vmul.f32 1.442695, %v2674_v6  ;;  %v2927_v18 = vmul.f32 1.442695, %v2675_v56  ;;  %v2257_v16 = vmax.f32 %v2255_v59, %v2256_v63 }
 0x23a   : > { %7782 = vlog2.f32 %v3779_v50  ;;  %v2929_v22 = vmul.f32 1.442695, %v2676_v61  ;;  %v2931_v12 = vmul.f32 1.442695, %v2677_v24  ;;  %v2933_v26 = vmul.f32 1.442695, %v2678_v0 }
 0x23b   : > { %7784 = vpow2.f32 %v2919_v10  ;;  %v2259_v15 = vmax.f32 %v2257_v16, %v2258_v1  ;;  %v10047_v51 = vadd.f32 %v9916_v5, %v9840_v62  ;;  %v10050_v23 = vadd.f32 %v1669_v28, %v9836_v31  ;;  %v13631_v63 = vld [vmem:[#allocation28_spill] sm:$0xff]  ;;  %v13632_v16 = vld [vmem:[#allocation29_spill] sm:$0xff] }
 0x23c   : > { %7786 = vpow2.f32 %v2921_v43  ;;  %v10053_v60 = vadd.f32 %v1670_v58, %v9850_v29  ;;  %v10056_v41 = vadd.f32 %v1671_v53, %v9843_v25  ;;  %v10059_v39 = vadd.f32 %v1672_v4, %v13631_v63  ;;  %v13633_v5 = vld [vmem:[#allocation4_spill] sm:$0xff]  ;;  %v13634_v28 = vld [vmem:[#allocation5_spill] sm:$0xff] }
 0x23d   : > { %7788 = vpow2.f32 %v2923_v47  ;;  %v2261_v27 = vmax.f32 %v2259_v15, %v2260_v49  ;;  %v10062_v1 = vadd.f32 %v1673_v9, %v13632_v16  ;;  %v10065_v59 = vadd.f32 %v1674_v30, %v13633_v5 }
 0x23e   : > { %7790 = vpow2.f32 %v2925_v7  ;;  %v10068_v43 = vadd.f32 %v1675_v14, %v13634_v28  ;;  %v2294_v58 = vsel %vm2158_vm8, %v10047_v51, -inf  ;;  %v2295_v53 = vsel %vm2158_vm8, %v10050_v23, -inf }
 0x23f   : > { %7792 = vpow2.f32 %v2927_v18  ;;  %v10074_v4 = vmax.f32 %v2261_v27, %v2262_v42  ;;  %v2296_v47 = vmax.f32 %v2294_v58, %v2295_v53  ;;  %v2297_v49 = vsel %vm2158_vm8, %v10053_v60, -inf }
 0x240   : > { %7794 = vpow2.f32 %v2929_v22  ;;  %v2299_v7 = vsel %vm2158_vm8, %v10056_v41, -inf  ;;  %v2301_v9 = vsel %vm2158_vm8, %v10059_v39, -inf  ;;  %v10083_v30 = vmul.f32 0.6931472, %v9894_v36 }
 0x241   : > { %7796 = vpow2.f32 %v2931_v12  ;;  %v2546_v14 = vrot.slane %v10074_v4, %v13611_v33  ;;  %v2298_v42 = vmax.f32 %v2296_v47, %v2297_v49  ;;  %v2303_v3 = vsel %vm2158_vm8, %v10062_v1, -inf }
 0x242   : > { %7798 = vpow2.f32 %v2933_v26  ;;  %v2305_v2 = vsel %vm2158_vm8, %v10065_v59, -inf  ;;  %v2307_v17 = vsel %vm2158_vm8, %v10068_v43, -inf  ;;  %v10095_v40 = vadd.f32 %v9920_v11, %v13627_v32 }
 0x243   : > { %v2663_v36 = vsub.f32 %v9981_v35, %v2546_v14  ;;  %v2664_v6 = vsub.f32 %v9985_v52, %v2546_v14  ;;  %v2665_v56 = vsub.f32 %v9988_v21, %v2546_v14  ;;  %v2666_v61 = vsub.f32 %v9991_v8, %v2546_v14 }
 0x244   : > { %v7783_v24 = vpop.eup %7782  ;;  %v2667_v26 = vsub.f32 %v9994_v44, %v2546_v14  ;;  %v2668_v50 = vsub.f32 %v9997_v13, %v2546_v14  ;;  %v2669_v0 = vsub.f32 %v10000_v20, %v2546_v14  ;;  %v2670_v10 = vsub.f32 %v10003_v54, %v2546_v14 }
 0x245   : > { %v7785_v18 = vpop.eup %7784  ;;  %v3903_v11 = vmul.f32 0.6931472, %v7783_v24  ;;  %v2903_v22 = vmul.f32 1.442695, %v2663_v36  ;;  %v2905_v12 = vmul.f32 1.442695, %v2664_v6  ;;  %v2300_v35 = vmax.f32 %v2298_v42, %v2299_v7 }
 0x246   : > { %v7787_v15 = vpop.eup %7786  ;;  %v2907_v52 = vmul.f32 1.442695, %v2665_v56  ;;  %v2909_v27 = vmul.f32 1.442695, %v2666_v61  ;;  %v2911_v21 = vmul.f32 1.442695, %v2667_v26  ;;  %v10107_v8 = vadd.f32 %v10095_v40, %v9840_v62 }
 0x247   : > { %v7789_v44 = vpop.eup %7788  ;;  %v10110_v13 = vadd.f32 %v3903_v11, %v9862_v46  ;;  %v3488_v20 = vrot.slane %v7787_v15, 7  ;;  %7800 = vpow2.f32 %v2903_v22  ;;  %v2913_v54 = vmul.f32 1.442695, %v2668_v50 }
 0x248   : > { %v7791_v58 = vpop.eup %7790  ;;  %v3490_v53 = vrot.slane %v7789_v44, 6  ;;  %7802 = vpow2.f32 %v2905_v12  ;;  %v2915_v47 = vmul.f32 1.442695, %v2669_v0  ;;  %v2917_v49 = vmul.f32 1.442695, %v2670_v10  ;;  %v10116_v10 = vpop.f32.mrb[28].mxu1 }
 0x249   : > { %v7793_v7 = vpop.eup %7792  ;;  %v3489_v14 = vsel %vm3384_vm12, %v3488_v20, %v7785_v18  ;;  %v3492_v42 = vrot.slane %v7791_v58, 5  ;;  %7804 = vpow2.f32 %v2907_v52  ;;  %v2302_v36 = vmax.f32 %v2300_v35, %v2301_v9 }
 0x24a   : > { %v7795_v6 = vpop.eup %7794  ;;  %v3491_v56 = vsel %vm3387_vm13, %v3490_v53, %v3489_v14  ;;  %v3494_v61 = vrot.slane %v7793_v7, 4  ;;  %7806 = vpow2.f32 %v2909_v27  ;;  %v1662_v46 = vrot.slane %v10095_v40, 1 }
 0x24b   : > { %v7797_v24 = vpop.eup %7796  ;;  %v3493_v26 = vsel %vm3390_vm14, %v3492_v42, %v3491_v56  ;;  %v3496_v50 = vrot.slane %v7795_v6, 3  ;;  %7808 = vpow2.f32 %v2911_v21  ;;  %v2304_v0 = vmax.f32 %v2302_v36, %v2303_v3 }
 0x24c   : > { %v7799_v11 = vpop.eup %7798  ;;  %v3495_v18 = vsel %vm3393_vm15, %v3494_v61, %v3493_v26  ;;  %v3498_v22 = vrot.slane %v7797_v24, 2  ;;  %7810 = vpow2.f32 %v2913_v54  ;;  %v1663_v9 = vrot.slane %v10095_v40, 2 }
 0x24d   : > { %v3497_v12 = vsel %vm3396_vm0, %v3496_v50, %v3495_v18  ;;  %v3500_v35 = vrot.slane %v7799_v11, 1  ;;  %7812 = vpow2.f32 %v2915_v47  ;;  %v2306_v15 = vmax.f32 %v2304_v0, %v2305_v2 }
 0x24e   : > { %v3499_v52 = vsel %vm3399_vm1, %v3498_v22, %v3497_v12  ;;  %7814 = vpow2.f32 %v2917_v49  ;;  %v1664_v27 = vrot.slane %v10095_v40, 3  ;;  %v1665_v3 = vrot.slane %v10095_v40, 4 }
 0x24f   : > { %v3501_v21 = vsel %vm3402_vm2, %v3500_v35, %v3499_v52  ;;  %v10125_v44 = vmax.f32 %v2306_v15, %v2307_v17  ;;  %v1666_v20 = vrot.slane %v10095_v40, 5  ;;  %v1667_v54 = vrot.slane %v10095_v40, 6 }
 0x250   : > { %v3792_v58 = vrot.slane %v3501_v21, 4  ;;  %v1668_v53 = vrot.slane %v10095_v40, 7  ;;  %v10131_v2 = vadd.f32 %v1662_v46, %v9836_v31  ;;  %v10134_v47 = vadd.f32 %v1663_v9, %v9850_v29 }
 0x251   : > { %vm1449_vm3 = vcmp.gt.f32.partialorder %v9548_v19, 0.0  ;;  %v7801_v49 = vpop.eup %7800  ;;  %v2558_v17 = vrot.slane %v10125_v44, %v13611_v33  ;;  %v10140_v7 = vadd.f32 %v1664_v27, %v9843_v25  ;;  %v10143_v14 = vadd.f32 %v1665_v3, %v13631_v63 }
 0x252   : > { %v10146_v40 = vadd.f32 %v1666_v20, %v13632_v16  ;;  %v7803_v42 = vpop.eup %7802  ;;  %v3793_v36 = vadd.f32 %v3792_v58, %v3501_v21  ;;  %v10149_v6 = vadd.f32 %v1667_v54, %v13633_v5  ;;  %v10152_v56 = vadd.f32 %v1668_v53, %v13634_v28 }
 0x253   : > { %v2279_v61 = vsel %vm2158_vm8, %v10107_v8, -inf  ;;  %v7805_v46 = vpop.eup %7804  ;;  %v3474_v24 = vrot.slane %v7803_v42, 7  ;;  %v2687_v26 = vsub.f32 %v10047_v51, %v2558_v17  ;;  %v2688_v50 = vsub.f32 %v10050_v23, %v2558_v17 }
 0x254   : > { %v2689_v0 = vsub.f32 %v10053_v60, %v2558_v17  ;;  %v7807_v11 = vpop.eup %7806  ;;  %v3794_v18 = vrot.slane %v3793_v36, 2  ;;  %v3476_v22 = vrot.slane %v7805_v46, 6  ;;  %v2690_v9 = vsub.f32 %v10056_v41, %v2558_v17 }
 0x255   : > { %v2691_v12 = vsub.f32 %v10059_v39, %v2558_v17  ;;  %v7809_v35 = vpop.eup %7808  ;;  %v3475_v15 = vsel %vm3384_vm12, %v3474_v24, %v7801_v49  ;;  %v3478_v52 = vrot.slane %v7807_v11, 5  ;;  %v2692_v27 = vsub.f32 %v10062_v1, %v2558_v17 }
 0x256   : > { %v2693_v3 = vsub.f32 %v10065_v59, %v2558_v17  ;;  %v7811_v51 = vpop.eup %7810  ;;  %v3795_v21 = vadd.f32 %v3794_v18, %v3793_v36  ;;  %v3477_v23 = vsel %vm3387_vm13, %v3476_v22, %v3475_v15  ;;  %v3480_v60 = vrot.slane %v7809_v35, 4  ;;  %v10169_v18 = vpop.f32.mrb[29].mxu1 }
 0x257   : > { %v2694_v20 = vsub.f32 %v10068_v43, %v2558_v17  ;;  %v7813_v54 = vpop.eup %7812  ;;  %v3479_v41 = vsel %vm3390_vm14, %v3478_v52, %v3477_v23  ;;  %v3482_v58 = vrot.slane %v7811_v51, 3  ;;  %v2951_v39 = vmul.f32 1.442695, %v2687_v26 }
 0x258   : > { %v2953_v53 = vmul.f32 1.442695, %v2688_v50  ;;  %v7815_v42 = vpop.eup %7814  ;;  %v3796_v49 = vrot.slane %v3795_v21, 1  ;;  %v3481_v46 = vsel %vm3393_vm15, %v3480_v60, %v3479_v41  ;;  %v3484_v1 = vrot.slane %v7813_v54, 2 }
 0x259   : > { %v2955_v24 = vmul.f32 1.442695, %v2689_v0  ;;  %v3483_v59 = vsel %vm3396_vm0, %v3482_v58, %v3481_v46  ;;  %v3486_v36 = vrot.slane %v7815_v42, 1  ;;  %7816 = vpow2.f32 %v2951_v39 }
 0x25a   : > { %v2957_v11 = vmul.f32 1.442695, %v2690_v9  ;;  %v3797_v43 = vadd.f32 %v3796_v49, %v3795_v21  ;;  %v3485_v17 = vsel %vm3399_vm1, %v3484_v1, %v3483_v59  ;;  %7818 = vpow2.f32 %v2953_v53  ;;  %v13635_v21 = vld [vmem:[#allocation9_spill] sm:$0xff] }
 0x25b   : > { %v2959_v22 = vmul.f32 1.442695, %v2691_v12  ;;  %v3487_v26 = vsel %vm3402_vm2, %v3486_v36, %v3485_v17  ;;  %7820 = vpow2.f32 %v2955_v24  ;;  %v2961_v50 = vmul.f32 1.442695, %v2692_v27 }
 0x25c   : > { %v1545_v0 = vsel %vm1449_vm3, %v10083_v30, -1e+09  ;;  %7822 = vlog2.f32 %v3797_v43  ;;  %v3786_v35 = vrot.slane %v3487_v26, 4  ;;  %v2963_v15 = vmul.f32 1.442695, %v2693_v3 }
 0x25d   : > { %v2280_v9 = vsel %vm2158_vm8, %v10131_v2, -inf  ;;  %7824 = vpow2.f32 %v2957_v11  ;;  %v2965_v52 = vmul.f32 1.442695, %v2694_v20  ;;  %v2282_v12 = vsel %vm2158_vm8, %v10134_v47, -inf }
 0x25e   : > { %v2281_v51 = vmax.f32 %v2279_v61, %v2280_v9  ;;  %v10181_v23 = vmul.f32 0.6931472, %v13635_v21  ;;  %v3787_v27 = vadd.f32 %v3786_v35, %v3487_v26  ;;  %7826 = vpow2.f32 %v2959_v22 }
 0x25f   : > { %v2284_v19 = vsel %vm2158_vm8, %v10140_v7, -inf  ;;  %7828 = vpow2.f32 %v2961_v50  ;;  %v2286_v3 = vsel %vm2158_vm8, %v10143_v14, -inf  ;;  %v2288_v60 = vsel %vm2158_vm8, %v10146_v40, -inf }
 0x260   : > { %v2283_v30 = vmax.f32 %v2281_v51, %v2282_v12  ;;  %v3788_v61 = vrot.slane %v3787_v27, 2  ;;  %7830 = vpow2.f32 %v2963_v15  ;;  %v2290_v20 = vsel %vm2158_vm8, %v10149_v6, -inf }
 0x261   : > { %v1569_v54 = vadd.f32 %v1545_v0, %v13627_v32  ;;  %7832 = vpow2.f32 %v2965_v52  ;;  %v2292_v58 = vsel %vm2158_vm8, %v10152_v56, -inf  ;;  %v10195_v39 = vmul.f32 0.6931472, %v9899_v57 }
 0x262   : > { %v2285_v41 = vmax.f32 %v2283_v30, %v2284_v19  ;;  %v3789_v53 = vadd.f32 %v3788_v61, %v3787_v27  ;;  %vm1448_vm4 = vcmp.gt.f32.partialorder %v9622_v37, 0.0  ;;  %vm1451_vm5 = vcmp.gt.f32.partialorder %v9752_v45, 0.0 }
 0x263   : > { %v1683_v42 = vrot.slane %v1569_v54, 1  ;;  %v1684_v49 = vrot.slane %v1569_v54, 2  ;;  %v1685_v46 = vrot.slane %v1569_v54, 3  ;;  %v7817_v1 = vpop.eup %7816  ;;  %v1686_v59 = vrot.slane %v1569_v54, 4 }
 0x264   : > { %v2287_v24 = vmax.f32 %v2285_v41, %v2286_v3  ;;  %v1687_v36 = vrot.slane %v1569_v54, 5  ;;  %v1688_v11 = vrot.slane %v1569_v54, 6  ;;  %v7819_v43 = vpop.eup %7818  ;;  %v3790_v17 = vrot.slane %v3789_v53, 1 }
 0x265   : > { %v1689_v22 = vrot.slane %v1569_v54, 7  ;;  %v10198_v26 = vadd.f32 %v1569_v54, %v9840_v62  ;;  %v10201_v50 = vadd.f32 %v1683_v42, %v9836_v31  ;;  %v7821_v57 = vpop.eup %7820  ;;  %v3516_v0 = vrot.slane %v7819_v43, 7 }
 0x266   : > { %v2289_v35 = vmax.f32 %v2287_v24, %v2288_v60  ;;  %v10204_v15 = vadd.f32 %v1684_v49, %v9850_v29  ;;  %v10207_v9 = vadd.f32 %v1685_v46, %v9843_v25  ;;  %v7823_v52 = vpop.eup %7822  ;;  %v3791_v51 = vadd.f32 %v3790_v17, %v3789_v53 }
 0x267   : > { %v3518_v12 = vrot.slane %v7821_v57, 6  ;;  %v10210_v21 = vadd.f32 %v1686_v59, %v13631_v63  ;;  %v10213_v27 = vadd.f32 %v1687_v36, %v13632_v16  ;;  %v7825_v19 = vpop.eup %7824  ;;  %v3909_v30 = vmul.f32 0.6931472, %v7823_v52 }
 0x268   : > { %v3517_v3 = vsel %vm3384_vm12, %v3516_v0, %v7817_v1  ;;  %v2291_v60 = vmax.f32 %v2289_v35, %v2290_v20  ;;  %v10217_v61 = vadd.f32 %v1688_v11, %v13633_v5  ;;  %v7827_v54 = vpop.eup %7826  ;;  %7834 = vlog2.f32 %v3791_v51 }
 0x269   : > { %v3519_v41 = vsel %vm3387_vm13, %v3518_v12, %v3517_v3  ;;  %v3520_v53 = vrot.slane %v7825_v19, 5  ;;  %v10221_v42 = vadd.f32 %v1689_v22, %v13634_v28  ;;  %v7829_v49 = vpop.eup %7828  ;;  %v10224_v46 = vadd.f32 %v3909_v30, %v10020_v34 }
 0x26a   : > { %v3522_v24 = vrot.slane %v7827_v54, 4  ;;  %v10226_v59 = vmax.f32 %v2291_v60, %v2292_v58  ;;  %v2324_v20 = vsel %vm2158_vm8, %v10198_v26, -inf  ;;  %v7831_v1 = vpop.eup %7830  ;;  %v3524_v11 = vrot.slane %v7829_v49, 3 }
 0x26b   : > { %13636 = vst [vmem:[#allocation17_spill] sm:$0xff] %v10224_v46  ;;  %v3521_v36 = vsel %vm3390_vm14, %v3520_v53, %v3519_v41  ;;  %v2325_v43 = vsel %vm2158_vm8, %v10201_v50, -inf  ;;  %v1513_v17 = vmul.f32 0.6931472, %v9922_v55  ;;  %v7833_v22 = vpop.eup %7832  ;;  %v3526_v57 = vrot.slane %v7831_v1, 2 }
 0x26c   : > { %v3523_v34 = vsel %vm3393_vm15, %v3522_v24, %v3521_v36  ;;  %v2554_v58 = vrot.slane %v10226_v59, %v13611_v33  ;;  %v2326_v0 = vmax.f32 %v2324_v20, %v2325_v43  ;;  %v3528_v52 = vrot.slane %v7833_v22, 1  ;;  %v10256_v22 = vpop.f32.mrb[30].mxu1 }
 0x26d   : > { %v3525_v35 = vsel %vm3396_vm0, %v3524_v11, %v3523_v34  ;;  %v2327_v51 = vsel %vm2158_vm8, %v10204_v15, -inf  ;;  %v2329_v12 = vsel %vm2158_vm8, %v10207_v9, -inf  ;;  %vm1450_vm6 = vcmp.gt.f32.partialorder %v9808_v38, 0.0 }
 0x26e   : > { %v3527_v55 = vsel %vm3399_vm1, %v3526_v57, %v3525_v35  ;;  %v2679_v19 = vsub.f32 %v10107_v8, %v2554_v58  ;;  %v2680_v30 = vsub.f32 %v10131_v2, %v2554_v58  ;;  %v2681_v3 = vsub.f32 %v10134_v47, %v2554_v58 }
 0x26f   : > { %v3529_v60 = vsel %vm3402_vm2, %v3528_v52, %v3527_v55  ;;  %v2682_v54 = vsub.f32 %v10140_v7, %v2554_v58  ;;  %v2683_v41 = vsub.f32 %v10143_v14, %v2554_v58  ;;  %v2684_v53 = vsub.f32 %v10146_v40, %v2554_v58 }
 0x270   : > { %v3804_v49 = vrot.slane %v3529_v60, 4  ;;  %v2685_v24 = vsub.f32 %v10149_v6, %v2554_v58  ;;  %v2686_v20 = vsub.f32 %v10152_v56, %v2554_v58  ;;  %v2935_v1 = vmul.f32 1.442695, %v2679_v19 }
 0x271   : > { %v2937_v36 = vmul.f32 1.442695, %v2680_v30  ;;  %v2939_v8 = vmul.f32 1.442695, %v2681_v3  ;;  %v2941_v11 = vmul.f32 1.442695, %v2682_v54  ;;  %v2328_v2 = vmax.f32 %v2326_v0, %v2327_v51 }
 0x272   : > { %v3805_v43 = vadd.f32 %v3804_v49, %v3529_v60  ;;  %7836 = vpow2.f32 %v2935_v1  ;;  %v2943_v47 = vmul.f32 1.442695, %v2683_v41  ;;  %v2331_v7 = vsel %vm2158_vm8, %v10210_v21, -inf  ;;  %v7835_v14 = vpop.eup %7834 }
 0x273   : > { %7838 = vpow2.f32 %v2937_v36  ;;  %v2945_v40 = vmul.f32 1.442695, %v2684_v53  ;;  %v2947_v34 = vmul.f32 1.442695, %v2685_v24  ;;  %v2330_v6 = vmax.f32 %v2328_v2, %v2329_v12 }
 0x274   : > { %v3907_v57 = vmul.f32 0.6931472, %v7835_v14  ;;  %v3806_v56 = vrot.slane %v3805_v43, 2  ;;  %7840 = vpow2.f32 %v2939_v8  ;;  %v2949_v58 = vmul.f32 1.442695, %v2686_v20 }
 0x275   : > { %7842 = vpow2.f32 %v2941_v11  ;;  %v2332_v35 = vmax.f32 %v2330_v6, %v2331_v7  ;;  %v2333_v0 = vsel %vm2158_vm8, %v10213_v27, -inf  ;;  %v2335_v52 = vsel %vm2158_vm8, %v10217_v61, -inf }
 0x276   : > { %v10263_v51 = vadd.f32 %v3907_v57, %v10074_v4  ;;  %v3807_v55 = vadd.f32 %v3806_v56, %v3805_v43  ;;  %7844 = vpow2.f32 %v2943_v47  ;;  %v1544_v12 = vsel %vm1448_vm4, %v10195_v39, -1e+09 }
 0x277   : > { %7846 = vpow2.f32 %v2945_v40  ;;  %v2334_v19 = vmax.f32 %v2332_v35, %v2333_v0  ;;  %v1568_v30 = vadd.f32 %v1544_v12, %v13627_v32  ;;  %v1547_v3 = vsel %vm1451_vm5, %v1513_v17, -1e+09 }
 0x278   : > { %13637 = vst [vmem:[#allocation19_spill] sm:$0xff] %v10263_v51  ;;  %v3808_v60 = vrot.slane %v3807_v55, 1  ;;  %7848 = vpow2.f32 %v2947_v34  ;;  %v2337_v54 = vsel %vm2158_vm8, %v10221_v42, -inf  ;;  %v10274_v4 = vadd.f32 %v1547_v3, %v13627_v32 }
 0x279   : > { %7850 = vpow2.f32 %v2949_v58  ;;  %v2336_v41 = vmax.f32 %v2334_v19, %v2335_v52  ;;  %v1676_v53 = vrot.slane %v1568_v30, 1  ;;  %v1677_v37 = vrot.slane %v1568_v30, 2 }
 0x27a   : > { %v3809_v39 = vadd.f32 %v3808_v60, %v3807_v55  ;;  %v1678_v49 = vrot.slane %v1568_v30, 3  ;;  %v1679_v24 = vrot.slane %v1568_v30, 4  ;;  %v1680_v20 = vrot.slane %v1568_v30, 5 }
 0x27b   : > { %v10276_v1 = vmax.f32 %v2336_v41, %v2337_v54  ;;  %v1681_v45 = vrot.slane %v1568_v30, 6  ;;  %v1682_v17 = vrot.slane %v1568_v30, 7  ;;  %v10279_v36 = vadd.f32 %v1568_v30, %v9840_v62 }
 0x27c   : > { %v7837_v8 = vpop.eup %7836  ;;  %7852 = vlog2.f32 %v3809_v39  ;;  %v10282_v11 = vadd.f32 %v1676_v53, %v9836_v31  ;;  %v10285_v2 = vadd.f32 %v1677_v37, %v9850_v29  ;;  %v10288_v43 = vadd.f32 %v1678_v49, %v9843_v25 }
 0x27d   : > { %v7839_v47 = vpop.eup %7838  ;;  %v2566_v7 = vrot.slane %v10276_v1, %v13611_v33  ;;  %v10293_v14 = vadd.f32 %v1679_v24, %v13631_v63  ;;  %v10296_v40 = vadd.f32 %v1680_v20, %v13632_v16  ;;  %v10299_v34 = vadd.f32 %v1681_v45, %v13633_v5 }
 0x27e   : > { %v7841_v6 = vpop.eup %7840  ;;  %v3502_v57 = vrot.slane %v7839_v47, 7  ;;  %v10302_v56 = vadd.f32 %v1682_v17, %v13634_v28  ;;  %v2309_v58 = vsel %vm2158_vm8, %v10279_v36, -inf  ;;  %v2310_v35 = vsel %vm2158_vm8, %v10282_v11, -inf }
 0x27f   : > { %v7843_v0 = vpop.eup %7842  ;;  %v3504_v52 = vrot.slane %v7841_v6, 6  ;;  %v2703_v55 = vsub.f32 %v10198_v26, %v2566_v7  ;;  %v2704_v12 = vsub.f32 %v10201_v50, %v2566_v7  ;;  %v2705_v19 = vsub.f32 %v10204_v15, %v2566_v7 }
 0x280   : > { %v7845_v30 = vpop.eup %7844  ;;  %v3503_v3 = vsel %vm3384_vm12, %v3502_v57, %v7837_v8  ;;  %v3506_v60 = vrot.slane %v7843_v0, 5  ;;  %v2706_v54 = vsub.f32 %v10207_v9, %v2566_v7  ;;  %v2707_v41 = vsub.f32 %v10210_v21, %v2566_v7 }
 0x281   : > { %v7847_v53 = vpop.eup %7846  ;;  %v3505_v37 = vsel %vm3387_vm13, %v3504_v52, %v3503_v3  ;;  %v3508_v39 = vrot.slane %v7845_v30, 4  ;;  %v2708_v49 = vsub.f32 %v10213_v27, %v2566_v7  ;;  %v2709_v26 = vsub.f32 %v10217_v61, %v2566_v7 }
 0x282   : > { %v7849_v24 = vpop.eup %7848  ;;  %v3507_v50 = vsel %vm3390_vm14, %v3506_v60, %v3505_v37  ;;  %v3510_v15 = vrot.slane %v7847_v53, 3  ;;  %v2710_v20 = vsub.f32 %v10221_v42, %v2566_v7  ;;  %v2983_v45 = vmul.f32 1.442695, %v2703_v55 }
 0x283   : > { %v7851_v17 = vpop.eup %7850  ;;  %v3509_v9 = vsel %vm3393_vm15, %v3508_v39, %v3507_v50  ;;  %v3512_v8 = vrot.slane %v7849_v24, 2  ;;  %v2985_v21 = vmul.f32 1.442695, %v2704_v12  ;;  %v2987_v47 = vmul.f32 1.442695, %v2705_v19  ;;  %v10323_v19 = vpop.f32.mrb[31].mxu1 }
 0x284   : > { %v3511_v6 = vsel %vm3396_vm0, %v3510_v15, %v3509_v9  ;;  %v3514_v57 = vrot.slane %v7851_v17, 1  ;;  %7854 = vpow2.f32 %v2983_v45  ;;  %v2989_v27 = vmul.f32 1.442695, %v2706_v54 }
 0x285   : > { %v3513_v61 = vsel %vm3399_vm1, %v3512_v8, %v3511_v6  ;;  %7856 = vpow2.f32 %v2985_v21  ;;  %v2991_v0 = vmul.f32 1.442695, %v2707_v41  ;;  %v2993_v52 = vmul.f32 1.442695, %v2708_v49 }
 0x286   : > { %v7853_v30 = vpop.eup %7852  ;;  %v3515_v42 = vsel %vm3402_vm2, %v3514_v57, %v3513_v61  ;;  %7858 = vpow2.f32 %v2987_v47  ;;  %v2995_v7 = vmul.f32 1.442695, %v2709_v26  ;;  %v2997_v55 = vmul.f32 1.442695, %v2710_v20 }
 0x287   : > { %v3913_v3 = vmul.f32 0.6931472, %v7853_v30  ;;  %v3798_v60 = vrot.slane %v3515_v42, 4  ;;  %7860 = vpow2.f32 %v2989_v27  ;;  %v2311_v12 = vmax.f32 %v2309_v58, %v2310_v35 }
 0x288   : > { %7862 = vpow2.f32 %v2991_v0  ;;  %v2312_v54 = vsel %vm2158_vm8, %v10285_v2, -inf  ;;  %v2314_v41 = vsel %vm2158_vm8, %v10288_v43, -inf  ;;  %v2316_v53 = vsel %vm2158_vm8, %v10293_v14, -inf }
 0x289   : > { %v10332_v37 = vadd.f32 %v3913_v3, %v10125_v44  ;;  %v3799_v39 = vadd.f32 %v3798_v60, %v3515_v42  ;;  %7864 = vpow2.f32 %v2993_v52  ;;  %v2313_v49 = vmax.f32 %v2311_v12, %v2312_v54 }
 0x28a   : > { %7866 = vpow2.f32 %v2995_v7  ;;  %v2318_v58 = vsel %vm2158_vm8, %v10296_v40, -inf  ;;  %v2320_v35 = vsel %vm2158_vm8, %v10299_v34, -inf  ;;  %v2322_v26 = vsel %vm2158_vm8, %v10302_v56, -inf }
 0x28b   : > { %13638 = vst [vmem:[#allocation20_spill] sm:$0xff] %v10332_v37  ;;  %v3800_v24 = vrot.slane %v3799_v39, 2  ;;  %7868 = vpow2.f32 %v2997_v55  ;;  %v2315_v50 = vmax.f32 %v2313_v49, %v2314_v41  ;;  %v1697_v15 = vrot.slane %v10274_v4, 1 }
 0x28c   : > { %v1698_v44 = vrot.slane %v10274_v4, 2  ;;  %v1699_v20 = vrot.slane %v10274_v4, 3  ;;  %v1700_v45 = vrot.slane %v10274_v4, 4  ;;  %v1701_v17 = vrot.slane %v10274_v4, 5 }
 0x28d   : > { %v3801_v9 = vadd.f32 %v3800_v24, %v3799_v39  ;;  %v2317_v8 = vmax.f32 %v2315_v50, %v2316_v53  ;;  %v1702_v21 = vrot.slane %v10274_v4, 6  ;;  %v1703_v47 = vrot.slane %v10274_v4, 7 }
 0x28e   : > { %v7855_v6 = vpop.eup %7854  ;;  %v10349_v57 = vadd.f32 %v10274_v4, %v9840_v62  ;;  %v10352_v27 = vadd.f32 %v1697_v15, %v9836_v31  ;;  %v10355_v61 = vadd.f32 %v1698_v44, %v9850_v29  ;;  %v10358_v0 = vadd.f32 %v1699_v20, %v9843_v25 }
 0x28f   : > { %v7857_v52 = vpop.eup %7856  ;;  %v3802_v30 = vrot.slane %v3801_v9, 1  ;;  %v2319_v42 = vmax.f32 %v2317_v8, %v2318_v58  ;;  %v10361_v7 = vadd.f32 %v1700_v45, %v13631_v63  ;;  %v10364_v55 = vadd.f32 %v1701_v17, %v13632_v16 }
 0x290   : > { %v7859_v4 = vpop.eup %7858  ;;  %v3544_v3 = vrot.slane %v7857_v52, 7  ;;  %v10367_v60 = vadd.f32 %v1702_v21, %v13633_v5  ;;  %v10370_v12 = vadd.f32 %v1703_v47, %v13634_v28  ;;  %v2354_v54 = vsel %vm2158_vm8, %v10349_v57, -inf }
 0x291   : > { %v7861_v41 = vpop.eup %7860  ;;  %v3803_v53 = vadd.f32 %v3802_v30, %v3801_v9  ;;  %v3546_v39 = vrot.slane %v7859_v4, 6  ;;  %v2321_v49 = vmax.f32 %v2319_v42, %v2320_v35  ;;  %v2355_v58 = vsel %vm2158_vm8, %v10352_v27, -inf  ;;  %v13639_v35 = vld [vmem:[#allocation10_spill] sm:$0xff] }
 0x292   : > { %v7863_v24 = vpop.eup %7862  ;;  %v3545_v50 = vsel %vm3384_vm12, %v3544_v3, %v7855_v6  ;;  %v3548_v15 = vrot.slane %v7861_v41, 5  ;;  %v2356_v44 = vmax.f32 %v2354_v54, %v2355_v58  ;;  %v2357_v20 = vsel %vm2158_vm8, %v10355_v61, -inf }
 0x293   : > { %v7865_v45 = vpop.eup %7864  ;;  %7870 = vlog2.f32 %v3803_v53  ;;  %v3547_v17 = vsel %vm3387_vm13, %v3546_v39, %v3545_v50  ;;  %v3550_v8 = vrot.slane %v7863_v24, 4  ;;  %v10380_v21 = vmax.f32 %v2321_v49, %v2322_v26 }
 0x294   : > { %v7867_v9 = vpop.eup %7866  ;;  %v1209_v47 = vmul.f32 0.6931472, %v13639_v35  ;;  %v3549_v52 = vsel %vm3390_vm14, %v3548_v15, %v3547_v17  ;;  %v3552_v30 = vrot.slane %v7865_v45, 3  ;;  %v2358_v42 = vmax.f32 %v2356_v44, %v2357_v20 }
 0x295   : > { %v7869_v6 = vpop.eup %7868  ;;  %v3551_v4 = vsel %vm3393_vm15, %v3550_v8, %v3549_v52  ;;  %v3554_v3 = vrot.slane %v7867_v9, 2  ;;  %v2562_v54 = vrot.slane %v10380_v21, %v13611_v33  ;;  %v2359_v41 = vsel %vm2158_vm8, %v10358_v0, -inf }
 0x296   : > { %v3553_v26 = vsel %vm3396_vm0, %v3552_v30, %v3551_v4  ;;  %v3556_v53 = vrot.slane %v7869_v6, 1  ;;  %v2360_v39 = vmax.f32 %v2358_v42, %v2359_v41  ;;  %v2361_v49 = vsel %vm2158_vm8, %v10361_v7, -inf  ;;  %v13640_v4 = vld [vmem:[#allocation11_spill] sm:$0xff]  ;;  %v10405_v41 = vpop.f32.mrb[32].mxu1 }
 0x297   : > { %v3555_v58 = vsel %vm3399_vm1, %v3554_v3, %v3553_v26  ;;  %v2695_v24 = vsub.f32 %v10279_v36, %v2562_v54  ;;  %v2696_v50 = vsub.f32 %v10282_v11, %v2562_v54  ;;  %v2697_v15 = vsub.f32 %v10285_v2, %v2562_v54 }
 0x298   : > { %v3557_v44 = vsel %vm3402_vm2, %v3556_v53, %v3555_v58  ;;  %v2698_v20 = vsub.f32 %v10288_v43, %v2562_v54  ;;  %v2699_v45 = vsub.f32 %v10293_v14, %v2562_v54  ;;  %v2700_v17 = vsub.f32 %v10296_v40, %v2562_v54 }
 0x299   : > { %v3816_v8 = vrot.slane %v3557_v44, 4  ;;  %v2701_v9 = vsub.f32 %v10299_v34, %v2562_v54  ;;  %v2702_v35 = vsub.f32 %v10302_v56, %v2562_v54  ;;  %v2967_v52 = vmul.f32 1.442695, %v2695_v24 }
 0x29a   : > { %v2969_v30 = vmul.f32 1.442695, %v2696_v50  ;;  %v2971_v36 = vmul.f32 1.442695, %v2697_v15  ;;  %v2973_v42 = vmul.f32 1.442695, %v2698_v20  ;;  %v2362_v11 = vmax.f32 %v2360_v39, %v2361_v49 }
 0x29b   : > { %v3817_v6 = vadd.f32 %v3816_v8, %v3557_v44  ;;  %7872 = vpow2.f32 %v2967_v52  ;;  %v2975_v2 = vmul.f32 1.442695, %v2699_v45  ;;  %v2363_v43 = vsel %vm2158_vm8, %v10364_v55, -inf  ;;  %v13641_v15 = vld [vmem:[#allocation21_spill] sm:$0xff]  ;;  %v13643_v8 = vld [vmem:[#allocation22_spill] sm:$0xff]  ;;  %v13644_v52 = vld [vmem:[#allocation12_spill] sm:$0xff] }
 0x29c   : > { %v1211_v14 = vmul.f32 0.6931472, %v13640_v4  ;;  %7874 = vpow2.f32 %v2969_v30  ;;  %v2977_v40 = vmul.f32 1.442695, %v2700_v17  ;;  %v2364_v3 = vmax.f32 %v2362_v11, %v2363_v43 }
 0x29d   : > { %v7871_v34 = vpop.eup %7870  ;;  %v3818_v56 = vrot.slane %v3817_v6, 2  ;;  %7876 = vpow2.f32 %v2971_v36  ;;  %v2979_v54 = vmul.f32 1.442695, %v2701_v9  ;;  %v2365_v26 = vsel %vm2158_vm8, %v10367_v60, -inf  ;;  %v13645_v36 = vld [vmem:[#allocation23_spill] sm:$0xff] }
 0x29e   : > { %v3911_v53 = vmul.f32 0.6931472, %v7871_v34  ;;  %7878 = vpow2.f32 %v2973_v42  ;;  %v2981_v39 = vmul.f32 1.442695, %v2702_v35  ;;  %v2366_v49 = vmax.f32 %v2364_v3, %v2365_v26 }
 0x29f   : > { %v3819_v58 = vadd.f32 %v3818_v56, %v3817_v6  ;;  %7880 = vpow2.f32 %v2975_v2  ;;  %v2367_v24 = vsel %vm2158_vm8, %v10370_v12, -inf  ;;  %v1474_v50 = vmax.f32 %v9808_v38, 1e-30  ;;  %v13647_v2 = vld [vmem:[#allocation18_spill] sm:$0xff] }
 0x2a0   : > { %v10414_v44 = vadd.f32 %v10181_v23, %v13641_v15  ;;  %v10417_v20 = vadd.f32 %v3911_v53, %v10226_v59  ;;  %7882 = vpow2.f32 %v2977_v40  ;;  %v10419_v45 = vmax.f32 %v2366_v49, %v2367_v24  ;;  %v13646_v59 = vld [vmem:[#allocation15_spill] sm:$0xff] }
 0x2a1   : > { %v1213_v17 = vmul.f32 0.6931472, %v9701_v48  ;;  %v10423_v9 = vadd.f32 %v1209_v47, %v13643_v8  ;;  %v3820_v35 = vrot.slane %v3819_v58, 1  ;;  %7884 = vpow2.f32 %v2979_v54 }
 0x2a2   : > { %13642 = vst [vmem:[#allocation2_spill] sm:$0xff] %v10417_v20  ;;  %v1215_v30 = vmul.f32 0.6931472, %v13644_v52  ;;  %v10427_v42 = vadd.f32 %v1211_v14, %v13645_v36  ;;  %7886 = vpow2.f32 %v2981_v39  ;;  %v2574_v23 = vrot.slane %v10419_v45, %v13611_v33 }
 0x2a3   : > { %v1217_v11 = vmul.f32 0.6931472, %v13646_v59  ;;  %v3821_v6 = vadd.f32 %v3820_v35, %v3819_v58  ;;  %7888 = vlog2.f32 %v1474_v50  ;;  %v1477_v48 = vmax.f32 %v13647_v2, 1e-30 }
 0x2a4   : > { %v2719_v47 = vsub.f32 %v10349_v57, %v2574_v23  ;;  %v2720_v43 = vsub.f32 %v10352_v27, %v2574_v23  ;;  %v2721_v4 = vsub.f32 %v10355_v61, %v2574_v23  ;;  %v2722_v40 = vsub.f32 %v10358_v0, %v2574_v23  ;;  %v13648_v27 = vld [vmem:[#allocation24_spill] sm:$0xff] }
 0x2a5   : > { %v7873_v14 = vpop.eup %7872  ;;  %7890 = vlog2.f32 %v3821_v6  ;;  %v2723_v3 = vsub.f32 %v10361_v7, %v2574_v23  ;;  %v2724_v34 = vsub.f32 %v10364_v55, %v2574_v23  ;;  %v2725_v56 = vsub.f32 %v10367_v60, %v2574_v23 }
 0x2a6   : > { %v7875_v54 = vpop.eup %7874  ;;  %v2726_v26 = vsub.f32 %v10370_v12, %v2574_v23  ;;  %v3015_v53 = vmul.f32 1.442695, %v2719_v47  ;;  %v3017_v39 = vmul.f32 1.442695, %v2720_v43  ;;  %v3019_v57 = vmul.f32 1.442695, %v2721_v4 }
 0x2a7   : > { %v7877_v49 = vpop.eup %7876  ;;  %v10442_v58 = vadd.f32 %v1213_v17, %v13648_v27  ;;  %v3530_v61 = vrot.slane %v7875_v54, 7  ;;  %v3021_v0 = vmul.f32 1.442695, %v2722_v40  ;;  %7892 = vlog2.f32 %v1477_v48  ;;  %v13649_v4 = vld [vmem:[#allocation7_spill] sm:$0xff]  ;;  %v13651_v27 = vld [vmem:[#allocation26_spill] sm:$0xff] }
 0x2a8   : > { %v7879_v24 = vpop.eup %7878  ;;  %v3532_v50 = vrot.slane %v7877_v49, 6  ;;  %7894 = vpow2.f32 %v3015_v53  ;;  %v3023_v7 = vmul.f32 1.442695, %v2723_v3  ;;  %v3025_v15 = vmul.f32 1.442695, %v2724_v34 }
 0x2a9   : > { %v7881_v55 = vpop.eup %7880  ;;  %v3531_v60 = vsel %vm3384_vm12, %v3530_v61, %v7873_v14  ;;  %v3534_v12 = vrot.slane %v7879_v24, 5  ;;  %7896 = vpow2.f32 %v3017_v39  ;;  %v3027_v52 = vmul.f32 1.442695, %v2725_v56 }
 0x2aa   : > { %v7883_v8 = vpop.eup %7882  ;;  %v3533_v35 = vsel %vm3387_vm13, %v3532_v50, %v3531_v60  ;;  %v3536_v17 = vrot.slane %v7881_v55, 4  ;;  %7898 = vpow2.f32 %v3019_v57  ;;  %v3029_v6 = vmul.f32 1.442695, %v2726_v26  ;;  %v13650_v57 = vld [vmem:[#allocation25_spill] sm:$0xff] }
 0x2ab   : > { %v7885_v36 = vpop.eup %7884  ;;  %v3535_v23 = vsel %vm3390_vm14, %v3534_v12, %v3533_v35  ;;  %v3538_v59 = vrot.slane %v7883_v8, 3  ;;  %7900 = vpow2.f32 %v3021_v0  ;;  %v1476_v40 = vmax.f32 %v13649_v4, 1e-30 }
 0x2ac   : > { %v7887_v48 = vpop.eup %7886  ;;  %v3537_v47 = vsel %vm3393_vm15, %v3536_v17, %v3535_v23  ;;  %v3540_v43 = vrot.slane %v7885_v36, 2  ;;  %7902 = vpow2.f32 %v3023_v7  ;;  %v1479_v56 = vmax.f32 %v10116_v10, 1e-30 }
 0x2ad   : > { %v7889_v14 = vpop.eup %7888  ;;  %v3539_v3 = vsel %vm3396_vm0, %v3538_v59, %v3537_v47  ;;  %v3542_v34 = vrot.slane %v7887_v48, 1  ;;  %7904 = vpow2.f32 %v3025_v15  ;;  %v1478_v26 = vmax.f32 %v10169_v18, 1e-30 }
 0x2ae   : > { %v3541_v54 = vsel %vm3399_vm1, %v3540_v43, %v3539_v3  ;;  %7906 = vpow2.f32 %v3027_v52  ;;  %v1511_v53 = vmul.f32 0.6931472, %v7889_v14  ;;  %v10455_v49 = vadd.f32 %v1215_v30, %v13650_v57 }
 0x2af   : > { %v7891_v39 = vpop.eup %7890  ;;  %v10458_v61 = vadd.f32 %v1217_v11, %v13651_v27  ;;  %v3543_v0 = vsel %vm3402_vm2, %v3542_v34, %v3541_v54  ;;  %7908 = vpow2.f32 %v3029_v6  ;;  %v1481_v12 = vmax.f32 %v10256_v22, 1e-30 }
 0x2b0   : > { %v3917_v24 = vmul.f32 0.6931472, %v7891_v39  ;;  %v3810_v50 = vrot.slane %v3543_v0, 4  ;;  %v1546_v7 = vsel %vm1450_vm6, %v1511_v53, -1e+09  ;;  %7910 = vlog2.f32 %v1476_v40 }
 0x2b1   : > { %v7893_v55 = vpop.eup %7892  ;;  %v1570_v60 = vadd.f32 %v1546_v7, %v13627_v32  ;;  %7912 = vlog2.f32 %v1479_v56  ;;  %vm1453_vm7 = vcmp.gt.f32.partialorder %v13647_v2, 0.0  ;;  %vm1452_vm9 = vcmp.gt.f32.partialorder %v13649_v4, 0.0 }
 0x2b2   : > { %v7895_v15 = vpop.eup %7894  ;;  %v10467_v11 = vadd.f32 %v3917_v24, %v10276_v1  ;;  %v3811_v8 = vadd.f32 %v3810_v50, %v3543_v0  ;;  %v1517_v35 = vmul.f32 0.6931472, %v7893_v55  ;;  %7914 = vlog2.f32 %v1478_v26 }
 0x2b3   : > { %v7897_v17 = vpop.eup %7896  ;;  %v1690_v52 = vrot.slane %v1570_v60, 1  ;;  %v1691_v38 = vrot.slane %v1570_v60, 2  ;;  %v1692_v36 = vrot.slane %v1570_v60, 3  ;;  %v1693_v23 = vrot.slane %v1570_v60, 4 }
 0x2b4   : > { %13652 = vst [vmem:[#allocation28_spill] sm:$0xff] %v10467_v11  ;;  %v7899_v59 = vpop.eup %7898  ;;  %v3812_v6 = vrot.slane %v3811_v8, 2  ;;  %v3572_v48 = vrot.slane %v7897_v17, 7  ;;  %v1694_v47 = vrot.slane %v1570_v60, 5  ;;  %v1695_v43 = vrot.slane %v1570_v60, 6  ;;  %v10493_v17 = vpop.f32.mrb[33].mxu1 }
 0x2b5   : > { %v7901_v40 = vpop.eup %7900  ;;  %v3574_v14 = vrot.slane %v7899_v59, 6  ;;  %v1696_v3 = vrot.slane %v1570_v60, 7  ;;  %v10471_v1 = vadd.f32 %v1570_v60, %v9840_v62  ;;  %v10474_v34 = vadd.f32 %v1690_v52, %v9836_v31 }
 0x2b6   : > { %vm1455_vm10 = vcmp.gt.f32.partialorder %v10116_v10, 0.0  ;;  %v7903_v56 = vpop.eup %7902  ;;  %v3813_v54 = vadd.f32 %v3812_v6, %v3811_v8  ;;  %v3573_v53 = vsel %vm3384_vm12, %v3572_v48, %v7895_v15  ;;  %v3576_v26 = vrot.slane %v7901_v40, 5 }
 0x2b7   : > { %v10480_v39 = vadd.f32 %v1691_v38, %v9850_v29  ;;  %v7905_v57 = vpop.eup %7904  ;;  %v3575_v27 = vsel %vm3387_vm13, %v3574_v14, %v3573_v53  ;;  %v3578_v0 = vrot.slane %v7903_v56, 4  ;;  %v10484_v24 = vadd.f32 %v1692_v36, %v9843_v25 }
 0x2b8   : > { %v10487_v50 = vadd.f32 %v1693_v23, %v13631_v63  ;;  %v7907_v7 = vpop.eup %7906  ;;  %v3814_v55 = vrot.slane %v3813_v54, 1  ;;  %v3577_v60 = vsel %vm3390_vm14, %v3576_v26, %v3575_v27  ;;  %v3580_v8 = vrot.slane %v7905_v57, 3 }
 0x2b9   : > { %v10491_v15 = vadd.f32 %v1694_v47, %v13632_v16  ;;  %v7909_v52 = vpop.eup %7908  ;;  %v3579_v38 = vsel %vm3393_vm15, %v3578_v0, %v3577_v60  ;;  %v3582_v59 = vrot.slane %v7907_v7, 2  ;;  %v10497_v36 = vadd.f32 %v1695_v43, %v13633_v5 }
 0x2ba   : > { %v10500_v23 = vadd.f32 %v1696_v3, %v13634_v28  ;;  %v7911_v6 = vpop.eup %7910  ;;  %v3815_v48 = vadd.f32 %v3814_v55, %v3813_v54  ;;  %v3581_v40 = vsel %vm3396_vm0, %v3580_v8, %v3579_v38  ;;  %v3584_v14 = vrot.slane %v7909_v52, 1 }
 0x2bb   : > { %v2339_v47 = vsel %vm2158_vm8, %v10471_v1, -inf  ;;  %v7913_v56 = vpop.eup %7912  ;;  %v3583_v53 = vsel %vm3399_vm1, %v3582_v59, %v3581_v40  ;;  %v2340_v26 = vsel %vm2158_vm8, %v10474_v34, -inf  ;;  %v2342_v43 = vsel %vm2158_vm8, %v10480_v39, -inf }
 0x2bc   : > { %v7915_v57 = vpop.eup %7914  ;;  %7916 = vlog2.f32 %v3815_v48  ;;  %v3585_v54 = vsel %vm3402_vm2, %v3584_v14, %v3583_v53  ;;  %v2341_v27 = vmax.f32 %v2339_v47, %v2340_v26  ;;  %v2344_v0 = vsel %vm2158_vm8, %v10484_v24, -inf }
 0x2bd   : > { %v3828_v7 = vrot.slane %v3585_v54, 4  ;;  %v2346_v55 = vsel %vm2158_vm8, %v10487_v50, -inf  ;;  %v2348_v60 = vsel %vm2158_vm8, %v10491_v15, -inf  ;;  %v2350_v8 = vsel %vm2158_vm8, %v10497_v36, -inf }
 0x2be   : > { %v2343_v52 = vmax.f32 %v2341_v27, %v2342_v43  ;;  %v1549_v38 = vsel %vm1453_vm7, %v1517_v35, -1e+09  ;;  %v1515_v59 = vmul.f32 0.6931472, %v7911_v6  ;;  %v1521_v48 = vmul.f32 0.6931472, %v7913_v56 }
 0x2bf   : > { %v3829_v40 = vadd.f32 %v3828_v7, %v3585_v54  ;;  %v2352_v14 = vsel %vm2158_vm8, %v10500_v23, -inf  ;;  %v1573_v47 = vadd.f32 %v1549_v38, %v13627_v32  ;;  %vm1454_vm11 = vcmp.gt.f32.partialorder %v10169_v18, 0.0 }
 0x2c0   : > { %7918 = vlog2.f32 %v1481_v12  ;;  %v2345_v53 = vmax.f32 %v2343_v52, %v2344_v0  ;;  %v1548_v26 = vsel %vm1452_vm9, %v1515_v59, -1e+09  ;;  %v1551_v2 = vsel %vm1455_vm10, %v1521_v48, -1e+09 }
 0x2c1   : > { %v1519_v35 = vmul.f32 0.6931472, %v7915_v57  ;;  %v3830_v6 = vrot.slane %v3829_v40, 2  ;;  %v1711_v56 = vrot.slane %v1573_v47, 1  ;;  %v1712_v43 = vrot.slane %v1573_v47, 2 }
 0x2c2   : > { %v1713_v54 = vrot.slane %v1573_v47, 3  ;;  %v2347_v27 = vmax.f32 %v2345_v53, %v2346_v55  ;;  %v1714_v7 = vrot.slane %v1573_v47, 4  ;;  %v1715_v38 = vrot.slane %v1573_v47, 5 }
 0x2c3   : > { %v1716_v3 = vrot.slane %v1573_v47, 6  ;;  %v3831_v30 = vadd.f32 %v3830_v6, %v3829_v40  ;;  %v1717_v11 = vrot.slane %v1573_v47, 7  ;;  %v10533_v12 = vadd.f32 %v1573_v47, %v9840_v62 }
 0x2c4   : > { %v10536_v4 = vadd.f32 %v1711_v56, %v9836_v31  ;;  %v2349_v0 = vmax.f32 %v2347_v27, %v2348_v60  ;;  %v10539_v10 = vadd.f32 %v1712_v43, %v9850_v29  ;;  %v10542_v57 = vadd.f32 %v1713_v54, %v9843_v25 }
 0x2c5   : > { %v10545_v55 = vadd.f32 %v1714_v7, %v13631_v63  ;;  %v3832_v52 = vrot.slane %v3831_v30, 1  ;;  %v10548_v59 = vadd.f32 %v1715_v38, %v13632_v16  ;;  %v10551_v48 = vadd.f32 %v1716_v3, %v13633_v5 }
 0x2c6   : > { %v10554_v40 = vadd.f32 %v1717_v11, %v13634_v28  ;;  %v7917_v60 = vpop.eup %7916  ;;  %v2351_v47 = vmax.f32 %v2349_v0, %v2350_v8  ;;  %v2384_v53 = vsel %vm2158_vm8, %v10533_v12, -inf  ;;  %v2385_v6 = vsel %vm2158_vm8, %v10536_v4, -inf }
 0x2c7   : > { %v2387_v56 = vsel %vm2158_vm8, %v10539_v10, -inf  ;;  %v3915_v43 = vmul.f32 0.6931472, %v7917_v60  ;;  %v3833_v54 = vadd.f32 %v3832_v52, %v3831_v30  ;;  %v2386_v27 = vmax.f32 %v2384_v53, %v2385_v6 }
 0x2c8   : > { %v13653_v3 = vmax.f32 %v10323_v19, 1e-30  ;;  %v10564_v7 = vmax.f32 %v2351_v47, %v2352_v14  ;;  %v2389_v11 = vsel %vm2158_vm8, %v10542_v57, -inf  ;;  %v2391_v8 = vsel %vm2158_vm8, %v10545_v55, -inf }
 0x2c9   : > { %v2393_v38 = vsel %vm2158_vm8, %v10548_v59, -inf  ;;  %v10573_v37 = vadd.f32 %v3915_v43, %v10380_v21  ;;  %v2388_v30 = vmax.f32 %v2386_v27, %v2387_v56  ;;  %v2395_v52 = vsel %vm2158_vm8, %v10551_v48, -inf }
 0x2ca   : > { %7920 = vlog2.f32 %v13653_v3  ;;  %v7919_v0 = vpop.eup %7918  ;;  %v2570_v14 = vrot.slane %v10564_v7, %v13611_v33  ;;  %v2397_v60 = vsel %vm2158_vm8, %v10554_v40, -inf  ;;  %v1572_v47 = vadd.f32 %v1548_v26, %v13627_v32 }
 0x2cb   : > { %13654 = vst [vmem:[#allocation29_spill] sm:$0xff] %v10573_v37  ;;  %7922 = vlog2.f32 %v3833_v54  ;;  %v1550_v53 = vsel %vm1454_vm11, %v1519_v35, -1e+09  ;;  %v2390_v6 = vmax.f32 %v2388_v30, %v2389_v11  ;;  %v10585_v21 = vadd.f32 %v1551_v2, %v13627_v32 }
 0x2cc   : > { %v10588_v56 = vadd.f32 %v1550_v53, %v13627_v32  ;;  %v10590_v43 = vmul.f32 0.6931472, %v7919_v0  ;;  %v2711_v54 = vsub.f32 %v10471_v1, %v2570_v14  ;;  %v2712_v27 = vsub.f32 %v10474_v34, %v2570_v14 }
 0x2cd   : > { %v2713_v3 = vsub.f32 %v10480_v39, %v2570_v14  ;;  %v2714_v26 = vsub.f32 %v10484_v24, %v2570_v14  ;;  %v2715_v18 = vsub.f32 %v10487_v50, %v2570_v14  ;;  %v2716_v35 = vsub.f32 %v10491_v15, %v2570_v14 }
 0x2ce   : > { %v2717_v2 = vsub.f32 %v10497_v36, %v2570_v14  ;;  %v2718_v11 = vsub.f32 %v10500_v23, %v2570_v14  ;;  %v2999_v30 = vmul.f32 1.442695, %v2711_v54  ;;  %v3001_v53 = vmul.f32 1.442695, %v2712_v27 }
 0x2cf   : > { %v3003_v0 = vmul.f32 1.442695, %v2713_v3  ;;  %v2392_v37 = vmax.f32 %v2390_v6, %v2391_v8  ;;  %v3005_v20 = vmul.f32 1.442695, %v2714_v26  ;;  %v3007_v1 = vmul.f32 1.442695, %v2715_v18 }
 0x2d0   : > { %v3009_v46 = vmul.f32 1.442695, %v2716_v35  ;;  %v10601_v34 = vadd.f32 %v1572_v47, %v9840_v62  ;;  %7924 = vpow2.f32 %v2999_v30  ;;  %v3011_v39 = vmul.f32 1.442695, %v2717_v2  ;;  %v10605_v6 = vpop.f32.mrb[34].mxu1 }
 0x2d1   : > { %v3013_v24 = vmul.f32 1.442695, %v2718_v11  ;;  %v2394_v50 = vmax.f32 %v2392_v37, %v2393_v38  ;;  %7926 = vpow2.f32 %v3001_v53  ;;  %v1704_v15 = vrot.slane %v1572_v47, 1 }
 0x2d2   : > { %v1705_v36 = vrot.slane %v1572_v47, 2  ;;  %v1706_v23 = vrot.slane %v1572_v47, 3  ;;  %7928 = vpow2.f32 %v3003_v0  ;;  %v1707_v54 = vrot.slane %v1572_v47, 4 }
 0x2d3   : > { %v2396_v14 = vmax.f32 %v2394_v50, %v2395_v52  ;;  %v1708_v8 = vrot.slane %v1572_v47, 5  ;;  %7930 = vpow2.f32 %v3005_v20  ;;  %v1709_v62 = vrot.slane %v1572_v47, 6 }
 0x2d4   : > { %v10603_v51 = vpop.eup %7920  ;;  %v1710_v3 = vrot.slane %v1572_v47, 7  ;;  %v10608_v26 = vadd.f32 %v1704_v15, %v9836_v31  ;;  %7932 = vpow2.f32 %v3007_v1  ;;  %v10613_v18 = vadd.f32 %v1705_v36, %v9850_v29 }
 0x2d5   : > { %v7923_v27 = vpop.eup %7922  ;;  %v10610_v38 = vmax.f32 %v2396_v14, %v2397_v60  ;;  %7934 = vpow2.f32 %v3009_v46  ;;  %v10616_v52 = vadd.f32 %v1706_v23, %v9843_v25  ;;  %v10619_v35 = vadd.f32 %v1707_v54, %v13631_v63 }
 0x2d6   : > { %v3921_v37 = vmul.f32 0.6931472, %v7923_v27  ;;  %v10622_v20 = vadd.f32 %v1708_v8, %v13632_v16  ;;  %7936 = vpow2.f32 %v3011_v39  ;;  %v10630_v29 = vadd.f32 %v1709_v62, %v13633_v5 }
 0x2d7   : > { %v2582_v60 = vrot.slane %v10610_v38, %v13611_v33  ;;  %7938 = vpow2.f32 %v3013_v24  ;;  %v10633_v25 = vadd.f32 %v1710_v3, %v13634_v28  ;;  %v2369_v63 = vsel %vm2158_vm8, %v10601_v34, -inf }
 0x2d8   : > { %v10625_v31 = vadd.f32 %v3921_v37, %v10419_v45  ;;  %v2370_v16 = vsel %vm2158_vm8, %v10608_v26, -inf  ;;  %v2372_v14 = vsel %vm2158_vm8, %v10613_v18, -inf  ;;  %v2374_v54 = vsel %vm2158_vm8, %v10616_v52, -inf }
 0x2d9   : > { %v2735_v46 = vsub.f32 %v10533_v12, %v2582_v60  ;;  %v2736_v45 = vsub.f32 %v10536_v4, %v2582_v60  ;;  %v2737_v47 = vsub.f32 %v10539_v10, %v2582_v60  ;;  %v2738_v2 = vsub.f32 %v10542_v57, %v2582_v60  ;;  %v13656_v10 = vld [vmem:[#allocation16_spill] sm:$0xff] }
 0x2da   : > { %13655 = vst [vmem:[#allocation4_spill] sm:$0xff] %v10625_v31  ;;  %v2739_v5 = vsub.f32 %v10545_v55, %v2582_v60  ;;  %v2740_v11 = vsub.f32 %v10548_v59, %v2582_v60  ;;  %v2741_v28 = vsub.f32 %v10551_v48, %v2582_v60  ;;  %v2742_v30 = vsub.f32 %v10554_v40, %v2582_v60  ;;  %v7925_v53 = vpop.eup %7924 }
 0x2db   : > { %v3047_v0 = vmul.f32 1.442695, %v2735_v46  ;;  %v3049_v1 = vmul.f32 1.442695, %v2736_v45  ;;  %v3051_v39 = vmul.f32 1.442695, %v2737_v47  ;;  %v2371_v24 = vmax.f32 %v2369_v63, %v2370_v16  ;;  %v7927_v12 = vpop.eup %7926 }
 0x2dc   : > { %v3053_v50 = vmul.f32 1.442695, %v2738_v2  ;;  %v3055_v4 = vmul.f32 1.442695, %v2739_v5  ;;  %v3057_v15 = vmul.f32 1.442695, %v2740_v11  ;;  %v10649_v57 = vadd.f32 %v10585_v21, %v13656_v10  ;;  %v7929_v55 = vpop.eup %7928 }
 0x2dd   : > { %v3558_v36 = vrot.slane %v7927_v12, 7  ;;  %7940 = vpow2.f32 %v3047_v0  ;;  %v3059_v59 = vmul.f32 1.442695, %v2741_v28  ;;  %v3061_v48 = vmul.f32 1.442695, %v2742_v30  ;;  %v7931_v23 = vpop.eup %7930 }
 0x2de   : > { %v3560_v40 = vrot.slane %v7929_v55, 6  ;;  %7942 = vpow2.f32 %v3049_v1  ;;  %v7933_v8 = vpop.eup %7932  ;;  %v3562_v62 = vrot.slane %v7931_v23, 5  ;;  %v2373_v3 = vmax.f32 %v2371_v24, %v2372_v14 }
 0x2df   : > { %v3559_v27 = vsel %vm3384_vm12, %v3558_v36, %v7925_v53  ;;  %7944 = vpow2.f32 %v3051_v39  ;;  %v7935_v37 = vpop.eup %7934  ;;  %v3564_v63 = vrot.slane %v7933_v8, 4  ;;  %v2376_v16 = vsel %vm2158_vm8, %v10619_v35, -inf }
 0x2e0   : > { %v3561_v60 = vsel %vm3387_vm13, %v3560_v40, %v3559_v27  ;;  %7946 = vpow2.f32 %v3053_v50  ;;  %v7937_v46 = vpop.eup %7936  ;;  %v3566_v47 = vrot.slane %v7935_v37, 3  ;;  %v2375_v2 = vmax.f32 %v2373_v3, %v2374_v54  ;;  %v10675_v40 = vpop.f32.mrb[35].mxu1 }
 0x2e1   : > { %v3563_v45 = vsel %vm3390_vm14, %v3562_v62, %v3561_v60  ;;  %7948 = vpow2.f32 %v3055_v4  ;;  %v7939_v5 = vpop.eup %7938  ;;  %v3568_v28 = vrot.slane %v7937_v46, 2  ;;  %v2378_v30 = vsel %vm2158_vm8, %v10622_v20, -inf  ;;  %v13657_v62 = vld [vmem:[#allocation6_spill] sm:$0xff] }
 0x2e2   : > { %v3565_v11 = vsel %vm3393_vm15, %v3564_v63, %v3563_v45  ;;  %7950 = vpow2.f32 %v3057_v15  ;;  %v3570_v0 = vrot.slane %v7939_v5, 1  ;;  %v2377_v1 = vmax.f32 %v2375_v2, %v2376_v16 }
 0x2e3   : > { %v3567_v53 = vsel %vm3396_vm0, %v3566_v47, %v3565_v11  ;;  %7952 = vpow2.f32 %v3059_v59  ;;  %v2380_v24 = vsel %vm2158_vm8, %v10630_v29, -inf  ;;  %v2382_v12 = vsel %vm2158_vm8, %v10633_v25, -inf }
 0x2e4   : > { %v3569_v39 = vsel %vm3399_vm1, %v3568_v28, %v3567_v53  ;;  %7954 = vpow2.f32 %v3061_v48  ;;  %v2379_v4 = vmax.f32 %v2377_v1, %v2378_v30  ;;  %v1725_v15 = vrot.slane %v10585_v21, 1 }
 0x2e5   : > { %v3571_v50 = vsel %vm3402_vm2, %v3570_v0, %v3569_v39  ;;  %v1726_v55 = vrot.slane %v10585_v21, 2  ;;  %v1727_v59 = vrot.slane %v10585_v21, 3  ;;  %v1728_v23 = vrot.slane %v10585_v21, 4 }
 0x2e6   : > { %v3822_v36 = vrot.slane %v3571_v50, 4  ;;  %v1729_v48 = vrot.slane %v10585_v21, 5  ;;  %v2381_v54 = vmax.f32 %v2379_v4, %v2380_v24  ;;  %v1730_v8 = vrot.slane %v10585_v21, 6 }
 0x2e7   : > { %v7941_v14 = vpop.eup %7940  ;;  %v1731_v27 = vrot.slane %v10585_v21, 7  ;;  %v10680_v3 = vadd.f32 %v1725_v15, %v13657_v62  ;;  %v10683_v63 = vadd.f32 %v1726_v55, %v10414_v44  ;;  %v10686_v16 = vadd.f32 %v1727_v59, %v10423_v9 }
 0x2e8   : > { %v7943_v37 = vpop.eup %7942  ;;  %v3823_v60 = vadd.f32 %v3822_v36, %v3571_v50  ;;  %v10689_v46 = vadd.f32 %v1728_v23, %v10427_v42  ;;  %v10691_v2 = vmax.f32 %v2381_v54, %v2382_v12  ;;  %v10694_v21 = vadd.f32 %v1729_v48, %v10442_v58 }
 0x2e9   : > { %v7945_v45 = vpop.eup %7944  ;;  %v3600_v47 = vrot.slane %v7943_v37, 7  ;;  %v10697_v5 = vadd.f32 %v1730_v8, %v10455_v49  ;;  %v10700_v53 = vadd.f32 %v1731_v27, %v10458_v61  ;;  %v2414_v0 = vsel %vm2158_vm8, %v10649_v57, -inf }
 0x2ea   : > { %v7947_v11 = vpop.eup %7946  ;;  %v3824_v28 = vrot.slane %v3823_v60, 2  ;;  %v3602_v30 = vrot.slane %v7945_v45, 6  ;;  %v2578_v12 = vrot.slane %v10691_v2, %v13611_v33  ;;  %v2415_v50 = vsel %vm2158_vm8, %v10680_v3, -inf }
 0x2eb   : > { %v7949_v1 = vpop.eup %7948  ;;  %v3601_v39 = vsel %vm3384_vm12, %v3600_v47, %v7941_v14  ;;  %v3604_v24 = vrot.slane %v7947_v11, 5  ;;  %v2416_v59 = vmax.f32 %v2414_v0, %v2415_v50  ;;  %vm1457_vm3 = vcmp.gt.f32.partialorder %v10256_v22, 0.0 }
 0x2ec   : > { %v7951_v4 = vpop.eup %7950  ;;  %v3825_v15 = vadd.f32 %v3824_v28, %v3823_v60  ;;  %v3603_v55 = vsel %vm3387_vm13, %v3602_v30, %v3601_v39  ;;  %v3606_v36 = vrot.slane %v7949_v1, 4  ;;  %v2727_v8 = vsub.f32 %v10601_v34, %v2578_v12 }
 0x2ed   : > { %v7953_v23 = vpop.eup %7952  ;;  %v3605_v48 = vsel %vm3390_vm14, %v3604_v24, %v3603_v55  ;;  %v3608_v54 = vrot.slane %v7951_v4, 3  ;;  %v2728_v14 = vsub.f32 %v10608_v26, %v2578_v12  ;;  %v2729_v11 = vsub.f32 %v10613_v18, %v2578_v12 }
 0x2ee   : > { %v7955_v27 = vpop.eup %7954  ;;  %v3826_v37 = vrot.slane %v3825_v15, 1  ;;  %v3607_v45 = vsel %vm3393_vm15, %v3606_v36, %v3605_v48  ;;  %v3610_v47 = vrot.slane %v7953_v23, 2  ;;  %v2730_v30 = vsub.f32 %v10616_v52, %v2578_v12 }
 0x2ef   : > { %v3609_v60 = vsel %vm3396_vm0, %v3608_v54, %v3607_v45  ;;  %v3612_v28 = vrot.slane %v7955_v27, 1  ;;  %v2731_v0 = vsub.f32 %v10619_v35, %v2578_v12  ;;  %v2732_v34 = vsub.f32 %v10622_v20, %v2578_v12 }
 0x2f0   : > { %v3827_v1 = vadd.f32 %v3826_v37, %v3825_v15  ;;  %v3611_v39 = vsel %vm3399_vm1, %v3610_v47, %v3609_v60  ;;  %v2733_v26 = vsub.f32 %v10630_v29, %v2578_v12  ;;  %v2734_v50 = vsub.f32 %v10633_v25, %v2578_v12 }
 0x2f1   : > { %v3613_v24 = vsel %vm3402_vm2, %v3612_v28, %v3611_v39  ;;  %v3031_v4 = vmul.f32 1.442695, %v2727_v8  ;;  %v3033_v18 = vmul.f32 1.442695, %v2728_v14  ;;  %v3035_v36 = vmul.f32 1.442695, %v2729_v11 }
 0x2f2   : > { %7956 = vlog2.f32 %v3827_v1  ;;  %v3840_v55 = vrot.slane %v3613_v24, 4  ;;  %v3037_v23 = vmul.f32 1.442695, %v2730_v30  ;;  %v3039_v52 = vmul.f32 1.442695, %v2731_v0 }
 0x2f3   : > { %7958 = vpow2.f32 %v3031_v4  ;;  %v3041_v35 = vmul.f32 1.442695, %v2732_v34  ;;  %v3043_v15 = vmul.f32 1.442695, %v2733_v26  ;;  %v3045_v54 = vmul.f32 1.442695, %v2734_v50 }
 0x2f4   : > { %v3841_v48 = vadd.f32 %v3840_v55, %v3613_v24  ;;  %7960 = vpow2.f32 %v3033_v18  ;;  %v2417_v20 = vsel %vm2158_vm8, %v10683_v63, -inf  ;;  %v2419_v25 = vsel %vm2158_vm8, %v10686_v16, -inf }
 0x2f5   : > { %7962 = vpow2.f32 %v3035_v36  ;;  %v2418_v29 = vmax.f32 %v2416_v59, %v2417_v20  ;;  %v2421_v12 = vsel %vm2158_vm8, %v10689_v46, -inf  ;;  %v2423_v14 = vsel %vm2158_vm8, %v10694_v21, -inf }
 0x2f6   : > { %v3842_v8 = vrot.slane %v3841_v48, 2  ;;  %7964 = vpow2.f32 %v3037_v23  ;;  %v2425_v27 = vsel %vm2158_vm8, %v10697_v5, -inf  ;;  %v2427_v45 = vsel %vm2158_vm8, %v10700_v53, -inf }
 0x2f7   : > { %7966 = vpow2.f32 %v3039_v52  ;;  %v2420_v37 = vmax.f32 %v2418_v29, %v2419_v25  ;;  %v1718_v59 = vrot.slane %v10588_v56, 1  ;;  %v1719_v11 = vrot.slane %v10588_v56, 2 }
 0x2f8   : > { %v3843_v47 = vadd.f32 %v3842_v8, %v3841_v48  ;;  %7968 = vpow2.f32 %v3041_v35  ;;  %v1720_v60 = vrot.slane %v10588_v56, 3  ;;  %v1721_v30 = vrot.slane %v10588_v56, 4 }
 0x2f9   : > { %7970 = vpow2.f32 %v3043_v15  ;;  %v2422_v28 = vmax.f32 %v2420_v37, %v2421_v12  ;;  %v1722_v0 = vrot.slane %v10588_v56, 5  ;;  %v1723_v39 = vrot.slane %v10588_v56, 6 }
 0x2fa   : > { %v3844_v1 = vrot.slane %v3843_v47, 1  ;;  %7972 = vpow2.f32 %v3045_v54  ;;  %v1724_v34 = vrot.slane %v10588_v56, 7  ;;  %v10744_v24 = vadd.f32 %v10588_v56, %v13656_v10 }
 0x2fb   : > { %v2424_v26 = vmax.f32 %v2422_v28, %v2423_v14  ;;  %v10747_v50 = vadd.f32 %v1718_v59, %v13657_v62  ;;  %v10750_v4 = vadd.f32 %v1719_v11, %v10414_v44  ;;  %v10753_v36 = vadd.f32 %v1720_v60, %v10423_v9 }
 0x2fc   : > { %v7957_v18 = vpop.eup %7956  ;;  %v3845_v55 = vadd.f32 %v3844_v1, %v3843_v47  ;;  %v10756_v23 = vadd.f32 %v1721_v30, %v10427_v42  ;;  %v10759_v52 = vadd.f32 %v1722_v0, %v10442_v58  ;;  %v10762_v48 = vadd.f32 %v1723_v39, %v10455_v49 }
 0x2fd   : > { %v7959_v35 = vpop.eup %7958  ;;  %v3919_v56 = vmul.f32 0.6931472, %v7957_v18  ;;  %v2426_v15 = vmax.f32 %v2424_v26, %v2425_v27  ;;  %v10765_v54 = vadd.f32 %v1724_v34, %v10458_v61  ;;  %v2399_v29 = vsel %vm2158_vm8, %v10744_v24, -inf }
 0x2fe   : > { %v7961_v20 = vpop.eup %7960  ;;  %7974 = vlog2.f32 %v3845_v55  ;;  %v2400_v25 = vsel %vm2158_vm8, %v10747_v50, -inf  ;;  %v2402_v12 = vsel %vm2158_vm8, %v10750_v4, -inf  ;;  %v2404_v60 = vsel %vm2158_vm8, %v10753_v36, -inf }
 0x2ff   : > { %v7963_v8 = vpop.eup %7962  ;;  %v10774_v14 = vadd.f32 %v3919_v56, %v10564_v7  ;;  %v3586_v27 = vrot.slane %v7961_v20, 7  ;;  %v10776_v37 = vmax.f32 %v2426_v15, %v2427_v45  ;;  %v2401_v59 = vmax.f32 %v2399_v29, %v2400_v25 }
 0x300   : > { %v7965_v47 = vpop.eup %7964  ;;  %v3588_v11 = vrot.slane %v7963_v8, 6  ;;  %v2406_v28 = vsel %vm2158_vm8, %v10756_v23, -inf  ;;  %v1523_v30 = vmul.f32 0.6931472, %v10603_v51  ;;  %vm1456_vm4 = vcmp.gt.f32.partialorder %v10323_v19, 0.0 }
 0x301   : > { %13658 = vst [vmem:[#allocation5_spill] sm:$0xff] %v10774_v14  ;;  %v7967_v0 = vpop.eup %7966  ;;  %v3587_v7 = vsel %vm3384_vm12, %v3586_v27, %v7959_v35  ;;  %v3590_v1 = vrot.slane %v7965_v47, 5  ;;  %v2590_v45 = vrot.slane %v10776_v37, %v13611_v33  ;;  %v2403_v39 = vmax.f32 %v2401_v59, %v2402_v12 }
 0x302   : > { %v7969_v34 = vpop.eup %7968  ;;  %v3589_v26 = vsel %vm3387_vm13, %v3588_v11, %v3587_v7  ;;  %v3592_v18 = vrot.slane %v7967_v0, 4  ;;  %v2408_v55 = vsel %vm2158_vm8, %v10759_v52, -inf  ;;  %v2410_v51 = vsel %vm2158_vm8, %v10762_v48, -inf }
 0x303   : > { %v7971_v56 = vpop.eup %7970  ;;  %v3591_v35 = vsel %vm3390_vm14, %v3590_v1, %v3589_v26  ;;  %v3594_v15 = vrot.slane %v7969_v34, 3  ;;  %v2751_v20 = vsub.f32 %v10649_v57, %v2590_v45  ;;  %v2752_v29 = vsub.f32 %v10680_v3, %v2590_v45 }
 0x304   : > { %v7973_v25 = vpop.eup %7972  ;;  %v3593_v12 = vsel %vm3393_vm15, %v3592_v18, %v3591_v35  ;;  %v3596_v8 = vrot.slane %v7971_v56, 2  ;;  %v2753_v27 = vsub.f32 %v10683_v63, %v2590_v45  ;;  %v2754_v59 = vsub.f32 %v10686_v16, %v2590_v45 }
 0x305   : > { %v3595_v47 = vsel %vm3396_vm0, %v3594_v15, %v3593_v12  ;;  %v3598_v11 = vrot.slane %v7973_v25, 1  ;;  %v2755_v0 = vsub.f32 %v10689_v46, %v2590_v45  ;;  %v2756_v7 = vsub.f32 %v10694_v21, %v2590_v45 }
 0x306   : > { %v3597_v1 = vsel %vm3399_vm1, %v3596_v8, %v3595_v47  ;;  %v2757_v57 = vsub.f32 %v10697_v5, %v2590_v45  ;;  %v2758_v3 = vsub.f32 %v10700_v53, %v2590_v45  ;;  %v3079_v34 = vmul.f32 1.442695, %v2751_v20 }
 0x307   : > { %v3599_v26 = vsel %vm3402_vm2, %v3598_v11, %v3597_v1  ;;  %v3081_v18 = vmul.f32 1.442695, %v2752_v29  ;;  %v3083_v63 = vmul.f32 1.442695, %v2753_v27  ;;  %v3085_v56 = vmul.f32 1.442695, %v2754_v59 }
 0x308   : > { %v7975_v16 = vpop.eup %7974  ;;  %v3834_v35 = vrot.slane %v3599_v26, 4  ;;  %7976 = vpow2.f32 %v3079_v34  ;;  %v3087_v15 = vmul.f32 1.442695, %v2755_v0  ;;  %v2412_v46 = vsel %vm2158_vm8, %v10765_v54, -inf  ;;  %v10817_v11 = vpop.f32.mrb[12].mxu0 }
 0x309   : > { %v3925_v21 = vmul.f32 0.6931472, %v7975_v16  ;;  %7978 = vpow2.f32 %v3081_v18  ;;  %v3089_v25 = vmul.f32 1.442695, %v2756_v7  ;;  %v3091_v12 = vmul.f32 1.442695, %v2757_v57 }
 0x30a   : > { %v3835_v5 = vadd.f32 %v3834_v35, %v3599_v26  ;;  %7980 = vpow2.f32 %v3083_v63  ;;  %v2405_v53 = vmax.f32 %v2403_v39, %v2404_v60  ;;  %v1553_v45 = vsel %vm1457_vm3, %v10590_v43, -1e+09  ;;  %v10819_v43 = vpop.f32.mrb[13].mxu0 }
 0x30b   : > { %v10812_v20 = vadd.f32 %v3925_v21, %v10610_v38  ;;  %7982 = vpow2.f32 %v3085_v56  ;;  %v3093_v29 = vmul.f32 1.442695, %v2758_v3  ;;  %v1577_v8 = vadd.f32 %v1553_v45, %v13627_v32  ;;  %v10847_v21 = vpop.f32.mrb[14].mxu0 }
 0x30c   : > { %v3836_v27 = vrot.slane %v3835_v5, 2  ;;  %7984 = vpow2.f32 %v3087_v15  ;;  %v2407_v59 = vmax.f32 %v2405_v53, %v2406_v28  ;;  %v1552_v47 = vsel %vm1456_vm4, %v1523_v30, -1e+09 }
 0x30d   : > { %13659 = vst [vmem:[#allocation9_spill] sm:$0xff] %v10812_v20  ;;  %7986 = vpow2.f32 %v3089_v25  ;;  %v1739_v60 = vrot.slane %v1577_v8, 1  ;;  %v1740_v39 = vrot.slane %v1577_v8, 2  ;;  %v1741_v22 = vrot.slane %v1577_v8, 3 }
 0x30e   : > { %v3837_v38 = vadd.f32 %v3836_v27, %v3835_v5  ;;  %7988 = vpow2.f32 %v3091_v12  ;;  %v2409_v0 = vmax.f32 %v2407_v59, %v2408_v55  ;;  %v1742_v7 = vrot.slane %v1577_v8, 4 }
 0x30f   : > { %7990 = vpow2.f32 %v3093_v29  ;;  %v1743_v1 = vrot.slane %v1577_v8, 5  ;;  %v1744_v57 = vrot.slane %v1577_v8, 6  ;;  %v1745_v3 = vrot.slane %v1577_v8, 7 }
 0x310   : > { %v3838_v28 = vrot.slane %v3837_v38, 1  ;;  %v2411_v34 = vmax.f32 %v2409_v0, %v2410_v51  ;;  %v10822_v19 = vadd.f32 %v1577_v8, %v13656_v10  ;;  %v10825_v30 = vadd.f32 %v1739_v60, %v13657_v62 }
 0x311   : > { %v10828_v26 = vadd.f32 %v1740_v39, %v10414_v44  ;;  %v10831_v18 = vadd.f32 %v1741_v22, %v10423_v9  ;;  %v10834_v55 = vadd.f32 %v1742_v7, %v10427_v42  ;;  %v10837_v63 = vadd.f32 %v1743_v1, %v10442_v58 }
 0x312   : > { %v7977_v56 = vpop.eup %7976  ;;  %v3839_v51 = vadd.f32 %v3838_v28, %v3837_v38  ;;  %v10839_v16 = vmax.f32 %v2411_v34, %v2412_v46  ;;  %v10842_v35 = vadd.f32 %v1744_v57, %v10455_v49  ;;  %v10845_v15 = vadd.f32 %v1745_v3, %v10458_v61 }
 0x313   : > { %v7979_v25 = vpop.eup %7978  ;;  %v2444_v12 = vsel %vm2158_vm8, %v10822_v19, -inf  ;;  %v2445_v5 = vsel %vm2158_vm8, %v10825_v30, -inf  ;;  %v2447_v53 = vsel %vm2158_vm8, %v10828_v26, -inf  ;;  %v10856_v46 = vadd.f32 %v1552_v47, %v13627_v32 }
 0x314   : > { %v7981_v45 = vpop.eup %7980  ;;  %7992 = vlog2.f32 %v3839_v51  ;;  %v3628_v29 = vrot.slane %v7979_v25, 7  ;;  %v2586_v8 = vrot.slane %v10839_v16, %v13611_v33  ;;  %v2446_v27 = vmax.f32 %v2444_v12, %v2445_v5 }
 0x315   : > { %v7983_v59 = vpop.eup %7982  ;;  %v3630_v60 = vrot.slane %v7981_v45, 6  ;;  %v2449_v39 = vsel %vm2158_vm8, %v10831_v18, -inf  ;;  %v2451_v22 = vsel %vm2158_vm8, %v10834_v55, -inf  ;;  %v10866_v38 = vsel %vm2158_vm8, %v10837_v63, -inf }
 0x316   : > { %v7985_v47 = vpop.eup %7984  ;;  %v3629_v0 = vsel %vm3384_vm12, %v3628_v29, %v7977_v56  ;;  %v3632_v7 = vrot.slane %v7983_v59, 5  ;;  %v2743_v1 = vsub.f32 %v10744_v24, %v2586_v8  ;;  %v2744_v57 = vsub.f32 %v10747_v50, %v2586_v8 }
 0x317   : > { %v7987_v3 = vpop.eup %7986  ;;  %v3631_v28 = vsel %vm3387_vm13, %v3630_v60, %v3629_v0  ;;  %v3634_v34 = vrot.slane %v7985_v47, 4  ;;  %v2745_v51 = vsub.f32 %v10750_v4, %v2586_v8  ;;  %v2746_v25 = vsub.f32 %v10753_v36, %v2586_v8 }
 0x318   : > { %v7989_v12 = vpop.eup %7988  ;;  %v3633_v5 = vsel %vm3390_vm14, %v3632_v7, %v3631_v28  ;;  %v3636_v45 = vrot.slane %v7987_v3, 3  ;;  %v2747_v20 = vsub.f32 %v10756_v23, %v2586_v8  ;;  %v2748_v56 = vsub.f32 %v10759_v52, %v2586_v8 }
 0x319   : > { %v7991_v29 = vpop.eup %7990  ;;  %v3635_v24 = vsel %vm3393_vm15, %v3634_v34, %v3633_v5  ;;  %v3638_v50 = vrot.slane %v7989_v12, 2  ;;  %v2749_v59 = vsub.f32 %v10762_v48, %v2586_v8  ;;  %v2750_v60 = vsub.f32 %v10765_v54, %v2586_v8 }
 0x31a   : > { %v3637_v4 = vsel %vm3396_vm0, %v3636_v45, %v3635_v24  ;;  %v3640_v47 = vrot.slane %v7991_v29, 1  ;;  %v3063_v36 = vmul.f32 1.442695, %v2743_v1  ;;  %v3065_v0 = vmul.f32 1.442695, %v2744_v57 }
 0x31b   : > { %v3639_v7 = vsel %vm3399_vm1, %v3638_v50, %v3637_v4  ;;  %v3067_v3 = vmul.f32 1.442695, %v2745_v51  ;;  %v3069_v28 = vmul.f32 1.442695, %v2746_v25  ;;  %v2455_v23 = vsel %vm2158_vm8, %v10842_v35, -inf }
 0x31c   : > { %v3641_v52 = vsel %vm3402_vm2, %v3640_v47, %v3639_v7  ;;  %7994 = vpow2.f32 %v3063_v36  ;;  %v3071_v34 = vmul.f32 1.442695, %v2747_v20  ;;  %v3073_v12 = vmul.f32 1.442695, %v2748_v56 }
 0x31d   : > { %v3852_v48 = vrot.slane %v3641_v52, 4  ;;  %7996 = vpow2.f32 %v3065_v0  ;;  %v3075_v54 = vmul.f32 1.442695, %v2749_v59  ;;  %v2448_v8 = vmax.f32 %v2446_v27, %v2447_v53  ;;  %v10893_v59 = vpop.f32.mrb[15].mxu0 }
 0x31e   : > { %v7993_v5 = vpop.eup %7992  ;;  %7998 = vpow2.f32 %v3067_v3  ;;  %v3077_v1 = vmul.f32 1.442695, %v2750_v60  ;;  %v1732_v57 = vrot.slane %v10856_v46, 1  ;;  %v1733_v51 = vrot.slane %v10856_v46, 2 }
 0x31f   : > { %v3923_v25 = vmul.f32 0.6931472, %v7993_v5  ;;  %v3853_v45 = vadd.f32 %v3852_v48, %v3641_v52  ;;  %8000 = vpow2.f32 %v3069_v28  ;;  %v2450_v29 = vmax.f32 %v2448_v8, %v2449_v39 }
 0x320   : > { %8002 = vpow2.f32 %v3071_v34  ;;  %v1734_v24 = vrot.slane %v10856_v46, 3  ;;  %v1735_v20 = vrot.slane %v10856_v46, 4  ;;  %v1736_v56 = vrot.slane %v10856_v46, 5 }
 0x321   : > { %v10891_v53 = vadd.f32 %v3923_v25, %v10691_v2  ;;  %v3854_v27 = vrot.slane %v3853_v45, 2  ;;  %8004 = vpow2.f32 %v3073_v12  ;;  %v2452_v50 = vmax.f32 %v2450_v29, %v2451_v22 }
 0x322   : > { %8006 = vpow2.f32 %v3075_v54  ;;  %v1737_v60 = vrot.slane %v10856_v46, 6  ;;  %v1738_v39 = vrot.slane %v10856_v46, 7  ;;  %v10899_v4 = vadd.f32 %v10856_v46, %v13656_v10 }
 0x323   : > { %13660 = vst [vmem:[#allocation10_spill] sm:$0xff] %v10891_v53  ;;  %v3855_v47 = vadd.f32 %v3854_v27, %v3853_v45  ;;  %8008 = vpow2.f32 %v3077_v1  ;;  %v2454_v36 = vmax.f32 %v2452_v50, %v10866_v38  ;;  %v10903_v2 = vadd.f32 %v1732_v57, %v13657_v62 }
 0x324   : > { %v10906_v22 = vadd.f32 %v1733_v51, %v10414_v44  ;;  %v10909_v0 = vadd.f32 %v1734_v24, %v10423_v9  ;;  %v10912_v7 = vadd.f32 %v1735_v20, %v10427_v42  ;;  %v10915_v3 = vadd.f32 %v1736_v56, %v10442_v58 }
 0x325   : > { %v3856_v46 = vrot.slane %v3855_v47, 1  ;;  %v2456_v28 = vmax.f32 %v2454_v36, %v2455_v23  ;;  %v10918_v52 = vadd.f32 %v1737_v60, %v10455_v49  ;;  %v10921_v38 = vadd.f32 %v1738_v39, %v10458_v61 }
 0x326   : > { %v7995_v34 = vpop.eup %7994  ;;  %v2457_v12 = vsel %vm2158_vm8, %v10845_v15, -inf  ;;  %v2429_v48 = vsel %vm2158_vm8, %v10899_v4, -inf  ;;  %v2430_v54 = vsel %vm2158_vm8, %v10903_v2, -inf  ;;  %v2432_v8 = vsel %vm2158_vm8, %v10906_v22, -inf }
 0x327   : > { %v7997_v23 = vpop.eup %7996  ;;  %v3857_v5 = vadd.f32 %v3856_v46, %v3855_v47  ;;  %v10931_v1 = vmax.f32 %v2456_v28, %v2457_v12  ;;  %v2431_v57 = vmax.f32 %v2429_v48, %v2430_v54  ;;  %v13661_v60 = vmax.f32 %v10405_v41, 1e-30 }
 0x328   : > { %v7999_v51 = vpop.eup %7998  ;;  %v3614_v25 = vrot.slane %v7997_v23, 7  ;;  %vm1459_vm5 = vcmp.gt.f32.partialorder %v10405_v41, 0.0  ;;  %vm1458_vm6 = vcmp.gt.f32.partialorder %v10493_v17, 0.0  ;;  %vm1461_vm7 = vcmp.gt.f32.partialorder %v10605_v6, 0.0 }
 0x329   : > { %v8001_v45 = vpop.eup %8000  ;;  %8010 = vlog2.f32 %v3857_v5  ;;  %v3616_v29 = vrot.slane %v7999_v51, 6  ;;  %v2598_v24 = vrot.slane %v10931_v1, %v13611_v33  ;;  %v2433_v20 = vmax.f32 %v2431_v57, %v2432_v8 }
 0x32a   : > { %v8003_v56 = vpop.eup %8002  ;;  %v3615_v27 = vsel %vm3384_vm12, %v3614_v25, %v7995_v34  ;;  %v3618_v50 = vrot.slane %v8001_v45, 5  ;;  %8012 = vlog2.f32 %v13661_v60  ;;  %vm1460_vm9 = vcmp.gt.f32.partialorder %v10675_v40, 0.0 }
 0x32b   : > { %v8005_v39 = vpop.eup %8004  ;;  %v3617_v47 = vsel %vm3387_vm13, %v3616_v29, %v3615_v27  ;;  %v3620_v36 = vrot.slane %v8003_v56, 4  ;;  %v2767_v46 = vsub.f32 %v10822_v19, %v2598_v24  ;;  %v2768_v28 = vsub.f32 %v10825_v30, %v2598_v24 }
 0x32c   : > { %v8007_v12 = vpop.eup %8006  ;;  %v3619_v48 = vsel %vm3390_vm14, %v3618_v50, %v3617_v47  ;;  %v3622_v54 = vrot.slane %v8005_v39, 3  ;;  %v2769_v8 = vsub.f32 %v10828_v26, %v2598_v24  ;;  %v2770_v34 = vsub.f32 %v10831_v18, %v2598_v24 }
 0x32d   : > { %v8009_v23 = vpop.eup %8008  ;;  %v3621_v5 = vsel %vm3393_vm15, %v3620_v36, %v3619_v48  ;;  %v3624_v57 = vrot.slane %v8007_v12, 2  ;;  %v2771_v51 = vsub.f32 %v10834_v55, %v2598_v24  ;;  %v2772_v25 = vsub.f32 %v10837_v63, %v2598_v24 }
 0x32e   : > { %v3623_v19 = vsel %vm3396_vm0, %v3622_v54, %v3621_v5  ;;  %v3626_v45 = vrot.slane %v8009_v23, 1  ;;  %v2773_v30 = vsub.f32 %v10842_v35, %v2598_v24  ;;  %v2774_v29 = vsub.f32 %v10845_v15, %v2598_v24 }
 0x32f   : > { %v3625_v56 = vsel %vm3399_vm1, %v3624_v57, %v3623_v19  ;;  %v3111_v26 = vmul.f32 1.442695, %v2767_v46  ;;  %v3113_v27 = vmul.f32 1.442695, %v2768_v28  ;;  %v3115_v18 = vmul.f32 1.442695, %v2769_v8 }
 0x330   : > { %v3627_v50 = vsel %vm3402_vm2, %v3626_v45, %v3625_v56  ;;  %v3117_v60 = vmul.f32 1.442695, %v2770_v34  ;;  %v2434_v55 = vsel %vm2158_vm8, %v10909_v0, -inf  ;;  %v3119_v39 = vmul.f32 1.442695, %v2771_v51 }
 0x331   : > { %v3846_v63 = vrot.slane %v3627_v50, 4  ;;  %8014 = vpow2.f32 %v3111_v26  ;;  %v2436_v35 = vsel %vm2158_vm8, %v10912_v7, -inf  ;;  %v3121_v15 = vmul.f32 1.442695, %v2772_v25 }
 0x332   : > { %8016 = vpow2.f32 %v3113_v27  ;;  %v2435_v24 = vmax.f32 %v2433_v20, %v2434_v55  ;;  %v2438_v47 = vsel %vm2158_vm8, %v10915_v3, -inf  ;;  %v3123_v28 = vmul.f32 1.442695, %v2773_v30 }
 0x333   : > { %v8011_v36 = vpop.eup %8010  ;;  %v3847_v46 = vadd.f32 %v3846_v63, %v3627_v50  ;;  %8018 = vpow2.f32 %v3115_v18  ;;  %v2440_v12 = vsel %vm2158_vm8, %v10918_v52, -inf  ;;  %v3125_v8 = vmul.f32 1.442695, %v2774_v29 }
 0x334   : > { %v8013_v48 = vpop.eup %8012  ;;  %v3929_v54 = vmul.f32 0.6931472, %v8011_v36  ;;  %8020 = vpow2.f32 %v3117_v60  ;;  %v2437_v34 = vmax.f32 %v2435_v24, %v2436_v35  ;;  %v1482_v20 = vmax.f32 %v10493_v17, 1e-30 }
 0x335   : > { %v3848_v23 = vrot.slane %v3847_v46, 2  ;;  %8022 = vpow2.f32 %v3119_v39  ;;  %v1529_v5 = vmul.f32 0.6931472, %v8013_v48  ;;  %v2442_v56 = vsel %vm2158_vm8, %v10921_v38, -inf }
 0x336   : > { %v10963_v57 = vadd.f32 %v3929_v54, %v10776_v37  ;;  %8024 = vpow2.f32 %v3121_v15  ;;  %v2439_v51 = vmax.f32 %v2437_v34, %v2438_v47  ;;  %v1485_v37 = vmax.f32 %v10605_v6, 1e-30  ;;  %v10997_v54 = vpop.f32.mrb[16].mxu0  ;;  %v13665_v6 = vld [vmem:[#allocation3_spill] sm:$0xff] }
 0x337   : > { %v3849_v25 = vadd.f32 %v3848_v23, %v3847_v46  ;;  %8026 = vpow2.f32 %v3123_v28  ;;  %v1555_v19 = vsel %vm1459_vm5, %v1529_v5, -1e+09  ;;  %vm4163_vm10 = vcmp.gt.f32.partialorder %v10817_v11, 0.0 }
 0x338   : > { %13662 = vst [vmem:[#allocation11_spill] sm:$0xff] %v10963_v57  ;;  %8028 = vpow2.f32 %v3125_v8  ;;  %v2441_v45 = vmax.f32 %v2439_v51, %v2440_v12  ;;  %v10968_v30 = vadd.f32 %v1555_v19, %v13627_v32  ;;  %vm4162_vm11 = vcmp.gt.f32.partialorder %v10819_v43, 0.0 }
 0x339   : > { %v3850_v29 = vrot.slane %v3849_v25, 1  ;;  %8030 = vlog2.f32 %v1482_v20  ;;  %vm4165_vm3 = vcmp.gt.f32.partialorder %v10847_v21, 0.0  ;;  %vm4164_vm4 = vcmp.gt.f32.partialorder %v10893_v59, 0.0 }
 0x33a   : > { %v10973_v26 = vmax.f32 %v2441_v45, %v2442_v56  ;;  %v1753_v27 = vrot.slane %v10968_v30, 1  ;;  %v1754_v18 = vrot.slane %v10968_v30, 2  ;;  %v1755_v41 = vrot.slane %v10968_v30, 3 }
 0x33b   : > { %v8015_v50 = vpop.eup %8014  ;;  %v3851_v60 = vadd.f32 %v3850_v29, %v3849_v25  ;;  %v1756_v55 = vrot.slane %v10968_v30, 4  ;;  %v1757_v63 = vrot.slane %v10968_v30, 5  ;;  %v1758_v39 = vrot.slane %v10968_v30, 6 }
 0x33c   : > { %v8017_v35 = vpop.eup %8016  ;;  %v2594_v15 = vrot.slane %v10973_v26, %v13611_v33  ;;  %v1759_v24 = vrot.slane %v10968_v30, 7  ;;  %v10986_v47 = vadd.f32 %v10968_v30, %v13656_v10  ;;  %v10989_v36 = vadd.f32 %v1753_v27, %v13657_v62 }
 0x33d   : > { %v8019_v46 = vpop.eup %8018  ;;  %8032 = vlog2.f32 %v3851_v60  ;;  %v3656_v28 = vrot.slane %v8017_v35, 7  ;;  %v10992_v12 = vadd.f32 %v1754_v18, %v10414_v44  ;;  %v10995_v48 = vadd.f32 %v1755_v41, %v10423_v9 }
 0x33e   : > { %v8021_v8 = vpop.eup %8020  ;;  %v3658_v34 = vrot.slane %v8019_v46, 6  ;;  %v2759_v23 = vsub.f32 %v10899_v4, %v2594_v15  ;;  %v2760_v5 = vsub.f32 %v10903_v2, %v2594_v15  ;;  %v2761_v20 = vsub.f32 %v10906_v22, %v2594_v15 }
 0x33f   : > { %v8023_v51 = vpop.eup %8022  ;;  %v3657_v25 = vsel %vm3384_vm12, %v3656_v28, %v8015_v50  ;;  %v3660_v19 = vrot.slane %v8021_v8, 5  ;;  %v2762_v45 = vsub.f32 %v10909_v0, %v2594_v15  ;;  %v2763_v30 = vsub.f32 %v10912_v7, %v2594_v15 }
 0x340   : > { %v8025_v29 = vpop.eup %8024  ;;  %v3659_v56 = vsel %vm3387_vm13, %v3658_v34, %v3657_v25  ;;  %v3662_v27 = vrot.slane %v8023_v51, 4  ;;  %v2764_v18 = vsub.f32 %v10915_v3, %v2594_v15  ;;  %v2765_v4 = vsub.f32 %v10918_v52, %v2594_v15 }
 0x341   : > { %v8027_v41 = vpop.eup %8026  ;;  %v3661_v2 = vsel %vm3390_vm14, %v3660_v19, %v3659_v56  ;;  %v3664_v22 = vrot.slane %v8025_v29, 3  ;;  %v2766_v60 = vsub.f32 %v10921_v38, %v2594_v15  ;;  %v3095_v50 = vmul.f32 1.442695, %v2759_v23 }
 0x342   : > { %v8029_v35 = vpop.eup %8028  ;;  %v3663_v0 = vsel %vm3393_vm15, %v3662_v27, %v3661_v2  ;;  %v3666_v46 = vrot.slane %v8027_v41, 2  ;;  %v3097_v7 = vmul.f32 1.442695, %v2760_v5  ;;  %v3099_v28 = vmul.f32 1.442695, %v2761_v20 }
 0x343   : > { %v8031_v8 = vpop.eup %8030  ;;  %v3665_v34 = vsel %vm3396_vm0, %v3664_v22, %v3663_v0  ;;  %v3668_v51 = vrot.slane %v8029_v35, 1  ;;  %8034 = vpow2.f32 %v3095_v50  ;;  %v3101_v3 = vmul.f32 1.442695, %v2762_v45 }
 0x344   : > { %v3667_v52 = vsel %vm3399_vm1, %v3666_v46, %v3665_v34  ;;  %8036 = vpow2.f32 %v3097_v7  ;;  %v3103_v25 = vmul.f32 1.442695, %v2763_v30  ;;  %v3105_v38 = vmul.f32 1.442695, %v2764_v18 }
 0x345   : > { %v3669_v15 = vsel %vm3402_vm2, %v3668_v51, %v3667_v52  ;;  %8038 = vpow2.f32 %v3099_v28  ;;  %v3107_v23 = vmul.f32 1.442695, %v2765_v4  ;;  %v3109_v19 = vmul.f32 1.442695, %v2766_v60 }
 0x346   : > { %v3864_v5 = vrot.slane %v3669_v15, 4  ;;  %8040 = vpow2.f32 %v3101_v3  ;;  %v11016_v20 = vadd.f32 %v1756_v55, %v10427_v42  ;;  %v11019_v29 = vadd.f32 %v1757_v63, %v10442_v58 }
 0x347   : > { %v8033_v45 = vpop.eup %8032  ;;  %8042 = vpow2.f32 %v3103_v25  ;;  %v11022_v56 = vadd.f32 %v1758_v39, %v10455_v49  ;;  %v11025_v30 = vadd.f32 %v1759_v24, %v10458_v61  ;;  %v2474_v27 = vsel %vm2158_vm8, %v10986_v47, -inf }
 0x348   : > { %v3927_v18 = vmul.f32 0.6931472, %v8033_v45  ;;  %v3865_v4 = vadd.f32 %v3864_v5, %v3669_v15  ;;  %8044 = vpow2.f32 %v3105_v38  ;;  %v2475_v55 = vsel %vm2158_vm8, %v10989_v36, -inf }
 0x349   : > { %8046 = vpow2.f32 %v3107_v23  ;;  %v2476_v63 = vmax.f32 %v2474_v27, %v2475_v55  ;;  %v2477_v41 = vsel %vm2158_vm8, %v10992_v12, -inf  ;;  %v1484_v39 = vmax.f32 %v10675_v40, 1e-30 }
 0x34a   : > { %v11035_v2 = vadd.f32 %v3927_v18, %v10839_v16  ;;  %v3866_v24 = vrot.slane %v3865_v4, 2  ;;  %8048 = vpow2.f32 %v3109_v19  ;;  %v4187_v22 = vmax.f32 %v10817_v11, 1e-30  ;;  %v11057_v18 = vpop.f32.mrb[17].mxu0 }
 0x34b   : > { %v2478_v60 = vmax.f32 %v2476_v63, %v2477_v41  ;;  %v2479_v50 = vsel %vm2158_vm8, %v10995_v48, -inf  ;;  %v4186_v35 = vmax.f32 %v10819_v43, 1e-30  ;;  %v4189_v0 = vmax.f32 %v10847_v21, 1e-30 }
 0x34c   : > { %13663 = vst [vmem:[#allocation21_spill] sm:$0xff] %v11035_v2  ;;  %v3867_v46 = vadd.f32 %v3866_v24, %v3865_v4  ;;  %v2481_v7 = vsel %vm2158_vm8, %v11016_v20, -inf  ;;  %v1527_v28 = vmul.f32 0.6931472, %v8031_v8  ;;  %8050 = vlog2.f32 %v1485_v37 }
 0x34d   : > { %v8035_v16 = vpop.eup %8034  ;;  %v2480_v34 = vmax.f32 %v2478_v60, %v2479_v50  ;;  %v2483_v51 = vsel %vm2158_vm8, %v11019_v29, -inf  ;;  %8052 = vlog2.f32 %v1484_v39  ;;  %v2485_v25 = vsel %vm2158_vm8, %v11022_v56, -inf }
 0x34e   : > { %v8037_v3 = vpop.eup %8036  ;;  %v3868_v52 = vrot.slane %v3867_v46, 1  ;;  %v1554_v38 = vsel %vm1458_vm6, %v1527_v28, -1e+09  ;;  %8054 = vlog2.f32 %v4187_v22  ;;  %v2487_v27 = vsel %vm2158_vm8, %v11025_v30, -inf }
 0x34f   : > { %v8039_v15 = vpop.eup %8038  ;;  %v3642_v8 = vrot.slane %v8037_v3, 7  ;;  %v2482_v23 = vmax.f32 %v2480_v34, %v2481_v7  ;;  %v11053_v37 = vadd.f32 %v1554_v38, %v13627_v32  ;;  %8056 = vlog2.f32 %v4186_v35 }
 0x350   : > { %v8041_v19 = vpop.eup %8040  ;;  %v3869_v5 = vadd.f32 %v3868_v52, %v3867_v46  ;;  %v3644_v45 = vrot.slane %v8039_v15, 6  ;;  %8058 = vlog2.f32 %v4189_v0  ;;  %vm4167_vm5 = vcmp.gt.f32.partialorder %v10997_v54, 0.0 }
 0x351   : > { %v8043_v4 = vpop.eup %8042  ;;  %v3643_v17 = vsel %vm3384_vm12, %v3642_v8, %v8035_v16  ;;  %v3646_v55 = vrot.slane %v8041_v19, 5  ;;  %v2484_v63 = vmax.f32 %v2482_v23, %v2483_v51  ;;  %v1746_v41 = vrot.slane %v11053_v37, 1 }
 0x352   : > { %v8045_v39 = vpop.eup %8044  ;;  %8060 = vlog2.f32 %v3869_v5  ;;  %v3645_v24 = vsel %vm3387_vm13, %v3644_v45, %v3643_v17  ;;  %v3648_v22 = vrot.slane %v8043_v4, 4  ;;  %v1747_v60 = vrot.slane %v11053_v37, 2 }
 0x353   : > { %v8047_v50 = vpop.eup %8046  ;;  %v3647_v35 = vsel %vm3390_vm14, %v3646_v55, %v3645_v24  ;;  %v3650_v0 = vrot.slane %v8045_v39, 3  ;;  %v2486_v46 = vmax.f32 %v2484_v63, %v2485_v25  ;;  %v1748_v7 = vrot.slane %v11053_v37, 3 }
 0x354   : > { %v8049_v28 = vpop.eup %8048  ;;  %v3649_v16 = vsel %vm3393_vm15, %v3648_v22, %v3647_v35  ;;  %v3652_v34 = vrot.slane %v8047_v50, 2  ;;  %v1749_v51 = vrot.slane %v11053_v37, 4  ;;  %v1750_v3 = vrot.slane %v11053_v37, 5 }
 0x355   : > { %v3651_v52 = vsel %vm3396_vm0, %v3650_v0, %v3649_v16  ;;  %v3654_v38 = vrot.slane %v8049_v28, 1  ;;  %v11069_v15 = vmax.f32 %v2486_v46, %v2487_v27  ;;  %v1751_v8 = vrot.slane %v11053_v37, 6 }
 0x356   : > { %v8051_v23 = vpop.eup %8050  ;;  %v3653_v25 = vsel %vm3399_vm1, %v3652_v34, %v3651_v52  ;;  %v1752_v19 = vrot.slane %v11053_v37, 7  ;;  %v11076_v5 = vadd.f32 %v11053_v37, %v13656_v10  ;;  %v11079_v45 = vadd.f32 %v1746_v41, %v13657_v62 }
 0x357   : > { %v8053_v4 = vpop.eup %8052  ;;  %v3655_v17 = vsel %vm3402_vm2, %v3654_v38, %v3653_v25  ;;  %v2606_v27 = vrot.slane %v11069_v15, %v13611_v33  ;;  %v11085_v55 = vadd.f32 %v1747_v60, %v10414_v44  ;;  %v11088_v63 = vadd.f32 %v1748_v7, %v10423_v9 }
 0x358   : > { %v8055_v39 = vpop.eup %8054  ;;  %v3858_v24 = vrot.slane %v3655_v17, 4  ;;  %v11091_v37 = vadd.f32 %v1749_v51, %v10427_v42  ;;  %v11094_v41 = vadd.f32 %v1750_v3, %v10442_v58  ;;  %v11097_v22 = vadd.f32 %v1751_v8, %v10455_v49 }
 0x359   : > { %v8057_v50 = vpop.eup %8056  ;;  %v2783_v35 = vsub.f32 %v10986_v47, %v2606_v27  ;;  %v2784_v60 = vsub.f32 %v10989_v36, %v2606_v27  ;;  %v2785_v0 = vsub.f32 %v10992_v12, %v2606_v27  ;;  %v2786_v46 = vsub.f32 %v10995_v48, %v2606_v27 }
 0x35a   : > { %v8059_v7 = vpop.eup %8058  ;;  %v3859_v28 = vadd.f32 %v3858_v24, %v3655_v17  ;;  %v2787_v16 = vsub.f32 %v11016_v20, %v2606_v27  ;;  %v2788_v34 = vsub.f32 %v11019_v29, %v2606_v27  ;;  %v2789_v51 = vsub.f32 %v11022_v56, %v2606_v27 }
 0x35b   : > { %v2790_v47 = vsub.f32 %v11025_v30, %v2606_v27  ;;  %v3143_v36 = vmul.f32 1.442695, %v2783_v35  ;;  %v3145_v12 = vmul.f32 1.442695, %v2784_v60  ;;  %v3147_v3 = vmul.f32 1.442695, %v2785_v0 }
 0x35c   : > { %v8061_v48 = vpop.eup %8060  ;;  %v3860_v52 = vrot.slane %v3859_v28, 2  ;;  %v3149_v38 = vmul.f32 1.442695, %v2786_v46  ;;  %v11111_v20 = vadd.f32 %v1752_v19, %v10458_v61  ;;  %v3151_v56 = vmul.f32 1.442695, %v2787_v16 }
 0x35d   : > { %v3933_v29 = vmul.f32 0.6931472, %v8061_v48  ;;  %8062 = vpow2.f32 %v3143_v36  ;;  %v3153_v8 = vmul.f32 1.442695, %v2788_v34  ;;  %v3155_v30 = vmul.f32 1.442695, %v2789_v51 }
 0x35e   : > { %v3861_v25 = vadd.f32 %v3860_v52, %v3859_v28  ;;  %8064 = vpow2.f32 %v3145_v12  ;;  %v2459_v17 = vsel %vm2158_vm8, %v11076_v5, -inf  ;;  %v2460_v19 = vsel %vm2158_vm8, %v11079_v45, -inf }
 0x35f   : > { %v11118_v27 = vadd.f32 %v3933_v29, %v10931_v1  ;;  %8066 = vpow2.f32 %v3147_v3  ;;  %v2462_v24 = vsel %vm2158_vm8, %v11085_v55, -inf  ;;  %v2461_v60 = vmax.f32 %v2459_v17, %v2460_v19 }
 0x360   : > { %v3862_v35 = vrot.slane %v3861_v25, 1  ;;  %8068 = vpow2.f32 %v3149_v38  ;;  %v3157_v46 = vmul.f32 1.442695, %v2790_v47  ;;  %v2464_v28 = vsel %vm2158_vm8, %v11088_v63, -inf }
 0x361   : > { %13664 = vst [vmem:[#allocation22_spill] sm:$0xff] %v11118_v27  ;;  %8070 = vpow2.f32 %v3151_v56  ;;  %v2466_v1 = vsel %vm2158_vm8, %v11091_v37, -inf  ;;  %v2463_v34 = vmax.f32 %v2461_v60, %v2462_v24  ;;  %v2468_v51 = vsel %vm2158_vm8, %v11094_v41, -inf }
 0x362   : > { %v3863_v16 = vadd.f32 %v3862_v35, %v3861_v25  ;;  %8072 = vpow2.f32 %v3153_v8  ;;  %v1533_v36 = vmul.f32 0.6931472, %v8051_v23  ;;  %v1531_v12 = vmul.f32 0.6931472, %v8053_v4 }
 0x363   : > { %8074 = vpow2.f32 %v3155_v30  ;;  %v4213_v3 = vmul.f32 0.6931472, %v8055_v39  ;;  %v2465_v48 = vmax.f32 %v2463_v34, %v2464_v28  ;;  %v4211_v52 = vmul.f32 0.6931472, %v8057_v50 }
 0x364   : > { %8076 = vlog2.f32 %v3863_v16  ;;  %v4217_v47 = vmul.f32 0.6931472, %v8059_v7  ;;  %v1557_v38 = vsel %vm1461_vm7, %v1533_v36, -1e+09  ;;  %v1556_v29 = vsel %vm1460_vm9, %v1531_v12, -1e+09 }
 0x365   : > { %8078 = vpow2.f32 %v3157_v46  ;;  %v4259_v56 = vsel %vm4163_vm10, %v4213_v3, -1e+09  ;;  %v2467_v8 = vmax.f32 %v2465_v48, %v2466_v1  ;;  %v2470_v23 = vsel %vm2158_vm8, %v11097_v22, -inf }
 0x366   : > { %v2472_v4 = vsel %vm2158_vm8, %v11111_v20, -inf  ;;  %v1581_v39 = vadd.f32 %v1557_v38, %v13627_v32  ;;  %v11143_v7 = vadd.f32 %v1556_v29, %v13627_v32  ;;  %v11146_v25 = vadd.f32 %v4259_v56, %v13665_v6 }
 0x367   : > { %v8063_v50 = vpop.eup %8062  ;;  %v11150_v40 = vsel %vm4162_vm11, %v4211_v52, -1e+09  ;;  %v11154_v11 = vsel %vm4165_vm3, %v4217_v47, -1e+09  ;;  %v2469_v17 = vmax.f32 %v2467_v8, %v2468_v51  ;;  %vm4166_vm6 = vcmp.gt.f32.partialorder %v11057_v18, 0.0 }
 0x368   : > { %v8065_v30 = vpop.eup %8064  ;;  %v1767_v19 = vrot.slane %v1581_v39, 1  ;;  %v1768_v24 = vrot.slane %v1581_v39, 2  ;;  %v1769_v35 = vrot.slane %v1581_v39, 3  ;;  %v1770_v32 = vrot.slane %v1581_v39, 4 }
 0x369   : > { %v8067_v60 = vpop.eup %8066  ;;  %v3684_v46 = vrot.slane %v8065_v30, 7  ;;  %v1771_v28 = vrot.slane %v1581_v39, 5  ;;  %v1772_v1 = vrot.slane %v1581_v39, 6  ;;  %v2471_v36 = vmax.f32 %v2469_v17, %v2470_v23 }
 0x36a   : > { %v8069_v16 = vpop.eup %8068  ;;  %v3686_v34 = vrot.slane %v8067_v60, 6  ;;  %v1773_v43 = vrot.slane %v1581_v39, 7  ;;  %v11157_v12 = vadd.f32 %v1581_v39, %v13656_v10  ;;  %v11161_v51 = vadd.f32 %v1767_v19, %v13657_v62 }
 0x36b   : > { %v8071_v21 = vpop.eup %8070  ;;  %v3685_v3 = vsel %vm3384_vm12, %v3684_v46, %v8063_v50  ;;  %v3688_v48 = vrot.slane %v8069_v16, 5  ;;  %v11164_v52 = vadd.f32 %v1768_v24, %v10414_v44  ;;  %v11167_v56 = vmax.f32 %v2471_v36, %v2472_v4 }
 0x36c   : > { %v8073_v47 = vpop.eup %8072  ;;  %v3687_v38 = vsel %vm3387_vm13, %v3686_v34, %v3685_v3  ;;  %v3690_v29 = vrot.slane %v8071_v21, 4  ;;  %v11170_v8 = vadd.f32 %v1769_v35, %v10423_v9  ;;  %v11174_v30 = vadd.f32 %v1770_v32, %v10427_v42 }
 0x36d   : > { %v8075_v23 = vpop.eup %8074  ;;  %v3689_v39 = vsel %vm3390_vm14, %v3688_v48, %v3687_v38  ;;  %v3692_v50 = vrot.slane %v8073_v47, 3  ;;  %v11177_v17 = vadd.f32 %v1771_v28, %v10442_v58  ;;  %v2602_v4 = vrot.slane %v11167_v56, %v13611_v33 }
 0x36e   : > { %v8077_v19 = vpop.eup %8076  ;;  %v3691_v24 = vsel %vm3393_vm15, %v3690_v29, %v3689_v39  ;;  %v3694_v60 = vrot.slane %v8075_v23, 2  ;;  %v11183_v35 = vadd.f32 %v1772_v1, %v10455_v49  ;;  %v11187_v32 = vadd.f32 %v1773_v43, %v10458_v61 }
 0x36f   : > { %v8079_v46 = vpop.eup %8078  ;;  %v3931_v16 = vmul.f32 0.6931472, %v8077_v19  ;;  %v3693_v34 = vsel %vm3396_vm0, %v3692_v50, %v3691_v24  ;;  %v2504_v28 = vsel %vm2158_vm8, %v11157_v12, -inf  ;;  %v2775_v3 = vsub.f32 %v11076_v5, %v2602_v4 }
 0x370   : > { %v3695_v36 = vsel %vm3399_vm1, %v3694_v60, %v3693_v34  ;;  %v3696_v21 = vrot.slane %v8079_v46, 1  ;;  %v2776_v48 = vsub.f32 %v11079_v45, %v2602_v4  ;;  %v2777_v47 = vsub.f32 %v11085_v55, %v2602_v4 }
 0x371   : > { %v11195_v1 = vadd.f32 %v3931_v16, %v10973_v26  ;;  %v2778_v38 = vsub.f32 %v11088_v63, %v2602_v4  ;;  %v2779_v43 = vsub.f32 %v11091_v37, %v2602_v4  ;;  %v2780_v23 = vsub.f32 %v11094_v41, %v2602_v4 }
 0x372   : > { %v3697_v29 = vsel %vm3402_vm2, %v3696_v21, %v3695_v36  ;;  %v2781_v39 = vsub.f32 %v11097_v22, %v2602_v4  ;;  %v2782_v50 = vsub.f32 %v11111_v20, %v2602_v4  ;;  %v3127_v19 = vmul.f32 1.442695, %v2775_v3 }
 0x373   : > { %13666 = vst [vmem:[#allocation12_spill] sm:$0xff] %v11195_v1  ;;  %v3876_v5 = vrot.slane %v3697_v29, 4  ;;  %v3129_v45 = vmul.f32 1.442695, %v2776_v48  ;;  %v2505_v26 = vsel %vm2158_vm8, %v11161_v51, -inf  ;;  %v2507_v22 = vsel %vm2158_vm8, %v11164_v52, -inf }
 0x374   : > { %v3131_v24 = vmul.f32 1.442695, %v2777_v47  ;;  %v3133_v55 = vmul.f32 1.442695, %v2778_v38  ;;  %v3135_v60 = vmul.f32 1.442695, %v2779_v43  ;;  %v2506_v63 = vmax.f32 %v2504_v28, %v2505_v26 }
 0x375   : > { %v3877_v46 = vadd.f32 %v3876_v5, %v3697_v29  ;;  %8080 = vpow2.f32 %v3127_v19  ;;  %v3137_v37 = vmul.f32 1.442695, %v2780_v23  ;;  %v3139_v16 = vmul.f32 1.442695, %v2781_v39 }
 0x376   : > { %8082 = vpow2.f32 %v3129_v45  ;;  %v3141_v41 = vmul.f32 1.442695, %v2782_v50  ;;  %v2509_v20 = vsel %vm2158_vm8, %v11170_v8, -inf  ;;  %v2508_v34 = vmax.f32 %v2506_v63, %v2507_v22 }
 0x377   : > { %v3878_v4 = vrot.slane %v3877_v46, 2  ;;  %8084 = vpow2.f32 %v3131_v24  ;;  %v2511_v36 = vsel %vm2158_vm8, %v11174_v30, -inf  ;;  %v2513_v28 = vsel %vm2158_vm8, %v11177_v17, -inf }
 0x378   : > { %8086 = vpow2.f32 %v3133_v55  ;;  %v2515_v21 = vsel %vm2158_vm8, %v11183_v35, -inf  ;;  %v2517_v3 = vsel %vm2158_vm8, %v11187_v32, -inf  ;;  %v2510_v47 = vmax.f32 %v2508_v34, %v2509_v20 }
 0x379   : > { %v3879_v48 = vadd.f32 %v3878_v4, %v3877_v46  ;;  %8088 = vpow2.f32 %v3135_v60  ;;  %v1760_v38 = vrot.slane %v11143_v7, 1  ;;  %v1761_v43 = vrot.slane %v11143_v7, 2  ;;  %v11235_v46 = vpop.f32.mrb[18].mxu0 }
 0x37a   : > { %8090 = vpow2.f32 %v3137_v37  ;;  %v1762_v29 = vrot.slane %v11143_v7, 3  ;;  %v1763_v23 = vrot.slane %v11143_v7, 4  ;;  %v2512_v50 = vmax.f32 %v2510_v47, %v2511_v36 }
 0x37b   : > { %v3880_v39 = vrot.slane %v3879_v48, 1  ;;  %8092 = vpow2.f32 %v3139_v16  ;;  %v1764_v5 = vrot.slane %v11143_v7, 5  ;;  %v1765_v19 = vrot.slane %v11143_v7, 6 }
 0x37c   : > { %8094 = vpow2.f32 %v3141_v41  ;;  %v1766_v45 = vrot.slane %v11143_v7, 7  ;;  %v11227_v26 = vadd.f32 %v11143_v7, %v13656_v10  ;;  %v2514_v55 = vmax.f32 %v2512_v50, %v2513_v28 }
 0x37d   : > { %v3881_v24 = vadd.f32 %v3880_v39, %v3879_v48  ;;  %v11230_v60 = vadd.f32 %v1760_v38, %v13657_v62  ;;  %v11233_v63 = vadd.f32 %v1761_v43, %v10414_v44  ;;  %v11238_v37 = vadd.f32 %v1762_v29, %v10423_v9 }
 0x37e   : > { %v11241_v16 = vadd.f32 %v1763_v23, %v10427_v42  ;;  %v11244_v41 = vadd.f32 %v1764_v5, %v10442_v58  ;;  %v11247_v10 = vadd.f32 %v1765_v19, %v10455_v49  ;;  %v2516_v62 = vmax.f32 %v2514_v55, %v2515_v21 }
 0x37f   : > { %v8081_v7 = vpop.eup %8080  ;;  %8096 = vlog2.f32 %v3881_v24  ;;  %v11250_v44 = vadd.f32 %v1766_v45, %v10458_v61  ;;  %v2489_v22 = vsel %vm2158_vm8, %v11227_v26, -inf  ;;  %v2490_v42 = vsel %vm2158_vm8, %v11230_v60, -inf }
 0x380   : > { %v8083_v9 = vpop.eup %8082  ;;  %v2492_v58 = vsel %vm2158_vm8, %v11233_v63, -inf  ;;  %v11260_v49 = vsel %vm2158_vm8, %v11238_v37, -inf  ;;  %v11264_v20 = vsel %vm2158_vm8, %v11241_v16, -inf  ;;  %v11266_v34 = vmax.f32 %v2516_v62, %v2517_v3 }
 0x381   : > { %v8085_v61 = vpop.eup %8084  ;;  %v3670_v4 = vrot.slane %v8083_v9, 7  ;;  %v2491_v36 = vmax.f32 %v2489_v22, %v2490_v42  ;;  %v11270_v28 = vsel %vm2158_vm8, %v11244_v41, -inf  ;;  %v11274_v47 = vsel %vm2158_vm8, %v11247_v10, -inf }
 0x382   : > { %v8087_v21 = vpop.eup %8086  ;;  %v3672_v48 = vrot.slane %v8085_v61, 6  ;;  %v11278_v38 = vsel %vm2158_vm8, %v11250_v44, -inf  ;;  %v4337_v43 = vrot.slane %v11146_v25, 1  ;;  %v2614_v39 = vrot.slane %v11266_v34, %v13611_v33  ;;  %v11290_v61 = vpop.f32.mrb[19].mxu0 }
 0x383   : > { %v8089_v29 = vpop.eup %8088  ;;  %v3671_v3 = vsel %vm3384_vm12, %v3670_v4, %v8081_v7  ;;  %v3674_v23 = vrot.slane %v8087_v21, 5  ;;  %v2493_v50 = vmax.f32 %v2491_v36, %v2492_v58  ;;  %v4338_v24 = vrot.slane %v11146_v25, 2  ;;  %13667 = vst [vmem:[#allocation23_spill] sm:$0xff] %v11290_v61 }
 0x384   : > { %v8091_v5 = vpop.eup %8090  ;;  %v3673_v19 = vsel %vm3387_vm13, %v3672_v48, %v3671_v3  ;;  %v3676_v45 = vrot.slane %v8089_v29, 4  ;;  %v4339_v55 = vrot.slane %v11146_v25, 3  ;;  %v2799_v42 = vsub.f32 %v11157_v12, %v2614_v39 }
 0x385   : > { %v8093_v62 = vpop.eup %8092  ;;  %v3675_v22 = vsel %vm3390_vm14, %v3674_v23, %v3673_v19  ;;  %v3678_v9 = vrot.slane %v8091_v5, 3  ;;  %v2800_v7 = vsub.f32 %v11161_v51, %v2614_v39  ;;  %v2801_v21 = vsub.f32 %v11164_v52, %v2614_v39 }
 0x386   : > { %v8095_v4 = vpop.eup %8094  ;;  %v3677_v58 = vsel %vm3393_vm15, %v3676_v45, %v3675_v22  ;;  %v3680_v36 = vrot.slane %v8093_v62, 2  ;;  %v2802_v48 = vsub.f32 %v11170_v8, %v2614_v39  ;;  %v2803_v23 = vsub.f32 %v11174_v30, %v2614_v39 }
 0x387   : > { %v3679_v29 = vsel %vm3396_vm0, %v3678_v9, %v3677_v58  ;;  %v3682_v3 = vrot.slane %v8095_v4, 1  ;;  %v2804_v5 = vsub.f32 %v11177_v17, %v2614_v39  ;;  %v2805_v51 = vsub.f32 %v11183_v35, %v2614_v39 }
 0x388   : > { %v3681_v12 = vsel %vm3399_vm1, %v3680_v36, %v3679_v29  ;;  %v2806_v19 = vsub.f32 %v11187_v32, %v2614_v39  ;;  %v3175_v0 = vmul.f32 1.442695, %v2799_v42  ;;  %v3177_v52 = vmul.f32 1.442695, %v2800_v7  ;;  %v13670_v29 = vld [vmem:[#allocation27_spill] sm:$0xff] }
 0x389   : > { %v8097_v45 = vpop.eup %8096  ;;  %v3683_v62 = vsel %vm3402_vm2, %v3682_v3, %v3681_v12  ;;  %v3179_v22 = vmul.f32 1.442695, %v2801_v21  ;;  %v3181_v8 = vmul.f32 1.442695, %v2802_v48  ;;  %v3183_v4 = vmul.f32 1.442695, %v2803_v23 }
 0x38a   : > { %v3937_v27 = vmul.f32 0.6931472, %v8097_v45  ;;  %v3870_v9 = vrot.slane %v3683_v62, 4  ;;  %8098 = vpow2.f32 %v3175_v0  ;;  %v3185_v30 = vmul.f32 1.442695, %v2804_v5  ;;  %v13672_v12 = vld [vmem:[#allocation14_spill] sm:$0xff] }
 0x38b   : > { %8100 = vpow2.f32 %v3177_v52  ;;  %v3187_v17 = vmul.f32 1.442695, %v2805_v51  ;;  %v3189_v58 = vmul.f32 1.442695, %v2806_v19  ;;  %v2495_v32 = vmax.f32 %v2493_v50, %v11260_v49  ;;  %v13671_v50 = vld [vmem:[#allocation8_spill] sm:$0xff]  ;;  %v13673_v19 = vld [vmem:[#allocation13_spill] sm:$0xff] }
 0x38c   : > { %v11303_v36 = vadd.f32 %v3937_v27, %v11069_v15  ;;  %v3871_v35 = vadd.f32 %v3870_v9, %v3683_v62  ;;  %8102 = vpow2.f32 %v3179_v22  ;;  %v4340_v39 = vrot.slane %v11146_v25, 4  ;;  %v13669_v15 = vld [vmem:[#allocation30_spill] sm:$0xff]  ;;  %v13674_v45 = vld [vmem:[#allocation19_spill] sm:$0xff]  ;;  %v13675_v52 = vld [vmem:[#allocation17_spill] sm:$0xff] }
 0x38d   : > { %8104 = vpow2.f32 %v3181_v8  ;;  %v4341_v42 = vrot.slane %v11146_v25, 5  ;;  %v4342_v7 = vrot.slane %v11146_v25, 6  ;;  %v2497_v21 = vmax.f32 %v2495_v32, %v11264_v20 }
 0x38e   : > { %13668 = vst [vmem:[#allocation15_spill] sm:$0xff] %v11303_v36  ;;  %v3872_v0 = vrot.slane %v3871_v35, 2  ;;  %8106 = vpow2.f32 %v3183_v4  ;;  %v4343_v48 = vrot.slane %v11146_v25, 7  ;;  %v11313_v27 = vadd.f32 %v11146_v25, %v13669_v15 }
 0x38f   : > { %8108 = vpow2.f32 %v3185_v30  ;;  %v11316_v49 = vadd.f32 %v4337_v43, %v13670_v29  ;;  %v11319_v3 = vadd.f32 %v4338_v24, %v13671_v50  ;;  %v2499_v5 = vmax.f32 %v2497_v21, %v11270_v28 }
 0x390   : > { %v3873_v23 = vadd.f32 %v3872_v0, %v3871_v35  ;;  %8110 = vpow2.f32 %v3187_v17  ;;  %v11323_v51 = vadd.f32 %v4339_v55, %v13672_v12  ;;  %v11326_v20 = vadd.f32 %v4340_v39, %v10110_v13 }
 0x391   : > { %8112 = vpow2.f32 %v3189_v58  ;;  %v11329_v25 = vadd.f32 %v4341_v42, %v13673_v19  ;;  %v11332_v43 = vadd.f32 %v4342_v7, %v13674_v45  ;;  %v2501_v24 = vmax.f32 %v2499_v5, %v11274_v47 }
 0x392   : > { %v3874_v62 = vrot.slane %v3873_v23, 1  ;;  %v11336_v22 = vadd.f32 %v4343_v48, %v13675_v52  ;;  %v4897_v28 = vsel %vm2158_vm8, %v11313_v27, -inf  ;;  %v4898_v55 = vsel %vm2158_vm8, %v11316_v49, -inf }
 0x393   : > { %v4900_v8 = vsel %vm2158_vm8, %v11319_v3, -inf  ;;  %v11346_v9 = vsel %vm2158_vm8, %v11323_v51, -inf  ;;  %v11350_v4 = vsel %vm2158_vm8, %v11326_v20, -inf  ;;  %v11353_v17 = vmax.f32 %v2501_v24, %v11278_v38 }
 0x394   : > { %v8099_v47 = vpop.eup %8098  ;;  %v3875_v30 = vadd.f32 %v3874_v62, %v3873_v23  ;;  %v4899_v58 = vmax.f32 %v4897_v28, %v4898_v55  ;;  %v11357_v35 = vsel %vm2158_vm8, %v11329_v25, -inf  ;;  %v11361_v39 = vsel %vm2158_vm8, %v11332_v43, -inf  ;;  %v11380_v55 = vpop.f32.mrb[20].mxu0 }
 0x395   : > { %v8101_v32 = vpop.eup %8100  ;;  %v11365_v42 = vsel %vm2158_vm8, %v11336_v22, -inf  ;;  %v11369_v7 = vadd.f32 %v11150_v40, %v13665_v6  ;;  %v11373_v38 = vadd.f32 %v11154_v11, %v13665_v6  ;;  %v2610_v48 = vrot.slane %v11353_v17, %v13611_v33  ;;  %13676 = vst [vmem:[#allocation18_spill] sm:$0xff] %v11380_v55 }
 0x396   : > { %v8103_v0 = vpop.eup %8102  ;;  %8114 = vlog2.f32 %v3875_v30  ;;  %v3712_v21 = vrot.slane %v8101_v32, 7  ;;  %v4901_v23 = vmax.f32 %v4899_v58, %v4900_v8  ;;  %vm4169_vm7 = vcmp.gt.f32.partialorder %v11235_v46, 0.0 }
 0x397   : > { %v8105_v5 = vpop.eup %8104  ;;  %v3714_v62 = vrot.slane %v8103_v0, 6  ;;  %v4330_v24 = vrot.slane %v11369_v7, 1  ;;  %v4331_v28 = vrot.slane %v11369_v7, 2  ;;  %v4332_v40 = vrot.slane %v11369_v7, 3 }
 0x398   : > { %v8107_v36 = vpop.eup %8106  ;;  %v3713_v11 = vsel %vm3384_vm12, %v3712_v21, %v8099_v47  ;;  %v3716_v1 = vrot.slane %v8105_v5, 5  ;;  %v2791_v30 = vsub.f32 %v11227_v26, %v2610_v48  ;;  %v2792_v32 = vsub.f32 %v11230_v60, %v2610_v48 }
 0x399   : > { %v8109_v57 = vpop.eup %8108  ;;  %v3715_v8 = vsel %vm3387_vm13, %v3714_v62, %v3713_v11  ;;  %v3718_v58 = vrot.slane %v8107_v36, 4  ;;  %v2793_v0 = vsub.f32 %v11233_v63, %v2610_v48  ;;  %v2794_v2 = vsub.f32 %v11238_v37, %v2610_v48 }
 0x39a   : > { %v8111_v53 = vpop.eup %8110  ;;  %v3717_v31 = vsel %vm3390_vm14, %v3716_v1, %v3715_v8  ;;  %v3720_v14 = vrot.slane %v8109_v57, 3  ;;  %v2795_v55 = vsub.f32 %v11241_v16, %v2610_v48  ;;  %v2796_v47 = vsub.f32 %v11244_v41, %v2610_v48 }
 0x39b   : > { %v8113_v21 = vpop.eup %8112  ;;  %v3719_v26 = vsel %vm3393_vm15, %v3718_v58, %v3717_v31  ;;  %v3722_v60 = vrot.slane %v8111_v53, 2  ;;  %v2797_v5 = vsub.f32 %v11247_v10, %v2610_v48  ;;  %v2798_v36 = vsub.f32 %v11250_v44, %v2610_v48 }
 0x39c   : > { %v3721_v63 = vsel %vm3396_vm0, %v3720_v14, %v3719_v26  ;;  %v3724_v62 = vrot.slane %v8113_v21, 1  ;;  %v3159_v37 = vmul.f32 1.442695, %v2791_v30  ;;  %v3161_v11 = vmul.f32 1.442695, %v2792_v32 }
 0x39d   : > { %v3723_v1 = vsel %vm3399_vm1, %v3722_v60, %v3721_v63  ;;  %v3163_v57 = vmul.f32 1.442695, %v2793_v0  ;;  %v3165_v8 = vmul.f32 1.442695, %v2794_v2  ;;  %v3167_v16 = vmul.f32 1.442695, %v2795_v55 }
 0x39e   : > { %v3725_v41 = vsel %vm3402_vm2, %v3724_v62, %v3723_v1  ;;  %8116 = vpow2.f32 %v3159_v37  ;;  %v3169_v61 = vmul.f32 1.442695, %v2796_v47  ;;  %v3171_v31 = vmul.f32 1.442695, %v2797_v5 }
 0x39f   : > { %v3888_v53 = vrot.slane %v3725_v41, 4  ;;  %8118 = vpow2.f32 %v3161_v11  ;;  %v3173_v10 = vmul.f32 1.442695, %v2798_v36  ;;  %v4903_v44 = vmax.f32 %v4901_v23, %v11346_v9 }
 0x3a0   : > { %v8115_v48 = vpop.eup %8114  ;;  %8120 = vpow2.f32 %v3163_v57  ;;  %v4333_v14 = vrot.slane %v11369_v7, 4  ;;  %v4334_v30 = vrot.slane %v11369_v7, 5  ;;  %v4335_v32 = vrot.slane %v11369_v7, 6 }
 0x3a1   : > { %v3935_v2 = vmul.f32 0.6931472, %v8115_v48  ;;  %v3889_v55 = vadd.f32 %v3888_v53, %v3725_v41  ;;  %8122 = vpow2.f32 %v3165_v8  ;;  %v4905_v58 = vmax.f32 %v4903_v44, %v11350_v4 }
 0x3a2   : > { %8124 = vpow2.f32 %v3167_v16  ;;  %v4336_v0 = vrot.slane %v11369_v7, 7  ;;  %v11405_v47 = vadd.f32 %v11369_v7, %v13669_v15  ;;  %v11408_v9 = vadd.f32 %v4330_v24, %v13670_v29 }
 0x3a3   : > { %v11411_v23 = vadd.f32 %v3935_v2, %v11167_v56  ;;  %v3890_v21 = vrot.slane %v3889_v55, 2  ;;  %8126 = vpow2.f32 %v3169_v61  ;;  %v4907_v26 = vmax.f32 %v4905_v58, %v11357_v35 }
 0x3a4   : > { %8128 = vpow2.f32 %v3171_v31  ;;  %v11415_v4 = vadd.f32 %v4331_v28, %v13671_v50  ;;  %v11418_v60 = vadd.f32 %v4332_v40, %v13672_v12  ;;  %v11421_v7 = vadd.f32 %v4333_v14, %v10110_v13 }
 0x3a5   : > { %13677 = vst [vmem:[#allocation24_spill] sm:$0xff] %v11411_v23  ;;  %v3891_v5 = vadd.f32 %v3890_v21, %v3889_v55  ;;  %8130 = vpow2.f32 %v3173_v10  ;;  %v4909_v24 = vmax.f32 %v4907_v26, %v11361_v39  ;;  %v11425_v56 = vadd.f32 %v4334_v30, %v13673_v19 }
 0x3a6   : > { %v11428_v61 = vadd.f32 %v4335_v32, %v13674_v45  ;;  %v11431_v35 = vadd.f32 %v4336_v0, %v13675_v52  ;;  %v4882_v28 = vsel %vm2158_vm8, %v11405_v47, -inf  ;;  %v4883_v40 = vsel %vm2158_vm8, %v11408_v9, -inf  ;;  %v11463_v32 = vpop.f32.mrb[21].mxu0 }
 0x3a7   : > { %v3892_v36 = vrot.slane %v3891_v5, 1  ;;  %v11438_v63 = vmax.f32 %v4909_v24, %v11365_v42  ;;  %v4884_v39 = vmax.f32 %v4882_v28, %v4883_v40  ;;  %v13678_v62 = vmax.f32 %v10893_v59, 1e-30 }
 0x3a8   : > { %v8117_v37 = vpop.eup %8116  ;;  %v4885_v11 = vsel %vm2158_vm8, %v11415_v4, -inf  ;;  %v11446_v1 = vsel %vm2158_vm8, %v11418_v60, -inf  ;;  %v4889_v57 = vsel %vm2158_vm8, %v11421_v7, -inf  ;;  %v11452_v8 = vsel %vm2158_vm8, %v11425_v56, -inf }
 0x3a9   : > { %8132 = vlog2.f32 %v13678_v62  ;;  %v8119_v42 = vpop.eup %8118  ;;  %v3893_v16 = vadd.f32 %v3892_v36, %v3891_v5  ;;  %v5249_v41 = vrot.slane %v11438_v63, %v13611_v33  ;;  %v4886_v31 = vmax.f32 %v4884_v39, %v4885_v11 }
 0x3aa   : > { %v11458_v53 = vsel %vm2158_vm8, %v11428_v61, -inf  ;;  %v8121_v10 = vpop.eup %8120  ;;  %v3698_v44 = vrot.slane %v8119_v42, 7  ;;  %v4351_v48 = vrot.slane %v11373_v38, 1  ;;  %v4352_v14 = vrot.slane %v11373_v38, 2 }
 0x3ab   : > { %v4353_v30 = vrot.slane %v11373_v38, 3  ;;  %v8123_v2 = vpop.eup %8122  ;;  %8134 = vlog2.f32 %v3893_v16  ;;  %v3700_v55 = vrot.slane %v8121_v10, 6  ;;  %v5346_v58 = vsub.f32 %v11313_v27, %v5249_v41 }
 0x3ac   : > { %v5347_v0 = vsub.f32 %v11316_v49, %v5249_v41  ;;  %v8125_v21 = vpop.eup %8124  ;;  %v3699_v26 = vsel %vm3384_vm12, %v3698_v44, %v8117_v37  ;;  %v3702_v5 = vrot.slane %v8123_v2, 5  ;;  %v5348_v24 = vsub.f32 %v11319_v3, %v5249_v41 }
 0x3ad   : > { %v5349_v28 = vsub.f32 %v11323_v51, %v5249_v41  ;;  %v8127_v40 = vpop.eup %8126  ;;  %v3701_v36 = vsel %vm3387_vm13, %v3700_v55, %v3699_v26  ;;  %v3704_v39 = vrot.slane %v8125_v21, 4  ;;  %v5350_v62 = vsub.f32 %v11326_v20, %v5249_v41 }
 0x3ae   : > { %v5351_v11 = vsub.f32 %v11329_v25, %v5249_v41  ;;  %v8129_v42 = vpop.eup %8128  ;;  %v3703_v27 = vsel %vm3390_vm14, %v3702_v5, %v3701_v36  ;;  %v3706_v49 = vrot.slane %v8127_v40, 3  ;;  %v5352_v16 = vsub.f32 %v11332_v43, %v5249_v41 }
 0x3af   : > { %v5353_v37 = vsub.f32 %v11336_v22, %v5249_v41  ;;  %v8131_v10 = vpop.eup %8130  ;;  %v3705_v3 = vsel %vm3393_vm15, %v3704_v39, %v3703_v27  ;;  %v3708_v51 = vrot.slane %v8129_v42, 2  ;;  %v5546_v44 = vmul.f32 1.442695, %v5346_v58 }
 0x3b0   : > { %v5548_v2 = vmul.f32 1.442695, %v5347_v0  ;;  %v3707_v55 = vsel %vm3396_vm0, %v3706_v49, %v3705_v3  ;;  %v3710_v21 = vrot.slane %v8131_v10, 1  ;;  %v5550_v20 = vmul.f32 1.442695, %v5348_v24 }
 0x3b1   : > { %v5552_v26 = vmul.f32 1.442695, %v5349_v28  ;;  %v3709_v23 = vsel %vm3399_vm1, %v3708_v51, %v3707_v55  ;;  %8136 = vpow2.f32 %v5546_v44  ;;  %v5554_v5 = vmul.f32 1.442695, %v5350_v62 }
 0x3b2   : > { %v5556_v40 = vmul.f32 1.442695, %v5351_v11  ;;  %v3711_v43 = vsel %vm3402_vm2, %v3710_v21, %v3709_v23  ;;  %8138 = vpow2.f32 %v5548_v2  ;;  %v5558_v22 = vmul.f32 1.442695, %v5352_v16 }
 0x3b3   : > { %v8133_v25 = vpop.eup %8132  ;;  %v5560_v41 = vmul.f32 1.442695, %v5353_v37  ;;  %v3882_v36 = vrot.slane %v3711_v43, 4  ;;  %8140 = vpow2.f32 %v5550_v20  ;;  %v4888_v58 = vmax.f32 %v4886_v31, %v11446_v1 }
 0x3b4   : > { %v4354_v0 = vrot.slane %v11373_v38, 4  ;;  %8142 = vpow2.f32 %v5552_v26  ;;  %v4355_v24 = vrot.slane %v11373_v38, 5  ;;  %v4356_v28 = vrot.slane %v11373_v38, 6 }
 0x3b5   : > { %v4357_v39 = vrot.slane %v11373_v38, 7  ;;  %v8135_v62 = vpop.eup %8134  ;;  %v3883_v11 = vadd.f32 %v3882_v36, %v3711_v43  ;;  %8144 = vpow2.f32 %v5554_v5  ;;  %v4890_v23 = vmax.f32 %v4888_v58, %v4889_v57 }
 0x3b6   : > { %v11487_v42 = vadd.f32 %v11373_v38, %v13669_v15  ;;  %v3941_v27 = vmul.f32 0.6931472, %v8135_v62  ;;  %8146 = vpow2.f32 %v5556_v40  ;;  %v11490_v1 = vadd.f32 %v4351_v48, %v13670_v29 }
 0x3b7   : > { %v11493_v31 = vadd.f32 %v4352_v14, %v13671_v50  ;;  %v3884_v49 = vrot.slane %v3883_v11, 2  ;;  %8148 = vpow2.f32 %v5558_v22  ;;  %v4892_v16 = vmax.f32 %v4890_v23, %v11452_v8 }
 0x3b8   : > { %v11497_v37 = vadd.f32 %v4353_v30, %v13672_v12  ;;  %v11500_v57 = vadd.f32 %v3941_v27, %v11266_v34  ;;  %8150 = vpow2.f32 %v5560_v41  ;;  %v11503_v38 = vadd.f32 %v4354_v0, %v10110_v13 }
 0x3b9   : > { %v11506_v48 = vadd.f32 %v4355_v24, %v13673_v19  ;;  %v3885_v10 = vadd.f32 %v3884_v49, %v3883_v11  ;;  %v4894_v14 = vmax.f32 %v4892_v16, %v11458_v53  ;;  %v11510_v3 = vadd.f32 %v4356_v28, %v13674_v45 }
 0x3ba   : > { %13679 = vst [vmem:[#allocation7_spill] sm:$0xff] %v11500_v57  ;;  %v11513_v8 = vadd.f32 %v4357_v39, %v13675_v52  ;;  %v4895_v34 = vsel %vm2158_vm8, %v11431_v35, -inf  ;;  %v4927_v30 = vsel %vm2158_vm8, %v11487_v42, -inf  ;;  %v4928_v51 = vsel %vm2158_vm8, %v11490_v1, -inf }
 0x3bb   : > { %v4191_v44 = vmax.f32 %v10997_v54, 1e-30  ;;  %v8137_v2 = vpop.eup %8136  ;;  %v3886_v55 = vrot.slane %v3885_v10, 1  ;;  %v11522_v53 = vmax.f32 %v4894_v14, %v4895_v34  ;;  %v4929_v21 = vmax.f32 %v4927_v30, %v4928_v51 }
 0x3bc   : > { %v8139_v20 = vpop.eup %8138  ;;  %v4930_v26 = vsel %vm2158_vm8, %v11493_v31, -inf  ;;  %v4932_v5 = vsel %vm2158_vm8, %v11497_v37, -inf  ;;  %v4215_v40 = vmul.f32 0.6931472, %v8133_v25  ;;  %v4934_v59 = vsel %vm2158_vm8, %v11503_v38, -inf }
 0x3bd   : > { %v8141_v43 = vpop.eup %8140  ;;  %v3887_v22 = vadd.f32 %v3886_v55, %v3885_v10  ;;  %v6120_v41 = vrot.slane %v8139_v20, 7  ;;  %v5245_v36 = vrot.slane %v11522_v53, %v13611_v33  ;;  %v4931_v58 = vmax.f32 %v4929_v21, %v4930_v26 }
 0x3be   : > { %v8143_v0 = vpop.eup %8142  ;;  %v6122_v24 = vrot.slane %v8141_v43, 6  ;;  %v4260_v28 = vsel %vm4164_vm4, %v4215_v40, -1e+09  ;;  %8152 = vlog2.f32 %v4191_v44  ;;  %v11546_v43 = vpop.f32.mrb[22].mxu0  ;;  %vm4170_vm11 = vcmp.gt.f32.partialorder %v11463_v32, 0.0 }
 0x3bf   : > { %v8145_v39 = vpop.eup %8144  ;;  %8154 = vlog2.f32 %v3887_v22  ;;  %v6121_v62 = vsel %vm3384_vm12, %v6120_v41, %v8137_v2  ;;  %v6124_v11 = vrot.slane %v8143_v0, 5  ;;  %v5338_v25 = vsub.f32 %v11405_v47, %v5245_v36  ;;  %13680 = vst [vmem:[#allocation25_spill] sm:$0xff] %v11546_v43 }
 0x3c0   : > { %v8147_v23 = vpop.eup %8146  ;;  %v6123_v27 = vsel %vm3387_vm13, %v6122_v24, %v6121_v62  ;;  %v6126_v49 = vrot.slane %v8145_v39, 4  ;;  %v5339_v16 = vsub.f32 %v11408_v9, %v5245_v36  ;;  %v5340_v10 = vsub.f32 %v11415_v4, %v5245_v36 }
 0x3c1   : > { %v8149_v14 = vpop.eup %8148  ;;  %v6125_v34 = vsel %vm3390_vm14, %v6124_v11, %v6123_v27  ;;  %v6128_v30 = vrot.slane %v8147_v23, 3  ;;  %v5341_v51 = vsub.f32 %v11418_v60, %v5245_v36  ;;  %v5342_v44 = vsub.f32 %v11421_v7, %v5245_v36 }
 0x3c2   : > { %v8151_v2 = vpop.eup %8150  ;;  %v6127_v55 = vsel %vm3393_vm15, %v6126_v49, %v6125_v34  ;;  %v6130_v47 = vrot.slane %v8149_v14, 2  ;;  %v5343_v21 = vsub.f32 %v11425_v56, %v5245_v36  ;;  %v5344_v20 = vsub.f32 %v11428_v61, %v5245_v36 }
 0x3c3   : > { %v6129_v9 = vsel %vm3396_vm0, %v6128_v30, %v6127_v55  ;;  %v6132_v26 = vrot.slane %v8151_v2, 1  ;;  %v5345_v4 = vsub.f32 %v11431_v35, %v5245_v36  ;;  %v5530_v40 = vmul.f32 1.442695, %v5338_v25 }
 0x3c4   : > { %v6131_v60 = vsel %vm3399_vm1, %v6130_v47, %v6129_v9  ;;  %v5532_v22 = vmul.f32 1.442695, %v5339_v16  ;;  %v5534_v7 = vmul.f32 1.442695, %v5340_v10  ;;  %v5536_v41 = vmul.f32 1.442695, %v5341_v51 }
 0x3c5   : > { %v6133_v0 = vsel %vm3402_vm2, %v6132_v26, %v6131_v60  ;;  %8156 = vpow2.f32 %v5530_v40  ;;  %v5538_v24 = vmul.f32 1.442695, %v5342_v44  ;;  %v4936_v56 = vsel %vm2158_vm8, %v11506_v48, -inf }
 0x3c6   : > { %v6472_v61 = vrot.slane %v6133_v0, 4  ;;  %8158 = vpow2.f32 %v5532_v22  ;;  %v5540_v39 = vmul.f32 1.442695, %v5343_v21  ;;  %v4938_v35 = vsel %vm2158_vm8, %v11510_v3, -inf }
 0x3c7   : > { %8160 = vpow2.f32 %v5534_v7  ;;  %v5542_v36 = vmul.f32 1.442695, %v5344_v20  ;;  %v4933_v62 = vmax.f32 %v4931_v58, %v4932_v5  ;;  %v4284_v11 = vadd.f32 %v4260_v28, %v13665_v6 }
 0x3c8   : > { %v11555_v25 = vpop.eup %8152  ;;  %v6473_v23 = vadd.f32 %v6472_v61, %v6133_v0  ;;  %8162 = vpow2.f32 %v5536_v41  ;;  %v5544_v27 = vmul.f32 1.442695, %v5345_v4  ;;  %v4940_v49 = vsel %vm2158_vm8, %v11513_v8, -inf }
 0x3c9   : > { %v8155_v16 = vpop.eup %8154  ;;  %8164 = vpow2.f32 %v5538_v24  ;;  %v4935_v10 = vmax.f32 %v4933_v62, %v4934_v59  ;;  %v4344_v14 = vrot.slane %v4284_v11, 1  ;;  %v4345_v34 = vrot.slane %v4284_v11, 2 }
 0x3ca   : > { %v3939_v30 = vmul.f32 0.6931472, %v8155_v16  ;;  %v6474_v51 = vrot.slane %v6473_v23, 2  ;;  %8166 = vpow2.f32 %v5540_v39  ;;  %v4346_v44 = vrot.slane %v4284_v11, 3 }
 0x3cb   : > { %8168 = vpow2.f32 %v5542_v36  ;;  %v4937_v5 = vmax.f32 %v4935_v10, %v4936_v56  ;;  %v4347_v58 = vrot.slane %v4284_v11, 4  ;;  %v4348_v28 = vrot.slane %v4284_v11, 5 }
 0x3cc   : > { %v11560_v2 = vadd.f32 %v3939_v30, %v11353_v17  ;;  %v6475_v55 = vadd.f32 %v6474_v51, %v6473_v23  ;;  %8170 = vpow2.f32 %v5544_v27  ;;  %v4349_v47 = vrot.slane %v4284_v11, 6 }
 0x3cd   : > { %v4939_v21 = vmax.f32 %v4937_v5, %v4938_v35  ;;  %v4350_v20 = vrot.slane %v4284_v11, 7  ;;  %v11563_v59 = vadd.f32 %v4284_v11, %v13669_v15  ;;  %v11566_v9 = vadd.f32 %v4344_v14, %v13670_v29 }
 0x3ce   : > { %13681 = vst [vmem:[#allocation26_spill] sm:$0xff] %v11560_v2  ;;  %v6476_v26 = vrot.slane %v6475_v55, 1  ;;  %v11569_v4 = vadd.f32 %v4345_v34, %v13671_v50  ;;  %v11572_v40 = vadd.f32 %v4346_v44, %v13672_v12  ;;  %v11575_v17 = vadd.f32 %v4347_v58, %v10110_v13 }
 0x3cf   : > { %v8157_v60 = vpop.eup %8156  ;;  %v11577_v22 = vmax.f32 %v4939_v21, %v4940_v49  ;;  %v11580_v7 = vadd.f32 %v4348_v28, %v13673_v19  ;;  %v11583_v41 = vadd.f32 %v4349_v47, %v13674_v45  ;;  %v11586_v0 = vadd.f32 %v4350_v20, %v13675_v52 }
 0x3d0   : > { %v8159_v24 = vpop.eup %8158  ;;  %v6477_v56 = vadd.f32 %v6476_v26, %v6475_v55  ;;  %v4912_v61 = vsel %vm2158_vm8, %v11563_v59, -inf  ;;  %v4913_v39 = vsel %vm2158_vm8, %v11566_v9, -inf  ;;  %v11603_v26 = vpop.f32.mrb[23].mxu0 }
 0x3d1   : > { %v8161_v35 = vpop.eup %8160  ;;  %v6106_v36 = vrot.slane %v8159_v24, 7  ;;  %v5257_v62 = vrot.slane %v11577_v22, %v13611_v33  ;;  %v4914_v11 = vmax.f32 %v4912_v61, %v4913_v39  ;;  %13682 = vst [vmem:[#allocation16_spill] sm:$0xff] %v11603_v26  ;;  %v4925_v54 = vsel %vm2158_vm8, %v11586_v0, -inf }
 0x3d2   : > { %v8163_v23 = vpop.eup %8162  ;;  %8172 = vlog2.f32 %v6477_v56  ;;  %v6108_v27 = vrot.slane %v8161_v35, 6 }
 0x3d3   : > { %v8165_v49 = vpop.eup %8164  ;;  %v6107_v16 = vsel %vm3384_vm12, %v6106_v36, %v8157_v60  ;;  %v6110_v10 = vrot.slane %v8163_v23, 5  ;;  %v5362_v14 = vsub.f32 %v11487_v42, %v5257_v62  ;;  %v5363_v34 = vsub.f32 %v11490_v1, %v5257_v62 }
 0x3d4   : > { %v8167_v30 = vpop.eup %8166  ;;  %v6109_v51 = vsel %vm3387_vm13, %v6108_v27, %v6107_v16  ;;  %v6112_v44 = vrot.slane %v8165_v49, 4  ;;  %v5364_v5 = vsub.f32 %v11493_v31, %v5257_v62  ;;  %v5365_v58 = vsub.f32 %v11497_v37, %v5257_v62 }
 0x3d5   : > { %v8169_v28 = vpop.eup %8168  ;;  %v6111_v55 = vsel %vm3390_vm14, %v6110_v10, %v6109_v51  ;;  %v6114_v47 = vrot.slane %v8167_v30, 3  ;;  %v5366_v21 = vsub.f32 %v11503_v38, %v5257_v62  ;;  %v5367_v20 = vsub.f32 %v11506_v48, %v5257_v62 }
 0x3d6   : > { %v8171_v42 = vpop.eup %8170  ;;  %v6113_v1 = vsel %vm3393_vm15, %v6112_v44, %v6111_v55  ;;  %v6116_v60 = vrot.slane %v8169_v28, 2  ;;  %v5368_v24 = vsub.f32 %v11510_v3, %v5257_v62  ;;  %v5369_v31 = vsub.f32 %v11513_v8, %v5257_v62 }
 0x3d7   : > { %v6115_v37 = vsel %vm3396_vm0, %v6114_v47, %v6113_v1  ;;  %v6118_v56 = vrot.slane %v8171_v42, 1  ;;  %v5578_v61 = vmul.f32 1.442695, %v5362_v14  ;;  %v5580_v39 = vmul.f32 1.442695, %v5363_v34 }
 0x3d8   : > { %v6117_v35 = vsel %vm3399_vm1, %v6116_v60, %v6115_v37  ;;  %v5582_v38 = vmul.f32 1.442695, %v5364_v5  ;;  %v5584_v36 = vmul.f32 1.442695, %v5365_v58  ;;  %v5586_v23 = vmul.f32 1.442695, %v5366_v21 }
 0x3d9   : > { %v6119_v48 = vsel %vm3402_vm2, %v6118_v56, %v6117_v35  ;;  %8174 = vpow2.f32 %v5578_v61  ;;  %v4915_v3 = vsel %vm2158_vm8, %v11569_v4, -inf  ;;  %v5588_v8 = vmul.f32 1.442695, %v5367_v20 }
 0x3da   : > { %v6466_v27 = vrot.slane %v6119_v48, 4  ;;  %8176 = vpow2.f32 %v5580_v39  ;;  %v4916_v62 = vmax.f32 %v4914_v11, %v4915_v3  ;;  %v5590_v49 = vmul.f32 1.442695, %v5368_v24 }
 0x3db   : > { %8178 = vpow2.f32 %v5582_v38  ;;  %v4917_v16 = vsel %vm2158_vm8, %v11572_v40, -inf  ;;  %v4221_v10 = vmul.f32 0.6931472, %v11555_v25  ;;  %v5592_v30 = vmul.f32 1.442695, %v5369_v31 }
 0x3dc   : > { %v8173_v14 = vpop.eup %8172  ;;  %v6467_v34 = vadd.f32 %v6466_v27, %v6119_v48  ;;  %8180 = vpow2.f32 %v5584_v36  ;;  %v4918_v51 = vmax.f32 %v4916_v62, %v4917_v16  ;;  %v4919_v5 = vsel %vm2158_vm8, %v11575_v17, -inf }
 0x3dd   : > { %v6613_v44 = vmul.f32 0.6931472, %v8173_v14  ;;  %8182 = vpow2.f32 %v5586_v23  ;;  %v4263_v11 = vsel %vm4167_vm5, %v4221_v10, -1e+09  ;;  %v4921_v47 = vsel %vm2158_vm8, %v11580_v7, -inf }
 0x3de   : > { %v6468_v58 = vrot.slane %v6467_v34, 2  ;;  %8184 = vpow2.f32 %v5588_v8  ;;  %v4920_v28 = vmax.f32 %v4918_v51, %v4919_v5  ;;  %v4287_v55 = vadd.f32 %v4263_v11, %v13665_v6 }
 0x3df   : > { %v11623_v25 = vadd.f32 %v6613_v44, %v11438_v63  ;;  %8186 = vpow2.f32 %v5590_v49  ;;  %v4923_v42 = vsel %vm2158_vm8, %v11583_v41, -inf }
 0x3e0   : > { %v6469_v21 = vadd.f32 %v6468_v58, %v6467_v34  ;;  %8188 = vpow2.f32 %v5592_v30  ;;  %v4922_v20 = vmax.f32 %v4920_v28, %v4921_v47  ;;  %v4365_v1 = vrot.slane %v4287_v55, 1 }
 0x3e1   : > { %v4366_v60 = vrot.slane %v4287_v55, 2  ;;  %v4367_v24 = vrot.slane %v4287_v55, 3  ;;  %v4368_v63 = vrot.slane %v4287_v55, 4  ;;  %v4369_v56 = vrot.slane %v4287_v55, 5 }
 0x3e2   : > { %v6470_v31 = vrot.slane %v6469_v21, 1  ;;  %v4924_v37 = vmax.f32 %v4922_v20, %v4923_v42  ;;  %v4370_v39 = vrot.slane %v4287_v55, 6  ;;  %v4371_v35 = vrot.slane %v4287_v55, 7 }
 0x3e3   : > { %v8175_v61 = vpop.eup %8174  ;;  %v11632_v38 = vadd.f32 %v4287_v55, %v13669_v15  ;;  %v11635_v36 = vadd.f32 %v4365_v1, %v13670_v29  ;;  %v11640_v27 = vadd.f32 %v4366_v60, %v13671_v50  ;;  %v11643_v8 = vadd.f32 %v4367_v24, %v13672_v12  ;;  %v11667_v60 = vpop.permute.xlu1 %6691 }
 0x3e4   : > { %v8177_v48 = vpop.eup %8176  ;;  %v6471_v23 = vadd.f32 %v6470_v31, %v6469_v21  ;;  %v11637_v3 = vmax.f32 %v4924_v37, %v4925_v54  ;;  %v11646_v16 = vadd.f32 %v4368_v63, %v10110_v13  ;;  %v11649_v10 = vadd.f32 %v4369_v56, %v13673_v19  ;;  %13683 = vst [vmem:[#allocation6_spill] sm:$0xff] %v11667_v60 }
 0x3e5   : > { %v8179_v62 = vpop.eup %8178  ;;  %v6148_v49 = vrot.slane %v8177_v48, 7  ;;  %v11652_v14 = vadd.f32 %v4370_v39, %v13674_v45  ;;  %v11657_v44 = vadd.f32 %v4371_v35, %v13675_v52  ;;  %v4957_v28 = vsel %vm2158_vm8, %v11632_v38, -inf }
 0x3e6   : > { %v8181_v34 = vpop.eup %8180  ;;  %8190 = vlog2.f32 %v6471_v23  ;;  %v6150_v30 = vrot.slane %v8179_v62, 6  ;;  %v5253_v51 = vrot.slane %v11637_v3, %v13611_v33  ;;  %v4958_v55 = vsel %vm2158_vm8, %v11635_v36, -inf }
 0x3e7   : > { %v8183_v5 = vpop.eup %8182  ;;  %v6149_v11 = vsel %vm3384_vm12, %v6148_v49, %v8175_v61  ;;  %v6152_v58 = vrot.slane %v8181_v34, 5 }
 0x3e8   : > { %v8185_v47 = vpop.eup %8184  ;;  %v6151_v21 = vsel %vm3387_vm13, %v6150_v30, %v6149_v11  ;;  %v6154_v20 = vrot.slane %v8183_v5, 4  ;;  %v5354_v42 = vsub.f32 %v11563_v59, %v5253_v51  ;;  %v5355_v54 = vsub.f32 %v11566_v9, %v5253_v51 }
 0x3e9   : > { %v8187_v1 = vpop.eup %8186  ;;  %v6153_v24 = vsel %vm3390_vm14, %v6152_v58, %v6151_v21  ;;  %v6156_v31 = vrot.slane %v8185_v47, 3  ;;  %v5356_v37 = vsub.f32 %v11569_v4, %v5253_v51  ;;  %v5357_v63 = vsub.f32 %v11572_v40, %v5253_v51  ;;  %v11680_v58 = vpop.f32.mrb[24].mxu0 }
 0x3ea   : > { %v8189_v56 = vpop.eup %8188  ;;  %v6155_v61 = vsel %vm3393_vm15, %v6154_v20, %v6153_v24  ;;  %v6158_v39 = vrot.slane %v8187_v1, 2  ;;  %v5358_v35 = vsub.f32 %v11575_v17, %v5253_v51  ;;  %v5359_v59 = vsub.f32 %v11580_v7, %v5253_v51  ;;  %13684 = vst [vmem:[#allocation3_spill] sm:$0xff] %v11680_v58  ;;  %v11682_v7 = vpop.permute.xlu1 %6687 }
 0x3eb   : > { %v6157_v9 = vsel %vm3396_vm0, %v6156_v31, %v6155_v61  ;;  %v6160_v48 = vrot.slane %v8189_v56, 1  ;;  %v5360_v23 = vsub.f32 %v11583_v41, %v5253_v51  ;;  %v5361_v62 = vsub.f32 %v11586_v0, %v5253_v51 }
 0x3ec   : > { %v6159_v49 = vsel %vm3399_vm1, %v6158_v39, %v6157_v9  ;;  %v5562_v4 = vmul.f32 1.442695, %v5354_v42  ;;  %v5564_v34 = vmul.f32 1.442695, %v5355_v54  ;;  %v5566_v40 = vmul.f32 1.442695, %v5356_v37 }
 0x3ed   : > { %v6161_v30 = vsel %vm3402_vm2, %v6160_v48, %v6159_v49  ;;  %v5568_v5 = vmul.f32 1.442695, %v5357_v63  ;;  %v5570_v17 = vmul.f32 1.442695, %v5358_v35  ;;  %v5572_v47 = vmul.f32 1.442695, %v5359_v59 }
 0x3ee   : > { %v6484_v11 = vrot.slane %v6161_v30, 4  ;;  %8192 = vpow2.f32 %v5562_v4  ;;  %v4959_v41 = vmax.f32 %v4957_v28, %v4958_v55  ;;  %v5574_v51 = vmul.f32 1.442695, %v5360_v23  ;;  %v13685_v9 = vld [vmem:[#allocation23_spill] sm:$0xff] }
 0x3ef   : > { %8194 = vpow2.f32 %v5564_v34  ;;  %v4960_v20 = vsel %vm2158_vm8, %v11640_v27, -inf  ;;  %v5576_v54 = vmul.f32 1.442695, %v5361_v62  ;;  %v6697_v24 = vrot.slane %v11682_v7, 1 }
 0x3f0   : > { %v8191_v21 = vpop.eup %8190  ;;  %v6485_v0 = vadd.f32 %v6484_v11, %v6161_v30  ;;  %8196 = vpow2.f32 %v5566_v40  ;;  %v4961_v1 = vmax.f32 %v4959_v41, %v4960_v20  ;;  %v4962_v37 = vsel %vm2158_vm8, %v11643_v8, -inf  ;;  %v13687_v40 = vld [vmem:[#allocation18_spill] sm:$0xff] }
 0x3f1   : > { %v6611_v42 = vmul.f32 0.6931472, %v8191_v21  ;;  %8198 = vpow2.f32 %v5568_v5  ;;  %v4190_v63 = vmax.f32 %v11057_v18, 1e-30  ;;  %v4964_v61 = vsel %vm2158_vm8, %v11646_v16, -inf }
 0x3f2   : > { %v6486_v31 = vrot.slane %v6485_v0, 2  ;;  %8200 = vpow2.f32 %v5570_v17  ;;  %v4963_v55 = vmax.f32 %v4961_v1, %v4962_v37  ;;  %v4193_v39 = vmax.f32 %v11235_v46, 1e-30 }
 0x3f3   : > { %v11690_v28 = vadd.f32 %v6611_v42, %v11522_v53  ;;  %8202 = vpow2.f32 %v5572_v47  ;;  %v4192_v48 = vmax.f32 %v13685_v9, 1e-30  ;;  %v6699_v53 = vrot.slane %v11682_v7, 3 }
 0x3f4   : > { %v6487_v56 = vadd.f32 %v6486_v31, %v6485_v0  ;;  %8204 = vpow2.f32 %v5574_v51  ;;  %v4965_v59 = vmax.f32 %v4963_v55, %v4964_v61  ;;  %v4966_v49 = vsel %vm2158_vm8, %v11649_v10, -inf }
 0x3f5   : > { %8206 = vpow2.f32 %v5576_v54  ;;  %v11703_v4 = vadd.f32 %v6697_v24, %v11623_v25  ;;  %v4195_v30 = vmax.f32 %v13687_v40, 1e-30  ;;  %v4968_v17 = vsel %vm2158_vm8, %v11652_v14, -inf }
 0x3f6   : > { %v6488_v62 = vrot.slane %v6487_v56, 1  ;;  %v4967_v34 = vmax.f32 %v4965_v59, %v4966_v49  ;;  %8208 = vlog2.f32 %v4190_v63  ;;  %v4194_v47 = vmax.f32 %v11463_v32, 1e-30 }
 0x3f7   : > { %13686 = vst [vmem:[#allocation30_spill] sm:$0xff] %v11703_v4  ;;  %8210 = vlog2.f32 %v4193_v39  ;;  %v4197_v25 = vmax.f32 %v11546_v43, 1e-30  ;;  %v4970_v42 = vsel %vm2158_vm8, %v11657_v44, -inf  ;;  %v4196_v54 = vmax.f32 %v11603_v26, 1e-30 }
 0x3f8   : > { %v8193_v5 = vpop.eup %8192  ;;  %v6489_v11 = vadd.f32 %v6488_v62, %v6487_v56  ;;  %v4969_v0 = vmax.f32 %v4967_v34, %v4968_v17  ;;  %8212 = vlog2.f32 %v4192_v48  ;;  %v11719_v63 = vsel %vm2158_vm8, %v11703_v4, -inf }
 0x3f9   : > { %v8195_v41 = vpop.eup %8194  ;;  %vm4168_vm9 = vcmp.gt.f32.partialorder %v13685_v9, 0.0  ;;  %vm4171_vm10 = vcmp.gt.f32.partialorder %v13687_v40, 0.0 }
 0x3fa   : > { %v8197_v51 = vpop.eup %8196  ;;  %8214 = vlog2.f32 %v6489_v11  ;;  %v6134_v20 = vrot.slane %v8195_v41, 7  ;;  %v11715_v37 = vmax.f32 %v4969_v0, %v4970_v42 }
 0x3fb   : > { %v8199_v1 = vpop.eup %8198  ;;  %v6136_v31 = vrot.slane %v8197_v51, 6  ;;  %8216 = vlog2.f32 %v4195_v30 }
 0x3fc   : > { %v8201_v55 = vpop.eup %8200  ;;  %v6135_v56 = vsel %vm3384_vm12, %v6134_v20, %v8193_v5  ;;  %v6138_v61 = vrot.slane %v8199_v1, 5  ;;  %8218 = vlog2.f32 %v4194_v47  ;;  %v5265_v62 = vrot.slane %v11715_v37, %v13611_v33 }
 0x3fd   : > { %v8203_v39 = vpop.eup %8202  ;;  %v6137_v59 = vsel %vm3387_vm13, %v6136_v31, %v6135_v56  ;;  %v6140_v48 = vrot.slane %v8201_v55, 4  ;;  %8220 = vlog2.f32 %v4197_v25  ;;  %v4199_v5 = vmax.f32 %v11680_v58, 1e-30 }
 0x3fe   : > { %v8205_v49 = vpop.eup %8204  ;;  %v6139_v34 = vsel %vm3390_vm14, %v6138_v61, %v6137_v59  ;;  %v6142_v30 = vrot.slane %v8203_v39, 3  ;;  %8222 = vlog2.f32 %v4196_v54  ;;  %v5378_v41 = vsub.f32 %v11632_v38, %v5265_v62 }
 0x3ff   : > { %v8207_v11 = vpop.eup %8206  ;;  %v6141_v17 = vsel %vm3393_vm15, %v6140_v48, %v6139_v34  ;;  %v6144_v47 = vrot.slane %v8205_v49, 2  ;;  %v5379_v0 = vsub.f32 %v11635_v36, %v5265_v62  ;;  %v5380_v20 = vsub.f32 %v11640_v27, %v5265_v62 }
 0x400   : > { %v6143_v51 = vsel %vm3396_vm0, %v6142_v30, %v6141_v17  ;;  %v6146_v25 = vrot.slane %v8207_v11, 1  ;;  %v5381_v42 = vsub.f32 %v11643_v8, %v5265_v62  ;;  %v8209_v54 = vpop.eup %8208  ;;  %v5382_v31 = vsub.f32 %v11646_v16, %v5265_v62 }
 0x401   : > { %v6145_v1 = vsel %vm3399_vm1, %v6144_v47, %v6143_v51  ;;  %v5383_v55 = vsub.f32 %v11649_v10, %v5265_v62  ;;  %v5384_v38 = vsub.f32 %v11652_v14, %v5265_v62  ;;  %v8211_v56 = vpop.eup %8210  ;;  %v5385_v61 = vsub.f32 %v11657_v44, %v5265_v62 }
 0x402   : > { %v6147_v36 = vsel %vm3402_vm2, %v6146_v25, %v6145_v1  ;;  %v5610_v39 = vmul.f32 1.442695, %v5378_v41  ;;  %v5612_v59 = vmul.f32 1.442695, %v5379_v0  ;;  %v8213_v48 = vpop.eup %8212  ;;  %v5614_v49 = vmul.f32 1.442695, %v5380_v20 }
 0x403   : > { %v6478_v27 = vrot.slane %v6147_v36, 4  ;;  %v5616_v8 = vmul.f32 1.442695, %v5381_v42  ;;  %8224 = vlog2.f32 %v4199_v5  ;;  %v11744_v16 = vadd.f32 %v11682_v7, %v11690_v28 }
 0x404   : > { %v8215_v34 = vpop.eup %8214  ;;  %8226 = vpow2.f32 %v5610_v39  ;;  %v5618_v10 = vmul.f32 1.442695, %v5382_v31  ;;  %v5620_v14 = vmul.f32 1.442695, %v5383_v55  ;;  %v5622_v44 = vmul.f32 1.442695, %v5384_v38 }
 0x405   : > { %13688 = vst [vmem:[#allocation27_spill] sm:$0xff] %v11744_v16  ;;  %v8217_v30 = vpop.eup %8216  ;;  %v6617_v11 = vmul.f32 0.6931472, %v8215_v34  ;;  %v6479_v17 = vadd.f32 %v6478_v27, %v6147_v36  ;;  %8228 = vpow2.f32 %v5612_v59  ;;  %v4219_v47 = vmul.f32 0.6931472, %v8209_v54 }
 0x406   : > { %v11746_v62 = vpop.eup %8218  ;;  %8230 = vpow2.f32 %v5614_v49  ;;  %v4225_v41 = vmul.f32 0.6931472, %v8211_v56  ;;  %v4223_v0 = vmul.f32 0.6931472, %v8213_v48  ;;  %v5624_v25 = vmul.f32 1.442695, %v5385_v61 }
 0x407   : > { %v11748_v5 = vpop.eup %8220  ;;  %v6661_v51 = vadd.f32 %v6617_v11, %v11577_v22  ;;  %v6480_v28 = vrot.slane %v6479_v17, 2  ;;  %8232 = vpow2.f32 %v5616_v8  ;;  %v11755_v42 = vsel %vm2158_vm8, %v11744_v16, -inf }
 0x408   : > { %v11751_v20 = vpop.eup %8222  ;;  %13689 = vst [vmem:[#allocation8_spill] sm:$0xff] %v11755_v42  ;;  %8234 = vpow2.f32 %v5618_v10  ;;  %v4262_v1 = vsel %vm4166_vm6, %v4219_v47, -1e+09  ;;  %v4265_v54 = vsel %vm4169_vm7, %v4225_v41, -1e+09 }
 0x409   : > { %v11763_v31 = vadd.f32 %v6699_v53, %v6661_v51  ;;  %v6481_v22 = vadd.f32 %v6480_v28, %v6479_v17  ;;  %8236 = vpow2.f32 %v5620_v14  ;;  %v4286_v55 = vadd.f32 %v4262_v1, %v13665_v6 }
 0x40a   : > { %8238 = vpow2.f32 %v5622_v44  ;;  %v11767_v38 = vadd.f32 %v4265_v54, %v13665_v6  ;;  %v4264_v56 = vsel %vm4168_vm9, %v4223_v0, -1e+09  ;;  %v11771_v18 = vmul.f32 0.6931472, %v8217_v30  ;;  %v11793_v44 = vpop.f32.mrb[25].mxu0 }
 0x40b   : > { %13690 = vst [vmem:[#allocation14_spill] sm:$0xff] %v11763_v31  ;;  %v11775_v46 = vsel %vm2158_vm8, %v11763_v31, -inf  ;;  %v6482_v36 = vrot.slane %v6481_v22, 1  ;;  %8240 = vpow2.f32 %v5624_v25  ;;  %v4358_v53 = vrot.slane %v4286_v55, 1  ;;  %13692 = vst [vmem:[#allocation19_spill] sm:$0xff] %v11793_v44 }
 0x40c   : > { %v4359_v39 = vrot.slane %v4286_v55, 2  ;;  %v4360_v59 = vrot.slane %v4286_v55, 3  ;;  %v4361_v48 = vrot.slane %v4286_v55, 4  ;;  %v4362_v9 = vrot.slane %v4286_v55, 5 }
 0x40d   : > { %v11779_v27 = vpop.eup %8224  ;;  %v6483_v49 = vadd.f32 %v6482_v36, %v6481_v22  ;;  %v4363_v8 = vrot.slane %v4286_v55, 6  ;;  %v4364_v34 = vrot.slane %v4286_v55, 7  ;;  %v11782_v14 = vadd.f32 %v4286_v55, %v13669_v15 }
 0x40e   : > { %13691 = vst [vmem:[#allocation13_spill] sm:$0xff] %v11779_v27  ;;  %v8227_v10 = vpop.eup %8226  ;;  %v11785_v30 = vadd.f32 %v4358_v53, %v13670_v29  ;;  %v11788_v11 = vadd.f32 %v4359_v39, %v13671_v50  ;;  %v11791_v17 = vadd.f32 %v4360_v59, %v13672_v12  ;;  %v11796_v41 = vadd.f32 %v4361_v48, %v10110_v13 }
 0x40f   : > { %v8229_v47 = vpop.eup %8228  ;;  %8242 = vlog2.f32 %v6483_v49  ;;  %v11799_v0 = vadd.f32 %v4362_v9, %v13673_v19  ;;  %v11802_v51 = vadd.f32 %v4363_v8, %v13674_v45  ;;  %v11805_v1 = vadd.f32 %v4364_v34, %v13675_v52 }
 0x410   : > { %v8231_v28 = vpop.eup %8230  ;;  %v6176_v25 = vrot.slane %v8229_v47, 7  ;;  %v4942_v54 = vsel %vm2158_vm8, %v11782_v14, -inf  ;;  %v4943_v22 = vsel %vm2158_vm8, %v11785_v30, -inf  ;;  %v4945_v39 = vsel %vm2158_vm8, %v11788_v11, -inf }
 0x411   : > { %v8233_v55 = vpop.eup %8232  ;;  %v6178_v36 = vrot.slane %v8231_v28, 6  ;;  %v4944_v53 = vmax.f32 %v4942_v54, %v4943_v22  ;;  %v11814_v59 = vadd.f32 %v4264_v56, %v13665_v6  ;;  %v4947_v8 = vsel %vm2158_vm8, %v11791_v17, -inf }
 0x412   : > { %v8235_v48 = vpop.eup %8234  ;;  %v6177_v49 = vsel %vm3384_vm12, %v6176_v25, %v8227_v10  ;;  %v6180_v9 = vrot.slane %v8233_v55, 5  ;;  %v4949_v34 = vsel %vm2158_vm8, %v11796_v41, -inf  ;;  %v4951_v24 = vsel %vm2158_vm8, %v11799_v0, -inf }
 0x413   : > { %v8237_v47 = vpop.eup %8236  ;;  %v6179_v28 = vsel %vm3387_vm13, %v6178_v36, %v6177_v49  ;;  %v6182_v54 = vrot.slane %v8235_v48, 4  ;;  %v4946_v22 = vmax.f32 %v4944_v53, %v4945_v39  ;;  %v4953_v10 = vsel %vm2158_vm8, %v11802_v51, -inf }
 0x414   : > { %v8239_v56 = vpop.eup %8238  ;;  %v6181_v23 = vsel %vm3390_vm14, %v6180_v9, %v6179_v28  ;;  %v6184_v61 = vrot.slane %v8237_v47, 3  ;;  %v4379_v25 = vrot.slane %v11767_v38, 1  ;;  %v4380_v36 = vrot.slane %v11767_v38, 2 }
 0x415   : > { %v8241_v55 = vpop.eup %8240  ;;  %v6183_v21 = vsel %vm3393_vm15, %v6182_v54, %v6181_v23  ;;  %v6186_v35 = vrot.slane %v8239_v56, 2  ;;  %v4948_v57 = vmax.f32 %v4946_v22, %v4947_v8  ;;  %v4381_v48 = vrot.slane %v11767_v38, 3 }
 0x416   : > { %v6185_v53 = vsel %vm3396_vm0, %v6184_v61, %v6183_v21  ;;  %v6188_v39 = vrot.slane %v8241_v55, 1  ;;  %v4382_v49 = vrot.slane %v11767_v38, 4  ;;  %v4383_v28 = vrot.slane %v11767_v38, 5 }
 0x417   : > { %v6187_v9 = vsel %vm3399_vm1, %v6186_v35, %v6185_v53  ;;  %v4950_v47 = vmax.f32 %v4948_v57, %v4949_v34  ;;  %v4384_v2 = vrot.slane %v11767_v38, 6  ;;  %v4385_v8 = vrot.slane %v11767_v38, 7 }
 0x418   : > { %v6189_v23 = vsel %vm3402_vm2, %v6188_v39, %v6187_v9  ;;  %v11840_v54 = vadd.f32 %v11767_v38, %v13669_v15  ;;  %v11843_v21 = vadd.f32 %v4379_v25, %v13670_v29  ;;  %v11846_v57 = vadd.f32 %v4380_v36, %v13671_v50 }
 0x419   : > { %v8243_v61 = vpop.eup %8242  ;;  %v6496_v22 = vrot.slane %v6189_v23, 4  ;;  %v4952_v56 = vmax.f32 %v4950_v47, %v4951_v24  ;;  %v11849_v35 = vadd.f32 %v4381_v48, %v13672_v12  ;;  %v11852_v55 = vadd.f32 %v4382_v49, %v10110_v13 }
 0x41a   : > { %v6615_v34 = vmul.f32 0.6931472, %v8243_v61  ;;  %v11855_v53 = vadd.f32 %v4383_v28, %v13673_v19  ;;  %v11858_v38 = vadd.f32 %v4384_v2, %v13674_v45  ;;  %v11861_v24 = vadd.f32 %v4385_v8, %v13675_v52 }
 0x41b   : > { %v6497_v25 = vadd.f32 %v6496_v22, %v6189_v23  ;;  %v4954_v39 = vmax.f32 %v4952_v56, %v4953_v10  ;;  %v4987_v36 = vsel %vm2158_vm8, %v11840_v54, -inf  ;;  %v4955_v49 = vsel %vm2158_vm8, %v11805_v1, -inf }
 0x41c   : > { %v6660_v48 = vadd.f32 %v6615_v34, %v11637_v3  ;;  %v4988_v9 = vsel %vm2158_vm8, %v11843_v21, -inf  ;;  %v4990_v2 = vsel %vm2158_vm8, %v11846_v57, -inf  ;;  %v4992_v23 = vsel %vm2158_vm8, %v11849_v35, -inf }
 0x41d   : > { %v6498_v47 = vrot.slane %v6497_v25, 2  ;;  %v11872_v28 = vmax.f32 %v4954_v39, %v4955_v49  ;;  %v4989_v10 = vmax.f32 %v4987_v36, %v4988_v9  ;;  %v13694_v8 = vrot.slane %v11682_v7, 2 }
 0x41e   : > { %v4994_v3 = vsel %vm2158_vm8, %v11852_v55, -inf  ;;  %v4996_v22 = vsel %vm2158_vm8, %v11855_v53, -inf  ;;  %v4998_v56 = vsel %vm2158_vm8, %v11858_v38, -inf  ;;  %v4372_v49 = vrot.slane %v11814_v59, 1 }
 0x41f   : > { %13693 = vst [vmem:[#allocation17_spill] sm:$0xff] %v11872_v28  ;;  %v11878_v61 = vadd.f32 %v13694_v8, %v6660_v48  ;;  %v6499_v34 = vadd.f32 %v6498_v47, %v6497_v25  ;;  %v5261_v39 = vrot.slane %v11872_v28, %v13611_v33  ;;  %v4991_v36 = vmax.f32 %v4989_v10, %v4990_v2 }
 0x420   : > { %v4373_v9 = vrot.slane %v11814_v59, 2  ;;  %v4374_v8 = vrot.slane %v11814_v59, 3  ;;  %v4375_v44 = vrot.slane %v11814_v59, 4 }
 0x421   : > { %13695 = vst [vmem:[#allocation23_spill] sm:$0xff] %v11878_v61  ;;  %v11891_v48 = vsel %vm2158_vm8, %v11878_v61, -inf  ;;  %v6500_v25 = vrot.slane %v6499_v34, 1  ;;  %v5370_v47 = vsub.f32 %v11782_v14, %v5261_v39  ;;  %v5371_v2 = vsub.f32 %v11785_v30, %v5261_v39 }
 0x422   : > { %13696 = vst [vmem:[#allocation18_spill] sm:$0xff] %v11891_v48  ;;  %v5372_v10 = vsub.f32 %v11788_v11, %v5261_v39  ;;  %v5373_v58 = vsub.f32 %v11791_v17, %v5261_v39  ;;  %v5374_v31 = vsub.f32 %v11796_v41, %v5261_v39  ;;  %v5375_v61 = vsub.f32 %v11799_v0, %v5261_v39 }
 0x423   : > { %v6501_v4 = vadd.f32 %v6500_v25, %v6499_v34  ;;  %v5376_v16 = vsub.f32 %v11802_v51, %v5261_v39  ;;  %v5377_v60 = vsub.f32 %v11805_v1, %v5261_v39  ;;  %v5594_v27 = vmul.f32 1.442695, %v5370_v47 }
 0x424   : > { %v5596_v48 = vmul.f32 1.442695, %v5371_v2  ;;  %v5598_v14 = vmul.f32 1.442695, %v5372_v10  ;;  %v5600_v42 = vmul.f32 1.442695, %v5373_v58  ;;  %v4993_v30 = vmax.f32 %v4991_v36, %v4992_v23 }
 0x425   : > { %8244 = vlog2.f32 %v6501_v4  ;;  %v5602_v28 = vmul.f32 1.442695, %v5374_v31  ;;  %v5604_v26 = vmul.f32 1.442695, %v5375_v61  ;;  %v5606_v11 = vmul.f32 1.442695, %v5376_v16 }
 0x426   : > { %8246 = vpow2.f32 %v5594_v27  ;;  %v5608_v17 = vmul.f32 1.442695, %v5377_v60  ;;  %v4995_v43 = vmax.f32 %v4993_v30, %v4994_v3  ;;  %v4376_v41 = vrot.slane %v11814_v59, 5 }
 0x427   : > { %8248 = vpow2.f32 %v5596_v48  ;;  %v4377_v0 = vrot.slane %v11814_v59, 6  ;;  %v4378_v51 = vrot.slane %v11814_v59, 7  ;;  %v11912_v1 = vadd.f32 %v11814_v59, %v13669_v15 }
 0x428   : > { %8250 = vpow2.f32 %v5598_v14  ;;  %v4997_v58 = vmax.f32 %v4995_v43, %v4996_v22  ;;  %v11915_v4 = vadd.f32 %v4372_v49, %v13670_v29  ;;  %v11918_v16 = vadd.f32 %v4373_v9, %v13671_v50 }
 0x429   : > { %8252 = vpow2.f32 %v5600_v42  ;;  %v11921_v60 = vadd.f32 %v4374_v8, %v13672_v12  ;;  %v11924_v31 = vadd.f32 %v4375_v44, %v10110_v13  ;;  %v11927_v27 = vadd.f32 %v4376_v41, %v13673_v19 }
 0x42a   : > { %8254 = vpow2.f32 %v5602_v28  ;;  %v4999_v15 = vmax.f32 %v4997_v58, %v4998_v56  ;;  %v11930_v43 = vadd.f32 %v4377_v0, %v13674_v45  ;;  %v11933_v29 = vadd.f32 %v4378_v51, %v13675_v52 }
 0x42b   : > { %8256 = vpow2.f32 %v5604_v26  ;;  %v5000_v50 = vsel %vm2158_vm8, %v11861_v24, -inf  ;;  %v4972_v12 = vsel %vm2158_vm8, %v11912_v1, -inf  ;;  %v4973_v13 = vsel %vm2158_vm8, %v11915_v4, -inf }
 0x42c   : > { %8258 = vpow2.f32 %v5606_v11  ;;  %v11941_v19 = vmax.f32 %v4999_v15, %v5000_v50  ;;  %v4974_v42 = vmax.f32 %v4972_v12, %v4973_v13  ;;  %v4267_v45 = vsel %vm4171_vm10, %v11771_v18, -1e+09 }
 0x42d   : > { %8260 = vpow2.f32 %v5608_v17  ;;  %v4975_v52 = vsel %vm2158_vm8, %v11918_v16, -inf  ;;  %v4977_v26 = vsel %vm2158_vm8, %v11921_v60, -inf  ;;  %v4979_v44 = vsel %vm2158_vm8, %v11924_v31, -inf }
 0x42e   : > { %v5273_v59 = vrot.slane %v11941_v19, %v13611_v33  ;;  %v4976_v28 = vmax.f32 %v4974_v42, %v4975_v52  ;;  %v11956_v23 = vsel %vm2158_vm8, %v11927_v27, -inf  ;;  %v11960_v40 = vsel %vm2158_vm8, %v11930_v43, -inf }
 0x42f   : > { %v8245_v18 = vpop.eup %8244  ;;  %v11964_v61 = vsel %vm2158_vm8, %v11933_v29, -inf  ;;  %v11967_v3 = vadd.f32 %v4267_v45, %v13665_v6  ;;  %v11970_v22 = vmul.f32 0.6931472, %v11746_v62  ;;  %v11973_v56 = vmul.f32 0.6931472, %v11748_v5 }
 0x430   : > { %v8247_v34 = vpop.eup %8246  ;;  %v6621_v39 = vmul.f32 0.6931472, %v8245_v18  ;;  %v5394_v36 = vsub.f32 %v11840_v54, %v5273_v59  ;;  %v5395_v49 = vsub.f32 %v11843_v21, %v5273_v59  ;;  %v5396_v48 = vsub.f32 %v11846_v57, %v5273_v59 }
 0x431   : > { %v8249_v9 = vpop.eup %8248  ;;  %v5397_v8 = vsub.f32 %v11849_v35, %v5273_v59  ;;  %v5398_v25 = vsub.f32 %v11852_v55, %v5273_v59  ;;  %v5399_v47 = vsub.f32 %v11855_v53, %v5273_v59  ;;  %v5400_v62 = vsub.f32 %v11858_v38, %v5273_v59 }
 0x432   : > { %v8251_v2 = vpop.eup %8250  ;;  %v6663_v5 = vadd.f32 %v6621_v39, %v11715_v37  ;;  %v6162_v10 = vrot.slane %v8249_v9, 7  ;;  %v5401_v14 = vsub.f32 %v11861_v24, %v5273_v59  ;;  %v5642_v54 = vmul.f32 1.442695, %v5394_v36  ;;  %v12001_v9 = vpop.f32.mrb[26].mxu0 }
 0x433   : > { %v8253_v30 = vpop.eup %8252  ;;  %v6164_v21 = vrot.slane %v8251_v2, 6  ;;  %v5644_v11 = vmul.f32 1.442695, %v5395_v49  ;;  %v5646_v57 = vmul.f32 1.442695, %v5396_v48  ;;  %v4978_v17 = vmax.f32 %v4976_v28, %v4977_v26 }
 0x434   : > { %v8255_v41 = vpop.eup %8254  ;;  %v13697_v35 = vrot.slane %v11682_v7, 5  ;;  %v6163_v53 = vsel %vm3384_vm12, %v6162_v10, %v8247_v34  ;;  %v6166_v38 = vrot.slane %v8253_v30, 5  ;;  %8262 = vpow2.f32 %v5642_v54 }
 0x435   : > { %v8257_v0 = vpop.eup %8256  ;;  %v6165_v37 = vsel %vm3387_vm13, %v6164_v21, %v6163_v53  ;;  %v6168_v51 = vrot.slane %v8255_v41, 4  ;;  %8264 = vpow2.f32 %v5644_v11  ;;  %v5648_v24 = vmul.f32 1.442695, %v5397_v8  ;;  %v13699_v21 = vld [vmem:[#allocation2_spill] sm:$0xff] }
 0x436   : > { %v11986_v55 = vadd.f32 %v13697_v35, %v6663_v5  ;;  %v8259_v58 = vpop.eup %8258  ;;  %v6167_v50 = vsel %vm3390_vm14, %v6166_v38, %v6165_v37  ;;  %v6170_v12 = vrot.slane %v8257_v0, 3  ;;  %8266 = vpow2.f32 %v5646_v57  ;;  %v13702_v35 = vld [vmem:[#allocation28_spill] sm:$0xff]  ;;  %v12026_v38 = vpop.f32.mrb[27].mxu0 }
 0x437   : > { %v8261_v13 = vpop.eup %8260  ;;  %v13698_v42 = vmax.f32 %v11719_v63, %v11775_v46  ;;  %v6169_v52 = vsel %vm3393_vm15, %v6168_v51, %v6167_v50  ;;  %v6172_v26 = vrot.slane %v8259_v58, 2  ;;  %8268 = vpow2.f32 %v5648_v24  ;;  %v13703_v51 = vld [vmem:[#allocation5_spill] sm:$0xff] }
 0x438   : > { %v6774_v15 = vsel %vm2158_vm8, %v11986_v55, -inf  ;;  %v6171_v59 = vsel %vm3396_vm0, %v6170_v12, %v6169_v52  ;;  %v6174_v28 = vrot.slane %v8261_v13, 1  ;;  %v5650_v18 = vmul.f32 1.442695, %v5398_v25  ;;  %v13705_v12 = vld [vmem:[#allocation10_spill] sm:$0xff] }
 0x439   : > { %v11996_v45 = vmax.f32 %v13698_v42, %v6774_v15  ;;  %v5652_v34 = vmul.f32 1.442695, %v5399_v47  ;;  %v6173_v39 = vsel %vm3399_vm1, %v6172_v26, %v6171_v59  ;;  %v5654_v36 = vmul.f32 1.442695, %v5400_v62  ;;  %v13706_v42 = vld [vmem:[#allocation9_spill] sm:$0xff] }
 0x43a   : > { %v5656_v49 = vmul.f32 1.442695, %v5401_v14  ;;  %v4980_v48 = vmax.f32 %v4978_v17, %v4979_v44  ;;  %v6175_v63 = vsel %vm3402_vm2, %v6174_v28, %v6173_v39  ;;  %8270 = vpow2.f32 %v5650_v18  ;;  %v13701_v17 = vld [vmem:[#allocation29_spill] sm:$0xff] }
 0x43b   : > { %v4393_v46 = vrot.slane %v11967_v3, 1  ;;  %v4394_v8 = vrot.slane %v11967_v3, 2  ;;  %v6490_v2 = vrot.slane %v6175_v63, 4  ;;  %8272 = vpow2.f32 %v5652_v34 }
 0x43c   : > { %v4982_v5 = vmax.f32 %v4980_v48, %v11956_v23  ;;  %v4395_v25 = vrot.slane %v11967_v3, 3  ;;  %8274 = vpow2.f32 %v5654_v36  ;;  %v4396_v47 = vrot.slane %v11967_v3, 4  ;;  %v13700_v23 = vld [vmem:[#allocation20_spill] sm:$0xff] }
 0x43d   : > { %v4397_v44 = vrot.slane %v11967_v3, 5  ;;  %v4398_v62 = vrot.slane %v11967_v3, 6  ;;  %v6491_v10 = vadd.f32 %v6490_v2, %v6175_v63  ;;  %8276 = vpow2.f32 %v5656_v49 }
 0x43e   : > { %v4984_v14 = vmax.f32 %v4982_v5, %v11960_v40  ;;  %v4399_v54 = vrot.slane %v11967_v3, 7  ;;  %v8263_v30 = vpop.eup %8262  ;;  %v12015_v11 = vadd.f32 %v11967_v3, %v13699_v21  ;;  %v12018_v57 = vadd.f32 %v4393_v46, %v13700_v23  ;;  %v13704_v3 = vld [vmem:[#allocation4_spill] sm:$0xff]  ;;  %v13707_v5 = vld [vmem:[#allocation25_spill] sm:$0xff] }
 0x43f   : > { %v12021_v41 = vadd.f32 %v4394_v8, %v13701_v17  ;;  %v12024_v53 = vadd.f32 %v4395_v25, %v13702_v35  ;;  %v8265_v0 = vpop.eup %8264  ;;  %v6492_v40 = vrot.slane %v6491_v10, 2  ;;  %v12032_v24 = vadd.f32 %v4396_v47, %v13703_v51  ;;  %v13708_v25 = vld [vmem:[#allocation16_spill] sm:$0xff] }
 0x440   : > { %v12029_v37 = vmax.f32 %v4984_v14, %v11964_v61  ;;  %v12035_v58 = vadd.f32 %v4397_v44, %v13704_v3  ;;  %v8267_v15 = vpop.eup %8266  ;;  %v6204_v50 = vrot.slane %v8265_v0, 7  ;;  %v12038_v13 = vadd.f32 %v4398_v62, %v13705_v12 }
 0x441   : > { %v12041_v52 = vadd.f32 %v4399_v54, %v13706_v42  ;;  %v5017_v26 = vsel %vm2158_vm8, %v12015_v11, -inf  ;;  %v8269_v59 = vpop.eup %8268  ;;  %v6493_v61 = vadd.f32 %v6492_v40, %v6491_v10  ;;  %v6206_v28 = vrot.slane %v8267_v15, 6 }
 0x442   : > { %v5269_v18 = vrot.slane %v12029_v37, %v13611_v33  ;;  %v5018_v34 = vsel %vm2158_vm8, %v12018_v57, -inf  ;;  %v6205_v39 = vsel %vm3384_vm12, %v6204_v50, %v8263_v30  ;;  %v6208_v36 = vrot.slane %v8269_v59, 5 }
 0x443   : > { %v5019_v49 = vmax.f32 %v5017_v26, %v5018_v34  ;;  %v4231_v48 = vmul.f32 0.6931472, %v11751_v20  ;;  %v6494_v63 = vrot.slane %v6493_v61, 1  ;;  %v6207_v46 = vsel %vm3387_vm13, %v6206_v28, %v6205_v39 }
 0x444   : > { %v5386_v8 = vsub.f32 %v11912_v1, %v5269_v18  ;;  %v5387_v2 = vsub.f32 %v11915_v4, %v5269_v18  ;;  %vm4173_vm3 = vcmp.gt.f32.partialorder %v13707_v5, 0.0  ;;  %vm4172_vm4 = vcmp.gt.f32.partialorder %v13708_v25, 0.0  ;;  %v8271_v47 = vpop.eup %8270 }
 0x445   : > { %v6209_v44 = vsel %vm3390_vm14, %v6208_v36, %v6207_v46  ;;  %v5388_v62 = vsub.f32 %v11918_v16, %v5269_v18  ;;  %v5389_v20 = vsub.f32 %v11921_v60, %v5269_v18  ;;  %v5390_v10 = vsub.f32 %v11924_v31, %v5269_v18  ;;  %v8273_v14 = vpop.eup %8272 }
 0x446   : > { %v6495_v54 = vadd.f32 %v6494_v63, %v6493_v61  ;;  %v6210_v1 = vrot.slane %v8271_v47, 4  ;;  %v5391_v4 = vsub.f32 %v11927_v27, %v5269_v18  ;;  %v5392_v30 = vsub.f32 %v11930_v43, %v5269_v18  ;;  %v8275_v0 = vpop.eup %8274 }
 0x447   : > { %v6212_v40 = vrot.slane %v8273_v14, 3  ;;  %v5393_v15 = vsub.f32 %v11933_v29, %v5269_v18  ;;  %v5626_v50 = vmul.f32 1.442695, %v5386_v8  ;;  %v5628_v26 = vmul.f32 1.442695, %v5387_v2  ;;  %v8277_v59 = vpop.eup %8276 }
 0x448   : > { %8278 = vlog2.f32 %v6495_v54  ;;  %v6211_v16 = vsel %vm3393_vm15, %v6210_v1, %v6209_v44  ;;  %v6214_v60 = vrot.slane %v8275_v0, 2  ;;  %v5630_v28 = vmul.f32 1.442695, %v5388_v62 }
 0x449   : > { %v6213_v31 = vsel %vm3396_vm0, %v6212_v40, %v6211_v16  ;;  %v6216_v61 = vrot.slane %v8277_v59, 1  ;;  %8280 = vpow2.f32 %v5626_v50  ;;  %v5632_v34 = vmul.f32 1.442695, %v5389_v20 }
 0x44a   : > { %v6215_v27 = vsel %vm3399_vm1, %v6214_v60, %v6213_v31  ;;  %8282 = vpow2.f32 %v5628_v26  ;;  %v5634_v43 = vmul.f32 1.442695, %v5390_v10  ;;  %v5636_v39 = vmul.f32 1.442695, %v5391_v4 }
 0x44b   : > { %v6217_v29 = vsel %vm3402_vm2, %v6216_v61, %v6215_v27  ;;  %8284 = vpow2.f32 %v5630_v28  ;;  %v5638_v18 = vmul.f32 1.442695, %v5392_v30  ;;  %v5020_v36 = vsel %vm2158_vm8, %v12021_v41, -inf }
 0x44c   : > { %v6508_v63 = vrot.slane %v6217_v29, 4  ;;  %8286 = vpow2.f32 %v5632_v34  ;;  %v5640_v46 = vmul.f32 1.442695, %v5393_v15  ;;  %v5021_v8 = vmax.f32 %v5019_v49, %v5020_v36 }
 0x44d   : > { %v6703_v2 = vrot.slane %v11682_v7, 7  ;;  %8288 = vpow2.f32 %v5634_v43  ;;  %v5022_v47 = vsel %vm2158_vm8, %v12024_v53, -inf  ;;  %v5024_v44 = vsel %vm2158_vm8, %v12032_v24, -inf }
 0x44e   : > { %v6509_v62 = vadd.f32 %v6508_v63, %v6217_v29  ;;  %8290 = vpow2.f32 %v5636_v39  ;;  %v5023_v20 = vmax.f32 %v5021_v8, %v5022_v47  ;;  %v5026_v10 = vsel %vm2158_vm8, %v12035_v58, -inf  ;;  %v13709_v39 = vld [vmem:[#allocation17_spill] sm:$0xff] }
 0x44f   : > { %8292 = vpow2.f32 %v5638_v18  ;;  %v4266_v49 = vsel %vm4170_vm11, %v11970_v22, -1e+09  ;;  %v4269_v14 = vsel %vm4173_vm3, %v11973_v56, -1e+09  ;;  %v4268_v54 = vsel %vm4172_vm4, %v4231_v48, -1e+09 }
 0x450   : > { %v6510_v1 = vrot.slane %v6509_v62, 2  ;;  %8294 = vpow2.f32 %v5640_v46  ;;  %v5025_v4 = vmax.f32 %v5023_v20, %v5024_v44  ;;  %v12086_v30 = vadd.f32 %v4266_v49, %v13665_v6  ;;  %v12118_v20 = vpop.f32.mrb[28].mxu0 }
 0x451   : > { %v5028_v0 = vsel %vm2158_vm8, %v12038_v13, -inf  ;;  %v5030_v32 = vsel %vm2158_vm8, %v12041_v52, -inf  ;;  %v12093_v22 = vadd.f32 %v4269_v14, %v13665_v6  ;;  %v12096_v56 = vadd.f32 %v4268_v54, %v13665_v6  ;;  %13710 = vst [vmem:[#allocation2_spill] sm:$0xff] %v12118_v20 }
 0x452   : > { %v8279_v5 = vpop.eup %8278  ;;  %v6511_v48 = vadd.f32 %v6510_v1, %v6509_v62  ;;  %v5027_v25 = vmax.f32 %v5025_v4, %v5026_v10  ;;  %v4386_v40 = vrot.slane %v12086_v30, 1  ;;  %v4387_v15 = vrot.slane %v12086_v30, 2 }
 0x453   : > { %v8281_v50 = vpop.eup %8280  ;;  %v6619_v26 = vmul.f32 0.6931472, %v8279_v5  ;;  %v4388_v59 = vrot.slane %v12086_v30, 3  ;;  %v4389_v16 = vrot.slane %v12086_v30, 4  ;;  %v4390_v60 = vrot.slane %v12086_v30, 5 }
 0x454   : > { %v8283_v28 = vpop.eup %8282  ;;  %v6512_v31 = vrot.slane %v6511_v48, 1  ;;  %v5029_v61 = vmax.f32 %v5027_v25, %v5028_v0  ;;  %v4391_v34 = vrot.slane %v12086_v30, 6  ;;  %v4392_v27 = vrot.slane %v12086_v30, 7 }
 0x455   : > { %v8285_v43 = vpop.eup %8284  ;;  %v6662_v29 = vadd.f32 %v6619_v26, %v13709_v39  ;;  %v6190_v18 = vrot.slane %v8283_v28, 7  ;;  %v12108_v36 = vadd.f32 %v12086_v30, %v13699_v21  ;;  %v12111_v63 = vadd.f32 %v4386_v40, %v13700_v23  ;;  %v13713_v28 = vld [vmem:[#allocation18_spill] sm:$0xff] }
 0x456   : > { %v8287_v46 = vpop.eup %8286  ;;  %v6513_v8 = vadd.f32 %v6512_v31, %v6511_v48  ;;  %v6192_v47 = vrot.slane %v8285_v43, 6  ;;  %v12113_v44 = vmax.f32 %v5029_v61, %v5030_v32  ;;  %v12116_v62 = vadd.f32 %v4387_v15, %v13701_v17 }
 0x457   : > { %v8289_v10 = vpop.eup %8288  ;;  %v13711_v49 = vrot.slane %v11682_v7, 4  ;;  %v6191_v54 = vsel %vm3384_vm12, %v6190_v18, %v8281_v50  ;;  %v6194_v1 = vrot.slane %v8287_v46, 5  ;;  %v12126_v4 = vadd.f32 %v4388_v59, %v13702_v35  ;;  %v13712_v59 = vld [vmem:[#allocation8_spill] sm:$0xff] }
 0x458   : > { %v8291_v30 = vpop.eup %8290  ;;  %8296 = vlog2.f32 %v6513_v8  ;;  %v6193_v0 = vsel %vm3387_vm13, %v6192_v47, %v6191_v54  ;;  %v6196_v32 = vrot.slane %v8289_v10, 4  ;;  %v5281_v5 = vrot.slane %v12113_v44, %v13611_v33 }
 0x459   : > { %v12122_v14 = vadd.f32 %v13711_v49, %v6662_v29  ;;  %v8293_v48 = vpop.eup %8292  ;;  %v6195_v40 = vsel %vm3390_vm14, %v6194_v1, %v6193_v0  ;;  %v6198_v15 = vrot.slane %v8291_v30, 3  ;;  %v12135_v50 = vadd.f32 %v4389_v16, %v13703_v51 }
 0x45a   : > { %v8295_v26 = vpop.eup %8294  ;;  %v13714_v31 = vmax.f32 %v13712_v59, %v13713_v28  ;;  %v6197_v43 = vsel %vm3393_vm15, %v6196_v32, %v6195_v40  ;;  %v6200_v39 = vrot.slane %v8293_v48, 2  ;;  %v5410_v29 = vsub.f32 %v12015_v11, %v5281_v5 }
 0x45b   : > { %v6772_v25 = vsel %vm2158_vm8, %v12122_v14, -inf  ;;  %v6199_v18 = vsel %vm3396_vm0, %v6198_v15, %v6197_v43  ;;  %v6202_v46 = vrot.slane %v8295_v26, 1  ;;  %v5411_v8 = vsub.f32 %v12018_v57, %v5281_v5 }
 0x45c   : > { %v12140_v61 = vmax.f32 %v13714_v31, %v6772_v25  ;;  %v5412_v47 = vsub.f32 %v12021_v41, %v5281_v5  ;;  %v6201_v16 = vsel %vm3399_vm1, %v6200_v39, %v6199_v18  ;;  %v5413_v10 = vsub.f32 %v12024_v53, %v5281_v5 }
 0x45d   : > { %v5414_v49 = vsub.f32 %v12032_v24, %v5281_v5  ;;  %v5415_v54 = vsub.f32 %v12035_v58, %v5281_v5  ;;  %v6203_v1 = vsel %vm3402_vm2, %v6202_v46, %v6201_v16  ;;  %v5416_v30 = vsub.f32 %v12038_v13, %v5281_v5 }
 0x45e   : > { %v5417_v11 = vsub.f32 %v12041_v52, %v5281_v5  ;;  %v5674_v0 = vmul.f32 1.442695, %v5410_v29  ;;  %v6502_v32 = vrot.slane %v6203_v1, 4  ;;  %v5676_v48 = vmul.f32 1.442695, %v5411_v8 }
 0x45f   : > { %v5678_v57 = vmul.f32 1.442695, %v5412_v47  ;;  %v12155_v41 = vadd.f32 %v4390_v60, %v13704_v3  ;;  %v5680_v25 = vmul.f32 1.442695, %v5413_v10  ;;  %v5682_v53 = vmul.f32 1.442695, %v5414_v49 }
 0x460   : > { %8298 = vpow2.f32 %v5674_v0  ;;  %v5684_v40 = vmul.f32 1.442695, %v5415_v54  ;;  %v6503_v24 = vadd.f32 %v6502_v32, %v6203_v1  ;;  %v5686_v58 = vmul.f32 1.442695, %v5416_v30 }
 0x461   : > { %8300 = vpow2.f32 %v5676_v48  ;;  %v5688_v15 = vmul.f32 1.442695, %v5417_v11  ;;  %v12158_v13 = vadd.f32 %v4391_v34, %v13705_v12  ;;  %v12161_v52 = vadd.f32 %v4392_v27, %v13706_v42 }
 0x462   : > { %8302 = vpow2.f32 %v5678_v57  ;;  %v5002_v5 = vsel %vm2158_vm8, %v12108_v36, -inf  ;;  %v8297_v60 = vpop.eup %8296  ;;  %v6504_v26 = vrot.slane %v6503_v24, 2  ;;  %v5003_v59 = vsel %vm2158_vm8, %v12111_v63, -inf }
 0x463   : > { %8304 = vpow2.f32 %v5680_v25  ;;  %v5005_v28 = vsel %vm2158_vm8, %v12116_v62, -inf  ;;  %v6625_v31 = vmul.f32 0.6931472, %v8297_v60  ;;  %v5004_v43 = vmax.f32 %v5002_v5, %v5003_v59 }
 0x464   : > { %8306 = vpow2.f32 %v5682_v53  ;;  %v5007_v34 = vsel %vm2158_vm8, %v12126_v4, -inf  ;;  %v6505_v27 = vadd.f32 %v6504_v26, %v6503_v24  ;;  %v5009_v39 = vsel %vm2158_vm8, %v12135_v50, -inf }
 0x465   : > { %8308 = vpow2.f32 %v5684_v40  ;;  %v5011_v29 = vsel %vm2158_vm8, %v12155_v41, -inf  ;;  %v6665_v18 = vadd.f32 %v6625_v31, %v11941_v19  ;;  %v5006_v46 = vmax.f32 %v5004_v43, %v5005_v28  ;;  %v12199_v40 = vpop.f32.mrb[29].mxu0 }
 0x466   : > { %8310 = vpow2.f32 %v5686_v58  ;;  %v5013_v8 = vsel %vm2158_vm8, %v12158_v13, -inf  ;;  %v6506_v47 = vrot.slane %v6505_v27, 1  ;;  %v5015_v16 = vsel %vm2158_vm8, %v12161_v52, -inf  ;;  %13715 = vst [vmem:[#allocation20_spill] sm:$0xff] %v12199_v40 }
 0x467   : > { %8312 = vpow2.f32 %v5688_v15  ;;  %v4407_v10 = vrot.slane %v12093_v22, 1  ;;  %v12183_v49 = vadd.f32 %v6703_v2, %v6665_v18  ;;  %v5008_v54 = vmax.f32 %v5006_v46, %v5007_v34 }
 0x468   : > { %v4408_v1 = vrot.slane %v12093_v22, 2  ;;  %v4409_v19 = vrot.slane %v12093_v22, 3  ;;  %v6507_v30 = vadd.f32 %v6506_v47, %v6505_v27  ;;  %v4410_v11 = vrot.slane %v12093_v22, 4 }
 0x469   : > { %v4411_v0 = vrot.slane %v12093_v22, 5  ;;  %v4412_v32 = vrot.slane %v12093_v22, 6  ;;  %v12192_v57 = vsel %vm2158_vm8, %v12183_v49, -inf  ;;  %v5010_v25 = vmax.f32 %v5008_v54, %v5009_v39 }
 0x46a   : > { %v8299_v48 = vpop.eup %8298  ;;  %v4413_v2 = vrot.slane %v12093_v22, 7  ;;  %v12197_v53 = vadd.f32 %v12093_v22, %v13699_v21  ;;  %8314 = vlog2.f32 %v6507_v30  ;;  %v12204_v15 = vadd.f32 %v4407_v10, %v13700_v23 }
 0x46b   : > { %v8301_v24 = vpop.eup %8300  ;;  %v12207_v5 = vadd.f32 %v4408_v1, %v13701_v17  ;;  %v5012_v59 = vmax.f32 %v5010_v25, %v5011_v29  ;;  %v12210_v28 = vadd.f32 %v4409_v19, %v13702_v35  ;;  %v12213_v22 = vadd.f32 %v4410_v11, %v13703_v51 }
 0x46c   : > { %v8303_v60 = vpop.eup %8302  ;;  %v6232_v26 = vrot.slane %v8301_v24, 7  ;;  %v12216_v34 = vadd.f32 %v4411_v0, %v13704_v3  ;;  %v12219_v27 = vadd.f32 %v4412_v32, %v13705_v12  ;;  %v12222_v39 = vadd.f32 %v4413_v2, %v13706_v42 }
 0x46d   : > { %v8305_v31 = vpop.eup %8304  ;;  %v6234_v43 = vrot.slane %v8303_v60, 6  ;;  %v5014_v47 = vmax.f32 %v5012_v59, %v5013_v8  ;;  %v5047_v10 = vsel %vm2158_vm8, %v12197_v53, -inf  ;;  %v5048_v30 = vsel %vm2158_vm8, %v12204_v15, -inf }
 0x46e   : > { %v8307_v18 = vpop.eup %8306  ;;  %v6233_v29 = vsel %vm3384_vm12, %v6232_v26, %v8299_v48  ;;  %v6236_v46 = vrot.slane %v8305_v31, 5  ;;  %v5050_v11 = vsel %vm2158_vm8, %v12207_v5, -inf  ;;  %v5049_v8 = vmax.f32 %v5047_v10, %v5048_v30 }
 0x46f   : > { %v8309_v54 = vpop.eup %8308  ;;  %v6235_v1 = vsel %vm3387_vm13, %v6234_v43, %v6233_v29  ;;  %v6238_v19 = vrot.slane %v8307_v18, 4  ;;  %v12233_v48 = vmax.f32 %v5014_v47, %v5015_v16  ;;  %v5052_v26 = vsel %vm2158_vm8, %v12210_v28, -inf }
 0x470   : > { %v8311_v0 = vpop.eup %8310  ;;  %v6237_v32 = vsel %vm3390_vm14, %v6236_v46, %v6235_v1  ;;  %v6240_v25 = vrot.slane %v8309_v54, 3  ;;  %v5054_v59 = vsel %vm2158_vm8, %v12213_v22, -inf  ;;  %v5051_v29 = vmax.f32 %v5049_v8, %v5050_v11 }
 0x471   : > { %v8313_v2 = vpop.eup %8312  ;;  %v6239_v24 = vsel %vm3393_vm15, %v6238_v19, %v6237_v32  ;;  %v6242_v60 = vrot.slane %v8311_v0, 2  ;;  %v5277_v18 = vrot.slane %v12233_v48, %v13611_v33  ;;  %v5056_v46 = vsel %vm2158_vm8, %v12216_v34, -inf }
 0x472   : > { %v6241_v31 = vsel %vm3396_vm0, %v6240_v25, %v6239_v24  ;;  %v6244_v43 = vrot.slane %v8313_v2, 1  ;;  %v5058_v47 = vsel %vm2158_vm8, %v12219_v27, -inf  ;;  %v5060_v10 = vsel %vm2158_vm8, %v12222_v39, -inf }
 0x473   : > { %v6243_v16 = vsel %vm3399_vm1, %v6242_v60, %v6241_v31  ;;  %v5402_v1 = vsub.f32 %v12108_v36, %v5277_v18  ;;  %v5403_v19 = vsub.f32 %v12111_v63, %v5277_v18  ;;  %v5404_v30 = vsub.f32 %v12116_v62, %v5277_v18 }
 0x474   : > { %v6245_v54 = vsel %vm3402_vm2, %v6244_v43, %v6243_v16  ;;  %v8315_v11 = vpop.eup %8314  ;;  %v5405_v32 = vsub.f32 %v12126_v4, %v5277_v18  ;;  %v5406_v25 = vsub.f32 %v12135_v50, %v5277_v18  ;;  %v5407_v8 = vsub.f32 %v12155_v41, %v5277_v18 }
 0x475   : > { %v6520_v0 = vrot.slane %v6245_v54, 4  ;;  %v6623_v2 = vmul.f32 0.6931472, %v8315_v11  ;;  %v5408_v24 = vsub.f32 %v12158_v13, %v5277_v18  ;;  %v5409_v60 = vsub.f32 %v12161_v52, %v5277_v18 }
 0x476   : > { %v5658_v31 = vmul.f32 1.442695, %v5402_v1  ;;  %v5660_v36 = vmul.f32 1.442695, %v5403_v19  ;;  %v5662_v16 = vmul.f32 1.442695, %v5404_v30  ;;  %v5053_v13 = vmax.f32 %v5051_v29, %v5052_v26 }
 0x477   : > { %v6521_v43 = vadd.f32 %v6520_v0, %v6245_v54  ;;  %v5664_v63 = vmul.f32 1.442695, %v5405_v32  ;;  %v6664_v62 = vadd.f32 %v6623_v2, %v12029_v37  ;;  %v5666_v58 = vmul.f32 1.442695, %v5406_v25 }
 0x478   : > { %8316 = vpow2.f32 %v5658_v31  ;;  %v5668_v40 = vmul.f32 1.442695, %v5407_v8  ;;  %v5670_v50 = vmul.f32 1.442695, %v5408_v24  ;;  %v5672_v20 = vmul.f32 1.442695, %v5409_v60 }
 0x479   : > { %v6522_v4 = vrot.slane %v6521_v43, 2  ;;  %8318 = vpow2.f32 %v5660_v36  ;;  %v13716_v41 = vrot.slane %v11682_v7, 6  ;;  %v4400_v52 = vrot.slane %v12096_v56, 1 }
 0x47a   : > { %8320 = vpow2.f32 %v5662_v16  ;;  %v4401_v54 = vrot.slane %v12096_v56, 2  ;;  %v4402_v37 = vrot.slane %v12096_v56, 3  ;;  %v5055_v19 = vmax.f32 %v5053_v13, %v5054_v59  ;;  %v12308_v16 = vpop.f32.mrb[30].mxu0  ;;  %v13721_v13 = vld [vmem:[#allocation23_spill] sm:$0xff] }
 0x47b   : > { %v6748_v11 = vadd.f32 %v13716_v41, %v6664_v62  ;;  %v6523_v18 = vadd.f32 %v6522_v4, %v6521_v43  ;;  %8322 = vpow2.f32 %v5664_v63  ;;  %v4403_v30 = vrot.slane %v12096_v56, 4  ;;  %v13718_v43 = vld [vmem:[#allocation13_spill] sm:$0xff]  ;;  %v13719_v62 = vld [vmem:[#allocation27_spill] sm:$0xff] }
 0x47c   : > { %8324 = vpow2.f32 %v5666_v58  ;;  %v4404_v26 = vrot.slane %v12096_v56, 5  ;;  %v5057_v29 = vmax.f32 %v5055_v19, %v5056_v46  ;;  %v4405_v32 = vrot.slane %v12096_v56, 6 }
 0x47d   : > { %v6776_v1 = vsel %vm2158_vm8, %v6748_v11, -inf  ;;  %v6524_v7 = vrot.slane %v6523_v18, 1  ;;  %8326 = vpow2.f32 %v5668_v40  ;;  %v4406_v25 = vrot.slane %v12096_v56, 7 }
 0x47e   : > { %v6777_v0 = vmax.f32 %v12140_v61, %v6776_v1  ;;  %8328 = vpow2.f32 %v5670_v50  ;;  %v13717_v8 = vmax.f32 %v11996_v45, %v12192_v57  ;;  %v12278_v61 = vadd.f32 %v12096_v56, %v13699_v21  ;;  %v13720_v50 = vld [vmem:[#allocation30_spill] sm:$0xff] }
 0x47f   : > { %v6525_v58 = vadd.f32 %v6524_v7, %v6523_v18  ;;  %8330 = vpow2.f32 %v5672_v20  ;;  %v5059_v40 = vmax.f32 %v5057_v29, %v5058_v47  ;;  %v12281_v59 = vadd.f32 %v4400_v52, %v13700_v23 }
 0x480   : > { %v12274_v2 = vmax.f32 %v6777_v0, %v13717_v8  ;;  %v12284_v46 = vadd.f32 %v4401_v54, %v13701_v17  ;;  %v12287_v24 = vadd.f32 %v4402_v37, %v13702_v35  ;;  %v12292_v20 = vadd.f32 %v4403_v30, %v13703_v51 }
 0x481   : > { %8332 = vlog2.f32 %v6525_v58  ;;  %v12295_v56 = vadd.f32 %v4404_v26, %v13704_v3  ;;  %v12297_v47 = vmax.f32 %v5059_v40, %v5060_v10  ;;  %v12300_v60 = vadd.f32 %v4405_v32, %v13705_v12  ;;  %v13722_v10 = vld [vmem:[#allocation14_spill] sm:$0xff] }
 0x482   : > { %v6814_v45 = vrot.slane %v12274_v2, %v13611_v33  ;;  %v8317_v57 = vpop.eup %8316  ;;  %v12303_v31 = vadd.f32 %v4406_v25, %v13706_v42  ;;  %v12306_v36 = vmul.f32 0.6931472, %v13718_v43  ;;  %vm4177_vm7 = vcmp.gt.f32.partialorder %v12001_v9, 0.0 }
 0x483   : > { %v8319_v63 = vpop.eup %8318  ;;  %v5289_v40 = vrot.slane %v12297_v47, %v13611_v33  ;;  %vm4176_vm9 = vcmp.gt.f32.partialorder %v12026_v38, 0.0  ;;  %vm4181_vm3 = vcmp.gt.f32.partialorder %v12308_v16, 0.0 }
 0x484   : > { %v6823_v4 = vsub.f32 %v13719_v62, %v6814_v45  ;;  %v6824_v41 = vsub.f32 %v13720_v50, %v6814_v45  ;;  %v6825_v52 = vsub.f32 %v13721_v13, %v6814_v45  ;;  %v6826_v18 = vsub.f32 %v13722_v10, %v6814_v45  ;;  %v8321_v54 = vpop.eup %8320 }
 0x485   : > { %v6827_v37 = vsub.f32 %v12122_v14, %v6814_v45  ;;  %v6828_v1 = vsub.f32 %v11986_v55, %v6814_v45  ;;  %v6829_v19 = vsub.f32 %v6748_v11, %v6814_v45  ;;  %v6830_v30 = vsub.f32 %v12183_v49, %v6814_v45  ;;  %v8323_v0 = vpop.eup %8322 }
 0x486   : > { %v6847_v7 = vmul.f32 1.442695, %v6823_v4  ;;  %v6849_v26 = vmul.f32 1.442695, %v6824_v41  ;;  %v6851_v29 = vmul.f32 1.442695, %v6825_v52  ;;  %v8325_v32 = vpop.eup %8324 }
 0x487   : > { %v6853_v25 = vmul.f32 1.442695, %v6826_v18  ;;  %v6855_v8 = vmul.f32 1.442695, %v6827_v37  ;;  %v6857_v58 = vmul.f32 1.442695, %v6828_v1  ;;  %v8327_v43 = vpop.eup %8326  ;;  %v5426_v37 = vsub.f32 %v12197_v53, %v5289_v40 }
 0x488   : > { %8334 = vpow2.f32 %v6847_v7  ;;  %v6859_v62 = vmul.f32 1.442695, %v6829_v19  ;;  %v6861_v14 = vmul.f32 1.442695, %v6830_v30  ;;  %v6218_v50 = vrot.slane %v8319_v63, 7  ;;  %v8329_v55 = vpop.eup %8328 }
 0x489   : > { %8336 = vpow2.f32 %v6849_v26  ;;  %v6220_v11 = vrot.slane %v8321_v54, 6  ;;  %v6222_v49 = vrot.slane %v8323_v0, 5  ;;  %v6224_v45 = vrot.slane %v8325_v32, 4  ;;  %v8331_v4 = vpop.eup %8330 }
 0x48a   : > { %8338 = vpow2.f32 %v6851_v29  ;;  %v6219_v41 = vsel %vm3384_vm12, %v6218_v50, %v8317_v57  ;;  %v6226_v13 = vrot.slane %v8327_v43, 3  ;;  %v6228_v52 = vrot.slane %v8329_v55, 2 }
 0x48b   : > { %8340 = vpow2.f32 %v6853_v25  ;;  %v6221_v10 = vsel %vm3387_vm13, %v6220_v11, %v6219_v41  ;;  %v6230_v18 = vrot.slane %v8331_v4, 1  ;;  %v8333_v1 = vpop.eup %8332  ;;  %v5427_v54 = vsub.f32 %v12204_v15, %v5289_v40 }
 0x48c   : > { %8342 = vpow2.f32 %v6855_v8  ;;  %v6223_v63 = vsel %vm3390_vm14, %v6222_v49, %v6221_v10  ;;  %v5428_v19 = vsub.f32 %v12207_v5, %v5289_v40  ;;  %v6629_v30 = vmul.f32 0.6931472, %v8333_v1 }
 0x48d   : > { %8344 = vpow2.f32 %v6857_v58  ;;  %v6225_v57 = vsel %vm3393_vm15, %v6224_v45, %v6223_v63  ;;  %v5429_v0 = vsub.f32 %v12210_v28, %v5289_v40  ;;  %v5430_v26 = vsub.f32 %v12213_v22, %v5289_v40  ;;  %v13723_v22 = vld [vmem:[#allocation3_spill] sm:$0xff] }
 0x48e   : > { %8346 = vpow2.f32 %v6859_v62  ;;  %v6227_v7 = vsel %vm3396_vm0, %v6226_v13, %v6225_v57  ;;  %v5431_v53 = vsub.f32 %v12216_v34, %v5289_v40  ;;  %v12331_v29 = vadd.f32 %v6629_v30, %v12113_v44 }
 0x48f   : > { %8348 = vpow2.f32 %v6861_v14  ;;  %v6229_v15 = vsel %vm3399_vm1, %v6228_v52, %v6227_v7  ;;  %v5432_v5 = vsub.f32 %v12219_v27, %v5289_v40  ;;  %v5433_v25 = vsub.f32 %v12222_v39, %v5289_v40 }
 0x490   : > { %v6231_v32 = vsel %vm3402_vm2, %v6230_v18, %v6229_v15  ;;  %v5706_v28 = vmul.f32 1.442695, %v5426_v37  ;;  %v5708_v8 = vmul.f32 1.442695, %v5427_v54  ;;  %v5710_v43 = vmul.f32 1.442695, %v5428_v19 }
 0x491   : > { %v6514_v58 = vrot.slane %v6231_v32, 4  ;;  %v5712_v62 = vmul.f32 1.442695, %v5429_v0  ;;  %vm4175_vm5 = vcmp.gt.f32.partialorder %v13723_v22, 0.0  ;;  %v5714_v14 = vmul.f32 1.442695, %v5430_v26 }
 0x492   : > { %v8335_v34 = vpop.eup %8334  ;;  %8350 = vpow2.f32 %v5706_v28  ;;  %v5716_v44 = vmul.f32 1.442695, %v5431_v53  ;;  %v5032_v50 = vsel %vm2158_vm8, %v12278_v61, -inf  ;;  %v5718_v11 = vmul.f32 1.442695, %v5432_v5 }
 0x493   : > { %v8337_v55 = vpop.eup %8336  ;;  %v6515_v27 = vadd.f32 %v6514_v58, %v6231_v32  ;;  %8352 = vpow2.f32 %v5708_v8  ;;  %v5720_v49 = vmul.f32 1.442695, %v5433_v25  ;;  %v5033_v45 = vsel %vm2158_vm8, %v12281_v59, -inf }
 0x494   : > { %v8339_v39 = vpop.eup %8338  ;;  %v6919_v40 = vrot.slane %v8337_v55, 7  ;;  %8354 = vpow2.f32 %v5710_v43  ;;  %v5035_v4 = vsel %vm2158_vm8, %v12284_v46, -inf  ;;  %v5034_v10 = vmax.f32 %v5032_v50, %v5033_v45 }
 0x495   : > { %v8341_v41 = vpop.eup %8340  ;;  %v6921_v13 = vrot.slane %v8339_v39, 6  ;;  %v6516_v52 = vrot.slane %v6515_v27, 2  ;;  %8356 = vpow2.f32 %v5712_v62  ;;  %v5037_v63 = vsel %vm2158_vm8, %v12287_v24, -inf }
 0x496   : > { %v8343_v18 = vpop.eup %8342  ;;  %v6920_v37 = vsel %vm3384_vm12, %v6919_v40, %v8335_v34  ;;  %v6923_v1 = vrot.slane %v8341_v41, 5  ;;  %8358 = vpow2.f32 %v5714_v14  ;;  %v5036_v53 = vmax.f32 %v5034_v10, %v5035_v4 }
 0x497   : > { %v8345_v54 = vpop.eup %8344  ;;  %v6922_v19 = vsel %vm3387_vm13, %v6921_v13, %v6920_v37  ;;  %v6925_v30 = vrot.slane %v8343_v18, 4  ;;  %v6517_v57 = vadd.f32 %v6516_v52, %v6515_v27  ;;  %8360 = vpow2.f32 %v5716_v44 }
 0x498   : > { %v8347_v0 = vpop.eup %8346  ;;  %v6924_v7 = vsel %vm3390_vm14, %v6923_v1, %v6922_v19  ;;  %v6927_v26 = vrot.slane %v8345_v54, 3  ;;  %8362 = vpow2.f32 %v5718_v11  ;;  %v5038_v58 = vmax.f32 %v5036_v53, %v5037_v63  ;;  %v12369_v54 = vpop.f32.mrb[31].mxu0 }
 0x499   : > { %v8349_v15 = vpop.eup %8348  ;;  %v6926_v5 = vsel %vm3393_vm15, %v6925_v30, %v6924_v7  ;;  %v6929_v32 = vrot.slane %v8347_v0, 2  ;;  %v6518_v25 = vrot.slane %v6517_v57, 1  ;;  %8364 = vpow2.f32 %v5720_v49  ;;  %13724 = vst [vmem:[#allocation29_spill] sm:$0xff] %v12369_v54 }
 0x49a   : > { %v6928_v28 = vsel %vm3396_vm0, %v6927_v26, %v6926_v5  ;;  %v6931_v8 = vrot.slane %v8349_v15, 1  ;;  %v5039_v34 = vsel %vm2158_vm8, %v12292_v20, -inf  ;;  %v4271_v55 = vsel %vm4175_vm5, %v12306_v36, -1e+09 }
 0x49b   : > { %v6930_v43 = vsel %vm3399_vm1, %v6929_v32, %v6928_v28  ;;  %v6519_v62 = vadd.f32 %v6518_v25, %v6517_v57  ;;  %v5040_v50 = vmax.f32 %v5038_v58, %v5039_v34  ;;  %v5041_v49 = vsel %vm2158_vm8, %v12295_v56, -inf }
 0x49c   : > { %v8351_v14 = vpop.eup %8350  ;;  %v6932_v44 = vsel %vm3402_vm2, %v6931_v8, %v6930_v43  ;;  %v12361_v39 = vadd.f32 %v4271_v55, %v13665_v6  ;;  %v5043_v10 = vsel %vm2158_vm8, %v12300_v60, -inf  ;;  %v5045_v36 = vsel %vm2158_vm8, %v12303_v31, -inf }
 0x49d   : > { %v8353_v27 = vpop.eup %8352  ;;  %v6964_v11 = vrot.slane %v6932_v44, 4  ;;  %8366 = vlog2.f32 %v6519_v62  ;;  %v5042_v4 = vmax.f32 %v5040_v50, %v5041_v49 }
 0x49e   : > { %v8355_v40 = vpop.eup %8354  ;;  %v6260_v45 = vrot.slane %v8353_v27, 7  ;;  %v4421_v63 = vrot.slane %v12361_v39, 1  ;;  %v4422_v7 = vrot.slane %v12361_v39, 2  ;;  %v4423_v32 = vrot.slane %v12361_v39, 3 }
 0x49f   : > { %v8357_v41 = vpop.eup %8356  ;;  %v6965_v13 = vadd.f32 %v6964_v11, %v6932_v44  ;;  %v6262_v52 = vrot.slane %v8355_v40, 6  ;;  %v5044_v1 = vmax.f32 %v5042_v4, %v5043_v10  ;;  %v4424_v43 = vrot.slane %v12361_v39, 4 }
 0x4a0   : > { %v8359_v22 = vpop.eup %8358  ;;  %v6261_v18 = vsel %vm3384_vm12, %v6260_v45, %v8351_v14  ;;  %v6264_v37 = vrot.slane %v8357_v41, 5  ;;  %v4425_v44 = vrot.slane %v12361_v39, 5  ;;  %v12386_v27 = vadd.f32 %v12361_v39, %v13699_v21 }
 0x4a1   : > { %v8361_v19 = vpop.eup %8360  ;;  %v6966_v30 = vrot.slane %v6965_v13, 2  ;;  %v6263_v57 = vsel %vm3387_vm13, %v6262_v52, %v6261_v18  ;;  %v6266_v0 = vrot.slane %v8359_v22, 4  ;;  %v12374_v5 = vmax.f32 %v5044_v1, %v5045_v36 }
 0x4a2   : > { %v8363_v26 = vpop.eup %8362  ;;  %v6265_v53 = vsel %vm3390_vm14, %v6264_v37, %v6263_v57  ;;  %v6268_v15 = vrot.slane %v8361_v19, 3  ;;  %v12389_v11 = vadd.f32 %v4421_v63, %v13700_v23  ;;  %v4426_v57 = vrot.slane %v12361_v39, 6 }
 0x4a3   : > { %v8365_v25 = vpop.eup %8364  ;;  %v6967_v28 = vadd.f32 %v6966_v30, %v6965_v13  ;;  %v6267_v8 = vsel %vm3393_vm15, %v6266_v0, %v6265_v53  ;;  %v6270_v58 = vrot.slane %v8363_v26, 2  ;;  %v5285_v14 = vrot.slane %v12374_v5, %v13611_v33 }
 0x4a4   : > { %v6269_v62 = vsel %vm3396_vm0, %v6268_v15, %v6267_v8  ;;  %v6272_v34 = vrot.slane %v8365_v25, 1  ;;  %v4427_v0 = vrot.slane %v12361_v39, 7  ;;  %v12407_v53 = vadd.f32 %v4423_v32, %v13702_v35 }
 0x4a5   : > { %v6968_v50 = vrot.slane %v6967_v28, 1  ;;  %v6271_v55 = vsel %vm3399_vm1, %v6270_v58, %v6269_v62  ;;  %v5418_v40 = vsub.f32 %v12278_v61, %v5285_v14  ;;  %v5419_v45 = vsub.f32 %v12281_v59, %v5285_v14  ;;  %v13726_v58 = vld [vmem:[#allocation6_spill] sm:$0xff] }
 0x4a6   : > { %v6273_v49 = vsel %vm3402_vm2, %v6272_v34, %v6271_v55  ;;  %v5420_v4 = vsub.f32 %v12284_v46, %v5285_v14  ;;  %v5421_v10 = vsub.f32 %v12287_v24, %v5285_v14  ;;  %v5422_v36 = vsub.f32 %v12292_v20, %v5285_v14  ;;  %v13727_v34 = vld [vmem:[#allocation19_spill] sm:$0xff] }
 0x4a7   : > { %v8367_v41 = vpop.eup %8366  ;;  %v6969_v13 = vadd.f32 %v6968_v50, %v6967_v28  ;;  %v6532_v52 = vrot.slane %v6273_v49, 4  ;;  %v5423_v18 = vsub.f32 %v12295_v56, %v5285_v14  ;;  %v5424_v37 = vsub.f32 %v12300_v60, %v5285_v14  ;;  %v12418_v28 = vpop.permute.xlu0 %6695 }
 0x4a8   : > { %v6627_v22 = vmul.f32 0.6931472, %v8367_v41  ;;  %v5425_v1 = vsub.f32 %v12303_v31, %v5285_v14  ;;  %v5690_v63 = vmul.f32 1.442695, %v5418_v40  ;;  %v5692_v59 = vmul.f32 1.442695, %v5419_v45 }
 0x4a9   : > { %8368 = vlog2.f32 %v6969_v13  ;;  %v6533_v61 = vadd.f32 %v6532_v52, %v6273_v49  ;;  %v5694_v19 = vmul.f32 1.442695, %v5420_v4  ;;  %v5696_v30 = vmul.f32 1.442695, %v5421_v10  ;;  %13725 = vst [vmem:[#allocation28_spill] sm:$0xff] %v12418_v28 }
 0x4aa   : > { %v6666_v46 = vadd.f32 %v6627_v22, %v12233_v48  ;;  %8370 = vpow2.f32 %v5690_v63  ;;  %v5698_v20 = vmul.f32 1.442695, %v5422_v36  ;;  %v5700_v56 = vmul.f32 1.442695, %v5423_v18 }
 0x4ab   : > { %v6534_v24 = vrot.slane %v6533_v61, 2  ;;  %8372 = vpow2.f32 %v5692_v59  ;;  %v5702_v60 = vmul.f32 1.442695, %v5424_v37  ;;  %v12404_v31 = vadd.f32 %v4422_v7, %v13701_v17 }
 0x4ac   : > { %8374 = vpow2.f32 %v5694_v19  ;;  %v12410_v48 = vadd.f32 %v4424_v43, %v13703_v51  ;;  %v5704_v15 = vmul.f32 1.442695, %v5425_v1  ;;  %v12413_v25 = vadd.f32 %v4425_v44, %v13704_v3 }
 0x4ad   : > { %v6535_v26 = vadd.f32 %v6534_v24, %v6533_v61  ;;  %8376 = vpow2.f32 %v5696_v30  ;;  %v12416_v39 = vadd.f32 %v4426_v57, %v13705_v12  ;;  %v12421_v8 = vadd.f32 %v4427_v0, %v13706_v42 }
 0x4ae   : > { %8378 = vpow2.f32 %v5698_v20  ;;  %v5077_v32 = vsel %vm2158_vm8, %v12386_v27, -inf  ;;  %v6704_v43 = vrot.slane %v13726_v58, 1  ;;  %v5078_v62 = vsel %vm2158_vm8, %v12389_v11, -inf }
 0x4af   : > { %v6536_v7 = vrot.slane %v6535_v26, 1  ;;  %8380 = vpow2.f32 %v5700_v56  ;;  %v4198_v14 = vmax.f32 %v13727_v34, 1e-30  ;;  %v5079_v50 = vmax.f32 %v5077_v32, %v5078_v62 }
 0x4b0   : > { %8382 = vpow2.f32 %v5702_v60  ;;  %v4201_v55 = vmax.f32 %v12001_v9, 1e-30  ;;  %v5080_v40 = vsel %vm2158_vm8, %v12404_v31, -inf  ;;  %v12435_v41 = vadd.f32 %v6704_v43, %v12331_v29 }
 0x4b1   : > { %v6537_v44 = vadd.f32 %v6536_v7, %v6535_v26  ;;  %8384 = vpow2.f32 %v5704_v15  ;;  %v5081_v13 = vmax.f32 %v5079_v50, %v5080_v40  ;;  %v5082_v36 = vsel %vm2158_vm8, %v12407_v53, -inf  ;;  %v13731_v15 = vld [vmem:[#allocation2_spill] sm:$0xff] }
 0x4b2   : > { %13728 = vst [vmem:[#allocation5_spill] sm:$0xff] %v12435_v41  ;;  %v6706_v18 = vrot.slane %v13726_v58, 3  ;;  %v5084_v59 = vsel %vm2158_vm8, %v12410_v48, -inf  ;;  %v4200_v19 = vmax.f32 %v12026_v38, 1e-30  ;;  %v12451_v57 = vsel %vm2158_vm8, %v12435_v41, -inf }
 0x4b3   : > { %v8369_v45 = vpop.eup %8368  ;;  %8386 = vlog2.f32 %v6537_v44  ;;  %v5083_v1 = vmax.f32 %v5081_v13, %v5082_v36  ;;  %v12454_v24 = vadd.f32 %v13726_v58, %v6666_v46  ;;  %v5088_v26 = vsel %vm2158_vm8, %v12416_v39, -inf  ;;  %v13732_v44 = vld [vmem:[#allocation20_spill] sm:$0xff] }
 0x4b4   : > { %v6983_v10 = vmul.f32 0.6931472, %v8369_v45  ;;  %8388 = vlog2.f32 %v4198_v14  ;;  %v8371_v22 = vpop.eup %8370  ;;  %v4203_v7 = vmax.f32 %v13731_v15, 1e-30  ;;  %v4202_v46 = vmax.f32 %v13732_v44, 1e-30 }
 0x4b5   : > { %8390 = vlog2.f32 %v4201_v55  ;;  %v8373_v61 = vpop.eup %8372  ;;  %13730 = vst [vmem:[#allocation10_spill] sm:$0xff] %v12454_v24  ;;  %v5085_v0 = vmax.f32 %v5083_v1, %v5084_v59  ;;  %v4205_v45 = vmax.f32 %v12308_v16, 1e-30  ;;  %vm4174_vm6 = vcmp.gt.f32.partialorder %v13727_v34, 0.0 }
 0x4b6   : > { %v12444_v63 = vadd.f32 %v6983_v10, %v12274_v2  ;;  %v8375_v30 = vpop.eup %8374  ;;  %v6246_v20 = vrot.slane %v8373_v61, 7  ;;  %v5086_v2 = vsel %vm2158_vm8, %v12413_v25, -inf  ;;  %8392 = vlog2.f32 %v4200_v19 }
 0x4b7   : > { %v8377_v56 = vpop.eup %8376  ;;  %v6248_v60 = vrot.slane %v8375_v30, 6  ;;  %v5087_v14 = vmax.f32 %v5085_v0, %v5086_v2  ;;  %v4204_v61 = vmax.f32 %v12369_v54, 1e-30  ;;  %8394 = vlog2.f32 %v4203_v7 }
 0x4b8   : > { %13729 = vst [vmem:[#allocation4_spill] sm:$0xff] %v12444_v63  ;;  %v8379_v32 = vpop.eup %8378  ;;  %v6247_v43 = vsel %vm3384_vm12, %v6246_v20, %v8371_v22  ;;  %v6250_v62 = vrot.slane %v8377_v56, 5  ;;  %v5090_v20 = vsel %vm2158_vm8, %v12421_v8, -inf  ;;  %8396 = vlog2.f32 %v4202_v46 }
 0x4b9   : > { %v8381_v50 = vpop.eup %8380  ;;  %v6249_v55 = vsel %vm3387_vm13, %v6248_v60, %v6247_v43  ;;  %v6252_v40 = vrot.slane %v8379_v32, 4  ;;  %v5089_v1 = vmax.f32 %v5087_v14, %v5088_v26  ;;  %8398 = vlog2.f32 %v4205_v45  ;;  %v12476_v43 = vpop.f32.mrb[32].mxu0 }
 0x4ba   : > { %v8383_v13 = vpop.eup %8382  ;;  %v6251_v10 = vsel %vm3390_vm14, %v6250_v62, %v6249_v55  ;;  %v6254_v36 = vrot.slane %v8381_v50, 3  ;;  %13733 = vst [vmem:[#allocation9_spill] sm:$0xff] %v12476_v43  ;;  %v12480_v7 = vsel %vm2158_vm8, %v12454_v24, -inf  ;;  %8400 = vlog2.f32 %v4204_v61 }
 0x4bb   : > { %v8385_v59 = vpop.eup %8384  ;;  %v6253_v22 = vsel %vm3393_vm15, %v6252_v40, %v6251_v10  ;;  %v6256_v30 = vrot.slane %v8383_v13, 2  ;;  %v12472_v60 = vmax.f32 %v5089_v1, %v5090_v20  ;;  %vm4179_vm10 = vcmp.gt.f32.partialorder %v13731_v15, 0.0 }
 0x4bc   : > { %v6255_v0 = vsel %vm3396_vm0, %v6254_v36, %v6253_v22  ;;  %v6258_v56 = vrot.slane %v8385_v59, 1  ;;  %vm4178_vm11 = vcmp.gt.f32.partialorder %v13732_v44, 0.0 }
 0x4bd   : > { %v8387_v19 = vpop.eup %8386  ;;  %v6257_v32 = vsel %vm3399_vm1, %v6256_v30, %v6255_v0  ;;  %v5297_v50 = vrot.slane %v12472_v60, %v13611_v33 }
 0x4be   : > { %v8389_v2 = vpop.eup %8388  ;;  %v6633_v26 = vmul.f32 0.6931472, %v8387_v19  ;;  %v6259_v14 = vsel %vm3402_vm2, %v6258_v56, %v6257_v32 }
 0x4bf   : > { %v8391_v62 = vpop.eup %8390  ;;  %v6526_v55 = vrot.slane %v6259_v14, 4  ;;  %v4235_v40 = vmul.f32 0.6931472, %v8389_v2  ;;  %v5442_v45 = vsub.f32 %v12386_v27, %v5297_v50  ;;  %v5443_v10 = vsub.f32 %v12389_v11, %v5297_v50 }
 0x4c0   : > { %v6669_v46 = vadd.f32 %v6633_v26, %v12297_v47  ;;  %v4241_v13 = vmul.f32 0.6931472, %v8391_v62  ;;  %v5444_v36 = vsub.f32 %v12404_v31, %v5297_v50  ;;  %v5445_v1 = vsub.f32 %v12407_v53, %v5297_v50  ;;  %v8393_v11 = vpop.eup %8392 }
 0x4c1   : > { %v6527_v22 = vadd.f32 %v6526_v55, %v6259_v14  ;;  %v5446_v61 = vsub.f32 %v12410_v48, %v5297_v50  ;;  %v5447_v47 = vsub.f32 %v12413_v25, %v5297_v50  ;;  %v5448_v30 = vsub.f32 %v12416_v39, %v5297_v50  ;;  %v8395_v25 = vpop.eup %8394 }
 0x4c2   : > { %v12492_v59 = vadd.f32 %v6706_v18, %v6669_v46  ;;  %v5449_v20 = vsub.f32 %v12421_v8, %v5297_v50  ;;  %v5738_v27 = vmul.f32 1.442695, %v5442_v45  ;;  %v5740_v19 = vmul.f32 1.442695, %v5443_v10  ;;  %v8397_v26 = vpop.eup %8396 }
 0x4c3   : > { %v6528_v53 = vrot.slane %v6527_v22, 2  ;;  %v5742_v0 = vmul.f32 1.442695, %v5444_v36  ;;  %v5744_v18 = vmul.f32 1.442695, %v5445_v1  ;;  %v12509_v50 = vpop.eup %8398 }
 0x4c4   : > { %13734 = vst [vmem:[#allocation25_spill] sm:$0xff] %v12492_v59  ;;  %v12500_v31 = vsel %vm2158_vm8, %v12492_v59, -inf  ;;  %8402 = vpow2.f32 %v5738_v27  ;;  %v5746_v48 = vmul.f32 1.442695, %v5446_v61  ;;  %v5748_v8 = vmul.f32 1.442695, %v5447_v47  ;;  %v12512_v10 = vpop.eup %8400 }
 0x4c5   : > { %v6529_v39 = vadd.f32 %v6528_v53, %v6527_v22  ;;  %8404 = vpow2.f32 %v5740_v19  ;;  %v5750_v2 = vmul.f32 1.442695, %v5448_v30  ;;  %v4270_v32 = vsel %vm4174_vm6, %v4235_v40, -1e+09 }
 0x4c6   : > { %8406 = vpow2.f32 %v5742_v0  ;;  %v4273_v62 = vsel %vm4177_vm7, %v4241_v13, -1e+09  ;;  %v4239_v14 = vmul.f32 0.6931472, %v8393_v11  ;;  %v5752_v55 = vmul.f32 1.442695, %v5449_v20 }
 0x4c7   : > { %v6530_v46 = vrot.slane %v6529_v39, 1  ;;  %8408 = vpow2.f32 %v5744_v18  ;;  %v4294_v45 = vadd.f32 %v4270_v32, %v13665_v6  ;;  %v12515_v36 = vadd.f32 %v4273_v62, %v13665_v6 }
 0x4c8   : > { %8410 = vpow2.f32 %v5746_v48  ;;  %v12519_v34 = vsel %vm4176_vm9, %v4239_v14, -1e+09  ;;  %v12521_v9 = vmul.f32 0.6931472, %v8395_v25  ;;  %v12553_v32 = vmul.f32 0.6931472, %v8397_v26 }
 0x4c9   : > { %v6531_v40 = vadd.f32 %v6530_v46, %v6529_v39  ;;  %8412 = vpow2.f32 %v5748_v8  ;;  %v4414_v13 = vrot.slane %v4294_v45, 1  ;;  %v4415_v1 = vrot.slane %v4294_v45, 2 }
 0x4ca   : > { %8414 = vpow2.f32 %v5750_v2  ;;  %v4416_v22 = vrot.slane %v4294_v45, 3  ;;  %v4417_v61 = vrot.slane %v4294_v45, 4  ;;  %v4418_v47 = vrot.slane %v4294_v45, 5 }
 0x4cb   : > { %8416 = vlog2.f32 %v6531_v40  ;;  %v4419_v30 = vrot.slane %v4294_v45, 6  ;;  %v4420_v20 = vrot.slane %v4294_v45, 7  ;;  %v12524_v27 = vadd.f32 %v4294_v45, %v13699_v21 }
 0x4cc   : > { %8418 = vpow2.f32 %v5752_v55  ;;  %v12527_v38 = vadd.f32 %v4414_v13, %v13700_v23  ;;  %v12530_v19 = vadd.f32 %v4415_v1, %v13701_v17  ;;  %v12533_v11 = vadd.f32 %v4416_v22, %v13702_v35 }
 0x4cd   : > { %v12536_v53 = vadd.f32 %v4417_v61, %v13703_v51  ;;  %v12539_v0 = vadd.f32 %v4418_v47, %v13704_v3  ;;  %v12542_v18 = vadd.f32 %v4419_v30, %v13705_v12  ;;  %v12545_v48 = vadd.f32 %v4420_v20, %v13706_v42 }
 0x4ce   : > { %v8403_v25 = vpop.eup %8402  ;;  %v5062_v39 = vsel %vm2158_vm8, %v12524_v27, -inf  ;;  %v5063_v8 = vsel %vm2158_vm8, %v12527_v38, -inf  ;;  %v5065_v2 = vsel %vm2158_vm8, %v12530_v19, -inf  ;;  %v5067_v46 = vsel %vm2158_vm8, %v12533_v11, -inf }
 0x4cf   : > { %v8405_v62 = vpop.eup %8404  ;;  %v5064_v14 = vmax.f32 %v5062_v39, %v5063_v8  ;;  %v5069_v55 = vsel %vm2158_vm8, %v12536_v53, -inf  ;;  %v5071_v45 = vsel %vm2158_vm8, %v12539_v0, -inf  ;;  %v5073_v1 = vsel %vm2158_vm8, %v12542_v18, -inf }
 0x4d0   : > { %v8407_v40 = vpop.eup %8406  ;;  %v6288_v13 = vrot.slane %v8405_v62, 7  ;;  %v4435_v22 = vrot.slane %v12515_v36, 1  ;;  %v4436_v26 = vrot.slane %v12515_v36, 2  ;;  %v4437_v20 = vrot.slane %v12515_v36, 3 }
 0x4d1   : > { %v8409_v61 = vpop.eup %8408  ;;  %v6290_v47 = vrot.slane %v8407_v40, 6  ;;  %v5066_v30 = vmax.f32 %v5064_v14, %v5065_v2  ;;  %v4438_v39 = vrot.slane %v12515_v36, 4  ;;  %v4439_v62 = vrot.slane %v12515_v36, 5 }
 0x4d2   : > { %v8411_v8 = vpop.eup %8410  ;;  %v6289_v4 = vsel %vm3384_vm12, %v6288_v13, %v8403_v25  ;;  %v6292_v49 = vrot.slane %v8409_v61, 5  ;;  %v4440_v37 = vrot.slane %v12515_v36, 6  ;;  %v4441_v2 = vrot.slane %v12515_v36, 7 }
 0x4d3   : > { %v8413_v56 = vpop.eup %8412  ;;  %v6291_v29 = vsel %vm3387_vm13, %v6290_v47, %v6289_v4  ;;  %v6294_v52 = vrot.slane %v8411_v8, 4  ;;  %v5068_v40 = vmax.f32 %v5066_v30, %v5067_v46  ;;  %v12576_v25 = vadd.f32 %v12515_v36, %v13699_v21  ;;  %v12592_v36 = vpop.f32.mrb[33].mxu0 }
 0x4d4   : > { %v8415_v14 = vpop.eup %8414  ;;  %v6293_v63 = vsel %vm3390_vm14, %v6292_v49, %v6291_v29  ;;  %v6296_v28 = vrot.slane %v8413_v56, 3  ;;  %v12579_v13 = vadd.f32 %v4435_v22, %v13700_v23  ;;  %v12583_v46 = vadd.f32 %v4436_v26, %v13701_v17  ;;  %13735 = vst [vmem:[#allocation16_spill] sm:$0xff] %v12592_v36 }
 0x4d5   : > { %v8417_v61 = vpop.eup %8416  ;;  %v6295_v59 = vsel %vm3393_vm15, %v6294_v52, %v6293_v63  ;;  %v6298_v41 = vrot.slane %v8415_v14, 2  ;;  %v5070_v4 = vmax.f32 %v5068_v40, %v5069_v55  ;;  %v12587_v29 = vadd.f32 %v4437_v20, %v13702_v35 }
 0x4d6   : > { %v8419_v47 = vpop.eup %8418  ;;  %v6631_v30 = vmul.f32 0.6931472, %v8417_v61  ;;  %v6297_v49 = vsel %vm3396_vm0, %v6296_v28, %v6295_v59  ;;  %v12590_v56 = vadd.f32 %v4438_v39, %v13703_v51  ;;  %v12596_v55 = vadd.f32 %v4439_v62, %v13704_v3 }
 0x4d7   : > { %v6299_v22 = vsel %vm3399_vm1, %v6298_v41, %v6297_v49  ;;  %v6300_v52 = vrot.slane %v8419_v47, 1  ;;  %v5072_v63 = vmax.f32 %v5070_v4, %v5071_v45  ;;  %v12600_v8 = vadd.f32 %v4440_v37, %v13705_v12 }
 0x4d8   : > { %v6668_v26 = vadd.f32 %v6631_v30, %v12374_v5  ;;  %v12603_v28 = vadd.f32 %v4441_v2, %v13706_v42  ;;  %v5107_v59 = vsel %vm2158_vm8, %v12576_v25, -inf  ;;  %v5075_v41 = vsel %vm2158_vm8, %v12545_v48, -inf }
 0x4d9   : > { %v6301_v20 = vsel %vm3402_vm2, %v6300_v52, %v6299_v22  ;;  %v5074_v39 = vmax.f32 %v5072_v63, %v5073_v1  ;;  %v5108_v45 = vsel %vm2158_vm8, %v12579_v13, -inf  ;;  %v13736_v5 = vrot.slane %v13726_v58, 2 }
 0x4da   : > { %v6544_v37 = vrot.slane %v6301_v20, 4  ;;  %v5109_v40 = vmax.f32 %v5107_v59, %v5108_v45  ;;  %v5110_v2 = vsel %vm2158_vm8, %v12583_v46, -inf  ;;  %v5112_v1 = vsel %vm2158_vm8, %v12587_v29, -inf }
 0x4db   : > { %v12614_v62 = vadd.f32 %v13736_v5, %v6668_v26  ;;  %v12618_v14 = vmax.f32 %v5074_v39, %v5075_v41  ;;  %v5114_v61 = vsel %vm2158_vm8, %v12590_v56, -inf  ;;  %v5116_v4 = vsel %vm2158_vm8, %v12596_v55, -inf }
 0x4dc   : > { %v6545_v30 = vadd.f32 %v6544_v37, %v6301_v20  ;;  %v5111_v49 = vmax.f32 %v5109_v40, %v5110_v2  ;;  %v5118_v22 = vsel %vm2158_vm8, %v12600_v8, -inf  ;;  %v5120_v26 = vsel %vm2158_vm8, %v12603_v28, -inf }
 0x4dd   : > { %13737 = vst [vmem:[#allocation17_spill] sm:$0xff] %v12614_v62  ;;  %v12628_v47 = vsel %vm2158_vm8, %v12614_v62, -inf  ;;  %v5293_v63 = vrot.slane %v12618_v14, %v13611_v33  ;;  %v4275_v59 = vsel %vm4179_vm10, %v12521_v9, -1e+09  ;;  %v4296_v20 = vadd.f32 %v12519_v34, %v13665_v6 }
 0x4de   : > { %v6546_v39 = vrot.slane %v6545_v30, 2  ;;  %v5113_v41 = vmax.f32 %v5111_v49, %v5112_v1  ;;  %v12644_v45 = vadd.f32 %v4275_v59, %v13665_v6 }
 0x4df   : > { %v5434_v5 = vsub.f32 %v12524_v27, %v5293_v63  ;;  %v5435_v37 = vsub.f32 %v12527_v38, %v5293_v63  ;;  %v5436_v40 = vsub.f32 %v12530_v19, %v5293_v63  ;;  %v5437_v2 = vsub.f32 %v12533_v11, %v5293_v63 }
 0x4e0   : > { %v6547_v52 = vadd.f32 %v6546_v39, %v6545_v30  ;;  %v5438_v15 = vsub.f32 %v12536_v53, %v5293_v63  ;;  %v5439_v9 = vsub.f32 %v12539_v0, %v5293_v63  ;;  %v5440_v1 = vsub.f32 %v12542_v18, %v5293_v63 }
 0x4e1   : > { %v5441_v34 = vsub.f32 %v12545_v48, %v5293_v63  ;;  %v5722_v49 = vmul.f32 1.442695, %v5434_v5  ;;  %v5724_v59 = vmul.f32 1.442695, %v5435_v37  ;;  %v5726_v36 = vmul.f32 1.442695, %v5436_v40 }
 0x4e2   : > { %v6548_v62 = vrot.slane %v6547_v52, 1  ;;  %v5728_v27 = vmul.f32 1.442695, %v5437_v2  ;;  %v5730_v24 = vmul.f32 1.442695, %v5438_v15  ;;  %v5115_v38 = vmax.f32 %v5113_v41, %v5114_v61 }
 0x4e3   : > { %8420 = vpow2.f32 %v5722_v49  ;;  %v5732_v19 = vmul.f32 1.442695, %v5439_v9  ;;  %v5734_v43 = vmul.f32 1.442695, %v5440_v1  ;;  %v5736_v11 = vmul.f32 1.442695, %v5441_v34 }
 0x4e4   : > { %v6549_v30 = vadd.f32 %v6548_v62, %v6547_v52  ;;  %8422 = vpow2.f32 %v5724_v59  ;;  %v5117_v53 = vmax.f32 %v5115_v38, %v5116_v4  ;;  %v4428_v39 = vrot.slane %v4296_v20, 1 }
 0x4e5   : > { %8424 = vpow2.f32 %v5726_v36  ;;  %v4429_v0 = vrot.slane %v4296_v20, 2  ;;  %v4430_v18 = vrot.slane %v4296_v20, 3  ;;  %v4431_v54 = vrot.slane %v4296_v20, 4 }
 0x4e6   : > { %8426 = vlog2.f32 %v6549_v30  ;;  %v5119_v48 = vmax.f32 %v5117_v53, %v5118_v22  ;;  %v4432_v63 = vrot.slane %v4296_v20, 5  ;;  %v4433_v5 = vrot.slane %v4296_v20, 6  ;;  %v12701_v53 = vpop.f32.mrb[34].mxu0 }
 0x4e7   : > { %8428 = vpow2.f32 %v5728_v27  ;;  %v4434_v37 = vrot.slane %v4296_v20, 7  ;;  %v12655_v61 = vadd.f32 %v4296_v20, %v13699_v21  ;;  %v12658_v41 = vadd.f32 %v4428_v39, %v13700_v23 }
 0x4e8   : > { %8430 = vpow2.f32 %v5730_v24  ;;  %v12660_v62 = vmax.f32 %v5119_v48, %v5120_v26  ;;  %v12663_v36 = vadd.f32 %v4429_v0, %v13701_v17  ;;  %v12666_v4 = vadd.f32 %v4430_v18, %v13702_v35 }
 0x4e9   : > { %8432 = vpow2.f32 %v5732_v19  ;;  %v12669_v22 = vadd.f32 %v4431_v54, %v13703_v51  ;;  %v12672_v52 = vadd.f32 %v4432_v63, %v13704_v3  ;;  %v12675_v21 = vadd.f32 %v4433_v5, %v13705_v12 }
 0x4ea   : > { %8434 = vpow2.f32 %v5734_v43  ;;  %v5305_v23 = vrot.slane %v12660_v62, %v13611_v33  ;;  %v12680_v17 = vadd.f32 %v4434_v37, %v13706_v42  ;;  %v5092_v35 = vsel %vm2158_vm8, %v12655_v61, -inf }
 0x4eb   : > { %8436 = vpow2.f32 %v5736_v11  ;;  %v5093_v51 = vsel %vm2158_vm8, %v12658_v41, -inf  ;;  %v5095_v3 = vsel %vm2158_vm8, %v12663_v36, -inf  ;;  %v5097_v12 = vsel %vm2158_vm8, %v12666_v4, -inf }
 0x4ec   : > { %v5458_v54 = vsub.f32 %v12576_v25, %v5305_v23  ;;  %v5459_v24 = vsub.f32 %v12579_v13, %v5305_v23  ;;  %v5460_v42 = vsub.f32 %v12583_v46, %v5305_v23  ;;  %v5461_v43 = vsub.f32 %v12587_v29, %v5305_v23 }
 0x4ed   : > { %v8421_v26 = vpop.eup %8420  ;;  %v5462_v20 = vsub.f32 %v12590_v56, %v5305_v23  ;;  %v5463_v40 = vsub.f32 %v12596_v55, %v5305_v23  ;;  %v5464_v2 = vsub.f32 %v12600_v8, %v5305_v23  ;;  %v5465_v15 = vsub.f32 %v12603_v28, %v5305_v23 }
 0x4ee   : > { %v8423_v9 = vpop.eup %8422  ;;  %v5770_v1 = vmul.f32 1.442695, %v5458_v54  ;;  %v5772_v34 = vmul.f32 1.442695, %v5459_v24  ;;  %v5774_v49 = vmul.f32 1.442695, %v5460_v42  ;;  %v5094_v25 = vmax.f32 %v5092_v35, %v5093_v51 }
 0x4ef   : > { %v8425_v59 = vpop.eup %8424  ;;  %v6274_v13 = vrot.slane %v8423_v9, 7  ;;  %v5776_v27 = vmul.f32 1.442695, %v5461_v43  ;;  %v5778_v46 = vmul.f32 1.442695, %v5462_v20  ;;  %v5099_v29 = vsel %vm2158_vm8, %v12669_v22, -inf }
 0x4f0   : > { %v8427_v38 = vpop.eup %8426  ;;  %v6276_v56 = vrot.slane %v8425_v59, 6  ;;  %8438 = vpow2.f32 %v5770_v1  ;;  %v5780_v55 = vmul.f32 1.442695, %v5463_v40  ;;  %v5782_v19 = vmul.f32 1.442695, %v5464_v2 }
 0x4f1   : > { %v8429_v8 = vpop.eup %8428  ;;  %v6637_v11 = vmul.f32 0.6931472, %v8427_v38  ;;  %v6275_v28 = vsel %vm3384_vm12, %v6274_v13, %v8421_v26  ;;  %8440 = vpow2.f32 %v5772_v34  ;;  %v5784_v30 = vmul.f32 1.442695, %v5465_v15 }
 0x4f2   : > { %v8431_v39 = vpop.eup %8430  ;;  %v6277_v0 = vsel %vm3387_vm13, %v6276_v56, %v6275_v28  ;;  %v6278_v18 = vrot.slane %v8429_v8, 5  ;;  %8442 = vpow2.f32 %v5774_v49  ;;  %v5096_v48 = vmax.f32 %v5094_v25, %v5095_v3  ;;  %v13740_v28 = vld [vmem:[#allocation21_spill] sm:$0xff] }
 0x4f3   : > { %v8433_v63 = vpop.eup %8432  ;;  %v6671_v5 = vadd.f32 %v6637_v11, %v12472_v60  ;;  %v6280_v37 = vrot.slane %v8431_v39, 4  ;;  %8444 = vpow2.f32 %v5776_v27  ;;  %v5101_v23 = vsel %vm2158_vm8, %v12672_v52, -inf  ;;  %v13741_v39 = vld [vmem:[#allocation11_spill] sm:$0xff] }
 0x4f4   : > { %v8435_v35 = vpop.eup %8434  ;;  %v6279_v51 = vsel %vm3390_vm14, %v6278_v18, %v6277_v0  ;;  %v6282_v54 = vrot.slane %v8433_v63, 3  ;;  %8446 = vpow2.f32 %v5778_v46  ;;  %v5098_v24 = vmax.f32 %v5096_v48, %v5097_v12 }
 0x4f5   : > { %v8437_v42 = vpop.eup %8436  ;;  %v13738_v43 = vrot.slane %v13726_v58, 5  ;;  %v6281_v3 = vsel %vm3393_vm15, %v6280_v37, %v6279_v51  ;;  %v6284_v20 = vrot.slane %v8435_v35, 2  ;;  %8448 = vpow2.f32 %v5780_v55 }
 0x4f6   : > { %v6283_v60 = vsel %vm3396_vm0, %v6282_v54, %v6281_v3  ;;  %v6286_v40 = vrot.slane %v8437_v42, 1  ;;  %8450 = vpow2.f32 %v5782_v19  ;;  %v5100_v2 = vmax.f32 %v5098_v24, %v5099_v29  ;;  %v13744_v42 = vld [vmem:[#allocation24_spill] sm:$0xff] }
 0x4f7   : > { %v12710_v26 = vadd.f32 %v13738_v43, %v6671_v5  ;;  %v6285_v9 = vsel %vm3399_vm1, %v6284_v20, %v6283_v60  ;;  %8452 = vpow2.f32 %v5784_v30  ;;  %v5103_v12 = vsel %vm2158_vm8, %v12675_v21, -inf  ;;  %v13742_v5 = vld [vmem:[#allocation12_spill] sm:$0xff] }
 0x4f8   : > { %v13739_v1 = vmax.f32 %v12451_v57, %v12500_v31  ;;  %v6287_v49 = vsel %vm3402_vm2, %v6286_v40, %v6285_v9  ;;  %v5102_v25 = vmax.f32 %v5100_v2, %v5101_v23  ;;  %v5105_v59 = vsel %vm2158_vm8, %v12680_v17, -inf  ;;  %v13743_v23 = vld [vmem:[#allocation22_spill] sm:$0xff] }
 0x4f9   : > { %v6789_v15 = vsel %vm2158_vm8, %v12710_v26, -inf  ;;  %v6538_v13 = vrot.slane %v6287_v49, 4  ;;  %v4449_v27 = vrot.slane %v12644_v45, 1  ;;  %v4450_v46 = vrot.slane %v12644_v45, 2 }
 0x4fa   : > { %v12722_v34 = vmax.f32 %v13739_v1, %v6789_v15  ;;  %v4451_v29 = vrot.slane %v12644_v45, 3  ;;  %v8439_v38 = vpop.eup %8438  ;;  %v5104_v56 = vmax.f32 %v5102_v25, %v5103_v12  ;;  %v4452_v55 = vrot.slane %v12644_v45, 4  ;;  %v13746_v15 = vld [vmem:[#allocation26_spill] sm:$0xff] }
 0x4fb   : > { %v4453_v57 = vrot.slane %v12644_v45, 5  ;;  %v4454_v31 = vrot.slane %v12644_v45, 6  ;;  %v8441_v19 = vpop.eup %8440  ;;  %v6539_v8 = vadd.f32 %v6538_v13, %v6287_v49  ;;  %v4455_v11 = vrot.slane %v12644_v45, 7 }
 0x4fc   : > { %v12736_v30 = vadd.f32 %v12644_v45, %v13740_v28  ;;  %v12739_v0 = vadd.f32 %v4449_v27, %v13741_v39  ;;  %v8443_v18 = vpop.eup %8442  ;;  %v6316_v48 = vrot.slane %v8441_v19, 7  ;;  %v12741_v63 = vmax.f32 %v5104_v56, %v5105_v59  ;;  %v13745_v45 = vld [vmem:[#allocation15_spill] sm:$0xff]  ;;  %v12766_v27 = vpop.f32.mrb[35].mxu0 }
 0x4fd   : > { %v12744_v37 = vadd.f32 %v4450_v46, %v13742_v5  ;;  %v12747_v35 = vadd.f32 %v4451_v29, %v13743_v23  ;;  %v8445_v51 = vpop.eup %8444  ;;  %v6540_v54 = vrot.slane %v6539_v8, 2  ;;  %v6318_v24 = vrot.slane %v8443_v18, 6  ;;  %v13747_v59 = vld [vmem:[#allocation7_spill] sm:$0xff] }
 0x4fe   : > { %v12750_v43 = vadd.f32 %v4452_v55, %v13744_v42  ;;  %v12753_v3 = vadd.f32 %v4453_v57, %v13745_v45  ;;  %v8447_v20 = vpop.eup %8446  ;;  %v6317_v60 = vsel %vm3384_vm12, %v6316_v48, %v8439_v38  ;;  %v6320_v40 = vrot.slane %v8445_v51, 5 }
 0x4ff   : > { %v5301_v2 = vrot.slane %v12741_v63, %v13611_v33  ;;  %v12760_v9 = vadd.f32 %v4454_v31, %v13746_v15  ;;  %v8449_v12 = vpop.eup %8448  ;;  %v6541_v1 = vadd.f32 %v6540_v54, %v6539_v8  ;;  %v6319_v49 = vsel %vm3387_vm13, %v6318_v24, %v6317_v60 }
 0x500   : > { %v6322_v25 = vrot.slane %v8447_v20, 4  ;;  %v12764_v13 = vadd.f32 %v4455_v11, %v13747_v59  ;;  %v8451_v46 = vpop.eup %8450  ;;  %v6321_v29 = vsel %vm3390_vm14, %v6320_v40, %v6319_v49  ;;  %v6324_v38 = vrot.slane %v8449_v12, 3 }
 0x501   : > { %v5450_v56 = vsub.f32 %v12655_v61, %v5301_v2  ;;  %v5451_v55 = vsub.f32 %v12658_v41, %v5301_v2  ;;  %v8453_v57 = vpop.eup %8452  ;;  %v6542_v31 = vrot.slane %v6541_v1, 1  ;;  %v6326_v8 = vrot.slane %v8451_v46, 2 }
 0x502   : > { %v6323_v19 = vsel %vm3393_vm15, %v6322_v25, %v6321_v29  ;;  %v5452_v18 = vsub.f32 %v12663_v36, %v5301_v2  ;;  %v6328_v48 = vrot.slane %v8453_v57, 1  ;;  %v5453_v51 = vsub.f32 %v12666_v4, %v5301_v2 }
 0x503   : > { %v6325_v11 = vsel %vm3396_vm0, %v6324_v38, %v6323_v19  ;;  %v5454_v54 = vsub.f32 %v12669_v22, %v5301_v2  ;;  %v6543_v24 = vadd.f32 %v6542_v31, %v6541_v1  ;;  %v5455_v61 = vsub.f32 %v12672_v52, %v5301_v2 }
 0x504   : > { %v6327_v20 = vsel %vm3399_vm1, %v6326_v8, %v6325_v11  ;;  %v5456_v41 = vsub.f32 %v12675_v21, %v5301_v2  ;;  %v5457_v40 = vsub.f32 %v12680_v17, %v5301_v2  ;;  %v5754_v12 = vmul.f32 1.442695, %v5450_v56 }
 0x505   : > { %v6329_v60 = vsel %vm3402_vm2, %v6328_v48, %v6327_v20  ;;  %v5756_v36 = vmul.f32 1.442695, %v5451_v55  ;;  %8454 = vlog2.f32 %v6543_v24  ;;  %v5758_v25 = vmul.f32 1.442695, %v5452_v18 }
 0x506   : > { %v6556_v49 = vrot.slane %v6329_v60, 4  ;;  %v5760_v46 = vmul.f32 1.442695, %v5453_v51  ;;  %v6709_v4 = vrot.slane %v13726_v58, 6  ;;  %v6710_v22 = vrot.slane %v13726_v58, 7 }
 0x507   : > { %8456 = vpow2.f32 %v5754_v12  ;;  %v5762_v1 = vmul.f32 1.442695, %v5454_v54  ;;  %v5764_v52 = vmul.f32 1.442695, %v5455_v61  ;;  %v5137_v21 = vsel %vm2158_vm8, %v12736_v30, -inf }
 0x508   : > { %v6557_v29 = vadd.f32 %v6556_v49, %v6329_v60  ;;  %8458 = vpow2.f32 %v5756_v36  ;;  %v5766_v17 = vmul.f32 1.442695, %v5456_v41  ;;  %v5138_v2 = vsel %vm2158_vm8, %v12739_v0, -inf }
 0x509   : > { %8460 = vpow2.f32 %v5758_v25  ;;  %v4274_v38 = vsel %vm4178_vm11, %v12553_v32, -1e+09  ;;  %v5768_v55 = vmul.f32 1.442695, %v5457_v40  ;;  %v5139_v57 = vmax.f32 %v5137_v21, %v5138_v2 }
 0x50a   : > { %v6558_v56 = vrot.slane %v6557_v29, 2  ;;  %8462 = vpow2.f32 %v5760_v46  ;;  %v5140_v31 = vsel %vm2158_vm8, %v12744_v37, -inf  ;;  %v5142_v19 = vsel %vm2158_vm8, %v12747_v35, -inf }
 0x50b   : > { %8464 = vpow2.f32 %v5762_v1  ;;  %v5144_v8 = vsel %vm2158_vm8, %v12750_v43, -inf  ;;  %v5141_v11 = vmax.f32 %v5139_v57, %v5140_v31  ;;  %v4298_v44 = vadd.f32 %v4274_v38, %v13665_v6 }
 0x50c   : > { %v6559_v18 = vadd.f32 %v6558_v56, %v6557_v29  ;;  %8466 = vpow2.f32 %v5764_v52  ;;  %v5146_v32 = vsel %vm2158_vm8, %v12753_v3, -inf  ;;  %v5148_v48 = vsel %vm2158_vm8, %v12760_v9, -inf }
 0x50d   : > { %8468 = vpow2.f32 %v5766_v17  ;;  %v5150_v51 = vsel %vm2158_vm8, %v12764_v13, -inf  ;;  %v5143_v24 = vmax.f32 %v5141_v11, %v5142_v19  ;;  %v4442_v20 = vrot.slane %v4298_v44, 1 }
 0x50e   : > { %v6560_v54 = vrot.slane %v6559_v18, 1  ;;  %8470 = vpow2.f32 %v5768_v55  ;;  %v4443_v61 = vrot.slane %v4298_v44, 2  ;;  %v4444_v41 = vrot.slane %v4298_v44, 3 }
 0x50f   : > { %v4445_v60 = vrot.slane %v4298_v44, 4  ;;  %v4446_v40 = vrot.slane %v4298_v44, 5  ;;  %v8455_v12 = vpop.eup %8454  ;;  %v5145_v49 = vmax.f32 %v5143_v24, %v5144_v8  ;;  %v4447_v25 = vrot.slane %v4298_v44, 6 }
 0x510   : > { %v6561_v36 = vadd.f32 %v6560_v54, %v6559_v18  ;;  %v4448_v46 = vrot.slane %v4298_v44, 7  ;;  %v6635_v29 = vmul.f32 0.6931472, %v8455_v12  ;;  %v12804_v52 = vadd.f32 %v4298_v44, %v13740_v28 }
 0x511   : > { %v8457_v1 = vpop.eup %8456  ;;  %v12807_v21 = vadd.f32 %v4442_v20, %v13741_v39  ;;  %v12810_v17 = vadd.f32 %v4443_v61, %v13742_v5  ;;  %v5147_v38 = vmax.f32 %v5145_v49, %v5146_v32  ;;  %v12813_v56 = vadd.f32 %v4444_v41, %v13743_v23 }
 0x512   : > { %v8459_v2 = vpop.eup %8458  ;;  %8472 = vlog2.f32 %v6561_v36  ;;  %v12816_v55 = vadd.f32 %v4445_v60, %v13744_v42  ;;  %v6670_v31 = vadd.f32 %v6635_v29, %v12618_v14  ;;  %v12820_v8 = vadd.f32 %v4446_v40, %v13745_v45 }
 0x513   : > { %v8461_v57 = vpop.eup %8460  ;;  %v6302_v19 = vrot.slane %v8459_v2, 7  ;;  %v12823_v18 = vadd.f32 %v4447_v25, %v13746_v15  ;;  %v5149_v54 = vmax.f32 %v5147_v38, %v5148_v48  ;;  %v12826_v32 = vadd.f32 %v4448_v46, %v13747_v59 }
 0x514   : > { %v8463_v11 = vpop.eup %8462  ;;  %v6304_v44 = vrot.slane %v8461_v57, 6  ;;  %v5122_v24 = vsel %vm2158_vm8, %v12804_v52, -inf  ;;  %v13748_v61 = vrot.slane %v13726_v58, 4  ;;  %v5123_v40 = vsel %vm2158_vm8, %v12807_v21, -inf }
 0x515   : > { %v8465_v20 = vpop.eup %8464  ;;  %v6303_v41 = vsel %vm3384_vm12, %v6302_v19, %v8457_v1  ;;  %v6306_v60 = vrot.slane %v8463_v11, 5  ;;  %v12838_v49 = vmax.f32 %v5149_v54, %v5150_v51  ;;  %v5124_v25 = vmax.f32 %v5122_v24, %v5123_v40 }
 0x516   : > { %v12832_v14 = vadd.f32 %v13748_v61, %v6670_v31  ;;  %v8467_v12 = vpop.eup %8466  ;;  %v6305_v48 = vsel %vm3387_vm13, %v6304_v44, %v6303_v41  ;;  %v6308_v36 = vrot.slane %v8465_v20, 4  ;;  %v5125_v1 = vsel %vm2158_vm8, %v12810_v17, -inf }
 0x517   : > { %v8469_v46 = vpop.eup %8468  ;;  %v6307_v2 = vsel %vm3390_vm14, %v6306_v60, %v6305_v48  ;;  %v6310_v38 = vrot.slane %v8467_v12, 3  ;;  %v13749_v31 = vmax.f32 %v12480_v7, %v12628_v47  ;;  %v5313_v44 = vrot.slane %v12838_v49, %v13611_v33 }
 0x518   : > { %v6787_v29 = vsel %vm2158_vm8, %v12832_v14, -inf  ;;  %v8471_v57 = vpop.eup %8470  ;;  %v6309_v51 = vsel %vm3393_vm15, %v6308_v36, %v6307_v2  ;;  %v6312_v11 = vrot.slane %v8469_v46, 2  ;;  %v5126_v20 = vmax.f32 %v5124_v25, %v5125_v1 }
 0x519   : > { %v12848_v19 = vmax.f32 %v13749_v31, %v6787_v29  ;;  %v6311_v54 = vsel %vm3396_vm0, %v6310_v38, %v6309_v51  ;;  %v6314_v24 = vrot.slane %v8471_v57, 1  ;;  %v5127_v61 = vsel %vm2158_vm8, %v12813_v56, -inf }
 0x51a   : > { %v6313_v41 = vsel %vm3399_vm1, %v6312_v11, %v6311_v54  ;;  %v5474_v7 = vsub.f32 %v12736_v30, %v5313_v44  ;;  %v5475_v47 = vsub.f32 %v12739_v0, %v5313_v44  ;;  %v5476_v60 = vsub.f32 %v12744_v37, %v5313_v44 }
 0x51b   : > { %v6315_v40 = vsel %vm3402_vm2, %v6314_v24, %v6313_v41  ;;  %v5477_v12 = vsub.f32 %v12747_v35, %v5313_v44  ;;  %v5478_v48 = vsub.f32 %v12750_v43, %v5313_v44  ;;  %v5479_v36 = vsub.f32 %v12753_v3, %v5313_v44 }
 0x51c   : > { %v8473_v25 = vpop.eup %8472  ;;  %v6550_v46 = vrot.slane %v6315_v40, 4  ;;  %v5480_v29 = vsub.f32 %v12760_v9, %v5313_v44  ;;  %v5481_v2 = vsub.f32 %v12764_v13, %v5313_v44  ;;  %v5802_v38 = vmul.f32 1.442695, %v5474_v7 }
 0x51d   : > { %v6641_v30 = vmul.f32 0.6931472, %v8473_v25  ;;  %v5804_v1 = vmul.f32 1.442695, %v5475_v47  ;;  %v5806_v0 = vmul.f32 1.442695, %v5476_v60  ;;  %v5128_v57 = vmax.f32 %v5126_v20, %v5127_v61 }
 0x51e   : > { %v6551_v37 = vadd.f32 %v6550_v46, %v6315_v40  ;;  %8474 = vpow2.f32 %v5802_v38  ;;  %v5808_v31 = vmul.f32 1.442695, %v5477_v12  ;;  %v5810_v51 = vmul.f32 1.442695, %v5478_v48 }
 0x51f   : > { %v6673_v35 = vadd.f32 %v6641_v30, %v12660_v62  ;;  %8476 = vpow2.f32 %v5804_v1  ;;  %v5812_v43 = vmul.f32 1.442695, %v5479_v36  ;;  %v4249_v3 = vmul.f32 0.6931472, %v12509_v50 }
 0x520   : > { %v6552_v11 = vrot.slane %v6551_v37, 2  ;;  %8478 = vpow2.f32 %v5806_v0  ;;  %v5814_v9 = vmul.f32 1.442695, %v5480_v29  ;;  %v5129_v13 = vsel %vm2158_vm8, %v12816_v55, -inf }
 0x521   : > { %v12873_v44 = vadd.f32 %v6710_v22, %v6673_v35  ;;  %8480 = vpow2.f32 %v5808_v31  ;;  %v5816_v54 = vmul.f32 1.442695, %v5481_v2  ;;  %v5130_v24 = vmax.f32 %v5128_v57, %v5129_v13 }
 0x522   : > { %v6553_v20 = vadd.f32 %v6552_v11, %v6551_v37  ;;  %8482 = vpow2.f32 %v5810_v51  ;;  %v5131_v62 = vsel %vm2158_vm8, %v12820_v8, -inf  ;;  %v5133_v50 = vsel %vm2158_vm8, %v12823_v18, -inf }
 0x523   : > { %v12881_v61 = vsel %vm2158_vm8, %v12873_v44, -inf  ;;  %8484 = vpow2.f32 %v5812_v43  ;;  %v5132_v41 = vmax.f32 %v5130_v24, %v5131_v62  ;;  %v4277_v22 = vsel %vm4181_vm3, %v4249_v3, -1e+09  ;;  %v13750_v3 = vld [vmem:[#allocation29_spill] sm:$0xff] }
 0x524   : > { %v6794_v7 = vmax.f32 %v12722_v34, %v12881_v61  ;;  %v6554_v47 = vrot.slane %v6553_v20, 1  ;;  %8486 = vpow2.f32 %v5814_v9  ;;  %v4301_v60 = vadd.f32 %v4277_v22, %v13665_v6 }
 0x525   : > { %8488 = vpow2.f32 %v5816_v54  ;;  %v5134_v40 = vmax.f32 %v5132_v41, %v5133_v50  ;;  %v5135_v12 = vsel %vm2158_vm8, %v12826_v32, -inf  ;;  %v12891_v48 = vmul.f32 0.6931472, %v12512_v10 }
 0x526   : > { %v6555_v36 = vadd.f32 %v6554_v47, %v6553_v20  ;;  %v4463_v25 = vrot.slane %v4301_v60, 1  ;;  %v4464_v46 = vrot.slane %v4301_v60, 2  ;;  %v4465_v16 = vrot.slane %v4301_v60, 3 }
 0x527   : > { %v12893_v29 = vmax.f32 %v5134_v40, %v5135_v12  ;;  %v4466_v2 = vrot.slane %v4301_v60, 4  ;;  %v4467_v38 = vrot.slane %v4301_v60, 5  ;;  %v4468_v30 = vrot.slane %v4301_v60, 6 }
 0x528   : > { %v8475_v1 = vpop.eup %8474  ;;  %8490 = vlog2.f32 %v6555_v36  ;;  %v4469_v0 = vrot.slane %v4301_v60, 7  ;;  %v12896_v57 = vadd.f32 %v4301_v60, %v13740_v28  ;;  %v12899_v37 = vadd.f32 %v4463_v25, %v13741_v39 }
 0x529   : > { %v8477_v10 = vpop.eup %8476  ;;  %v5309_v31 = vrot.slane %v12893_v29, %v13611_v33  ;;  %v12904_v51 = vadd.f32 %v4464_v46, %v13742_v5  ;;  %v12907_v35 = vadd.f32 %v4465_v16, %v13743_v23  ;;  %v12910_v43 = vadd.f32 %v4466_v2, %v13744_v42 }
 0x52a   : > { %vm4180_vm4 = vcmp.gt.f32.partialorder %v13750_v3, 0.0  ;;  %v8479_v11 = vpop.eup %8478  ;;  %v6344_v9 = vrot.slane %v8477_v10, 7  ;;  %v12914_v13 = vadd.f32 %v4467_v38, %v13745_v45  ;;  %v12917_v54 = vadd.f32 %v4468_v30, %v13746_v15 }
 0x52b   : > { %v12920_v24 = vadd.f32 %v4469_v0, %v13747_v59  ;;  %v8481_v20 = vpop.eup %8480  ;;  %v6346_v62 = vrot.slane %v8479_v11, 6  ;;  %v5466_v50 = vsub.f32 %v12804_v52, %v5309_v31  ;;  %v5467_v41 = vsub.f32 %v12807_v21, %v5309_v31 }
 0x52c   : > { %v5468_v22 = vsub.f32 %v12810_v17, %v5309_v31  ;;  %v8483_v47 = vpop.eup %8482  ;;  %v6345_v60 = vsel %vm3384_vm12, %v6344_v9, %v8475_v1  ;;  %v6348_v40 = vrot.slane %v8481_v20, 5  ;;  %v5469_v12 = vsub.f32 %v12813_v56, %v5309_v31 }
 0x52d   : > { %v5470_v36 = vsub.f32 %v12816_v55, %v5309_v31  ;;  %v8485_v25 = vpop.eup %8484  ;;  %v6347_v46 = vsel %vm3387_vm13, %v6346_v62, %v6345_v60  ;;  %v6350_v16 = vrot.slane %v8483_v47, 4  ;;  %v5471_v2 = vsub.f32 %v12820_v8, %v5309_v31 }
 0x52e   : > { %v5472_v52 = vsub.f32 %v12823_v18, %v5309_v31  ;;  %v8487_v38 = vpop.eup %8486  ;;  %v6349_v21 = vsel %vm3390_vm14, %v6348_v40, %v6347_v46  ;;  %v6352_v17 = vrot.slane %v8485_v25, 3  ;;  %v5473_v30 = vsub.f32 %v12826_v32, %v5309_v31 }
 0x52f   : > { %v5786_v1 = vmul.f32 1.442695, %v5466_v50  ;;  %v8489_v0 = vpop.eup %8488  ;;  %v6351_v56 = vsel %vm3393_vm15, %v6350_v16, %v6349_v21  ;;  %v6354_v10 = vrot.slane %v8487_v38, 2  ;;  %v5788_v55 = vmul.f32 1.442695, %v5467_v41  ;;  %v13751_v50 = vld [vmem:[#allocation9_spill] sm:$0xff] }
 0x530   : > { %v5790_v11 = vmul.f32 1.442695, %v5468_v22  ;;  %v6353_v9 = vsel %vm3396_vm0, %v6352_v17, %v6351_v56  ;;  %v6356_v20 = vrot.slane %v8489_v0, 1  ;;  %v5792_v8 = vmul.f32 1.442695, %v5469_v12 }
 0x531   : > { %8492 = vpow2.f32 %v5786_v1  ;;  %v6355_v18 = vsel %vm3399_vm1, %v6354_v10, %v6353_v9  ;;  %v5794_v62 = vmul.f32 1.442695, %v5470_v36  ;;  %v5796_v47 = vmul.f32 1.442695, %v5471_v2 }
 0x532   : > { %8494 = vpow2.f32 %v5788_v55  ;;  %v8491_v60 = vpop.eup %8490  ;;  %v6357_v32 = vsel %vm3402_vm2, %v6356_v20, %v6355_v18  ;;  %v5798_v31 = vmul.f32 1.442695, %v5472_v52  ;;  %v4207_v40 = vmax.f32 %v13751_v50, 1e-30 }
 0x533   : > { %8496 = vpow2.f32 %v5790_v11  ;;  %v6639_v25 = vmul.f32 0.6931472, %v8491_v60  ;;  %v6568_v41 = vrot.slane %v6357_v32, 4  ;;  %v5167_v22 = vsel %vm2158_vm8, %v12896_v57, -inf }
 0x534   : > { %8498 = vpow2.f32 %v5792_v8  ;;  %v5800_v12 = vmul.f32 1.442695, %v5473_v30  ;;  %v5168_v46 = vsel %vm2158_vm8, %v12899_v37, -inf  ;;  %v4276_v36 = vsel %vm4180_vm4, %v12891_v48, -1e+09 }
 0x535   : > { %8500 = vpow2.f32 %v5794_v62  ;;  %v6672_v16 = vadd.f32 %v6639_v25, %v12741_v63  ;;  %v6569_v2 = vadd.f32 %v6568_v41, %v6357_v32  ;;  %v5169_v52 = vmax.f32 %v5167_v22, %v5168_v46 }
 0x536   : > { %8502 = vpow2.f32 %v5796_v47  ;;  %v5170_v38 = vsel %vm2158_vm8, %v12904_v51, -inf  ;;  %v5172_v21 = vsel %vm2158_vm8, %v12907_v35, -inf  ;;  %v5174_v17 = vsel %vm2158_vm8, %v12910_v43, -inf }
 0x537   : > { %8504 = vpow2.f32 %v5798_v31  ;;  %v6756_v30 = vadd.f32 %v6709_v4, %v6672_v16  ;;  %v6570_v3 = vrot.slane %v6569_v2, 2  ;;  %v5171_v48 = vmax.f32 %v5169_v52, %v5170_v38 }
 0x538   : > { %v5176_v63 = vsel %vm2158_vm8, %v12914_v13, -inf  ;;  %8506 = vpow2.f32 %v5800_v12  ;;  %v5178_v1 = vsel %vm2158_vm8, %v12917_v54, -inf  ;;  %v5180_v0 = vsel %vm2158_vm8, %v12920_v24, -inf }
 0x539   : > { %v12961_v56 = vadd.f32 %v4276_v36, %v13665_v6  ;;  %v6791_v10 = vsel %vm2158_vm8, %v6756_v30, -inf  ;;  %v6571_v55 = vadd.f32 %v6570_v3, %v6569_v2  ;;  %v5173_v58 = vmax.f32 %v5171_v48, %v5172_v21 }
 0x53a   : > { %8508 = vlog2.f32 %v4207_v40  ;;  %v6792_v11 = vmax.f32 %v12848_v19, %v6791_v10  ;;  %vm4183_vm5 = vcmp.gt.f32.partialorder %v13751_v50, 0.0  ;;  %vm4185_vm7 = vcmp.gt.f32.partialorder %v12701_v53, 0.0 }
 0x53b   : > { %v8493_v4 = vpop.eup %8492  ;;  %v4456_v9 = vrot.slane %v12961_v56, 1  ;;  %v4457_v20 = vrot.slane %v12961_v56, 2  ;;  %v4458_v8 = vrot.slane %v12961_v56, 3  ;;  %v6572_v62 = vrot.slane %v6571_v55, 1 }
 0x53c   : > { %v8495_v18 = vpop.eup %8494  ;;  %v5175_v47 = vmax.f32 %v5173_v58, %v5174_v17  ;;  %v4459_v60 = vrot.slane %v12961_v56, 4  ;;  %v4460_v32 = vrot.slane %v12961_v56, 5  ;;  %v12973_v40 = vmax.f32 %v6792_v11, %v6794_v7  ;;  %v13754_v11 = vld [vmem:[#allocation17_spill] sm:$0xff] }
 0x53d   : > { %v8497_v31 = vpop.eup %8496  ;;  %v6330_v19 = vrot.slane %v8495_v18, 7  ;;  %v4461_v25 = vrot.slane %v12961_v56, 6  ;;  %v4462_v41 = vrot.slane %v12961_v56, 7  ;;  %v6573_v12 = vadd.f32 %v6572_v62, %v6571_v55  ;;  %v13753_v55 = vld [vmem:[#allocation5_spill] sm:$0xff] }
 0x53e   : > { %v8499_v22 = vpop.eup %8498  ;;  %v6332_v46 = vrot.slane %v8497_v31, 6  ;;  %v5177_v36 = vmax.f32 %v5175_v47, %v5176_v63  ;;  %v12979_v16 = vadd.f32 %v12961_v56, %v13740_v28  ;;  %v6818_v52 = vrot.slane %v12973_v40, %v13611_v33  ;;  %v13752_v63 = vld [vmem:[#allocation10_spill] sm:$0xff]  ;;  %v13755_v62 = vld [vmem:[#allocation25_spill] sm:$0xff] }
 0x53f   : > { %v8501_v2 = vpop.eup %8500  ;;  %v6331_v34 = vsel %vm3384_vm12, %v6330_v19, %v8493_v4  ;;  %v6334_v61 = vrot.slane %v8499_v22, 5  ;;  %v12985_v7 = vadd.f32 %v4456_v9, %v13741_v39  ;;  %8510 = vlog2.f32 %v6573_v12 }
 0x540   : > { %v8503_v38 = vpop.eup %8502  ;;  %v6333_v21 = vsel %vm3387_vm13, %v6332_v46, %v6331_v34  ;;  %v6336_v17 = vrot.slane %v8501_v2, 4  ;;  %v5179_v3 = vmax.f32 %v5177_v36, %v5178_v1  ;;  %v6831_v10 = vsub.f32 %v13752_v63, %v6818_v52 }
 0x541   : > { %v8505_v48 = vpop.eup %8504  ;;  %v6832_v58 = vsub.f32 %v13753_v55, %v6818_v52  ;;  %v6833_v18 = vsub.f32 %v13754_v11, %v6818_v52  ;;  %v6834_v47 = vsub.f32 %v13755_v62, %v6818_v52  ;;  %v6835_v4 = vsub.f32 %v12832_v14, %v6818_v52 }
 0x542   : > { %v6836_v9 = vsub.f32 %v12710_v26, %v6818_v52  ;;  %v6837_v31 = vsub.f32 %v6756_v30, %v6818_v52  ;;  %v6838_v19 = vsub.f32 %v12873_v44, %v6818_v52  ;;  %v8507_v22 = vpop.eup %8506  ;;  %v6863_v12 = vmul.f32 1.442695, %v6831_v10 }
 0x543   : > { %v6865_v46 = vmul.f32 1.442695, %v6832_v58  ;;  %v6867_v1 = vmul.f32 1.442695, %v6833_v18  ;;  %v6335_v36 = vsel %vm3390_vm14, %v6334_v61, %v6333_v21  ;;  %v6869_v34 = vmul.f32 1.442695, %v6834_v47 }
 0x544   : > { %v12996_v2 = vpop.eup %8508  ;;  %v6871_v63 = vmul.f32 1.442695, %v6835_v4  ;;  %v6873_v55 = vmul.f32 1.442695, %v6836_v9  ;;  %v6337_v11 = vsel %vm3393_vm15, %v6336_v17, %v6335_v36  ;;  %8512 = vpow2.f32 %v6863_v12  ;;  %v13756_v36 = vld [vmem:[#allocation28_spill] sm:$0xff] }
 0x545   : > { %v6875_v14 = vmul.f32 1.442695, %v6837_v31  ;;  %v6877_v62 = vmul.f32 1.442695, %v6838_v19  ;;  %v6338_v26 = vrot.slane %v8503_v38, 3  ;;  %8514 = vpow2.f32 %v6865_v46 }
 0x546   : > { %v6340_v30 = vrot.slane %v8505_v48, 2  ;;  %v6342_v44 = vrot.slane %v8507_v22, 1  ;;  %v12999_v52 = vmax.f32 %v5179_v3, %v5180_v0  ;;  %8516 = vpow2.f32 %v6867_v1 }
 0x547   : > { %v6339_v10 = vsel %vm3396_vm0, %v6338_v26, %v6337_v11  ;;  %v13003_v61 = vadd.f32 %v4457_v20, %v13742_v5  ;;  %v13006_v21 = vadd.f32 %v4458_v8, %v13743_v23  ;;  %8518 = vpow2.f32 %v6869_v34 }
 0x548   : > { %v6341_v17 = vsel %vm3399_vm1, %v6340_v30, %v6339_v10  ;;  %v5321_v38 = vrot.slane %v12999_v52, %v13611_v33  ;;  %v13012_v48 = vadd.f32 %v4459_v60, %v13744_v42  ;;  %8520 = vpow2.f32 %v6871_v63 }
 0x549   : > { %v6343_v0 = vsel %vm3402_vm2, %v6342_v44, %v6341_v17  ;;  %v13016_v3 = vadd.f32 %v4460_v32, %v13745_v45  ;;  %v13019_v20 = vadd.f32 %v4461_v25, %v13746_v15  ;;  %v8511_v8 = vpop.eup %8510  ;;  %8522 = vpow2.f32 %v6873_v55 }
 0x54a   : > { %v6562_v58 = vrot.slane %v6343_v0, 4  ;;  %v5490_v18 = vsub.f32 %v12896_v57, %v5321_v38  ;;  %v5491_v47 = vsub.f32 %v12899_v37, %v5321_v38  ;;  %8524 = vpow2.f32 %v6875_v14 }
 0x54b   : > { %v6645_v4 = vmul.f32 0.6931472, %v8511_v8  ;;  %v5492_v60 = vsub.f32 %v12904_v51, %v5321_v38  ;;  %v5493_v9 = vsub.f32 %v12907_v35, %v5321_v38  ;;  %8526 = vpow2.f32 %v6877_v62 }
 0x54c   : > { %v6563_v31 = vadd.f32 %v6562_v58, %v6343_v0  ;;  %v5494_v32 = vsub.f32 %v12910_v43, %v5321_v38  ;;  %v5495_v25 = vsub.f32 %v12914_v13, %v5321_v38  ;;  %v5496_v22 = vsub.f32 %v12917_v54, %v5321_v38 }
 0x54d   : > { %v6675_v19 = vadd.f32 %v6645_v4, %v12838_v49  ;;  %v5497_v57 = vsub.f32 %v12920_v24, %v5321_v38  ;;  %v5834_v12 = vmul.f32 1.442695, %v5490_v18  ;;  %v5836_v46 = vmul.f32 1.442695, %v5491_v47 }
 0x54e   : > { %v6564_v37 = vrot.slane %v6563_v31, 2  ;;  %v5838_v1 = vmul.f32 1.442695, %v5492_v60  ;;  %v13033_v51 = vadd.f32 %v4462_v41, %v13747_v59  ;;  %v8513_v35 = vpop.eup %8512  ;;  %v6713_v43 = vrot.slane %v13756_v36, 3 }
 0x54f   : > { %8528 = vpow2.f32 %v5834_v12  ;;  %v5840_v13 = vmul.f32 1.442695, %v5493_v9  ;;  %v5842_v34 = vmul.f32 1.442695, %v5494_v32  ;;  %v8515_v49 = vpop.eup %8514  ;;  %v13757_v54 = vrot.slane %v13756_v36, 1 }
 0x550   : > { %v6565_v24 = vadd.f32 %v6564_v37, %v6563_v31  ;;  %8530 = vpow2.f32 %v5836_v46  ;;  %v5844_v55 = vmul.f32 1.442695, %v5495_v25  ;;  %v8517_v11 = vpop.eup %8516  ;;  %v6933_v14 = vrot.slane %v8515_v49, 7 }
 0x551   : > { %v13038_v63 = vadd.f32 %v13757_v54, %v6675_v19  ;;  %8532 = vpow2.f32 %v5838_v1  ;;  %v5846_v56 = vmul.f32 1.442695, %v5496_v22  ;;  %v5848_v41 = vmul.f32 1.442695, %v5497_v57  ;;  %v8519_v62 = vpop.eup %8518 }
 0x552   : > { %v6935_v26 = vrot.slane %v8517_v11, 6  ;;  %v6566_v30 = vrot.slane %v6565_v24, 1  ;;  %8534 = vpow2.f32 %v5840_v13  ;;  %v5152_v44 = vsel %vm2158_vm8, %v12979_v16, -inf  ;;  %v8521_v10 = vpop.eup %8520 }
 0x553   : > { %v6934_v17 = vsel %vm3384_vm12, %v6933_v14, %v8513_v35  ;;  %v6937_v38 = vrot.slane %v8519_v62, 5  ;;  %8536 = vpow2.f32 %v5842_v34  ;;  %v5153_v0 = vsel %vm2158_vm8, %v12985_v7, -inf  ;;  %v8523_v8 = vpop.eup %8522  ;;  %v13758_v35 = vld [vmem:[#allocation16_spill] sm:$0xff] }
 0x554   : > { %v6936_v58 = vsel %vm3387_vm13, %v6935_v26, %v6934_v17  ;;  %v6939_v18 = vrot.slane %v8521_v10, 4  ;;  %v6567_v47 = vadd.f32 %v6566_v30, %v6565_v24  ;;  %8538 = vpow2.f32 %v5844_v55  ;;  %v8525_v4 = vpop.eup %8524 }
 0x555   : > { %v6938_v60 = vsel %vm3390_vm14, %v6937_v38, %v6936_v58  ;;  %v6941_v9 = vrot.slane %v8523_v8, 3  ;;  %8540 = vpow2.f32 %v5846_v56  ;;  %v5154_v31 = vmax.f32 %v5152_v44, %v5153_v0  ;;  %v8527_v32 = vpop.eup %8526 }
 0x556   : > { %v6940_v25 = vsel %vm3393_vm15, %v6939_v18, %v6938_v60  ;;  %v6943_v19 = vrot.slane %v8525_v4, 2  ;;  %8542 = vlog2.f32 %v6567_v47  ;;  %v5155_v22 = vsel %vm2158_vm8, %v13003_v61, -inf }
 0x557   : > { %v6942_v57 = vsel %vm3396_vm0, %v6941_v9, %v6940_v25  ;;  %v6945_v12 = vrot.slane %v8527_v32, 1  ;;  %8544 = vpow2.f32 %v5848_v41  ;;  %v5156_v37 = vmax.f32 %v5154_v31, %v5155_v22 }
 0x558   : > { %v6944_v46 = vsel %vm3399_vm1, %v6943_v19, %v6942_v57  ;;  %v5157_v1 = vsel %vm2158_vm8, %v13006_v21, -inf  ;;  %v4206_v13 = vmax.f32 %v13758_v35, 1e-30  ;;  %v13059_v54 = vsel %vm2158_vm8, %v13038_v63, -inf }
 0x559   : > { %v8529_v34 = vpop.eup %8528  ;;  %v6946_v49 = vsel %vm3402_vm2, %v6945_v12, %v6944_v46  ;;  %v5158_v24 = vmax.f32 %v5156_v37, %v5157_v1  ;;  %v5159_v55 = vsel %vm2158_vm8, %v13012_v48, -inf  ;;  %v5161_v56 = vsel %vm2158_vm8, %v13016_v3, -inf }
 0x55a   : > { %v8531_v11 = vpop.eup %8530  ;;  %v6970_v14 = vrot.slane %v6946_v49, 4  ;;  %v5163_v41 = vsel %vm2158_vm8, %v13019_v20, -inf  ;;  %v4253_v62 = vmul.f32 0.6931472, %v12996_v2  ;;  %v5165_v10 = vsel %vm2158_vm8, %v13033_v51, -inf }
 0x55b   : > { %v8533_v26 = vpop.eup %8532  ;;  %v6372_v30 = vrot.slane %v8531_v11, 7  ;;  %v5160_v44 = vmax.f32 %v5158_v24, %v5159_v55  ;;  %v4209_v17 = vmax.f32 %v12701_v53, 1e-30  ;;  %v4208_v18 = vmax.f32 %v12766_v27, 1e-30  ;;  %v13759_v53 = vld [vmem:[#allocation4_spill] sm:$0xff] }
 0x55c   : > { %v8535_v38 = vpop.eup %8534  ;;  %v6971_v0 = vadd.f32 %v6970_v14, %v6946_v49  ;;  %v6374_v8 = vrot.slane %v8533_v26, 6  ;;  %v4279_v58 = vsel %vm4183_vm5, %v4253_v62, -1e+09  ;;  %8546 = vlog2.f32 %v4206_v13 }
 0x55d   : > { %v8537_v47 = vpop.eup %8536  ;;  %v6373_v4 = vsel %vm3384_vm12, %v6372_v30, %v8529_v34  ;;  %v6376_v2 = vrot.slane %v8535_v38, 5  ;;  %v5162_v60 = vmax.f32 %v5160_v44, %v5161_v56  ;;  %v13076_v9 = vadd.f32 %v4279_v58, %v13665_v6 }
 0x55e   : > { %v8539_v31 = vpop.eup %8538  ;;  %v6972_v32 = vrot.slane %v6971_v0, 2  ;;  %v6375_v25 = vsel %vm3387_vm13, %v6374_v8, %v6373_v4  ;;  %v6378_v19 = vrot.slane %v8537_v47, 4  ;;  %8548 = vlog2.f32 %v4209_v17 }
 0x55f   : > { %v8541_v22 = vpop.eup %8540  ;;  %v6377_v50 = vsel %vm3390_vm14, %v6376_v2, %v6375_v25  ;;  %v6380_v57 = vrot.slane %v8539_v31, 3  ;;  %v5164_v12 = vmax.f32 %v5162_v60, %v5163_v41  ;;  %8550 = vlog2.f32 %v4208_v18 }
 0x560   : > { %v8543_v37 = vpop.eup %8542  ;;  %v6973_v46 = vadd.f32 %v6972_v32, %v6971_v0  ;;  %v6379_v1 = vsel %vm3393_vm15, %v6378_v19, %v6377_v50  ;;  %v6382_v34 = vrot.slane %v8541_v22, 2  ;;  %v4477_v13 = vrot.slane %v13076_v9, 1 }
 0x561   : > { %v8545_v49 = vpop.eup %8544  ;;  %v6643_v24 = vmul.f32 0.6931472, %v8543_v37  ;;  %v6381_v55 = vsel %vm3396_vm0, %v6380_v57, %v6379_v1  ;;  %v13082_v11 = vmax.f32 %v5164_v12, %v5165_v10  ;;  %v4478_v41 = vrot.slane %v13076_v9, 2 }
 0x562   : > { %v6974_v14 = vrot.slane %v6973_v46, 1  ;;  %v6383_v56 = vsel %vm3399_vm1, %v6382_v34, %v6381_v55  ;;  %v6384_v62 = vrot.slane %v8545_v49, 1  ;;  %v4479_v44 = vrot.slane %v13076_v9, 3 }
 0x563   : > { %v6674_v26 = vadd.f32 %v6643_v24, %v12893_v29  ;;  %v5317_v30 = vrot.slane %v13082_v11, %v13611_v33  ;;  %v4480_v17 = vrot.slane %v13076_v9, 4  ;;  %v4481_v0 = vrot.slane %v13076_v9, 5 }
 0x564   : > { %v6975_v38 = vadd.f32 %v6974_v14, %v6973_v46  ;;  %v6385_v10 = vsel %vm3402_vm2, %v6384_v62, %v6383_v56  ;;  %v13096_v8 = vadd.f32 %v13076_v9, %v13740_v28  ;;  %v4482_v47 = vrot.slane %v13076_v9, 6 }
 0x565   : > { %v6580_v58 = vrot.slane %v6385_v10, 4  ;;  %v5482_v18 = vsub.f32 %v12979_v16, %v5317_v30  ;;  %v5483_v29 = vsub.f32 %v12985_v7, %v5317_v30  ;;  %v5484_v4 = vsub.f32 %v13003_v61, %v5317_v30 }
 0x566   : > { %8552 = vlog2.f32 %v6975_v38  ;;  %v5485_v2 = vsub.f32 %v13006_v21, %v5317_v30  ;;  %v5486_v60 = vsub.f32 %v13012_v48, %v5317_v30  ;;  %v5487_v32 = vsub.f32 %v13016_v3, %v5317_v30  ;;  %v8547_v22 = vpop.eup %8546 }
 0x567   : > { %v6581_v31 = vadd.f32 %v6580_v58, %v6385_v10  ;;  %v5488_v25 = vsub.f32 %v13019_v20, %v5317_v30  ;;  %v4483_v19 = vrot.slane %v13076_v9, 7  ;;  %v5489_v16 = vsub.f32 %v13033_v51, %v5317_v30 }
 0x568   : > { %v5818_v7 = vmul.f32 1.442695, %v5482_v18  ;;  %v5820_v50 = vmul.f32 1.442695, %v5483_v29  ;;  %v5822_v57 = vmul.f32 1.442695, %v5484_v4  ;;  %v8549_v61 = vpop.eup %8548  ;;  %v13110_v21 = vadd.f32 %v13756_v36, %v6674_v26 }
 0x569   : > { %vm4182_vm6 = vcmp.gt.f32.partialorder %v13758_v35, 0.0  ;;  %v6582_v48 = vrot.slane %v6581_v31, 2  ;;  %v5824_v12 = vmul.f32 1.442695, %v5485_v2  ;;  %v13113_v3 = vadd.f32 %v4477_v13, %v13741_v39  ;;  %v8551_v20 = vpop.eup %8550 }
 0x56a   : > { %8554 = vpow2.f32 %v5818_v7  ;;  %v5826_v9 = vmul.f32 1.442695, %v5486_v60  ;;  %v5828_v51 = vmul.f32 1.442695, %v5487_v32  ;;  %v5830_v37 = vmul.f32 1.442695, %v5488_v25 }
 0x56b   : > { %v6583_v46 = vadd.f32 %v6582_v48, %v6581_v31  ;;  %8556 = vpow2.f32 %v5820_v50  ;;  %v13117_v1 = vadd.f32 %v4478_v41, %v13742_v5  ;;  %v13120_v34 = vadd.f32 %v4479_v44, %v13743_v23 }
 0x56c   : > { %8558 = vpow2.f32 %v5822_v57  ;;  %v13123_v49 = vadd.f32 %v4480_v17, %v13744_v42  ;;  %v13126_v24 = vadd.f32 %v4481_v0, %v13745_v45  ;;  %v13129_v55 = vadd.f32 %v4482_v47, %v13746_v15 }
 0x56d   : > { %v6584_v13 = vrot.slane %v6583_v46, 1  ;;  %8560 = vpow2.f32 %v5824_v12  ;;  %v13132_v14 = vadd.f32 %v4483_v19, %v13747_v59  ;;  %v5197_v56 = vsel %vm2158_vm8, %v13096_v8, -inf }
 0x56e   : > { %8562 = vpow2.f32 %v5826_v9  ;;  %v5832_v62 = vmul.f32 1.442695, %v5489_v16  ;;  %v5198_v41 = vsel %vm2158_vm8, %v13113_v3, -inf  ;;  %vm4184_vm9 = vcmp.gt.f32.partialorder %v12766_v27, 0.0 }
 0x56f   : > { %v13141_v26 = vsel %vm2158_vm8, %v13110_v21, -inf  ;;  %v6585_v30 = vadd.f32 %v6584_v13, %v6583_v46  ;;  %8564 = vpow2.f32 %v5828_v51  ;;  %v5199_v44 = vmax.f32 %v5197_v56, %v5198_v41 }
 0x570   : > { %v8553_v17 = vpop.eup %8552  ;;  %8566 = vpow2.f32 %v5830_v37  ;;  %v5200_v38 = vsel %vm2158_vm8, %v13117_v1, -inf  ;;  %v5202_v10 = vsel %vm2158_vm8, %v13120_v34, -inf  ;;  %v5204_v0 = vsel %vm2158_vm8, %v13123_v49, -inf }
 0x571   : > { %v6985_v58 = vmul.f32 0.6931472, %v8553_v17  ;;  %8568 = vlog2.f32 %v6585_v30  ;;  %v5201_v18 = vmax.f32 %v5199_v44, %v5200_v38  ;;  %v4251_v29 = vmul.f32 0.6931472, %v8547_v22 }
 0x572   : > { %8570 = vpow2.f32 %v5832_v62  ;;  %v5206_v47 = vsel %vm2158_vm8, %v13126_v24, -inf  ;;  %v4257_v4 = vmul.f32 0.6931472, %v8549_v61  ;;  %v4255_v2 = vmul.f32 0.6931472, %v8551_v20 }
 0x573   : > { %v6989_v60 = vadd.f32 %v6985_v58, %v12973_v40  ;;  %v5203_v31 = vmax.f32 %v5201_v18, %v5202_v10  ;;  %v5208_v32 = vsel %vm2158_vm8, %v13129_v55, -inf  ;;  %v4278_v25 = vsel %vm4182_vm6, %v4251_v29, -1e+09 }
 0x574   : > { %v8555_v19 = vpop.eup %8554  ;;  %v5210_v16 = vsel %vm2158_vm8, %v13132_v14, -inf  ;;  %v4302_v22 = vadd.f32 %v4278_v25, %v13665_v6  ;;  %v4281_v7 = vsel %vm4185_vm7, %v4257_v4, -1e+09  ;;  %v4280_v50 = vsel %vm4184_vm9, %v4255_v2, -1e+09 }
 0x575   : > { %v8557_v40 = vpop.eup %8556  ;;  %v6994_v57 = vrot.slane %v6989_v60, 7  ;;  %v5205_v61 = vmax.f32 %v5203_v31, %v5204_v0  ;;  %v13164_v48 = vadd.f32 %v4281_v7, %v13665_v6  ;;  %v13167_v35 = vadd.f32 %v4280_v50, %v13665_v6 }
 0x576   : > { %v8559_v12 = vpop.eup %8558  ;;  %v6358_v20 = vrot.slane %v8557_v40, 7  ;;  %v4470_v9 = vrot.slane %v4302_v22, 1  ;;  %v4471_v51 = vrot.slane %v4302_v22, 2  ;;  %v4472_v37 = vrot.slane %v4302_v22, 3 }
 0x577   : > { %v8561_v46 = vpop.eup %8560  ;;  %v13171_v13 = vsel %vm3384_vm12, %v6994_v57, %v13759_v53  ;;  %v6360_v27 = vrot.slane %v8559_v12, 6  ;;  %v5207_v56 = vmax.f32 %v5205_v61, %v5206_v47  ;;  %v4473_v62 = vrot.slane %v4302_v22, 4 }
 0x578   : > { %v8563_v41 = vpop.eup %8562  ;;  %v6359_v30 = vsel %vm3384_vm12, %v6358_v20, %v8555_v19  ;;  %v6362_v44 = vrot.slane %v8561_v46, 5  ;;  %v4474_v17 = vrot.slane %v4302_v22, 5  ;;  %v4475_v6 = vrot.slane %v4302_v22, 6 }
 0x579   : > { %v8565_v38 = vpop.eup %8564  ;;  %v6361_v10 = vsel %vm3387_vm13, %v6360_v27, %v6359_v30  ;;  %v6364_v0 = vrot.slane %v8563_v41, 4  ;;  %v5209_v58 = vmax.f32 %v5207_v56, %v5208_v32  ;;  %v4476_v18 = vrot.slane %v4302_v22, 7 }
 0x57a   : > { %v8567_v29 = vpop.eup %8566  ;;  %v6363_v4 = vsel %vm3390_vm14, %v6362_v44, %v6361_v10  ;;  %v6366_v2 = vrot.slane %v8565_v38, 3  ;;  %v13177_v60 = vadd.f32 %v4302_v22, %v13740_v28  ;;  %v13180_v47 = vadd.f32 %v4470_v9, %v13741_v39 }
 0x57b   : > { %v8569_v31 = vpop.eup %8568  ;;  %v6365_v25 = vsel %vm3393_vm15, %v6364_v0, %v6363_v4  ;;  %v6368_v19 = vrot.slane %v8567_v29, 2  ;;  %v13183_v7 = vmax.f32 %v5209_v58, %v5210_v16  ;;  %v13186_v50 = vadd.f32 %v4471_v51, %v13742_v5 }
 0x57c   : > { %v8571_v32 = vpop.eup %8570  ;;  %v6649_v40 = vmul.f32 0.6931472, %v8569_v31  ;;  %v6367_v57 = vsel %vm3396_vm0, %v6366_v2, %v6365_v25  ;;  %v13190_v61 = vadd.f32 %v4472_v37, %v13743_v23  ;;  %v13193_v22 = vadd.f32 %v4473_v62, %v13744_v42 }
 0x57d   : > { %v6369_v12 = vsel %vm3399_vm1, %v6368_v19, %v6367_v57  ;;  %v6370_v20 = vrot.slane %v8571_v32, 1  ;;  %v5329_v16 = vrot.slane %v13183_v7, %v13611_v33  ;;  %v13199_v9 = vadd.f32 %v4474_v17, %v13745_v45 }
 0x57e   : > { %v6677_v51 = vadd.f32 %v6649_v40, %v12999_v52  ;;  %v13203_v46 = vadd.f32 %v4475_v6, %v13746_v15  ;;  %v13206_v37 = vadd.f32 %v4476_v18, %v13747_v59  ;;  %v5182_v53 = vsel %vm2158_vm8, %v13177_v60, -inf }
 0x57f   : > { %v6371_v27 = vsel %vm3402_vm2, %v6370_v20, %v6369_v12  ;;  %v5506_v56 = vsub.f32 %v13096_v8, %v5329_v16  ;;  %v5507_v62 = vsub.f32 %v13113_v3, %v5329_v16  ;;  %v5508_v41 = vsub.f32 %v13117_v1, %v5329_v16 }
 0x580   : > { %v13216_v52 = vadd.f32 %v6713_v43, %v6677_v51  ;;  %v6574_v30 = vrot.slane %v6371_v27, 4  ;;  %v5509_v44 = vsub.f32 %v13120_v34, %v5329_v16  ;;  %v5510_v17 = vsub.f32 %v13123_v49, %v5329_v16 }
 0x581   : > { %v5511_v6 = vsub.f32 %v13126_v24, %v5329_v16  ;;  %v5512_v38 = vsub.f32 %v13129_v55, %v5329_v16  ;;  %v5513_v10 = vsub.f32 %v13132_v14, %v5329_v16  ;;  %v5866_v8 = vmul.f32 1.442695, %v5506_v56 }
 0x582   : > { %v13225_v3 = vsel %vm2158_vm8, %v13216_v52, -inf  ;;  %v6575_v1 = vadd.f32 %v6574_v30, %v6371_v27  ;;  %v5868_v0 = vmul.f32 1.442695, %v5507_v62  ;;  %v5870_v43 = vmul.f32 1.442695, %v5508_v41 }
 0x583   : > { %v6801_v58 = vmax.f32 %v13059_v54, %v13225_v3  ;;  %8572 = vpow2.f32 %v5866_v8  ;;  %v5872_v34 = vmul.f32 1.442695, %v5509_v44  ;;  %v5874_v49 = vmul.f32 1.442695, %v5510_v17 }
 0x584   : > { %v6576_v18 = vrot.slane %v6575_v1, 2  ;;  %8574 = vpow2.f32 %v5868_v0  ;;  %v5876_v24 = vmul.f32 1.442695, %v5511_v6  ;;  %v5878_v55 = vmul.f32 1.442695, %v5512_v38 }
 0x585   : > { %8576 = vpow2.f32 %v5870_v43  ;;  %v5880_v14 = vmul.f32 1.442695, %v5513_v10  ;;  %v5183_v29 = vsel %vm2158_vm8, %v13180_v47, -inf  ;;  %v5185_v4 = vsel %vm2158_vm8, %v13186_v50, -inf }
 0x586   : > { %v6577_v2 = vadd.f32 %v6576_v18, %v6575_v1  ;;  %8578 = vpow2.f32 %v5872_v34  ;;  %v5184_v31 = vmax.f32 %v5182_v53, %v5183_v29  ;;  %v5187_v25 = vsel %vm2158_vm8, %v13190_v61, -inf }
 0x587   : > { %8580 = vpow2.f32 %v5874_v49  ;;  %v5189_v19 = vsel %vm2158_vm8, %v13193_v22, -inf  ;;  %v5191_v32 = vsel %vm2158_vm8, %v13199_v9, -inf  ;;  %v5193_v40 = vsel %vm2158_vm8, %v13203_v46, -inf }
 0x588   : > { %v6578_v57 = vrot.slane %v6577_v2, 1  ;;  %8582 = vpow2.f32 %v5876_v24  ;;  %v5186_v12 = vmax.f32 %v5184_v31, %v5185_v4  ;;  %v5195_v20 = vsel %vm2158_vm8, %v13206_v37, -inf }
 0x589   : > { %8584 = vpow2.f32 %v5878_v55  ;;  %v4491_v16 = vrot.slane %v13164_v48, 1  ;;  %v4492_v51 = vrot.slane %v13164_v48, 2  ;;  %v4493_v53 = vrot.slane %v13164_v48, 3 }
 0x58a   : > { %v6579_v27 = vadd.f32 %v6578_v57, %v6577_v2  ;;  %8586 = vpow2.f32 %v5880_v14  ;;  %v5188_v56 = vmax.f32 %v5186_v12, %v5187_v25  ;;  %v4494_v62 = vrot.slane %v13164_v48, 4 }
 0x58b   : > { %v4495_v41 = vrot.slane %v13164_v48, 5  ;;  %v4496_v30 = vrot.slane %v13164_v48, 6  ;;  %v4497_v44 = vrot.slane %v13164_v48, 7  ;;  %v13252_v17 = vadd.f32 %v13164_v48, %v13740_v28 }
 0x58c   : > { %8588 = vlog2.f32 %v6579_v27  ;;  %v5190_v6 = vmax.f32 %v5188_v56, %v5189_v19  ;;  %v13255_v38 = vadd.f32 %v4491_v16, %v13741_v39  ;;  %v13258_v10 = vadd.f32 %v4492_v51, %v13742_v5 }
 0x58d   : > { %v8573_v8 = vpop.eup %8572  ;;  %v13261_v1 = vadd.f32 %v4493_v53, %v13743_v23  ;;  %v13264_v0 = vadd.f32 %v4494_v62, %v13744_v42  ;;  %v13267_v43 = vadd.f32 %v4495_v41, %v13745_v45  ;;  %v13270_v48 = vadd.f32 %v4496_v30, %v13746_v15 }
 0x58e   : > { %v8575_v34 = vpop.eup %8574  ;;  %v5192_v49 = vmax.f32 %v5190_v6, %v5191_v32  ;;  %v13273_v18 = vadd.f32 %v4497_v44, %v13747_v59  ;;  %v5227_v24 = vsel %vm2158_vm8, %v13252_v17, -inf  ;;  %v5228_v55 = vsel %vm2158_vm8, %v13255_v38, -inf }
 0x58f   : > { %v8577_v14 = vpop.eup %8576  ;;  %v6400_v29 = vrot.slane %v8575_v34, 7  ;;  %v5229_v4 = vmax.f32 %v5227_v24, %v5228_v55  ;;  %v5230_v2 = vsel %vm2158_vm8, %v13258_v10, -inf  ;;  %v5232_v31 = vsel %vm2158_vm8, %v13261_v1, -inf }
 0x590   : > { %v8579_v25 = vpop.eup %8578  ;;  %v6402_v19 = vrot.slane %v8577_v14, 6  ;;  %v5194_v32 = vmax.f32 %v5192_v49, %v5193_v40  ;;  %v5234_v57 = vsel %vm2158_vm8, %v13264_v0, -inf  ;;  %v5236_v12 = vsel %vm2158_vm8, %v13267_v43, -inf }
 0x591   : > { %v8581_v16 = vpop.eup %8580  ;;  %v6401_v51 = vsel %vm3384_vm12, %v6400_v29, %v8573_v8  ;;  %v6404_v53 = vrot.slane %v8579_v25, 5  ;;  %v5231_v27 = vmax.f32 %v5229_v4, %v5230_v2  ;;  %v5238_v56 = vsel %vm2158_vm8, %v13270_v48, -inf }
 0x592   : > { %v8583_v62 = vpop.eup %8582  ;;  %v6403_v41 = vsel %vm3387_vm13, %v6402_v19, %v6401_v51  ;;  %v6406_v30 = vrot.slane %v8581_v16, 4  ;;  %v13291_v44 = vmax.f32 %v5194_v32, %v5195_v20  ;;  %v5240_v40 = vsel %vm2158_vm8, %v13273_v18, -inf }
 0x593   : > { %v8585_v6 = vpop.eup %8584  ;;  %v6405_v34 = vsel %vm3390_vm14, %v6404_v53, %v6403_v41  ;;  %v6408_v49 = vrot.slane %v8583_v62, 3  ;;  %v5233_v24 = vmax.f32 %v5231_v27, %v5232_v31  ;;  %v4484_v8 = vrot.slane %v13167_v35, 1 }
 0x594   : > { %v8587_v55 = vpop.eup %8586  ;;  %v6407_v14 = vsel %vm3393_vm15, %v6406_v30, %v6405_v34  ;;  %v6410_v29 = vrot.slane %v8585_v6, 2  ;;  %v5325_v4 = vrot.slane %v13291_v44, %v13611_v33  ;;  %v4485_v20 = vrot.slane %v13167_v35, 2 }
 0x595   : > { %v6409_v2 = vsel %vm3396_vm0, %v6408_v49, %v6407_v14  ;;  %v6412_v25 = vrot.slane %v8587_v55, 1  ;;  %v5235_v19 = vmax.f32 %v5233_v24, %v5234_v57  ;;  %v4486_v32 = vrot.slane %v13167_v35, 3 }
 0x596   : > { %v8589_v16 = vpop.eup %8588  ;;  %v6411_v31 = vsel %vm3399_vm1, %v6410_v29, %v6409_v2  ;;  %v5498_v51 = vsub.f32 %v13177_v60, %v5325_v4  ;;  %v5499_v53 = vsub.f32 %v13180_v47, %v5325_v4  ;;  %v5500_v27 = vsub.f32 %v13186_v50, %v5325_v4 }
 0x597   : > { %v6647_v62 = vmul.f32 0.6931472, %v8589_v16  ;;  %v6413_v41 = vsel %vm3402_vm2, %v6412_v25, %v6411_v31  ;;  %v5501_v30 = vsub.f32 %v13190_v61, %v5325_v4  ;;  %v5502_v6 = vsub.f32 %v13193_v22, %v5325_v4 }
 0x598   : > { %v6592_v34 = vrot.slane %v6413_v41, 4  ;;  %v5503_v57 = vsub.f32 %v13199_v9, %v5325_v4  ;;  %v5504_v49 = vsub.f32 %v13203_v46, %v5325_v4  ;;  %v5505_v24 = vsub.f32 %v13206_v37, %v5325_v4 }
 0x599   : > { %v6676_v60 = vadd.f32 %v6647_v62, %v13082_v11  ;;  %v5850_v55 = vmul.f32 1.442695, %v5498_v51  ;;  %v5852_v47 = vmul.f32 1.442695, %v5499_v53  ;;  %v5854_v14 = vmul.f32 1.442695, %v5500_v27 }
 0x59a   : > { %v6593_v50 = vadd.f32 %v6592_v34, %v6413_v41  ;;  %v5856_v29 = vmul.f32 1.442695, %v5501_v30  ;;  %v5858_v2 = vmul.f32 1.442695, %v5502_v6  ;;  %v5860_v25 = vmul.f32 1.442695, %v5503_v57 }
 0x59b   : > { %v13760_v61 = vrot.slane %v13756_v36, 2  ;;  %8590 = vpow2.f32 %v5850_v55  ;;  %v5862_v22 = vmul.f32 1.442695, %v5504_v49  ;;  %v5864_v9 = vmul.f32 1.442695, %v5505_v24 }
 0x59c   : > { %v6594_v31 = vrot.slane %v6593_v50, 2  ;;  %8592 = vpow2.f32 %v5852_v47  ;;  %v5237_v46 = vmax.f32 %v5235_v19, %v5236_v12  ;;  %v4487_v37 = vrot.slane %v13167_v35, 4 }
 0x59d   : > { %v13316_v16 = vadd.f32 %v13760_v61, %v6676_v60  ;;  %8594 = vpow2.f32 %v5854_v14  ;;  %v4488_v4 = vrot.slane %v13167_v35, 5  ;;  %v4489_v51 = vrot.slane %v13167_v35, 6 }
 0x59e   : > { %v6595_v27 = vadd.f32 %v6594_v31, %v6593_v50  ;;  %8596 = vpow2.f32 %v5856_v29  ;;  %v5239_v62 = vmax.f32 %v5237_v46, %v5238_v56  ;;  %v4490_v12 = vrot.slane %v13167_v35, 7 }
 0x59f   : > { %v13321_v11 = vsel %vm2158_vm8, %v13316_v16, -inf  ;;  %8598 = vpow2.f32 %v5858_v2  ;;  %v13330_v19 = vadd.f32 %v13167_v35, %v13740_v28  ;;  %v13333_v41 = vadd.f32 %v4484_v8, %v13741_v39 }
 0x5a0   : > { %v6799_v53 = vmax.f32 %v13141_v26, %v13321_v11  ;;  %v6596_v30 = vrot.slane %v6595_v27, 1  ;;  %8600 = vpow2.f32 %v5860_v25  ;;  %v13335_v6 = vmax.f32 %v5239_v62, %v5240_v40 }
 0x5a1   : > { %v13338_v34 = vadd.f32 %v4485_v20, %v13742_v5  ;;  %8602 = vpow2.f32 %v5862_v22  ;;  %v13341_v56 = vadd.f32 %v4486_v32, %v13743_v23  ;;  %v13344_v57 = vadd.f32 %v4487_v37, %v13744_v42 }
 0x5a2   : > { %v13347_v28 = vadd.f32 %v4488_v4, %v13745_v45  ;;  %v6597_v35 = vadd.f32 %v6596_v30, %v6595_v27  ;;  %8604 = vpow2.f32 %v5864_v9  ;;  %v5337_v39 = vrot.slane %v13335_v6, %v13611_v33 }
 0x5a3   : > { %v13352_v40 = vadd.f32 %v4489_v51, %v13746_v15  ;;  %v13355_v5 = vadd.f32 %v4490_v12, %v13747_v59  ;;  %v5212_v23 = vsel %vm2158_vm8, %v13330_v19, -inf  ;;  %v5213_v42 = vsel %vm2158_vm8, %v13333_v41, -inf }
 0x5a4   : > { %v5215_v45 = vsel %vm2158_vm8, %v13338_v34, -inf  ;;  %8606 = vlog2.f32 %v6597_v35  ;;  %v5522_v8 = vsub.f32 %v13252_v17, %v5337_v39  ;;  %v5523_v20 = vsub.f32 %v13255_v38, %v5337_v39 }
 0x5a5   : > { %v5524_v15 = vsub.f32 %v13258_v10, %v5337_v39  ;;  %v8591_v32 = vpop.eup %8590  ;;  %v5525_v59 = vsub.f32 %v13261_v1, %v5337_v39  ;;  %v5526_v49 = vsub.f32 %v13264_v0, %v5337_v39  ;;  %v5527_v24 = vsub.f32 %v13267_v43, %v5337_v39 }
 0x5a6   : > { %v5528_v60 = vsub.f32 %v13270_v48, %v5337_v39  ;;  %v8593_v55 = vpop.eup %8592  ;;  %v5529_v47 = vsub.f32 %v13273_v18, %v5337_v39  ;;  %v5898_v14 = vmul.f32 1.442695, %v5522_v8  ;;  %v5900_v50 = vmul.f32 1.442695, %v5523_v20 }
 0x5a7   : > { %v5902_v29 = vmul.f32 1.442695, %v5524_v15  ;;  %v8595_v17 = vpop.eup %8594  ;;  %v6386_v2 = vrot.slane %v8593_v55, 7  ;;  %v5904_v38 = vmul.f32 1.442695, %v5525_v59  ;;  %v5214_v10 = vmax.f32 %v5212_v23, %v5213_v42 }
 0x5a8   : > { %v5906_v25 = vmul.f32 1.442695, %v5526_v49  ;;  %v8597_v61 = vpop.eup %8596  ;;  %v6388_v22 = vrot.slane %v8595_v17, 6  ;;  %8608 = vpow2.f32 %v5898_v14  ;;  %v5908_v1 = vmul.f32 1.442695, %v5527_v24 }
 0x5a9   : > { %v5910_v0 = vmul.f32 1.442695, %v5528_v60  ;;  %v8599_v9 = vpop.eup %8598  ;;  %v6387_v43 = vsel %vm3384_vm12, %v6386_v2, %v8591_v32  ;;  %v6390_v48 = vrot.slane %v8597_v61, 5  ;;  %8610 = vpow2.f32 %v5900_v50 }
 0x5aa   : > { %v5912_v31 = vmul.f32 1.442695, %v5529_v47  ;;  %v8601_v18 = vpop.eup %8600  ;;  %v6389_v46 = vsel %vm3387_vm13, %v6388_v22, %v6387_v43  ;;  %v6392_v37 = vrot.slane %v8599_v9, 4  ;;  %8612 = vpow2.f32 %v5902_v29 }
 0x5ab   : > { %v5216_v4 = vmax.f32 %v5214_v10, %v5215_v45  ;;  %v8603_v51 = vpop.eup %8602  ;;  %v6391_v27 = vsel %vm3390_vm14, %v6390_v48, %v6389_v46  ;;  %v6394_v62 = vrot.slane %v8601_v18, 3  ;;  %8614 = vpow2.f32 %v5904_v38 }
 0x5ac   : > { %v5217_v12 = vsel %vm2158_vm8, %v13341_v56, -inf  ;;  %v8605_v30 = vpop.eup %8604  ;;  %v6393_v35 = vsel %vm3393_vm15, %v6392_v37, %v6391_v27  ;;  %v6396_v39 = vrot.slane %v8603_v51, 2  ;;  %8616 = vpow2.f32 %v5906_v25 }
 0x5ad   : > { %v5218_v23 = vmax.f32 %v5216_v4, %v5217_v12  ;;  %v6395_v42 = vsel %vm3396_vm0, %v6394_v62, %v6393_v35  ;;  %v6398_v8 = vrot.slane %v8605_v30, 1  ;;  %8618 = vpow2.f32 %v5908_v1 }
 0x5ae   : > { %v5219_v45 = vsel %vm2158_vm8, %v13344_v57, -inf  ;;  %v8607_v20 = vpop.eup %8606  ;;  %v6397_v15 = vsel %vm3399_vm1, %v6396_v39, %v6395_v42  ;;  %8620 = vpow2.f32 %v5910_v0  ;;  %v5221_v24 = vsel %vm2158_vm8, %v13347_v28, -inf }
 0x5af   : > { %v5220_v32 = vmax.f32 %v5218_v23, %v5219_v45  ;;  %v6653_v59 = vmul.f32 0.6931472, %v8607_v20  ;;  %v6399_v49 = vsel %vm3402_vm2, %v6398_v8, %v6397_v15  ;;  %8622 = vpow2.f32 %v5912_v31 }
 0x5b0   : > { %v6586_v60 = vrot.slane %v6399_v49, 4  ;;  %v6715_v47 = vrot.slane %v13756_v36, 5  ;;  %v5223_v50 = vsel %vm2158_vm8, %v13352_v40, -inf  ;;  %v5225_v10 = vsel %vm2158_vm8, %v13355_v5, -inf }
 0x5b1   : > { %v5222_v55 = vmax.f32 %v5220_v32, %v5221_v24  ;;  %v6679_v14 = vadd.f32 %v6653_v59, %v13183_v7 }
 0x5b2   : > { %v8609_v29 = vpop.eup %8608  ;;  %v6587_v17 = vadd.f32 %v6586_v60, %v6399_v49 }
 0x5b3   : > { %v5224_v2 = vmax.f32 %v5222_v55, %v5223_v50  ;;  %v8611_v38 = vpop.eup %8610  ;;  %v13388_v25 = vadd.f32 %v6715_v47, %v6679_v14 }
 0x5b4   : > { %v8613_v61 = vpop.eup %8612  ;;  %v6588_v22 = vrot.slane %v6587_v17, 2  ;;  %v6428_v1 = vrot.slane %v8611_v38, 7 }
 0x5b5   : > { %v13392_v0 = vmax.f32 %v5224_v2, %v5225_v10  ;;  %v8615_v9 = vpop.eup %8614  ;;  %v6804_v7 = vsel %vm2158_vm8, %v13388_v25, -inf  ;;  %v6430_v43 = vrot.slane %v8613_v61, 6 }
 0x5b6   : > { %v8617_v48 = vpop.eup %8616  ;;  %v13399_v31 = vmax.f32 %v6801_v58, %v6804_v7  ;;  %v6589_v18 = vadd.f32 %v6588_v22, %v6587_v17  ;;  %v6429_v46 = vsel %vm3384_vm12, %v6428_v1, %v8609_v29  ;;  %v6432_v37 = vrot.slane %v8615_v9, 5 }
 0x5b7   : > { %v8619_v4 = vpop.eup %8618  ;;  %v6431_v51 = vsel %vm3387_vm13, %v6430_v43, %v6429_v46  ;;  %v6434_v27 = vrot.slane %v8617_v48, 4  ;;  %v5333_v62 = vrot.slane %v13392_v0, %v13611_v33  ;;  %v6714_v1 = vrot.slane %v13756_v36, 4 }
 0x5b8   : > { %v8621_v12 = vpop.eup %8620  ;;  %v6590_v30 = vrot.slane %v6589_v18, 1  ;;  %v6433_v35 = vsel %vm3390_vm14, %v6432_v37, %v6431_v51  ;;  %v6436_v39 = vrot.slane %v8619_v4, 3 }
 0x5b9   : > { %v8623_v23 = vpop.eup %8622  ;;  %v6435_v54 = vsel %vm3393_vm15, %v6434_v27, %v6433_v35  ;;  %v6438_v3 = vrot.slane %v8621_v12, 2  ;;  %v5514_v58 = vsub.f32 %v13330_v19, %v5333_v62  ;;  %v5515_v42 = vsub.f32 %v13333_v41, %v5333_v62 }
 0x5ba   : > { %v6591_v8 = vadd.f32 %v6590_v30, %v6589_v18  ;;  %v6437_v45 = vsel %vm3396_vm0, %v6436_v39, %v6435_v54  ;;  %v6440_v20 = vrot.slane %v8623_v23, 1  ;;  %v5516_v15 = vsub.f32 %v13338_v34, %v5333_v62 }
 0x5bb   : > { %v6439_v32 = vsel %vm3399_vm1, %v6438_v3, %v6437_v45  ;;  %v5517_v59 = vsub.f32 %v13341_v56, %v5333_v62  ;;  %v5518_v49 = vsub.f32 %v13344_v57, %v5333_v62  ;;  %v5519_v24 = vsub.f32 %v13347_v28, %v5333_v62 }
 0x5bc   : > { %8624 = vlog2.f32 %v6591_v8  ;;  %v6441_v60 = vsel %vm3402_vm2, %v6440_v20, %v6439_v32  ;;  %v5520_v19 = vsub.f32 %v13352_v40, %v5333_v62  ;;  %v5521_v41 = vsub.f32 %v13355_v5, %v5333_v62 }
 0x5bd   : > { %v6604_v55 = vrot.slane %v6441_v60, 4  ;;  %v5882_v47 = vmul.f32 1.442695, %v5514_v58  ;;  %v5884_v14 = vmul.f32 1.442695, %v5515_v42  ;;  %v6717_v32 = vrot.slane %v13756_v36, 7 }
 0x5be   : > { %v5886_v50 = vmul.f32 1.442695, %v5516_v15  ;;  %v5888_v34 = vmul.f32 1.442695, %v5517_v59  ;;  %v5890_v17 = vmul.f32 1.442695, %v5518_v49 }
 0x5bf   : > { %v6605_v29 = vadd.f32 %v6604_v55, %v6441_v60  ;;  %8626 = vpow2.f32 %v5882_v47  ;;  %v5892_v56 = vmul.f32 1.442695, %v5519_v24  ;;  %v5894_v28 = vmul.f32 1.442695, %v5520_v19 }
 0x5c0   : > { %8628 = vpow2.f32 %v5884_v14  ;;  %v5896_v2 = vmul.f32 1.442695, %v5521_v41 }
 0x5c1   : > { %v6606_v57 = vrot.slane %v6605_v29, 2  ;;  %8630 = vpow2.f32 %v5886_v50 }
 0x5c2   : > { %8632 = vpow2.f32 %v5888_v34 }
 0x5c3   : > { %v6607_v38 = vadd.f32 %v6606_v57, %v6605_v29  ;;  %8634 = vpow2.f32 %v5890_v17  ;;  %v6716_v29 = vrot.slane %v13756_v36, 6 }
 0x5c4   : > { %8636 = vpow2.f32 %v5892_v56 }
 0x5c5   : > { %v6608_v40 = vrot.slane %v6607_v38, 1  ;;  %8638 = vpow2.f32 %v5894_v28 }
 0x5c6   : > { %v8625_v5 = vpop.eup %8624  ;;  %8640 = vpow2.f32 %v5896_v2 }
 0x5c7   : > { %v6651_v10 = vmul.f32 0.6931472, %v8625_v5  ;;  %v6609_v61 = vadd.f32 %v6608_v40, %v6607_v38 }
 0x5c9   : > { %v8627_v22 = vpop.eup %8626  ;;  %v6678_v9 = vadd.f32 %v6651_v10, %v13291_v44  ;;  %8642 = vlog2.f32 %v6609_v61 }
 0x5ca   : > { %v8629_v7 = vpop.eup %8628 }
 0x5cb   : > { %v8631_v43 = vpop.eup %8630  ;;  %v6762_v48 = vadd.f32 %v6714_v1, %v6678_v9  ;;  %v6414_v18 = vrot.slane %v8629_v7, 7 }
 0x5cc   : > { %v8633_v46 = vpop.eup %8632  ;;  %v6416_v37 = vrot.slane %v8631_v43, 6 }
 0x5cd   : > { %v8635_v4 = vpop.eup %8634  ;;  %v6802_v51 = vsel %vm2158_vm8, %v6762_v48, -inf  ;;  %v6415_v27 = vsel %vm3384_vm12, %v6414_v18, %v8627_v22  ;;  %v6418_v62 = vrot.slane %v8633_v46, 5 }
 0x5ce   : > { %v8637_v12 = vpop.eup %8636  ;;  %v6803_v30 = vmax.f32 %v6799_v53, %v6802_v51  ;;  %v6417_v44 = vsel %vm3387_vm13, %v6416_v37, %v6415_v27  ;;  %v6420_v35 = vrot.slane %v8635_v4, 4 }
 0x5cf   : > { %v8639_v39 = vpop.eup %8638  ;;  %v6419_v23 = vsel %vm3390_vm14, %v6418_v62, %v6417_v44  ;;  %v6422_v54 = vrot.slane %v8637_v12, 3 }
 0x5d0   : > { %v8641_v3 = vpop.eup %8640  ;;  %v6421_v58 = vsel %vm3393_vm15, %v6420_v35, %v6419_v23  ;;  %v6424_v42 = vrot.slane %v8639_v39, 2 }
 0x5d1   : > { %v6423_v8 = vsel %vm3396_vm0, %v6422_v54, %v6421_v58  ;;  %v6426_v45 = vrot.slane %v8641_v3, 1 }
 0x5d2   : > { %v6425_v20 = vsel %vm3399_vm1, %v6424_v42, %v6423_v8 }
 0x5d3   : > { %v8643_v15 = vpop.eup %8642  ;;  %v6427_v26 = vsel %vm3402_vm2, %v6426_v45, %v6425_v20 }
 0x5d4   : > { %v6657_v11 = vmul.f32 0.6931472, %v8643_v15  ;;  %v6598_v53 = vrot.slane %v6427_v26, 4 }
 0x5d6   : > { %v6681_v59 = vadd.f32 %v6657_v11, %v13335_v6  ;;  %v6599_v49 = vadd.f32 %v6598_v53, %v6427_v26 }
 0x5d8   : > { %v6765_v24 = vadd.f32 %v6717_v32, %v6681_v59  ;;  %v6600_v60 = vrot.slane %v6599_v49, 2 }
 0x5da   : > { %v6808_v19 = vsel %vm2158_vm8, %v6765_v24, -inf  ;;  %v6601_v41 = vadd.f32 %v6600_v60, %v6599_v49 }
 0x5db   : > { %v6809_v55 = vmax.f32 %v13399_v31, %v6808_v19 }
 0x5dc   : > { %v6602_v47 = vrot.slane %v6601_v41, 1 }
 0x5de   : > { %v6603_v14 = vadd.f32 %v6602_v47, %v6601_v41 }
 0x5e0   : > { %8644 = vlog2.f32 %v6603_v14 }
 0x5ea   : > { %v8645_v50 = vpop.eup %8644 }
 0x5eb   : > { %v6655_v34 = vmul.f32 0.6931472, %v8645_v50 }
 0x5ed   : > { %v6680_v17 = vadd.f32 %v6655_v34, %v13392_v0 }
 0x5ef   : > { %v6764_v56 = vadd.f32 %v6716_v29, %v6680_v17 }
 0x5f1   : > { %v6806_v6 = vsel %vm2158_vm8, %v6764_v56, -inf }
 0x5f2   : > { %v6807_v57 = vmax.f32 %v6803_v30, %v6806_v6 }
 0x5f4   : > { %v6810_v28 = vmax.f32 %v6807_v57, %v6809_v55 }
 0x5f6   : > { %v6822_v2 = vrot.slane %v6810_v28, %v13611_v33 }
 0x5f8   : > { %v6839_v38 = vsub.f32 %v13110_v21, %v6822_v2  ;;  %v6840_v31 = vsub.f32 %v13038_v63, %v6822_v2  ;;  %v6841_v40 = vsub.f32 %v13316_v16, %v6822_v2  ;;  %v6842_v5 = vsub.f32 %v13216_v52, %v6822_v2 }
 0x5f9   : > { %v6843_v10 = vsub.f32 %v6762_v48, %v6822_v2  ;;  %v6844_v36 = vsub.f32 %v13388_v25, %v6822_v2  ;;  %v6845_v61 = vsub.f32 %v6764_v56, %v6822_v2  ;;  %v6846_v0 = vsub.f32 %v6765_v24, %v6822_v2 }
 0x5fa   : > { %v6879_v22 = vmul.f32 1.442695, %v6839_v38  ;;  %v6881_v1 = vmul.f32 1.442695, %v6840_v31  ;;  %v6883_v9 = vmul.f32 1.442695, %v6841_v40 }
 0x5fb   : > { %v6885_v7 = vmul.f32 1.442695, %v6842_v5  ;;  %v6887_v43 = vmul.f32 1.442695, %v6843_v10  ;;  %v6889_v33 = vmul.f32 1.442695, %v6844_v36 }
 0x5fc   : > { %8646 = vpow2.f32 %v6879_v22  ;;  %v6891_v21 = vmul.f32 1.442695, %v6845_v61  ;;  %v6893_v63 = vmul.f32 1.442695, %v6846_v0 }
 0x5fd   : > { %8648 = vpow2.f32 %v6881_v1 }
 0x5fe   : > { %8650 = vpow2.f32 %v6883_v9 }
 0x5ff   : > { %8652 = vpow2.f32 %v6885_v7 }
 0x600   : > { %8654 = vpow2.f32 %v6887_v43 }
 0x601   : > { %8656 = vpow2.f32 %v6889_v33 }
 0x602   : > { %8658 = vpow2.f32 %v6891_v21 }
 0x603   : > { %8660 = vpow2.f32 %v6893_v63 }
 0x606   : > { %v8647_v52 = vpop.eup %8646 }
 0x607   : > { %v8649_v16 = vpop.eup %8648 }
 0x608   : > { %v8651_v25 = vpop.eup %8650  ;;  %v6947_v48 = vrot.slane %v8649_v16, 7 }
 0x609   : > { %v8653_v18 = vpop.eup %8652  ;;  %v6949_v46 = vrot.slane %v8651_v25, 6 }
 0x60a   : > { %v8655_v37 = vpop.eup %8654  ;;  %v6948_v4 = vsel %vm3384_vm12, %v6947_v48, %v8647_v52  ;;  %v6951_v51 = vrot.slane %v8653_v18, 5 }
 0x60b   : > { %v8657_v27 = vpop.eup %8656  ;;  %v6950_v62 = vsel %vm3387_vm13, %v6949_v46, %v6948_v4  ;;  %v6953_v12 = vrot.slane %v8655_v37, 4 }
 0x60c   : > { %v8659_v30 = vpop.eup %8658  ;;  %v6952_v44 = vsel %vm3390_vm14, %v6951_v51, %v6950_v62  ;;  %v6955_v35 = vrot.slane %v8657_v27, 3 }
 0x60d   : > { %v8661_v39 = vpop.eup %8660  ;;  %v6954_v23 = vsel %vm3393_vm15, %v6953_v12, %v6952_v44  ;;  %v6957_v54 = vrot.slane %v8659_v30, 2 }
 0x60e   : > { %v6956_v3 = vsel %vm3396_vm0, %v6955_v35, %v6954_v23  ;;  %v6959_v58 = vrot.slane %v8661_v39, 1 }
 0x60f   : > { %v6958_v42 = vsel %vm3399_vm1, %v6957_v54, %v6956_v3 }
 0x610   : > { %v6960_v8 = vsel %vm3402_vm2, %v6959_v58, %v6958_v42 }
 0x611   : > { %v6976_v45 = vrot.slane %v6960_v8, 4 }
 0x613   : > { %v6977_v20 = vadd.f32 %v6976_v45, %v6960_v8 }
 0x615   : > { %v6978_v15 = vrot.slane %v6977_v20, 2 }
 0x617   : > { %v6979_v26 = vadd.f32 %v6978_v15, %v6977_v20 }
 0x619   : > { %v6980_v11 = vrot.slane %v6979_v26, 1 }
 0x61b   : > { %v6981_v53 = vadd.f32 %v6980_v11, %v6979_v26 }
 0x61d   : > { %8662 = vlog2.f32 %v6981_v53 }
 0x627   : > { %v8663_v32 = vpop.eup %8662 }
 0x628   : > { %v6987_v59 = vmul.f32 0.6931472, %v8663_v32 }
 0x62a   : > { %v6990_v49 = vadd.f32 %v6987_v59, %v6810_v28 }
 0x62c   : > { %v6996_v24 = vrot.slane %v6990_v49, 6 }
 0x62e   : > { %v6997_v60 = vsel %vm3387_vm13, %v6996_v24, %v13171_v13 }
 0x62f   : > { %6999 = vst [vmem:[%s307_s14] sm:$0x7] %v6997_v60 }
 0x630 PF: > { %s14_s17 = sadd.s32 1, %s8686_s17   ;;  %s13761_s15 = smov %s8682_s16 }
 0x631   : > { %p11_p5 = scmp.ge.s32.totalorder %s14_s17, 4   ;;  %s13762_s16 = smov %s13764_s18 }
 0x633   :  { %13 = sbr.rel (!%p11_p5) target bundleno = 2 (0x2), region = 77 }

</bundles_post_ra>
